<compile_context>
chip_gen: v7x
topology: tpu7x:2x2x1
jax: 0.10.0
libtpu: 0.0.40
codegen_flags: <defaults>
</compile_context>

<pallas_src>
import functools

import jax
import jax.numpy as jnp
from jax import lax
from jax.experimental import pallas as pl
from jax.experimental.pallas import tpu as pltpu


def _vmem_limit_bytes():
    """Per-generation scoped-VMEM budget: ~3/4 of physical, capped at 100 MiB.
    v5e/v6e (128 MiB) -> 96 MiB; v7x (64 MiB per TC) -> 48 MiB."""
    try:
        cap = pltpu.get_tpu_info().vmem_capacity_bytes
        return min(int(cap * 3 // 4), 100 * 1024 * 1024)
    except Exception:
        return 48 * 1024 * 1024


def _pick_block_b(B, P, block_b=None):
    """Batch elements per grid step: target ~256 matmul rows, but keep the
    grid >= 2 steps when B >= 2 so v7x's two TensorCores both get work."""
    if block_b is None:
        block_b = max(1, min(B, 256 // max(P, 1)))
    if B >= 2:
        block_b = min(block_b, max(1, B // 2))
    block_b = max(1, min(B, block_b))
    while B % block_b:
        block_b -= 1
    return block_b


# ----------------------------------------------------------------------------
# Fused kernel: 4 DynamicEdgeConv layers + lin1 + global max/mean pool.
# ----------------------------------------------------------------------------
def generator_kernel(pos_ref,
                     w1_ref, b1_ref, w2_ref, b2_ref, w3_ref, b3_ref,
                     w4_ref, b4_ref,
                     wl1_ref, wl2_ref, wl3_ref, wl4_ref, bl_ref,
                     o_ref, *, k):
    pos = pos_ref[...].astype(jnp.float32)                    # [Bt, P, 3]
    Bt, P, _ = pos.shape
    Fh = bl_ref.shape[-1]

    # Neighbor-index iota, broadcast over the batch block (saves (Bt-1)*P^2*4 B).
    col = lax.broadcasted_iota(jnp.int32, (1, P, P), 2)

    def edge_conv(x, w_cat, bias):
        """x: [Bt, P, C] f32; w_cat: [C, 2F] (cols [0:F]=w1^T on x_i,
        cols [F:2F]=w2^T on x_j - x_i); bias: [1, F].
        out_i = ReLU(base_i + max_{j in kNN(i)} c_j), a = x w1, c = x w2,
        base = a - c + b  (exact rewrite of max_j ReLU(x_i w1 + (x_j-x_i) w2 + b))."""
        Btc, Pc, C = x.shape
        F = bias.shape[-1]

        # Fused feature matmul, flattened over (Bt, P) for MXU occupancy.
        ac = jnp.dot(x.reshape(Btc * Pc, C), w_cat,
                     preferred_element_type=jnp.float32)       # [Bt*P, 2F]
        a = ac[:, :F].reshape(Btc, Pc, F)
        c = ac[:, F:].reshape(Btc, Pc, F)
        base = a - c + bias

        # Pairwise squared distances via the Gram matrix (MXU), f32 for stable
        # neighbor selection.
        g = jnp.einsum('bpc,bqc->bpq', x, x,
                       preferred_element_type=jnp.float32)     # [Bt, P, P]
        n2 = jnp.sum(x * x, axis=2)                            # [Bt, P]
        d2 = jnp.maximum(n2[:, :, None] + n2[:, None, :] - 2.0 * g, 0.0)

        # bf16 operands for the dominant pick matmuls (one-hot is exact in bf16,
        # c rounded once); accumulation stays f32 via preferred_element_type.
        c_bf = c.astype(jnp.bfloat16)

        def knn_step(carry):
            work, m = carry
            # Smallest remaining distance per row, ties broken to smallest index
            # (kept as two reduces: exact one-pick-per-row even for duplicated /
            #  zero-clamped distances).
            row_min = jnp.min(work, axis=2, keepdims=True)     # [Bt, P, 1]
            is_min = work <= row_min
            cand = jnp.where(is_min, col, P)
            first = jnp.min(cand, axis=2, keepdims=True)
            pick = col == first                                # one-hot per row
            pick_bf = pick.astype(jnp.float32).astype(jnp.bfloat16)
            picked_c = jnp.einsum('bij,bjf->bif', pick_bf, c_bf,
                                  preferred_element_type=jnp.float32)
            return jnp.where(pick, jnp.inf, work), jnp.maximum(m, picked_c)

        work = d2
        m = jnp.full((Btc, Pc, F), -jnp.inf, dtype=jnp.float32)
        if k <= 32:
            # Fully unrolled: lets the scheduler overlap step t's pick-matmul
            # (MXU) with step t+1's reduces (XLU) / work-update (VPU).
            for _ in range(k):
                work, m = knn_step((work, m))
        else:
            work, m = lax.fori_loop(0, k, lambda _, cr: knn_step(cr), (work, m))

        return jnp.maximum(base + m, 0.0)                      # Linear+ReLU (BN folded)

    x1 = edge_conv(pos, w1_ref[...], b1_ref[...])              # [Bt, P, 64]
    x2 = edge_conv(x1, w2_ref[...], b2_ref[...])               # [Bt, P, 64]
    x3 = edge_conv(x2, w3_ref[...], b3_ref[...])               # [Bt, P, 128]
    x4 = edge_conv(x3, w4_ref[...], b4_ref[...])               # [Bt, P, 256]

    # lin1 (Linear + ReLU, BN folded) with its weight pre-split over the four
    # conv outputs -- no [Bt, P, 512] concat is ever formed.
    def part(x, w_ref):
        return jnp.dot(x.reshape(Bt * P, x.shape[2]), w_ref[...],
                       preferred_element_type=jnp.float32)

    h = (part(x1, wl1_ref) + part(x2, wl2_ref)
         + part(x3, wl3_ref) + part(x4, wl4_ref) + bl_ref[...])
    h = jnp.maximum(h, 0.0).reshape(Bt, P, Fh)

    # Global max / mean pool over the points; lane offsets 0 and Fh are
    # multiples of 128 for Fh = 1024 -> lane-dense stores.
    o_ref[:, :, 0:Fh] = jnp.max(h, axis=1, keepdims=True)
    o_ref[:, :, Fh:2 * Fh] = jnp.sum(h, axis=1, keepdims=True) * (1.0 / P)


# ----------------------------------------------------------------------------
# Wrapper: weight preprocessing + pallas_call
# ----------------------------------------------------------------------------
def _conv_weight(w, b):
    """w: [F, 2C] (PyTorch Linear layout) -> w_cat [C, 2F], bias [1, F]."""
    F, two_c = w.shape
    C = two_c // 2
    w_cat = jnp.concatenate(
        [jnp.transpose(w[:, :C]), jnp.transpose(w[:, C:])], axis=1
    ).astype(jnp.float32)
    return w_cat, b.reshape(1, F).astype(jnp.float32)


def net_forward(pos, params, k, block_b=None):
    """pos: [B, P, 3] -> [B, 2*feature_num] = [max_pool | mean_pool]."""
    B, P, Cin = pos.shape
    assert 1 <= k <= P

    w1, b1 = _conv_weight(*params["conv1"])
    w2, b2 = _conv_weight(*params["conv2"])
    w3, b3 = _conv_weight(*params["conv3"])
    w4, b4 = _conv_weight(*params["conv4"])

    wl, bl = params["lin1"]                                    # [Fh, 512], [Fh]
    Fh = wl.shape[0]
    splits = [(0, 64), (64, 128), (128, 256), (256, 512)]
    wls = [jnp.transpose(wl[:, lo:hi]).astype(jnp.float32) for lo, hi in splits]
    bl2 = bl.reshape(1, Fh).astype(jnp.float32)

    conv_ws = [w1, b1, w2, b2, w3, b3, w4, b4]
    lin_ws = wls + [bl2]

    bt = _pick_block_b(B, P, block_b)
    kernel = functools.partial(generator_kernel, k=k)

    in_specs = [pl.BlockSpec((bt, P, Cin), lambda bi: (bi, 0, 0))]
    in_specs += [pl.BlockSpec(w.shape, lambda bi: (0, 0)) for w in conv_ws + lin_ws]

    out = pl.pallas_call(
        kernel,
        # Keep a size-1 middle dim so the output block's trailing dims match
        # the full array dims for any bt; reshape away outside.
        out_shape=jax.ShapeDtypeStruct((B, 1, 2 * Fh), jnp.float32),
        grid=(B // bt,),
        in_specs=in_specs,
        out_specs=pl.BlockSpec((bt, 1, 2 * Fh), lambda bi: (bi, 0, 0)),
        compiler_params=pltpu.CompilerParams(
            dimension_semantics=("parallel",),
            vmem_limit_bytes=_vmem_limit_bytes()),
    )(pos, *conv_ws, *lin_ws)
    return out.reshape(B, 2 * Fh)


# ----------------------------------------------------------------------------
# Parameter init (deterministic, PyTorch Linear layout: W [out, in], b [out])
# ----------------------------------------------------------------------------
def init_linear(key, in_dim, out_dim):
    kw, kb = jax.random.split(key)
    scale = 1.0 / jnp.sqrt(jnp.float32(in_dim))
    w = jax.random.uniform(kw, (out_dim, in_dim), jnp.float32, -scale, scale)
    b = jax.random.uniform(kb, (out_dim,), jnp.float32, -scale, scale)
    return w, b


def init_params(key, feature_num):
    keys = jax.random.split(key, 5)
    return {
        "conv1": init_linear(keys[0], 2 * 3, 64),
        "conv2": init_linear(keys[1], 2 * 64, 64),
        "conv3": init_linear(keys[2], 2 * 64, 128),
        "conv4": init_linear(keys[3], 2 * 128, 256),
        "lin1": init_linear(keys[4], 64 + 64 + 128 + 256, feature_num),
    }


if __name__ == "__main__":
    B, P, K, FEAT = 2, 32, 8, 1024
    key = jax.random.PRNGKey(0)
    k_pos, k_par = jax.random.split(key)
    pos = jax.random.normal(k_pos, (B, P, 3), jnp.float32)
    params = init_params(k_par, FEAT)

    out = net_forward(pos, params, K)
    out = jax.block_until_ready(out)
    assert out.shape == (B, 2 * FEAT)
    assert bool(jnp.all(jnp.isfinite(out)))
    print("KERNEL_OK")
</pallas_src>

<mosaic_0001>
module attributes {stable_mosaic.version = 11 : i64} {
  func.func @generator_kernel(%arg0: i32, %arg1: memref<1x32x3xf32, #tpu.memory_space<vmem>>, %arg2: memref<3x128xf32, #tpu.memory_space<vmem>>, %arg3: memref<1x64xf32, #tpu.memory_space<vmem>>, %arg4: memref<64x128xf32, #tpu.memory_space<vmem>>, %arg5: memref<1x64xf32, #tpu.memory_space<vmem>>, %arg6: memref<64x256xf32, #tpu.memory_space<vmem>>, %arg7: memref<1x128xf32, #tpu.memory_space<vmem>>, %arg8: memref<128x512xf32, #tpu.memory_space<vmem>>, %arg9: memref<1x256xf32, #tpu.memory_space<vmem>>, %arg10: memref<64x1024xf32, #tpu.memory_space<vmem>>, %arg11: memref<64x1024xf32, #tpu.memory_space<vmem>>, %arg12: memref<128x1024xf32, #tpu.memory_space<vmem>>, %arg13: memref<256x1024xf32, #tpu.memory_space<vmem>>, %arg14: memref<1x1024xf32, #tpu.memory_space<vmem>>, %arg15: memref<1x1x2048xf32, #tpu.memory_space<vmem>>) attributes {dimension_semantics = [#tpu.dimension_semantics<parallel>], iteration_bounds = array<i64: 2>, scalar_prefetch = 0 : i64, scratch_operands = 0 : i64, tpu.core_type = #tpu.core_type<tc>, window_params = [{transform_indices = @transform_0, window_bounds = array<i64: 1, 32, 3>}, {pipeline_mode = #tpu.pipeline_mode<synchronous>, transform_indices = @transform_1, window_bounds = array<i64: 3, 128>}, {pipeline_mode = #tpu.pipeline_mode<synchronous>, transform_indices = @transform_2, window_bounds = array<i64: 1, 64>}, {pipeline_mode = #tpu.pipeline_mode<synchronous>, transform_indices = @transform_3, window_bounds = array<i64: 64, 128>}, {pipeline_mode = #tpu.pipeline_mode<synchronous>, transform_indices = @transform_4, window_bounds = array<i64: 1, 64>}, {pipeline_mode = #tpu.pipeline_mode<synchronous>, transform_indices = @transform_5, window_bounds = array<i64: 64, 256>}, {pipeline_mode = #tpu.pipeline_mode<synchronous>, transform_indices = @transform_6, window_bounds = array<i64: 1, 128>}, {pipeline_mode = #tpu.pipeline_mode<synchronous>, transform_indices = @transform_7, window_bounds = array<i64: 128, 512>}, {pipeline_mode = #tpu.pipeline_mode<synchronous>, transform_indices = @transform_8, window_bounds = array<i64: 1, 256>}, {pipeline_mode = #tpu.pipeline_mode<synchronous>, transform_indices = @transform_9, window_bounds = array<i64: 64, 1024>}, {pipeline_mode = #tpu.pipeline_mode<synchronous>, transform_indices = @transform_10, window_bounds = array<i64: 64, 1024>}, {pipeline_mode = #tpu.pipeline_mode<synchronous>, transform_indices = @transform_11, window_bounds = array<i64: 128, 1024>}, {pipeline_mode = #tpu.pipeline_mode<synchronous>, transform_indices = @transform_12, window_bounds = array<i64: 256, 1024>}, {pipeline_mode = #tpu.pipeline_mode<synchronous>, transform_indices = @transform_13, window_bounds = array<i64: 1, 1024>}, {transform_indices = @transform_14, window_bounds = array<i64: 1, 1, 2048>}]} {
    %c0 = arith.constant 0 : index
    %c0_0 = arith.constant 0 : index
    %c0_1 = arith.constant 0 : index
    %0 = vector.load %arg1[%c0, %c0_0, %c0_1] : memref<1x32x3xf32, #tpu.memory_space<vmem>>, vector<1x32x3xf32>
    %1 = tpu.iota {dimensions = array<i32: 2>} : vector<1x32x32xi32>
    %c0_2 = arith.constant 0 : index
    %c0_3 = arith.constant 0 : index
    %2 = vector.load %arg2[%c0_2, %c0_3] : memref<3x128xf32, #tpu.memory_space<vmem>>, vector<3x128xf32>
    %c0_4 = arith.constant 0 : index
    %c0_5 = arith.constant 0 : index
    %3 = vector.load %arg3[%c0_4, %c0_5] : memref<1x64xf32, #tpu.memory_space<vmem>>, vector<1x64xf32>
    %4 = vector.shape_cast %0 : vector<1x32x3xf32> to vector<32x3xf32>
    %cst = arith.constant dense<0.000000e+00> : vector<32x128xf32>
    %5 = tpu.matmul %4, %2, %cst {dimension_numbers = #tpu.dot_dimension_numbers<[1], [0], [0], [1], [0, 0, 1, 1], [], []>} : vector<32x3xf32>, vector<3x128xf32>, vector<32x128xf32> -> vector<32x128xf32>
    %6 = vector.extract_strided_slice %5 {offsets = [0, 0], sizes = [32, 64], strides = [1, 1]} : vector<32x128xf32> to vector<32x64xf32>
    %7 = vector.shape_cast %6 : vector<32x64xf32> to vector<1x32x64xf32>
    %8 = vector.extract_strided_slice %5 {offsets = [0, 64], sizes = [32, 64], strides = [1, 1]} : vector<32x128xf32> to vector<32x64xf32>
    %9 = vector.shape_cast %8 : vector<32x64xf32> to vector<1x32x64xf32>
    %10 = arith.subf %7, %9 : vector<1x32x64xf32>
    %11 = vector.shape_cast %3 : vector<1x64xf32> to vector<1x1x64xf32>
    %12 = vector.broadcast %11 : vector<1x1x64xf32> to vector<1x32x64xf32>
    %13 = arith.addf %10, %12 : vector<1x32x64xf32>
    "tpu.trace_start"() <{level = 10 : i32, message = "bpc,bqc->bpq"}> : () -> ()
    %cst_6 = arith.constant dense<0.000000e+00> : vector<1x32x32xf32>
    %14 = tpu.matmul %0, %0, %cst_6 {dimension_numbers = #tpu.dot_dimension_numbers<[2], [2], [1], [1], [0, 0, 0, 1, 1, 1], [0], [0]>} : vector<1x32x3xf32>, vector<1x32x3xf32>, vector<1x32x32xf32> -> vector<1x32x32xf32>
    "tpu.trace_stop"() : () -> ()
    %15 = arith.mulf %0, %0 : vector<1x32x3xf32>
    %cst_7 = arith.constant dense<0.000000e+00> : vector<1x32xf32>
    %16 = vector.multi_reduction <add>, %15, %cst_7 [2] : vector<1x32x3xf32> to vector<1x32xf32>
    %17 = vector.shape_cast %16 : vector<1x32xf32> to vector<1x32x1xf32>
    %18 = vector.shape_cast %16 : vector<1x32xf32> to vector<1x1x32xf32>
    %19 = vector.broadcast %17 : vector<1x32x1xf32> to vector<1x32x32xf32>
    %20 = vector.broadcast %18 : vector<1x1x32xf32> to vector<1x32x32xf32>
    %21 = arith.addf %19, %20 : vector<1x32x32xf32>
    %cst_8 = arith.constant 2.000000e+00 : f32
    %22 = vector.broadcast %cst_8 : f32 to vector<1x32x32xf32>
    %23 = arith.mulf %22, %14 : vector<1x32x32xf32>
    %24 = arith.subf %21, %23 : vector<1x32x32xf32>
    %cst_9 = arith.constant 0.000000e+00 : f32
    %25 = vector.broadcast %cst_9 : f32 to vector<1x32x32xf32>
    %26 = arith.maximumf %24, %25 : vector<1x32x32xf32>
    %27 = arith.truncf %9 : vector<1x32x64xf32> to vector<1x32x64xbf16>
    %cst_10 = arith.constant 0xFF800000 : f32
    %28 = vector.broadcast %cst_10 : f32 to vector<1x32x64xf32>
    %cst_11 = arith.constant dense<0x7F800000> : vector<1x32xf32>
    %29 = vector.multi_reduction <minimumf>, %26, %cst_11 [2] : vector<1x32x32xf32> to vector<1x32xf32>
    %30 = vector.shape_cast %29 : vector<1x32xf32> to vector<1x32x1xf32>
    %31 = vector.broadcast %30 : vector<1x32x1xf32> to vector<1x32x32xf32>
    %32 = arith.cmpf ole, %26, %31 : vector<1x32x32xf32>
    %c32_i32 = arith.constant 32 : i32
    %33 = vector.broadcast %c32_i32 : i32 to vector<1x32x32xi32>
    %34 = arith.select %32, %1, %33 : vector<1x32x32xi1>, vector<1x32x32xi32>
    %cst_12 = arith.constant dense<2147483647> : vector<1x32xi32>
    %35 = vector.multi_reduction <minsi>, %34, %cst_12 [2] : vector<1x32x32xi32> to vector<1x32xi32>
    %36 = vector.shape_cast %35 : vector<1x32xi32> to vector<1x32x1xi32>
    %37 = vector.broadcast %36 : vector<1x32x1xi32> to vector<1x32x32xi32>
    %38 = arith.cmpi eq, %1, %37 : vector<1x32x32xi32>
    %39 = arith.extui %38 : vector<1x32x32xi1> to vector<1x32x32xi32>
    %40 = arith.sitofp %39 : vector<1x32x32xi32> to vector<1x32x32xf32>
    %41 = arith.truncf %40 : vector<1x32x32xf32> to vector<1x32x32xbf16>
    "tpu.trace_start"() <{level = 10 : i32, message = "bij,bjf->bif"}> : () -> ()
    %cst_13 = arith.constant dense<0.000000e+00> : vector<1x32x64xf32>
    %42 = tpu.matmul %41, %27, %cst_13 {dimension_numbers = #tpu.dot_dimension_numbers<[2], [1], [1], [2], [0, 0, 0, 1, 1, 2], [0], [0]>} : vector<1x32x32xbf16>, vector<1x32x64xbf16>, vector<1x32x64xf32> -> vector<1x32x64xf32>
    %cst_14 = arith.constant 0x7F800000 : f32
    "tpu.trace_stop"() : () -> ()
    %43 = vector.broadcast %cst_14 : f32 to vector<1x32x32xf32>
    %44 = arith.select %38, %43, %26 : vector<1x32x32xi1>, vector<1x32x32xf32>
    %45 = arith.maximumf %28, %42 : vector<1x32x64xf32>
    %cst_15 = arith.constant dense<0x7F800000> : vector<1x32xf32>
    %46 = vector.multi_reduction <minimumf>, %44, %cst_15 [2] : vector<1x32x32xf32> to vector<1x32xf32>
    %47 = vector.shape_cast %46 : vector<1x32xf32> to vector<1x32x1xf32>
    %48 = vector.broadcast %47 : vector<1x32x1xf32> to vector<1x32x32xf32>
    %49 = arith.cmpf ole, %44, %48 : vector<1x32x32xf32>
    %c32_i32_16 = arith.constant 32 : i32
    %50 = vector.broadcast %c32_i32_16 : i32 to vector<1x32x32xi32>
    %51 = arith.select %49, %1, %50 : vector<1x32x32xi1>, vector<1x32x32xi32>
    %cst_17 = arith.constant dense<2147483647> : vector<1x32xi32>
    %52 = vector.multi_reduction <minsi>, %51, %cst_17 [2] : vector<1x32x32xi32> to vector<1x32xi32>
    %53 = vector.shape_cast %52 : vector<1x32xi32> to vector<1x32x1xi32>
    %54 = vector.broadcast %53 : vector<1x32x1xi32> to vector<1x32x32xi32>
    %55 = arith.cmpi eq, %1, %54 : vector<1x32x32xi32>
    %56 = arith.extui %55 : vector<1x32x32xi1> to vector<1x32x32xi32>
    %57 = arith.sitofp %56 : vector<1x32x32xi32> to vector<1x32x32xf32>
    %58 = arith.truncf %57 : vector<1x32x32xf32> to vector<1x32x32xbf16>
    "tpu.trace_start"() <{level = 10 : i32, message = "bij,bjf->bif"}> : () -> ()
    %cst_18 = arith.constant dense<0.000000e+00> : vector<1x32x64xf32>
    %59 = tpu.matmul %58, %27, %cst_18 {dimension_numbers = #tpu.dot_dimension_numbers<[2], [1], [1], [2], [0, 0, 0, 1, 1, 2], [0], [0]>} : vector<1x32x32xbf16>, vector<1x32x64xbf16>, vector<1x32x64xf32> -> vector<1x32x64xf32>
    %cst_19 = arith.constant 0x7F800000 : f32
    "tpu.trace_stop"() : () -> ()
    %60 = vector.broadcast %cst_19 : f32 to vector<1x32x32xf32>
    %61 = arith.select %55, %60, %44 : vector<1x32x32xi1>, vector<1x32x32xf32>
    %62 = arith.maximumf %45, %59 : vector<1x32x64xf32>
    %cst_20 = arith.constant dense<0x7F800000> : vector<1x32xf32>
    %63 = vector.multi_reduction <minimumf>, %61, %cst_20 [2] : vector<1x32x32xf32> to vector<1x32xf32>
    %64 = vector.shape_cast %63 : vector<1x32xf32> to vector<1x32x1xf32>
    %65 = vector.broadcast %64 : vector<1x32x1xf32> to vector<1x32x32xf32>
    %66 = arith.cmpf ole, %61, %65 : vector<1x32x32xf32>
    %c32_i32_21 = arith.constant 32 : i32
    %67 = vector.broadcast %c32_i32_21 : i32 to vector<1x32x32xi32>
    %68 = arith.select %66, %1, %67 : vector<1x32x32xi1>, vector<1x32x32xi32>
    %cst_22 = arith.constant dense<2147483647> : vector<1x32xi32>
    %69 = vector.multi_reduction <minsi>, %68, %cst_22 [2] : vector<1x32x32xi32> to vector<1x32xi32>
    %70 = vector.shape_cast %69 : vector<1x32xi32> to vector<1x32x1xi32>
    %71 = vector.broadcast %70 : vector<1x32x1xi32> to vector<1x32x32xi32>
    %72 = arith.cmpi eq, %1, %71 : vector<1x32x32xi32>
    %73 = arith.extui %72 : vector<1x32x32xi1> to vector<1x32x32xi32>
    %74 = arith.sitofp %73 : vector<1x32x32xi32> to vector<1x32x32xf32>
    %75 = arith.truncf %74 : vector<1x32x32xf32> to vector<1x32x32xbf16>
    "tpu.trace_start"() <{level = 10 : i32, message = "bij,bjf->bif"}> : () -> ()
    %cst_23 = arith.constant dense<0.000000e+00> : vector<1x32x64xf32>
    %76 = tpu.matmul %75, %27, %cst_23 {dimension_numbers = #tpu.dot_dimension_numbers<[2], [1], [1], [2], [0, 0, 0, 1, 1, 2], [0], [0]>} : vector<1x32x32xbf16>, vector<1x32x64xbf16>, vector<1x32x64xf32> -> vector<1x32x64xf32>
    %cst_24 = arith.constant 0x7F800000 : f32
    "tpu.trace_stop"() : () -> ()
    %77 = vector.broadcast %cst_24 : f32 to vector<1x32x32xf32>
    %78 = arith.select %72, %77, %61 : vector<1x32x32xi1>, vector<1x32x32xf32>
    %79 = arith.maximumf %62, %76 : vector<1x32x64xf32>
    %cst_25 = arith.constant dense<0x7F800000> : vector<1x32xf32>
    %80 = vector.multi_reduction <minimumf>, %78, %cst_25 [2] : vector<1x32x32xf32> to vector<1x32xf32>
    %81 = vector.shape_cast %80 : vector<1x32xf32> to vector<1x32x1xf32>
    %82 = vector.broadcast %81 : vector<1x32x1xf32> to vector<1x32x32xf32>
    %83 = arith.cmpf ole, %78, %82 : vector<1x32x32xf32>
    %c32_i32_26 = arith.constant 32 : i32
    %84 = vector.broadcast %c32_i32_26 : i32 to vector<1x32x32xi32>
    %85 = arith.select %83, %1, %84 : vector<1x32x32xi1>, vector<1x32x32xi32>
    %cst_27 = arith.constant dense<2147483647> : vector<1x32xi32>
    %86 = vector.multi_reduction <minsi>, %85, %cst_27 [2] : vector<1x32x32xi32> to vector<1x32xi32>
    %87 = vector.shape_cast %86 : vector<1x32xi32> to vector<1x32x1xi32>
    %88 = vector.broadcast %87 : vector<1x32x1xi32> to vector<1x32x32xi32>
    %89 = arith.cmpi eq, %1, %88 : vector<1x32x32xi32>
    %90 = arith.extui %89 : vector<1x32x32xi1> to vector<1x32x32xi32>
    %91 = arith.sitofp %90 : vector<1x32x32xi32> to vector<1x32x32xf32>
    %92 = arith.truncf %91 : vector<1x32x32xf32> to vector<1x32x32xbf16>
    "tpu.trace_start"() <{level = 10 : i32, message = "bij,bjf->bif"}> : () -> ()
    %cst_28 = arith.constant dense<0.000000e+00> : vector<1x32x64xf32>
    %93 = tpu.matmul %92, %27, %cst_28 {dimension_numbers = #tpu.dot_dimension_numbers<[2], [1], [1], [2], [0, 0, 0, 1, 1, 2], [0], [0]>} : vector<1x32x32xbf16>, vector<1x32x64xbf16>, vector<1x32x64xf32> -> vector<1x32x64xf32>
    %cst_29 = arith.constant 0x7F800000 : f32
    "tpu.trace_stop"() : () -> ()
    %94 = vector.broadcast %cst_29 : f32 to vector<1x32x32xf32>
    %95 = arith.select %89, %94, %78 : vector<1x32x32xi1>, vector<1x32x32xf32>
    %96 = arith.maximumf %79, %93 : vector<1x32x64xf32>
    %cst_30 = arith.constant dense<0x7F800000> : vector<1x32xf32>
    %97 = vector.multi_reduction <minimumf>, %95, %cst_30 [2] : vector<1x32x32xf32> to vector<1x32xf32>
    %98 = vector.shape_cast %97 : vector<1x32xf32> to vector<1x32x1xf32>
    %99 = vector.broadcast %98 : vector<1x32x1xf32> to vector<1x32x32xf32>
    %100 = arith.cmpf ole, %95, %99 : vector<1x32x32xf32>
    %c32_i32_31 = arith.constant 32 : i32
    %101 = vector.broadcast %c32_i32_31 : i32 to vector<1x32x32xi32>
    %102 = arith.select %100, %1, %101 : vector<1x32x32xi1>, vector<1x32x32xi32>
    %cst_32 = arith.constant dense<2147483647> : vector<1x32xi32>
    %103 = vector.multi_reduction <minsi>, %102, %cst_32 [2] : vector<1x32x32xi32> to vector<1x32xi32>
    %104 = vector.shape_cast %103 : vector<1x32xi32> to vector<1x32x1xi32>
    %105 = vector.broadcast %104 : vector<1x32x1xi32> to vector<1x32x32xi32>
    %106 = arith.cmpi eq, %1, %105 : vector<1x32x32xi32>
    %107 = arith.extui %106 : vector<1x32x32xi1> to vector<1x32x32xi32>
    %108 = arith.sitofp %107 : vector<1x32x32xi32> to vector<1x32x32xf32>
    %109 = arith.truncf %108 : vector<1x32x32xf32> to vector<1x32x32xbf16>
    "tpu.trace_start"() <{level = 10 : i32, message = "bij,bjf->bif"}> : () -> ()
    %cst_33 = arith.constant dense<0.000000e+00> : vector<1x32x64xf32>
    %110 = tpu.matmul %109, %27, %cst_33 {dimension_numbers = #tpu.dot_dimension_numbers<[2], [1], [1], [2], [0, 0, 0, 1, 1, 2], [0], [0]>} : vector<1x32x32xbf16>, vector<1x32x64xbf16>, vector<1x32x64xf32> -> vector<1x32x64xf32>
    %cst_34 = arith.constant 0x7F800000 : f32
    "tpu.trace_stop"() : () -> ()
    %111 = vector.broadcast %cst_34 : f32 to vector<1x32x32xf32>
    %112 = arith.select %106, %111, %95 : vector<1x32x32xi1>, vector<1x32x32xf32>
    %113 = arith.maximumf %96, %110 : vector<1x32x64xf32>
    %cst_35 = arith.constant dense<0x7F800000> : vector<1x32xf32>
    %114 = vector.multi_reduction <minimumf>, %112, %cst_35 [2] : vector<1x32x32xf32> to vector<1x32xf32>
    %115 = vector.shape_cast %114 : vector<1x32xf32> to vector<1x32x1xf32>
    %116 = vector.broadcast %115 : vector<1x32x1xf32> to vector<1x32x32xf32>
    %117 = arith.cmpf ole, %112, %116 : vector<1x32x32xf32>
    %c32_i32_36 = arith.constant 32 : i32
    %118 = vector.broadcast %c32_i32_36 : i32 to vector<1x32x32xi32>
    %119 = arith.select %117, %1, %118 : vector<1x32x32xi1>, vector<1x32x32xi32>
    %cst_37 = arith.constant dense<2147483647> : vector<1x32xi32>
    %120 = vector.multi_reduction <minsi>, %119, %cst_37 [2] : vector<1x32x32xi32> to vector<1x32xi32>
    %121 = vector.shape_cast %120 : vector<1x32xi32> to vector<1x32x1xi32>
    %122 = vector.broadcast %121 : vector<1x32x1xi32> to vector<1x32x32xi32>
    %123 = arith.cmpi eq, %1, %122 : vector<1x32x32xi32>
    %124 = arith.extui %123 : vector<1x32x32xi1> to vector<1x32x32xi32>
    %125 = arith.sitofp %124 : vector<1x32x32xi32> to vector<1x32x32xf32>
    %126 = arith.truncf %125 : vector<1x32x32xf32> to vector<1x32x32xbf16>
    "tpu.trace_start"() <{level = 10 : i32, message = "bij,bjf->bif"}> : () -> ()
    %cst_38 = arith.constant dense<0.000000e+00> : vector<1x32x64xf32>
    %127 = tpu.matmul %126, %27, %cst_38 {dimension_numbers = #tpu.dot_dimension_numbers<[2], [1], [1], [2], [0, 0, 0, 1, 1, 2], [0], [0]>} : vector<1x32x32xbf16>, vector<1x32x64xbf16>, vector<1x32x64xf32> -> vector<1x32x64xf32>
    %cst_39 = arith.constant 0x7F800000 : f32
    "tpu.trace_stop"() : () -> ()
    %128 = vector.broadcast %cst_39 : f32 to vector<1x32x32xf32>
    %129 = arith.select %123, %128, %112 : vector<1x32x32xi1>, vector<1x32x32xf32>
    %130 = arith.maximumf %113, %127 : vector<1x32x64xf32>
    %cst_40 = arith.constant dense<0x7F800000> : vector<1x32xf32>
    %131 = vector.multi_reduction <minimumf>, %129, %cst_40 [2] : vector<1x32x32xf32> to vector<1x32xf32>
    %132 = vector.shape_cast %131 : vector<1x32xf32> to vector<1x32x1xf32>
    %133 = vector.broadcast %132 : vector<1x32x1xf32> to vector<1x32x32xf32>
    %134 = arith.cmpf ole, %129, %133 : vector<1x32x32xf32>
    %c32_i32_41 = arith.constant 32 : i32
    %135 = vector.broadcast %c32_i32_41 : i32 to vector<1x32x32xi32>
    %136 = arith.select %134, %1, %135 : vector<1x32x32xi1>, vector<1x32x32xi32>
    %cst_42 = arith.constant dense<2147483647> : vector<1x32xi32>
    %137 = vector.multi_reduction <minsi>, %136, %cst_42 [2] : vector<1x32x32xi32> to vector<1x32xi32>
    %138 = vector.shape_cast %137 : vector<1x32xi32> to vector<1x32x1xi32>
    %139 = vector.broadcast %138 : vector<1x32x1xi32> to vector<1x32x32xi32>
    %140 = arith.cmpi eq, %1, %139 : vector<1x32x32xi32>
    %141 = arith.extui %140 : vector<1x32x32xi1> to vector<1x32x32xi32>
    %142 = arith.sitofp %141 : vector<1x32x32xi32> to vector<1x32x32xf32>
    %143 = arith.truncf %142 : vector<1x32x32xf32> to vector<1x32x32xbf16>
    "tpu.trace_start"() <{level = 10 : i32, message = "bij,bjf->bif"}> : () -> ()
    %cst_43 = arith.constant dense<0.000000e+00> : vector<1x32x64xf32>
    %144 = tpu.matmul %143, %27, %cst_43 {dimension_numbers = #tpu.dot_dimension_numbers<[2], [1], [1], [2], [0, 0, 0, 1, 1, 2], [0], [0]>} : vector<1x32x32xbf16>, vector<1x32x64xbf16>, vector<1x32x64xf32> -> vector<1x32x64xf32>
    %cst_44 = arith.constant 0x7F800000 : f32
    "tpu.trace_stop"() : () -> ()
    %145 = vector.broadcast %cst_44 : f32 to vector<1x32x32xf32>
    %146 = arith.select %140, %145, %129 : vector<1x32x32xi1>, vector<1x32x32xf32>
    %147 = arith.maximumf %130, %144 : vector<1x32x64xf32>
    %cst_45 = arith.constant dense<0x7F800000> : vector<1x32xf32>
    %148 = vector.multi_reduction <minimumf>, %146, %cst_45 [2] : vector<1x32x32xf32> to vector<1x32xf32>
    %149 = vector.shape_cast %148 : vector<1x32xf32> to vector<1x32x1xf32>
    %150 = vector.broadcast %149 : vector<1x32x1xf32> to vector<1x32x32xf32>
    %151 = arith.cmpf ole, %146, %150 : vector<1x32x32xf32>
    %c32_i32_46 = arith.constant 32 : i32
    %152 = vector.broadcast %c32_i32_46 : i32 to vector<1x32x32xi32>
    %153 = arith.select %151, %1, %152 : vector<1x32x32xi1>, vector<1x32x32xi32>
    %cst_47 = arith.constant dense<2147483647> : vector<1x32xi32>
    %154 = vector.multi_reduction <minsi>, %153, %cst_47 [2] : vector<1x32x32xi32> to vector<1x32xi32>
    %155 = vector.shape_cast %154 : vector<1x32xi32> to vector<1x32x1xi32>
    %156 = vector.broadcast %155 : vector<1x32x1xi32> to vector<1x32x32xi32>
    %157 = arith.cmpi eq, %1, %156 : vector<1x32x32xi32>
    %158 = arith.extui %157 : vector<1x32x32xi1> to vector<1x32x32xi32>
    %159 = arith.sitofp %158 : vector<1x32x32xi32> to vector<1x32x32xf32>
    %160 = arith.truncf %159 : vector<1x32x32xf32> to vector<1x32x32xbf16>
    "tpu.trace_start"() <{level = 10 : i32, message = "bij,bjf->bif"}> : () -> ()
    %cst_48 = arith.constant dense<0.000000e+00> : vector<1x32x64xf32>
    %161 = tpu.matmul %160, %27, %cst_48 {dimension_numbers = #tpu.dot_dimension_numbers<[2], [1], [1], [2], [0, 0, 0, 1, 1, 2], [0], [0]>} : vector<1x32x32xbf16>, vector<1x32x64xbf16>, vector<1x32x64xf32> -> vector<1x32x64xf32>
    "tpu.trace_stop"() : () -> ()
    %162 = arith.maximumf %147, %161 : vector<1x32x64xf32>
    %163 = arith.addf %13, %162 : vector<1x32x64xf32>
    %cst_49 = arith.constant 0.000000e+00 : f32
    %164 = vector.broadcast %cst_49 : f32 to vector<1x32x64xf32>
    %165 = arith.maximumf %163, %164 : vector<1x32x64xf32>
    %c0_50 = arith.constant 0 : index
    %c0_51 = arith.constant 0 : index
    %166 = vector.load %arg4[%c0_50, %c0_51] : memref<64x128xf32, #tpu.memory_space<vmem>>, vector<64x128xf32>
    %c0_52 = arith.constant 0 : index
    %c0_53 = arith.constant 0 : index
    %167 = vector.load %arg5[%c0_52, %c0_53] : memref<1x64xf32, #tpu.memory_space<vmem>>, vector<1x64xf32>
    %168 = vector.shape_cast %165 : vector<1x32x64xf32> to vector<32x64xf32>
    %cst_54 = arith.constant dense<0.000000e+00> : vector<32x128xf32>
    %169 = tpu.matmul %168, %166, %cst_54 {dimension_numbers = #tpu.dot_dimension_numbers<[1], [0], [0], [1], [0, 0, 1, 1], [], []>} : vector<32x64xf32>, vector<64x128xf32>, vector<32x128xf32> -> vector<32x128xf32>
    %170 = vector.extract_strided_slice %169 {offsets = [0, 0], sizes = [32, 64], strides = [1, 1]} : vector<32x128xf32> to vector<32x64xf32>
    %171 = vector.shape_cast %170 : vector<32x64xf32> to vector<1x32x64xf32>
    %172 = vector.extract_strided_slice %169 {offsets = [0, 64], sizes = [32, 64], strides = [1, 1]} : vector<32x128xf32> to vector<32x64xf32>
    %173 = vector.shape_cast %172 : vector<32x64xf32> to vector<1x32x64xf32>
    %174 = arith.subf %171, %173 : vector<1x32x64xf32>
    %175 = vector.shape_cast %167 : vector<1x64xf32> to vector<1x1x64xf32>
    %176 = vector.broadcast %175 : vector<1x1x64xf32> to vector<1x32x64xf32>
    %177 = arith.addf %174, %176 : vector<1x32x64xf32>
    "tpu.trace_start"() <{level = 10 : i32, message = "bpc,bqc->bpq"}> : () -> ()
    %cst_55 = arith.constant dense<0.000000e+00> : vector<1x32x32xf32>
    %178 = tpu.matmul %165, %165, %cst_55 {dimension_numbers = #tpu.dot_dimension_numbers<[2], [2], [1], [1], [0, 0, 0, 1, 1, 1], [0], [0]>} : vector<1x32x64xf32>, vector<1x32x64xf32>, vector<1x32x32xf32> -> vector<1x32x32xf32>
    "tpu.trace_stop"() : () -> ()
    %179 = arith.mulf %165, %165 : vector<1x32x64xf32>
    %cst_56 = arith.constant dense<0.000000e+00> : vector<1x32xf32>
    %180 = vector.multi_reduction <add>, %179, %cst_56 [2] : vector<1x32x64xf32> to vector<1x32xf32>
    %181 = vector.shape_cast %180 : vector<1x32xf32> to vector<1x32x1xf32>
    %182 = vector.shape_cast %180 : vector<1x32xf32> to vector<1x1x32xf32>
    %183 = vector.broadcast %181 : vector<1x32x1xf32> to vector<1x32x32xf32>
    %184 = vector.broadcast %182 : vector<1x1x32xf32> to vector<1x32x32xf32>
    %185 = arith.addf %183, %184 : vector<1x32x32xf32>
    %cst_57 = arith.constant 2.000000e+00 : f32
    %186 = vector.broadcast %cst_57 : f32 to vector<1x32x32xf32>
    %187 = arith.mulf %186, %178 : vector<1x32x32xf32>
    %188 = arith.subf %185, %187 : vector<1x32x32xf32>
    %cst_58 = arith.constant 0.000000e+00 : f32
    %189 = vector.broadcast %cst_58 : f32 to vector<1x32x32xf32>
    %190 = arith.maximumf %188, %189 : vector<1x32x32xf32>
    %191 = arith.truncf %173 : vector<1x32x64xf32> to vector<1x32x64xbf16>
    %cst_59 = arith.constant 0xFF800000 : f32
    %192 = vector.broadcast %cst_59 : f32 to vector<1x32x64xf32>
    %cst_60 = arith.constant dense<0x7F800000> : vector<1x32xf32>
    %193 = vector.multi_reduction <minimumf>, %190, %cst_60 [2] : vector<1x32x32xf32> to vector<1x32xf32>
    %194 = vector.shape_cast %193 : vector<1x32xf32> to vector<1x32x1xf32>
    %195 = vector.broadcast %194 : vector<1x32x1xf32> to vector<1x32x32xf32>
    %196 = arith.cmpf ole, %190, %195 : vector<1x32x32xf32>
    %c32_i32_61 = arith.constant 32 : i32
    %197 = vector.broadcast %c32_i32_61 : i32 to vector<1x32x32xi32>
    %198 = arith.select %196, %1, %197 : vector<1x32x32xi1>, vector<1x32x32xi32>
    %cst_62 = arith.constant dense<2147483647> : vector<1x32xi32>
    %199 = vector.multi_reduction <minsi>, %198, %cst_62 [2] : vector<1x32x32xi32> to vector<1x32xi32>
    %200 = vector.shape_cast %199 : vector<1x32xi32> to vector<1x32x1xi32>
    %201 = vector.broadcast %200 : vector<1x32x1xi32> to vector<1x32x32xi32>
    %202 = arith.cmpi eq, %1, %201 : vector<1x32x32xi32>
    %203 = arith.extui %202 : vector<1x32x32xi1> to vector<1x32x32xi32>
    %204 = arith.sitofp %203 : vector<1x32x32xi32> to vector<1x32x32xf32>
    %205 = arith.truncf %204 : vector<1x32x32xf32> to vector<1x32x32xbf16>
    "tpu.trace_start"() <{level = 10 : i32, message = "bij,bjf->bif"}> : () -> ()
    %cst_63 = arith.constant dense<0.000000e+00> : vector<1x32x64xf32>
    %206 = tpu.matmul %205, %191, %cst_63 {dimension_numbers = #tpu.dot_dimension_numbers<[2], [1], [1], [2], [0, 0, 0, 1, 1, 2], [0], [0]>} : vector<1x32x32xbf16>, vector<1x32x64xbf16>, vector<1x32x64xf32> -> vector<1x32x64xf32>
    %cst_64 = arith.constant 0x7F800000 : f32
    "tpu.trace_stop"() : () -> ()
    %207 = vector.broadcast %cst_64 : f32 to vector<1x32x32xf32>
    %208 = arith.select %202, %207, %190 : vector<1x32x32xi1>, vector<1x32x32xf32>
    %209 = arith.maximumf %192, %206 : vector<1x32x64xf32>
    %cst_65 = arith.constant dense<0x7F800000> : vector<1x32xf32>
    %210 = vector.multi_reduction <minimumf>, %208, %cst_65 [2] : vector<1x32x32xf32> to vector<1x32xf32>
    %211 = vector.shape_cast %210 : vector<1x32xf32> to vector<1x32x1xf32>
    %212 = vector.broadcast %211 : vector<1x32x1xf32> to vector<1x32x32xf32>
    %213 = arith.cmpf ole, %208, %212 : vector<1x32x32xf32>
    %c32_i32_66 = arith.constant 32 : i32
    %214 = vector.broadcast %c32_i32_66 : i32 to vector<1x32x32xi32>
    %215 = arith.select %213, %1, %214 : vector<1x32x32xi1>, vector<1x32x32xi32>
    %cst_67 = arith.constant dense<2147483647> : vector<1x32xi32>
    %216 = vector.multi_reduction <minsi>, %215, %cst_67 [2] : vector<1x32x32xi32> to vector<1x32xi32>
    %217 = vector.shape_cast %216 : vector<1x32xi32> to vector<1x32x1xi32>
    %218 = vector.broadcast %217 : vector<1x32x1xi32> to vector<1x32x32xi32>
    %219 = arith.cmpi eq, %1, %218 : vector<1x32x32xi32>
    %220 = arith.extui %219 : vector<1x32x32xi1> to vector<1x32x32xi32>
    %221 = arith.sitofp %220 : vector<1x32x32xi32> to vector<1x32x32xf32>
    %222 = arith.truncf %221 : vector<1x32x32xf32> to vector<1x32x32xbf16>
    "tpu.trace_start"() <{level = 10 : i32, message = "bij,bjf->bif"}> : () -> ()
    %cst_68 = arith.constant dense<0.000000e+00> : vector<1x32x64xf32>
    %223 = tpu.matmul %222, %191, %cst_68 {dimension_numbers = #tpu.dot_dimension_numbers<[2], [1], [1], [2], [0, 0, 0, 1, 1, 2], [0], [0]>} : vector<1x32x32xbf16>, vector<1x32x64xbf16>, vector<1x32x64xf32> -> vector<1x32x64xf32>
    %cst_69 = arith.constant 0x7F800000 : f32
    "tpu.trace_stop"() : () -> ()
    %224 = vector.broadcast %cst_69 : f32 to vector<1x32x32xf32>
    %225 = arith.select %219, %224, %208 : vector<1x32x32xi1>, vector<1x32x32xf32>
    %226 = arith.maximumf %209, %223 : vector<1x32x64xf32>
    %cst_70 = arith.constant dense<0x7F800000> : vector<1x32xf32>
    %227 = vector.multi_reduction <minimumf>, %225, %cst_70 [2] : vector<1x32x32xf32> to vector<1x32xf32>
    %228 = vector.shape_cast %227 : vector<1x32xf32> to vector<1x32x1xf32>
    %229 = vector.broadcast %228 : vector<1x32x1xf32> to vector<1x32x32xf32>
    %230 = arith.cmpf ole, %225, %229 : vector<1x32x32xf32>
    %c32_i32_71 = arith.constant 32 : i32
    %231 = vector.broadcast %c32_i32_71 : i32 to vector<1x32x32xi32>
    %232 = arith.select %230, %1, %231 : vector<1x32x32xi1>, vector<1x32x32xi32>
    %cst_72 = arith.constant dense<2147483647> : vector<1x32xi32>
    %233 = vector.multi_reduction <minsi>, %232, %cst_72 [2] : vector<1x32x32xi32> to vector<1x32xi32>
    %234 = vector.shape_cast %233 : vector<1x32xi32> to vector<1x32x1xi32>
    %235 = vector.broadcast %234 : vector<1x32x1xi32> to vector<1x32x32xi32>
    %236 = arith.cmpi eq, %1, %235 : vector<1x32x32xi32>
    %237 = arith.extui %236 : vector<1x32x32xi1> to vector<1x32x32xi32>
    %238 = arith.sitofp %237 : vector<1x32x32xi32> to vector<1x32x32xf32>
    %239 = arith.truncf %238 : vector<1x32x32xf32> to vector<1x32x32xbf16>
    "tpu.trace_start"() <{level = 10 : i32, message = "bij,bjf->bif"}> : () -> ()
    %cst_73 = arith.constant dense<0.000000e+00> : vector<1x32x64xf32>
    %240 = tpu.matmul %239, %191, %cst_73 {dimension_numbers = #tpu.dot_dimension_numbers<[2], [1], [1], [2], [0, 0, 0, 1, 1, 2], [0], [0]>} : vector<1x32x32xbf16>, vector<1x32x64xbf16>, vector<1x32x64xf32> -> vector<1x32x64xf32>
    %cst_74 = arith.constant 0x7F800000 : f32
    "tpu.trace_stop"() : () -> ()
    %241 = vector.broadcast %cst_74 : f32 to vector<1x32x32xf32>
    %242 = arith.select %236, %241, %225 : vector<1x32x32xi1>, vector<1x32x32xf32>
    %243 = arith.maximumf %226, %240 : vector<1x32x64xf32>
    %cst_75 = arith.constant dense<0x7F800000> : vector<1x32xf32>
    %244 = vector.multi_reduction <minimumf>, %242, %cst_75 [2] : vector<1x32x32xf32> to vector<1x32xf32>
    %245 = vector.shape_cast %244 : vector<1x32xf32> to vector<1x32x1xf32>
    %246 = vector.broadcast %245 : vector<1x32x1xf32> to vector<1x32x32xf32>
    %247 = arith.cmpf ole, %242, %246 : vector<1x32x32xf32>
    %c32_i32_76 = arith.constant 32 : i32
    %248 = vector.broadcast %c32_i32_76 : i32 to vector<1x32x32xi32>
    %249 = arith.select %247, %1, %248 : vector<1x32x32xi1>, vector<1x32x32xi32>
    %cst_77 = arith.constant dense<2147483647> : vector<1x32xi32>
    %250 = vector.multi_reduction <minsi>, %249, %cst_77 [2] : vector<1x32x32xi32> to vector<1x32xi32>
    %251 = vector.shape_cast %250 : vector<1x32xi32> to vector<1x32x1xi32>
    %252 = vector.broadcast %251 : vector<1x32x1xi32> to vector<1x32x32xi32>
    %253 = arith.cmpi eq, %1, %252 : vector<1x32x32xi32>
    %254 = arith.extui %253 : vector<1x32x32xi1> to vector<1x32x32xi32>
    %255 = arith.sitofp %254 : vector<1x32x32xi32> to vector<1x32x32xf32>
    %256 = arith.truncf %255 : vector<1x32x32xf32> to vector<1x32x32xbf16>
    "tpu.trace_start"() <{level = 10 : i32, message = "bij,bjf->bif"}> : () -> ()
    %cst_78 = arith.constant dense<0.000000e+00> : vector<1x32x64xf32>
    %257 = tpu.matmul %256, %191, %cst_78 {dimension_numbers = #tpu.dot_dimension_numbers<[2], [1], [1], [2], [0, 0, 0, 1, 1, 2], [0], [0]>} : vector<1x32x32xbf16>, vector<1x32x64xbf16>, vector<1x32x64xf32> -> vector<1x32x64xf32>
    %cst_79 = arith.constant 0x7F800000 : f32
    "tpu.trace_stop"() : () -> ()
    %258 = vector.broadcast %cst_79 : f32 to vector<1x32x32xf32>
    %259 = arith.select %253, %258, %242 : vector<1x32x32xi1>, vector<1x32x32xf32>
    %260 = arith.maximumf %243, %257 : vector<1x32x64xf32>
    %cst_80 = arith.constant dense<0x7F800000> : vector<1x32xf32>
    %261 = vector.multi_reduction <minimumf>, %259, %cst_80 [2] : vector<1x32x32xf32> to vector<1x32xf32>
    %262 = vector.shape_cast %261 : vector<1x32xf32> to vector<1x32x1xf32>
    %263 = vector.broadcast %262 : vector<1x32x1xf32> to vector<1x32x32xf32>
    %264 = arith.cmpf ole, %259, %263 : vector<1x32x32xf32>
    %c32_i32_81 = arith.constant 32 : i32
    %265 = vector.broadcast %c32_i32_81 : i32 to vector<1x32x32xi32>
    %266 = arith.select %264, %1, %265 : vector<1x32x32xi1>, vector<1x32x32xi32>
    %cst_82 = arith.constant dense<2147483647> : vector<1x32xi32>
    %267 = vector.multi_reduction <minsi>, %266, %cst_82 [2] : vector<1x32x32xi32> to vector<1x32xi32>
    %268 = vector.shape_cast %267 : vector<1x32xi32> to vector<1x32x1xi32>
    %269 = vector.broadcast %268 : vector<1x32x1xi32> to vector<1x32x32xi32>
    %270 = arith.cmpi eq, %1, %269 : vector<1x32x32xi32>
    %271 = arith.extui %270 : vector<1x32x32xi1> to vector<1x32x32xi32>
    %272 = arith.sitofp %271 : vector<1x32x32xi32> to vector<1x32x32xf32>
    %273 = arith.truncf %272 : vector<1x32x32xf32> to vector<1x32x32xbf16>
    "tpu.trace_start"() <{level = 10 : i32, message = "bij,bjf->bif"}> : () -> ()
    %cst_83 = arith.constant dense<0.000000e+00> : vector<1x32x64xf32>
    %274 = tpu.matmul %273, %191, %cst_83 {dimension_numbers = #tpu.dot_dimension_numbers<[2], [1], [1], [2], [0, 0, 0, 1, 1, 2], [0], [0]>} : vector<1x32x32xbf16>, vector<1x32x64xbf16>, vector<1x32x64xf32> -> vector<1x32x64xf32>
    %cst_84 = arith.constant 0x7F800000 : f32
    "tpu.trace_stop"() : () -> ()
    %275 = vector.broadcast %cst_84 : f32 to vector<1x32x32xf32>
    %276 = arith.select %270, %275, %259 : vector<1x32x32xi1>, vector<1x32x32xf32>
    %277 = arith.maximumf %260, %274 : vector<1x32x64xf32>
    %cst_85 = arith.constant dense<0x7F800000> : vector<1x32xf32>
    %278 = vector.multi_reduction <minimumf>, %276, %cst_85 [2] : vector<1x32x32xf32> to vector<1x32xf32>
    %279 = vector.shape_cast %278 : vector<1x32xf32> to vector<1x32x1xf32>
    %280 = vector.broadcast %279 : vector<1x32x1xf32> to vector<1x32x32xf32>
    %281 = arith.cmpf ole, %276, %280 : vector<1x32x32xf32>
    %c32_i32_86 = arith.constant 32 : i32
    %282 = vector.broadcast %c32_i32_86 : i32 to vector<1x32x32xi32>
    %283 = arith.select %281, %1, %282 : vector<1x32x32xi1>, vector<1x32x32xi32>
    %cst_87 = arith.constant dense<2147483647> : vector<1x32xi32>
    %284 = vector.multi_reduction <minsi>, %283, %cst_87 [2] : vector<1x32x32xi32> to vector<1x32xi32>
    %285 = vector.shape_cast %284 : vector<1x32xi32> to vector<1x32x1xi32>
    %286 = vector.broadcast %285 : vector<1x32x1xi32> to vector<1x32x32xi32>
    %287 = arith.cmpi eq, %1, %286 : vector<1x32x32xi32>
    %288 = arith.extui %287 : vector<1x32x32xi1> to vector<1x32x32xi32>
    %289 = arith.sitofp %288 : vector<1x32x32xi32> to vector<1x32x32xf32>
    %290 = arith.truncf %289 : vector<1x32x32xf32> to vector<1x32x32xbf16>
    "tpu.trace_start"() <{level = 10 : i32, message = "bij,bjf->bif"}> : () -> ()
    %cst_88 = arith.constant dense<0.000000e+00> : vector<1x32x64xf32>
    %291 = tpu.matmul %290, %191, %cst_88 {dimension_numbers = #tpu.dot_dimension_numbers<[2], [1], [1], [2], [0, 0, 0, 1, 1, 2], [0], [0]>} : vector<1x32x32xbf16>, vector<1x32x64xbf16>, vector<1x32x64xf32> -> vector<1x32x64xf32>
    %cst_89 = arith.constant 0x7F800000 : f32
    "tpu.trace_stop"() : () -> ()
    %292 = vector.broadcast %cst_89 : f32 to vector<1x32x32xf32>
    %293 = arith.select %287, %292, %276 : vector<1x32x32xi1>, vector<1x32x32xf32>
    %294 = arith.maximumf %277, %291 : vector<1x32x64xf32>
    %cst_90 = arith.constant dense<0x7F800000> : vector<1x32xf32>
    %295 = vector.multi_reduction <minimumf>, %293, %cst_90 [2] : vector<1x32x32xf32> to vector<1x32xf32>
    %296 = vector.shape_cast %295 : vector<1x32xf32> to vector<1x32x1xf32>
    %297 = vector.broadcast %296 : vector<1x32x1xf32> to vector<1x32x32xf32>
    %298 = arith.cmpf ole, %293, %297 : vector<1x32x32xf32>
    %c32_i32_91 = arith.constant 32 : i32
    %299 = vector.broadcast %c32_i32_91 : i32 to vector<1x32x32xi32>
    %300 = arith.select %298, %1, %299 : vector<1x32x32xi1>, vector<1x32x32xi32>
    %cst_92 = arith.constant dense<2147483647> : vector<1x32xi32>
    %301 = vector.multi_reduction <minsi>, %300, %cst_92 [2] : vector<1x32x32xi32> to vector<1x32xi32>
    %302 = vector.shape_cast %301 : vector<1x32xi32> to vector<1x32x1xi32>
    %303 = vector.broadcast %302 : vector<1x32x1xi32> to vector<1x32x32xi32>
    %304 = arith.cmpi eq, %1, %303 : vector<1x32x32xi32>
    %305 = arith.extui %304 : vector<1x32x32xi1> to vector<1x32x32xi32>
    %306 = arith.sitofp %305 : vector<1x32x32xi32> to vector<1x32x32xf32>
    %307 = arith.truncf %306 : vector<1x32x32xf32> to vector<1x32x32xbf16>
    "tpu.trace_start"() <{level = 10 : i32, message = "bij,bjf->bif"}> : () -> ()
    %cst_93 = arith.constant dense<0.000000e+00> : vector<1x32x64xf32>
    %308 = tpu.matmul %307, %191, %cst_93 {dimension_numbers = #tpu.dot_dimension_numbers<[2], [1], [1], [2], [0, 0, 0, 1, 1, 2], [0], [0]>} : vector<1x32x32xbf16>, vector<1x32x64xbf16>, vector<1x32x64xf32> -> vector<1x32x64xf32>
    %cst_94 = arith.constant 0x7F800000 : f32
    "tpu.trace_stop"() : () -> ()
    %309 = vector.broadcast %cst_94 : f32 to vector<1x32x32xf32>
    %310 = arith.select %304, %309, %293 : vector<1x32x32xi1>, vector<1x32x32xf32>
    %311 = arith.maximumf %294, %308 : vector<1x32x64xf32>
    %cst_95 = arith.constant dense<0x7F800000> : vector<1x32xf32>
    %312 = vector.multi_reduction <minimumf>, %310, %cst_95 [2] : vector<1x32x32xf32> to vector<1x32xf32>
    %313 = vector.shape_cast %312 : vector<1x32xf32> to vector<1x32x1xf32>
    %314 = vector.broadcast %313 : vector<1x32x1xf32> to vector<1x32x32xf32>
    %315 = arith.cmpf ole, %310, %314 : vector<1x32x32xf32>
    %c32_i32_96 = arith.constant 32 : i32
    %316 = vector.broadcast %c32_i32_96 : i32 to vector<1x32x32xi32>
    %317 = arith.select %315, %1, %316 : vector<1x32x32xi1>, vector<1x32x32xi32>
    %cst_97 = arith.constant dense<2147483647> : vector<1x32xi32>
    %318 = vector.multi_reduction <minsi>, %317, %cst_97 [2] : vector<1x32x32xi32> to vector<1x32xi32>
    %319 = vector.shape_cast %318 : vector<1x32xi32> to vector<1x32x1xi32>
    %320 = vector.broadcast %319 : vector<1x32x1xi32> to vector<1x32x32xi32>
    %321 = arith.cmpi eq, %1, %320 : vector<1x32x32xi32>
    %322 = arith.extui %321 : vector<1x32x32xi1> to vector<1x32x32xi32>
    %323 = arith.sitofp %322 : vector<1x32x32xi32> to vector<1x32x32xf32>
    %324 = arith.truncf %323 : vector<1x32x32xf32> to vector<1x32x32xbf16>
    "tpu.trace_start"() <{level = 10 : i32, message = "bij,bjf->bif"}> : () -> ()
    %cst_98 = arith.constant dense<0.000000e+00> : vector<1x32x64xf32>
    %325 = tpu.matmul %324, %191, %cst_98 {dimension_numbers = #tpu.dot_dimension_numbers<[2], [1], [1], [2], [0, 0, 0, 1, 1, 2], [0], [0]>} : vector<1x32x32xbf16>, vector<1x32x64xbf16>, vector<1x32x64xf32> -> vector<1x32x64xf32>
    "tpu.trace_stop"() : () -> ()
    %326 = arith.maximumf %311, %325 : vector<1x32x64xf32>
    %327 = arith.addf %177, %326 : vector<1x32x64xf32>
    %cst_99 = arith.constant 0.000000e+00 : f32
    %328 = vector.broadcast %cst_99 : f32 to vector<1x32x64xf32>
    %329 = arith.maximumf %327, %328 : vector<1x32x64xf32>
    %c0_100 = arith.constant 0 : index
    %c0_101 = arith.constant 0 : index
    %330 = vector.load %arg6[%c0_100, %c0_101] : memref<64x256xf32, #tpu.memory_space<vmem>>, vector<64x256xf32>
    %c0_102 = arith.constant 0 : index
    %c0_103 = arith.constant 0 : index
    %331 = vector.load %arg7[%c0_102, %c0_103] : memref<1x128xf32, #tpu.memory_space<vmem>>, vector<1x128xf32>
    %332 = vector.shape_cast %329 : vector<1x32x64xf32> to vector<32x64xf32>
    %cst_104 = arith.constant dense<0.000000e+00> : vector<32x256xf32>
    %333 = tpu.matmul %332, %330, %cst_104 {dimension_numbers = #tpu.dot_dimension_numbers<[1], [0], [0], [1], [0, 0, 1, 1], [], []>} : vector<32x64xf32>, vector<64x256xf32>, vector<32x256xf32> -> vector<32x256xf32>
    %334 = vector.extract_strided_slice %333 {offsets = [0, 0], sizes = [32, 128], strides = [1, 1]} : vector<32x256xf32> to vector<32x128xf32>
    %335 = vector.shape_cast %334 : vector<32x128xf32> to vector<1x32x128xf32>
    %336 = vector.extract_strided_slice %333 {offsets = [0, 128], sizes = [32, 128], strides = [1, 1]} : vector<32x256xf32> to vector<32x128xf32>
    %337 = vector.shape_cast %336 : vector<32x128xf32> to vector<1x32x128xf32>
    %338 = arith.subf %335, %337 : vector<1x32x128xf32>
    %339 = vector.shape_cast %331 : vector<1x128xf32> to vector<1x1x128xf32>
    %340 = vector.broadcast %339 : vector<1x1x128xf32> to vector<1x32x128xf32>
    %341 = arith.addf %338, %340 : vector<1x32x128xf32>
    "tpu.trace_start"() <{level = 10 : i32, message = "bpc,bqc->bpq"}> : () -> ()
    %cst_105 = arith.constant dense<0.000000e+00> : vector<1x32x32xf32>
    %342 = tpu.matmul %329, %329, %cst_105 {dimension_numbers = #tpu.dot_dimension_numbers<[2], [2], [1], [1], [0, 0, 0, 1, 1, 1], [0], [0]>} : vector<1x32x64xf32>, vector<1x32x64xf32>, vector<1x32x32xf32> -> vector<1x32x32xf32>
    "tpu.trace_stop"() : () -> ()
    %343 = arith.mulf %329, %329 : vector<1x32x64xf32>
    %cst_106 = arith.constant dense<0.000000e+00> : vector<1x32xf32>
    %344 = vector.multi_reduction <add>, %343, %cst_106 [2] : vector<1x32x64xf32> to vector<1x32xf32>
    %345 = vector.shape_cast %344 : vector<1x32xf32> to vector<1x32x1xf32>
    %346 = vector.shape_cast %344 : vector<1x32xf32> to vector<1x1x32xf32>
    %347 = vector.broadcast %345 : vector<1x32x1xf32> to vector<1x32x32xf32>
    %348 = vector.broadcast %346 : vector<1x1x32xf32> to vector<1x32x32xf32>
    %349 = arith.addf %347, %348 : vector<1x32x32xf32>
    %cst_107 = arith.constant 2.000000e+00 : f32
    %350 = vector.broadcast %cst_107 : f32 to vector<1x32x32xf32>
    %351 = arith.mulf %350, %342 : vector<1x32x32xf32>
    %352 = arith.subf %349, %351 : vector<1x32x32xf32>
    %cst_108 = arith.constant 0.000000e+00 : f32
    %353 = vector.broadcast %cst_108 : f32 to vector<1x32x32xf32>
    %354 = arith.maximumf %352, %353 : vector<1x32x32xf32>
    %355 = arith.truncf %337 : vector<1x32x128xf32> to vector<1x32x128xbf16>
    %cst_109 = arith.constant 0xFF800000 : f32
    %356 = vector.broadcast %cst_109 : f32 to vector<1x32x128xf32>
    %cst_110 = arith.constant dense<0x7F800000> : vector<1x32xf32>
    %357 = vector.multi_reduction <minimumf>, %354, %cst_110 [2] : vector<1x32x32xf32> to vector<1x32xf32>
    %358 = vector.shape_cast %357 : vector<1x32xf32> to vector<1x32x1xf32>
    %359 = vector.broadcast %358 : vector<1x32x1xf32> to vector<1x32x32xf32>
    %360 = arith.cmpf ole, %354, %359 : vector<1x32x32xf32>
    %c32_i32_111 = arith.constant 32 : i32
    %361 = vector.broadcast %c32_i32_111 : i32 to vector<1x32x32xi32>
    %362 = arith.select %360, %1, %361 : vector<1x32x32xi1>, vector<1x32x32xi32>
    %cst_112 = arith.constant dense<2147483647> : vector<1x32xi32>
    %363 = vector.multi_reduction <minsi>, %362, %cst_112 [2] : vector<1x32x32xi32> to vector<1x32xi32>
    %364 = vector.shape_cast %363 : vector<1x32xi32> to vector<1x32x1xi32>
    %365 = vector.broadcast %364 : vector<1x32x1xi32> to vector<1x32x32xi32>
    %366 = arith.cmpi eq, %1, %365 : vector<1x32x32xi32>
    %367 = arith.extui %366 : vector<1x32x32xi1> to vector<1x32x32xi32>
    %368 = arith.sitofp %367 : vector<1x32x32xi32> to vector<1x32x32xf32>
    %369 = arith.truncf %368 : vector<1x32x32xf32> to vector<1x32x32xbf16>
    "tpu.trace_start"() <{level = 10 : i32, message = "bij,bjf->bif"}> : () -> ()
    %cst_113 = arith.constant dense<0.000000e+00> : vector<1x32x128xf32>
    %370 = tpu.matmul %369, %355, %cst_113 {dimension_numbers = #tpu.dot_dimension_numbers<[2], [1], [1], [2], [0, 0, 0, 1, 1, 2], [0], [0]>} : vector<1x32x32xbf16>, vector<1x32x128xbf16>, vector<1x32x128xf32> -> vector<1x32x128xf32>
    %cst_114 = arith.constant 0x7F800000 : f32
    "tpu.trace_stop"() : () -> ()
    %371 = vector.broadcast %cst_114 : f32 to vector<1x32x32xf32>
    %372 = arith.select %366, %371, %354 : vector<1x32x32xi1>, vector<1x32x32xf32>
    %373 = arith.maximumf %356, %370 : vector<1x32x128xf32>
    %cst_115 = arith.constant dense<0x7F800000> : vector<1x32xf32>
    %374 = vector.multi_reduction <minimumf>, %372, %cst_115 [2] : vector<1x32x32xf32> to vector<1x32xf32>
    %375 = vector.shape_cast %374 : vector<1x32xf32> to vector<1x32x1xf32>
    %376 = vector.broadcast %375 : vector<1x32x1xf32> to vector<1x32x32xf32>
    %377 = arith.cmpf ole, %372, %376 : vector<1x32x32xf32>
    %c32_i32_116 = arith.constant 32 : i32
    %378 = vector.broadcast %c32_i32_116 : i32 to vector<1x32x32xi32>
    %379 = arith.select %377, %1, %378 : vector<1x32x32xi1>, vector<1x32x32xi32>
    %cst_117 = arith.constant dense<2147483647> : vector<1x32xi32>
    %380 = vector.multi_reduction <minsi>, %379, %cst_117 [2] : vector<1x32x32xi32> to vector<1x32xi32>
    %381 = vector.shape_cast %380 : vector<1x32xi32> to vector<1x32x1xi32>
    %382 = vector.broadcast %381 : vector<1x32x1xi32> to vector<1x32x32xi32>
    %383 = arith.cmpi eq, %1, %382 : vector<1x32x32xi32>
    %384 = arith.extui %383 : vector<1x32x32xi1> to vector<1x32x32xi32>
    %385 = arith.sitofp %384 : vector<1x32x32xi32> to vector<1x32x32xf32>
    %386 = arith.truncf %385 : vector<1x32x32xf32> to vector<1x32x32xbf16>
    "tpu.trace_start"() <{level = 10 : i32, message = "bij,bjf->bif"}> : () -> ()
    %cst_118 = arith.constant dense<0.000000e+00> : vector<1x32x128xf32>
    %387 = tpu.matmul %386, %355, %cst_118 {dimension_numbers = #tpu.dot_dimension_numbers<[2], [1], [1], [2], [0, 0, 0, 1, 1, 2], [0], [0]>} : vector<1x32x32xbf16>, vector<1x32x128xbf16>, vector<1x32x128xf32> -> vector<1x32x128xf32>
    %cst_119 = arith.constant 0x7F800000 : f32
    "tpu.trace_stop"() : () -> ()
    %388 = vector.broadcast %cst_119 : f32 to vector<1x32x32xf32>
    %389 = arith.select %383, %388, %372 : vector<1x32x32xi1>, vector<1x32x32xf32>
    %390 = arith.maximumf %373, %387 : vector<1x32x128xf32>
    %cst_120 = arith.constant dense<0x7F800000> : vector<1x32xf32>
    %391 = vector.multi_reduction <minimumf>, %389, %cst_120 [2] : vector<1x32x32xf32> to vector<1x32xf32>
    %392 = vector.shape_cast %391 : vector<1x32xf32> to vector<1x32x1xf32>
    %393 = vector.broadcast %392 : vector<1x32x1xf32> to vector<1x32x32xf32>
    %394 = arith.cmpf ole, %389, %393 : vector<1x32x32xf32>
    %c32_i32_121 = arith.constant 32 : i32
    %395 = vector.broadcast %c32_i32_121 : i32 to vector<1x32x32xi32>
    %396 = arith.select %394, %1, %395 : vector<1x32x32xi1>, vector<1x32x32xi32>
    %cst_122 = arith.constant dense<2147483647> : vector<1x32xi32>
    %397 = vector.multi_reduction <minsi>, %396, %cst_122 [2] : vector<1x32x32xi32> to vector<1x32xi32>
    %398 = vector.shape_cast %397 : vector<1x32xi32> to vector<1x32x1xi32>
    %399 = vector.broadcast %398 : vector<1x32x1xi32> to vector<1x32x32xi32>
    %400 = arith.cmpi eq, %1, %399 : vector<1x32x32xi32>
    %401 = arith.extui %400 : vector<1x32x32xi1> to vector<1x32x32xi32>
    %402 = arith.sitofp %401 : vector<1x32x32xi32> to vector<1x32x32xf32>
    %403 = arith.truncf %402 : vector<1x32x32xf32> to vector<1x32x32xbf16>
    "tpu.trace_start"() <{level = 10 : i32, message = "bij,bjf->bif"}> : () -> ()
    %cst_123 = arith.constant dense<0.000000e+00> : vector<1x32x128xf32>
    %404 = tpu.matmul %403, %355, %cst_123 {dimension_numbers = #tpu.dot_dimension_numbers<[2], [1], [1], [2], [0, 0, 0, 1, 1, 2], [0], [0]>} : vector<1x32x32xbf16>, vector<1x32x128xbf16>, vector<1x32x128xf32> -> vector<1x32x128xf32>
    %cst_124 = arith.constant 0x7F800000 : f32
    "tpu.trace_stop"() : () -> ()
    %405 = vector.broadcast %cst_124 : f32 to vector<1x32x32xf32>
    %406 = arith.select %400, %405, %389 : vector<1x32x32xi1>, vector<1x32x32xf32>
    %407 = arith.maximumf %390, %404 : vector<1x32x128xf32>
    %cst_125 = arith.constant dense<0x7F800000> : vector<1x32xf32>
    %408 = vector.multi_reduction <minimumf>, %406, %cst_125 [2] : vector<1x32x32xf32> to vector<1x32xf32>
    %409 = vector.shape_cast %408 : vector<1x32xf32> to vector<1x32x1xf32>
    %410 = vector.broadcast %409 : vector<1x32x1xf32> to vector<1x32x32xf32>
    %411 = arith.cmpf ole, %406, %410 : vector<1x32x32xf32>
    %c32_i32_126 = arith.constant 32 : i32
    %412 = vector.broadcast %c32_i32_126 : i32 to vector<1x32x32xi32>
    %413 = arith.select %411, %1, %412 : vector<1x32x32xi1>, vector<1x32x32xi32>
    %cst_127 = arith.constant dense<2147483647> : vector<1x32xi32>
    %414 = vector.multi_reduction <minsi>, %413, %cst_127 [2] : vector<1x32x32xi32> to vector<1x32xi32>
    %415 = vector.shape_cast %414 : vector<1x32xi32> to vector<1x32x1xi32>
    %416 = vector.broadcast %415 : vector<1x32x1xi32> to vector<1x32x32xi32>
    %417 = arith.cmpi eq, %1, %416 : vector<1x32x32xi32>
    %418 = arith.extui %417 : vector<1x32x32xi1> to vector<1x32x32xi32>
    %419 = arith.sitofp %418 : vector<1x32x32xi32> to vector<1x32x32xf32>
    %420 = arith.truncf %419 : vector<1x32x32xf32> to vector<1x32x32xbf16>
    "tpu.trace_start"() <{level = 10 : i32, message = "bij,bjf->bif"}> : () -> ()
    %cst_128 = arith.constant dense<0.000000e+00> : vector<1x32x128xf32>
    %421 = tpu.matmul %420, %355, %cst_128 {dimension_numbers = #tpu.dot_dimension_numbers<[2], [1], [1], [2], [0, 0, 0, 1, 1, 2], [0], [0]>} : vector<1x32x32xbf16>, vector<1x32x128xbf16>, vector<1x32x128xf32> -> vector<1x32x128xf32>
    %cst_129 = arith.constant 0x7F800000 : f32
    "tpu.trace_stop"() : () -> ()
    %422 = vector.broadcast %cst_129 : f32 to vector<1x32x32xf32>
    %423 = arith.select %417, %422, %406 : vector<1x32x32xi1>, vector<1x32x32xf32>
    %424 = arith.maximumf %407, %421 : vector<1x32x128xf32>
    %cst_130 = arith.constant dense<0x7F800000> : vector<1x32xf32>
    %425 = vector.multi_reduction <minimumf>, %423, %cst_130 [2] : vector<1x32x32xf32> to vector<1x32xf32>
    %426 = vector.shape_cast %425 : vector<1x32xf32> to vector<1x32x1xf32>
    %427 = vector.broadcast %426 : vector<1x32x1xf32> to vector<1x32x32xf32>
    %428 = arith.cmpf ole, %423, %427 : vector<1x32x32xf32>
    %c32_i32_131 = arith.constant 32 : i32
    %429 = vector.broadcast %c32_i32_131 : i32 to vector<1x32x32xi32>
    %430 = arith.select %428, %1, %429 : vector<1x32x32xi1>, vector<1x32x32xi32>
    %cst_132 = arith.constant dense<2147483647> : vector<1x32xi32>
    %431 = vector.multi_reduction <minsi>, %430, %cst_132 [2] : vector<1x32x32xi32> to vector<1x32xi32>
    %432 = vector.shape_cast %431 : vector<1x32xi32> to vector<1x32x1xi32>
    %433 = vector.broadcast %432 : vector<1x32x1xi32> to vector<1x32x32xi32>
    %434 = arith.cmpi eq, %1, %433 : vector<1x32x32xi32>
    %435 = arith.extui %434 : vector<1x32x32xi1> to vector<1x32x32xi32>
    %436 = arith.sitofp %435 : vector<1x32x32xi32> to vector<1x32x32xf32>
    %437 = arith.truncf %436 : vector<1x32x32xf32> to vector<1x32x32xbf16>
    "tpu.trace_start"() <{level = 10 : i32, message = "bij,bjf->bif"}> : () -> ()
    %cst_133 = arith.constant dense<0.000000e+00> : vector<1x32x128xf32>
    %438 = tpu.matmul %437, %355, %cst_133 {dimension_numbers = #tpu.dot_dimension_numbers<[2], [1], [1], [2], [0, 0, 0, 1, 1, 2], [0], [0]>} : vector<1x32x32xbf16>, vector<1x32x128xbf16>, vector<1x32x128xf32> -> vector<1x32x128xf32>
    %cst_134 = arith.constant 0x7F800000 : f32
    "tpu.trace_stop"() : () -> ()
    %439 = vector.broadcast %cst_134 : f32 to vector<1x32x32xf32>
    %440 = arith.select %434, %439, %423 : vector<1x32x32xi1>, vector<1x32x32xf32>
    %441 = arith.maximumf %424, %438 : vector<1x32x128xf32>
    %cst_135 = arith.constant dense<0x7F800000> : vector<1x32xf32>
    %442 = vector.multi_reduction <minimumf>, %440, %cst_135 [2] : vector<1x32x32xf32> to vector<1x32xf32>
    %443 = vector.shape_cast %442 : vector<1x32xf32> to vector<1x32x1xf32>
    %444 = vector.broadcast %443 : vector<1x32x1xf32> to vector<1x32x32xf32>
    %445 = arith.cmpf ole, %440, %444 : vector<1x32x32xf32>
    %c32_i32_136 = arith.constant 32 : i32
    %446 = vector.broadcast %c32_i32_136 : i32 to vector<1x32x32xi32>
    %447 = arith.select %445, %1, %446 : vector<1x32x32xi1>, vector<1x32x32xi32>
    %cst_137 = arith.constant dense<2147483647> : vector<1x32xi32>
    %448 = vector.multi_reduction <minsi>, %447, %cst_137 [2] : vector<1x32x32xi32> to vector<1x32xi32>
    %449 = vector.shape_cast %448 : vector<1x32xi32> to vector<1x32x1xi32>
    %450 = vector.broadcast %449 : vector<1x32x1xi32> to vector<1x32x32xi32>
    %451 = arith.cmpi eq, %1, %450 : vector<1x32x32xi32>
    %452 = arith.extui %451 : vector<1x32x32xi1> to vector<1x32x32xi32>
    %453 = arith.sitofp %452 : vector<1x32x32xi32> to vector<1x32x32xf32>
    %454 = arith.truncf %453 : vector<1x32x32xf32> to vector<1x32x32xbf16>
    "tpu.trace_start"() <{level = 10 : i32, message = "bij,bjf->bif"}> : () -> ()
    %cst_138 = arith.constant dense<0.000000e+00> : vector<1x32x128xf32>
    %455 = tpu.matmul %454, %355, %cst_138 {dimension_numbers = #tpu.dot_dimension_numbers<[2], [1], [1], [2], [0, 0, 0, 1, 1, 2], [0], [0]>} : vector<1x32x32xbf16>, vector<1x32x128xbf16>, vector<1x32x128xf32> -> vector<1x32x128xf32>
    %cst_139 = arith.constant 0x7F800000 : f32
    "tpu.trace_stop"() : () -> ()
    %456 = vector.broadcast %cst_139 : f32 to vector<1x32x32xf32>
    %457 = arith.select %451, %456, %440 : vector<1x32x32xi1>, vector<1x32x32xf32>
    %458 = arith.maximumf %441, %455 : vector<1x32x128xf32>
    %cst_140 = arith.constant dense<0x7F800000> : vector<1x32xf32>
    %459 = vector.multi_reduction <minimumf>, %457, %cst_140 [2] : vector<1x32x32xf32> to vector<1x32xf32>
    %460 = vector.shape_cast %459 : vector<1x32xf32> to vector<1x32x1xf32>
    %461 = vector.broadcast %460 : vector<1x32x1xf32> to vector<1x32x32xf32>
    %462 = arith.cmpf ole, %457, %461 : vector<1x32x32xf32>
    %c32_i32_141 = arith.constant 32 : i32
    %463 = vector.broadcast %c32_i32_141 : i32 to vector<1x32x32xi32>
    %464 = arith.select %462, %1, %463 : vector<1x32x32xi1>, vector<1x32x32xi32>
    %cst_142 = arith.constant dense<2147483647> : vector<1x32xi32>
    %465 = vector.multi_reduction <minsi>, %464, %cst_142 [2] : vector<1x32x32xi32> to vector<1x32xi32>
    %466 = vector.shape_cast %465 : vector<1x32xi32> to vector<1x32x1xi32>
    %467 = vector.broadcast %466 : vector<1x32x1xi32> to vector<1x32x32xi32>
    %468 = arith.cmpi eq, %1, %467 : vector<1x32x32xi32>
    %469 = arith.extui %468 : vector<1x32x32xi1> to vector<1x32x32xi32>
    %470 = arith.sitofp %469 : vector<1x32x32xi32> to vector<1x32x32xf32>
    %471 = arith.truncf %470 : vector<1x32x32xf32> to vector<1x32x32xbf16>
    "tpu.trace_start"() <{level = 10 : i32, message = "bij,bjf->bif"}> : () -> ()
    %cst_143 = arith.constant dense<0.000000e+00> : vector<1x32x128xf32>
    %472 = tpu.matmul %471, %355, %cst_143 {dimension_numbers = #tpu.dot_dimension_numbers<[2], [1], [1], [2], [0, 0, 0, 1, 1, 2], [0], [0]>} : vector<1x32x32xbf16>, vector<1x32x128xbf16>, vector<1x32x128xf32> -> vector<1x32x128xf32>
    %cst_144 = arith.constant 0x7F800000 : f32
    "tpu.trace_stop"() : () -> ()
    %473 = vector.broadcast %cst_144 : f32 to vector<1x32x32xf32>
    %474 = arith.select %468, %473, %457 : vector<1x32x32xi1>, vector<1x32x32xf32>
    %475 = arith.maximumf %458, %472 : vector<1x32x128xf32>
    %cst_145 = arith.constant dense<0x7F800000> : vector<1x32xf32>
    %476 = vector.multi_reduction <minimumf>, %474, %cst_145 [2] : vector<1x32x32xf32> to vector<1x32xf32>
    %477 = vector.shape_cast %476 : vector<1x32xf32> to vector<1x32x1xf32>
    %478 = vector.broadcast %477 : vector<1x32x1xf32> to vector<1x32x32xf32>
    %479 = arith.cmpf ole, %474, %478 : vector<1x32x32xf32>
    %c32_i32_146 = arith.constant 32 : i32
    %480 = vector.broadcast %c32_i32_146 : i32 to vector<1x32x32xi32>
    %481 = arith.select %479, %1, %480 : vector<1x32x32xi1>, vector<1x32x32xi32>
    %cst_147 = arith.constant dense<2147483647> : vector<1x32xi32>
    %482 = vector.multi_reduction <minsi>, %481, %cst_147 [2] : vector<1x32x32xi32> to vector<1x32xi32>
    %483 = vector.shape_cast %482 : vector<1x32xi32> to vector<1x32x1xi32>
    %484 = vector.broadcast %483 : vector<1x32x1xi32> to vector<1x32x32xi32>
    %485 = arith.cmpi eq, %1, %484 : vector<1x32x32xi32>
    %486 = arith.extui %485 : vector<1x32x32xi1> to vector<1x32x32xi32>
    %487 = arith.sitofp %486 : vector<1x32x32xi32> to vector<1x32x32xf32>
    %488 = arith.truncf %487 : vector<1x32x32xf32> to vector<1x32x32xbf16>
    "tpu.trace_start"() <{level = 10 : i32, message = "bij,bjf->bif"}> : () -> ()
    %cst_148 = arith.constant dense<0.000000e+00> : vector<1x32x128xf32>
    %489 = tpu.matmul %488, %355, %cst_148 {dimension_numbers = #tpu.dot_dimension_numbers<[2], [1], [1], [2], [0, 0, 0, 1, 1, 2], [0], [0]>} : vector<1x32x32xbf16>, vector<1x32x128xbf16>, vector<1x32x128xf32> -> vector<1x32x128xf32>
    "tpu.trace_stop"() : () -> ()
    %490 = arith.maximumf %475, %489 : vector<1x32x128xf32>
    %491 = arith.addf %341, %490 : vector<1x32x128xf32>
    %cst_149 = arith.constant 0.000000e+00 : f32
    %492 = vector.broadcast %cst_149 : f32 to vector<1x32x128xf32>
    %493 = arith.maximumf %491, %492 : vector<1x32x128xf32>
    %c0_150 = arith.constant 0 : index
    %c0_151 = arith.constant 0 : index
    %494 = vector.load %arg8[%c0_150, %c0_151] : memref<128x512xf32, #tpu.memory_space<vmem>>, vector<128x512xf32>
    %c0_152 = arith.constant 0 : index
    %c0_153 = arith.constant 0 : index
    %495 = vector.load %arg9[%c0_152, %c0_153] : memref<1x256xf32, #tpu.memory_space<vmem>>, vector<1x256xf32>
    %496 = vector.shape_cast %493 : vector<1x32x128xf32> to vector<32x128xf32>
    %cst_154 = arith.constant dense<0.000000e+00> : vector<32x512xf32>
    %497 = tpu.matmul %496, %494, %cst_154 {dimension_numbers = #tpu.dot_dimension_numbers<[1], [0], [0], [1], [0, 0, 1, 1], [], []>} : vector<32x128xf32>, vector<128x512xf32>, vector<32x512xf32> -> vector<32x512xf32>
    %498 = vector.extract_strided_slice %497 {offsets = [0, 0], sizes = [32, 256], strides = [1, 1]} : vector<32x512xf32> to vector<32x256xf32>
    %499 = vector.shape_cast %498 : vector<32x256xf32> to vector<1x32x256xf32>
    %500 = vector.extract_strided_slice %497 {offsets = [0, 256], sizes = [32, 256], strides = [1, 1]} : vector<32x512xf32> to vector<32x256xf32>
    %501 = vector.shape_cast %500 : vector<32x256xf32> to vector<1x32x256xf32>
    %502 = arith.subf %499, %501 : vector<1x32x256xf32>
    %503 = vector.shape_cast %495 : vector<1x256xf32> to vector<1x1x256xf32>
    %504 = vector.broadcast %503 : vector<1x1x256xf32> to vector<1x32x256xf32>
    %505 = arith.addf %502, %504 : vector<1x32x256xf32>
    "tpu.trace_start"() <{level = 10 : i32, message = "bpc,bqc->bpq"}> : () -> ()
    %cst_155 = arith.constant dense<0.000000e+00> : vector<1x32x32xf32>
    %506 = tpu.matmul %493, %493, %cst_155 {dimension_numbers = #tpu.dot_dimension_numbers<[2], [2], [1], [1], [0, 0, 0, 1, 1, 1], [0], [0]>} : vector<1x32x128xf32>, vector<1x32x128xf32>, vector<1x32x32xf32> -> vector<1x32x32xf32>
    "tpu.trace_stop"() : () -> ()
    %507 = arith.mulf %493, %493 : vector<1x32x128xf32>
    %cst_156 = arith.constant dense<0.000000e+00> : vector<1x32xf32>
    %508 = vector.multi_reduction <add>, %507, %cst_156 [2] : vector<1x32x128xf32> to vector<1x32xf32>
    %509 = vector.shape_cast %508 : vector<1x32xf32> to vector<1x32x1xf32>
    %510 = vector.shape_cast %508 : vector<1x32xf32> to vector<1x1x32xf32>
    %511 = vector.broadcast %509 : vector<1x32x1xf32> to vector<1x32x32xf32>
    %512 = vector.broadcast %510 : vector<1x1x32xf32> to vector<1x32x32xf32>
    %513 = arith.addf %511, %512 : vector<1x32x32xf32>
    %cst_157 = arith.constant 2.000000e+00 : f32
    %514 = vector.broadcast %cst_157 : f32 to vector<1x32x32xf32>
    %515 = arith.mulf %514, %506 : vector<1x32x32xf32>
    %516 = arith.subf %513, %515 : vector<1x32x32xf32>
    %cst_158 = arith.constant 0.000000e+00 : f32
    %517 = vector.broadcast %cst_158 : f32 to vector<1x32x32xf32>
    %518 = arith.maximumf %516, %517 : vector<1x32x32xf32>
    %519 = arith.truncf %501 : vector<1x32x256xf32> to vector<1x32x256xbf16>
    %cst_159 = arith.constant 0xFF800000 : f32
    %520 = vector.broadcast %cst_159 : f32 to vector<1x32x256xf32>
    %cst_160 = arith.constant dense<0x7F800000> : vector<1x32xf32>
    %521 = vector.multi_reduction <minimumf>, %518, %cst_160 [2] : vector<1x32x32xf32> to vector<1x32xf32>
    %522 = vector.shape_cast %521 : vector<1x32xf32> to vector<1x32x1xf32>
    %523 = vector.broadcast %522 : vector<1x32x1xf32> to vector<1x32x32xf32>
    %524 = arith.cmpf ole, %518, %523 : vector<1x32x32xf32>
    %c32_i32_161 = arith.constant 32 : i32
    %525 = vector.broadcast %c32_i32_161 : i32 to vector<1x32x32xi32>
    %526 = arith.select %524, %1, %525 : vector<1x32x32xi1>, vector<1x32x32xi32>
    %cst_162 = arith.constant dense<2147483647> : vector<1x32xi32>
    %527 = vector.multi_reduction <minsi>, %526, %cst_162 [2] : vector<1x32x32xi32> to vector<1x32xi32>
    %528 = vector.shape_cast %527 : vector<1x32xi32> to vector<1x32x1xi32>
    %529 = vector.broadcast %528 : vector<1x32x1xi32> to vector<1x32x32xi32>
    %530 = arith.cmpi eq, %1, %529 : vector<1x32x32xi32>
    %531 = arith.extui %530 : vector<1x32x32xi1> to vector<1x32x32xi32>
    %532 = arith.sitofp %531 : vector<1x32x32xi32> to vector<1x32x32xf32>
    %533 = arith.truncf %532 : vector<1x32x32xf32> to vector<1x32x32xbf16>
    "tpu.trace_start"() <{level = 10 : i32, message = "bij,bjf->bif"}> : () -> ()
    %cst_163 = arith.constant dense<0.000000e+00> : vector<1x32x256xf32>
    %534 = tpu.matmul %533, %519, %cst_163 {dimension_numbers = #tpu.dot_dimension_numbers<[2], [1], [1], [2], [0, 0, 0, 1, 1, 2], [0], [0]>} : vector<1x32x32xbf16>, vector<1x32x256xbf16>, vector<1x32x256xf32> -> vector<1x32x256xf32>
    %cst_164 = arith.constant 0x7F800000 : f32
    "tpu.trace_stop"() : () -> ()
    %535 = vector.broadcast %cst_164 : f32 to vector<1x32x32xf32>
    %536 = arith.select %530, %535, %518 : vector<1x32x32xi1>, vector<1x32x32xf32>
    %537 = arith.maximumf %520, %534 : vector<1x32x256xf32>
    %cst_165 = arith.constant dense<0x7F800000> : vector<1x32xf32>
    %538 = vector.multi_reduction <minimumf>, %536, %cst_165 [2] : vector<1x32x32xf32> to vector<1x32xf32>
    %539 = vector.shape_cast %538 : vector<1x32xf32> to vector<1x32x1xf32>
    %540 = vector.broadcast %539 : vector<1x32x1xf32> to vector<1x32x32xf32>
    %541 = arith.cmpf ole, %536, %540 : vector<1x32x32xf32>
    %c32_i32_166 = arith.constant 32 : i32
    %542 = vector.broadcast %c32_i32_166 : i32 to vector<1x32x32xi32>
    %543 = arith.select %541, %1, %542 : vector<1x32x32xi1>, vector<1x32x32xi32>
    %cst_167 = arith.constant dense<2147483647> : vector<1x32xi32>
    %544 = vector.multi_reduction <minsi>, %543, %cst_167 [2] : vector<1x32x32xi32> to vector<1x32xi32>
    %545 = vector.shape_cast %544 : vector<1x32xi32> to vector<1x32x1xi32>
    %546 = vector.broadcast %545 : vector<1x32x1xi32> to vector<1x32x32xi32>
    %547 = arith.cmpi eq, %1, %546 : vector<1x32x32xi32>
    %548 = arith.extui %547 : vector<1x32x32xi1> to vector<1x32x32xi32>
    %549 = arith.sitofp %548 : vector<1x32x32xi32> to vector<1x32x32xf32>
    %550 = arith.truncf %549 : vector<1x32x32xf32> to vector<1x32x32xbf16>
    "tpu.trace_start"() <{level = 10 : i32, message = "bij,bjf->bif"}> : () -> ()
    %cst_168 = arith.constant dense<0.000000e+00> : vector<1x32x256xf32>
    %551 = tpu.matmul %550, %519, %cst_168 {dimension_numbers = #tpu.dot_dimension_numbers<[2], [1], [1], [2], [0, 0, 0, 1, 1, 2], [0], [0]>} : vector<1x32x32xbf16>, vector<1x32x256xbf16>, vector<1x32x256xf32> -> vector<1x32x256xf32>
    %cst_169 = arith.constant 0x7F800000 : f32
    "tpu.trace_stop"() : () -> ()
    %552 = vector.broadcast %cst_169 : f32 to vector<1x32x32xf32>
    %553 = arith.select %547, %552, %536 : vector<1x32x32xi1>, vector<1x32x32xf32>
    %554 = arith.maximumf %537, %551 : vector<1x32x256xf32>
    %cst_170 = arith.constant dense<0x7F800000> : vector<1x32xf32>
    %555 = vector.multi_reduction <minimumf>, %553, %cst_170 [2] : vector<1x32x32xf32> to vector<1x32xf32>
    %556 = vector.shape_cast %555 : vector<1x32xf32> to vector<1x32x1xf32>
    %557 = vector.broadcast %556 : vector<1x32x1xf32> to vector<1x32x32xf32>
    %558 = arith.cmpf ole, %553, %557 : vector<1x32x32xf32>
    %c32_i32_171 = arith.constant 32 : i32
    %559 = vector.broadcast %c32_i32_171 : i32 to vector<1x32x32xi32>
    %560 = arith.select %558, %1, %559 : vector<1x32x32xi1>, vector<1x32x32xi32>
    %cst_172 = arith.constant dense<2147483647> : vector<1x32xi32>
    %561 = vector.multi_reduction <minsi>, %560, %cst_172 [2] : vector<1x32x32xi32> to vector<1x32xi32>
    %562 = vector.shape_cast %561 : vector<1x32xi32> to vector<1x32x1xi32>
    %563 = vector.broadcast %562 : vector<1x32x1xi32> to vector<1x32x32xi32>
    %564 = arith.cmpi eq, %1, %563 : vector<1x32x32xi32>
    %565 = arith.extui %564 : vector<1x32x32xi1> to vector<1x32x32xi32>
    %566 = arith.sitofp %565 : vector<1x32x32xi32> to vector<1x32x32xf32>
    %567 = arith.truncf %566 : vector<1x32x32xf32> to vector<1x32x32xbf16>
    "tpu.trace_start"() <{level = 10 : i32, message = "bij,bjf->bif"}> : () -> ()
    %cst_173 = arith.constant dense<0.000000e+00> : vector<1x32x256xf32>
    %568 = tpu.matmul %567, %519, %cst_173 {dimension_numbers = #tpu.dot_dimension_numbers<[2], [1], [1], [2], [0, 0, 0, 1, 1, 2], [0], [0]>} : vector<1x32x32xbf16>, vector<1x32x256xbf16>, vector<1x32x256xf32> -> vector<1x32x256xf32>
    %cst_174 = arith.constant 0x7F800000 : f32
    "tpu.trace_stop"() : () -> ()
    %569 = vector.broadcast %cst_174 : f32 to vector<1x32x32xf32>
    %570 = arith.select %564, %569, %553 : vector<1x32x32xi1>, vector<1x32x32xf32>
    %571 = arith.maximumf %554, %568 : vector<1x32x256xf32>
    %cst_175 = arith.constant dense<0x7F800000> : vector<1x32xf32>
    %572 = vector.multi_reduction <minimumf>, %570, %cst_175 [2] : vector<1x32x32xf32> to vector<1x32xf32>
    %573 = vector.shape_cast %572 : vector<1x32xf32> to vector<1x32x1xf32>
    %574 = vector.broadcast %573 : vector<1x32x1xf32> to vector<1x32x32xf32>
    %575 = arith.cmpf ole, %570, %574 : vector<1x32x32xf32>
    %c32_i32_176 = arith.constant 32 : i32
    %576 = vector.broadcast %c32_i32_176 : i32 to vector<1x32x32xi32>
    %577 = arith.select %575, %1, %576 : vector<1x32x32xi1>, vector<1x32x32xi32>
    %cst_177 = arith.constant dense<2147483647> : vector<1x32xi32>
    %578 = vector.multi_reduction <minsi>, %577, %cst_177 [2] : vector<1x32x32xi32> to vector<1x32xi32>
    %579 = vector.shape_cast %578 : vector<1x32xi32> to vector<1x32x1xi32>
    %580 = vector.broadcast %579 : vector<1x32x1xi32> to vector<1x32x32xi32>
    %581 = arith.cmpi eq, %1, %580 : vector<1x32x32xi32>
    %582 = arith.extui %581 : vector<1x32x32xi1> to vector<1x32x32xi32>
    %583 = arith.sitofp %582 : vector<1x32x32xi32> to vector<1x32x32xf32>
    %584 = arith.truncf %583 : vector<1x32x32xf32> to vector<1x32x32xbf16>
    "tpu.trace_start"() <{level = 10 : i32, message = "bij,bjf->bif"}> : () -> ()
    %cst_178 = arith.constant dense<0.000000e+00> : vector<1x32x256xf32>
    %585 = tpu.matmul %584, %519, %cst_178 {dimension_numbers = #tpu.dot_dimension_numbers<[2], [1], [1], [2], [0, 0, 0, 1, 1, 2], [0], [0]>} : vector<1x32x32xbf16>, vector<1x32x256xbf16>, vector<1x32x256xf32> -> vector<1x32x256xf32>
    %cst_179 = arith.constant 0x7F800000 : f32
    "tpu.trace_stop"() : () -> ()
    %586 = vector.broadcast %cst_179 : f32 to vector<1x32x32xf32>
    %587 = arith.select %581, %586, %570 : vector<1x32x32xi1>, vector<1x32x32xf32>
    %588 = arith.maximumf %571, %585 : vector<1x32x256xf32>
    %cst_180 = arith.constant dense<0x7F800000> : vector<1x32xf32>
    %589 = vector.multi_reduction <minimumf>, %587, %cst_180 [2] : vector<1x32x32xf32> to vector<1x32xf32>
    %590 = vector.shape_cast %589 : vector<1x32xf32> to vector<1x32x1xf32>
    %591 = vector.broadcast %590 : vector<1x32x1xf32> to vector<1x32x32xf32>
    %592 = arith.cmpf ole, %587, %591 : vector<1x32x32xf32>
    %c32_i32_181 = arith.constant 32 : i32
    %593 = vector.broadcast %c32_i32_181 : i32 to vector<1x32x32xi32>
    %594 = arith.select %592, %1, %593 : vector<1x32x32xi1>, vector<1x32x32xi32>
    %cst_182 = arith.constant dense<2147483647> : vector<1x32xi32>
    %595 = vector.multi_reduction <minsi>, %594, %cst_182 [2] : vector<1x32x32xi32> to vector<1x32xi32>
    %596 = vector.shape_cast %595 : vector<1x32xi32> to vector<1x32x1xi32>
    %597 = vector.broadcast %596 : vector<1x32x1xi32> to vector<1x32x32xi32>
    %598 = arith.cmpi eq, %1, %597 : vector<1x32x32xi32>
    %599 = arith.extui %598 : vector<1x32x32xi1> to vector<1x32x32xi32>
    %600 = arith.sitofp %599 : vector<1x32x32xi32> to vector<1x32x32xf32>
    %601 = arith.truncf %600 : vector<1x32x32xf32> to vector<1x32x32xbf16>
    "tpu.trace_start"() <{level = 10 : i32, message = "bij,bjf->bif"}> : () -> ()
    %cst_183 = arith.constant dense<0.000000e+00> : vector<1x32x256xf32>
    %602 = tpu.matmul %601, %519, %cst_183 {dimension_numbers = #tpu.dot_dimension_numbers<[2], [1], [1], [2], [0, 0, 0, 1, 1, 2], [0], [0]>} : vector<1x32x32xbf16>, vector<1x32x256xbf16>, vector<1x32x256xf32> -> vector<1x32x256xf32>
    %cst_184 = arith.constant 0x7F800000 : f32
    "tpu.trace_stop"() : () -> ()
    %603 = vector.broadcast %cst_184 : f32 to vector<1x32x32xf32>
    %604 = arith.select %598, %603, %587 : vector<1x32x32xi1>, vector<1x32x32xf32>
    %605 = arith.maximumf %588, %602 : vector<1x32x256xf32>
    %cst_185 = arith.constant dense<0x7F800000> : vector<1x32xf32>
    %606 = vector.multi_reduction <minimumf>, %604, %cst_185 [2] : vector<1x32x32xf32> to vector<1x32xf32>
    %607 = vector.shape_cast %606 : vector<1x32xf32> to vector<1x32x1xf32>
    %608 = vector.broadcast %607 : vector<1x32x1xf32> to vector<1x32x32xf32>
    %609 = arith.cmpf ole, %604, %608 : vector<1x32x32xf32>
    %c32_i32_186 = arith.constant 32 : i32
    %610 = vector.broadcast %c32_i32_186 : i32 to vector<1x32x32xi32>
    %611 = arith.select %609, %1, %610 : vector<1x32x32xi1>, vector<1x32x32xi32>
    %cst_187 = arith.constant dense<2147483647> : vector<1x32xi32>
    %612 = vector.multi_reduction <minsi>, %611, %cst_187 [2] : vector<1x32x32xi32> to vector<1x32xi32>
    %613 = vector.shape_cast %612 : vector<1x32xi32> to vector<1x32x1xi32>
    %614 = vector.broadcast %613 : vector<1x32x1xi32> to vector<1x32x32xi32>
    %615 = arith.cmpi eq, %1, %614 : vector<1x32x32xi32>
    %616 = arith.extui %615 : vector<1x32x32xi1> to vector<1x32x32xi32>
    %617 = arith.sitofp %616 : vector<1x32x32xi32> to vector<1x32x32xf32>
    %618 = arith.truncf %617 : vector<1x32x32xf32> to vector<1x32x32xbf16>
    "tpu.trace_start"() <{level = 10 : i32, message = "bij,bjf->bif"}> : () -> ()
    %cst_188 = arith.constant dense<0.000000e+00> : vector<1x32x256xf32>
    %619 = tpu.matmul %618, %519, %cst_188 {dimension_numbers = #tpu.dot_dimension_numbers<[2], [1], [1], [2], [0, 0, 0, 1, 1, 2], [0], [0]>} : vector<1x32x32xbf16>, vector<1x32x256xbf16>, vector<1x32x256xf32> -> vector<1x32x256xf32>
    %cst_189 = arith.constant 0x7F800000 : f32
    "tpu.trace_stop"() : () -> ()
    %620 = vector.broadcast %cst_189 : f32 to vector<1x32x32xf32>
    %621 = arith.select %615, %620, %604 : vector<1x32x32xi1>, vector<1x32x32xf32>
    %622 = arith.maximumf %605, %619 : vector<1x32x256xf32>
    %cst_190 = arith.constant dense<0x7F800000> : vector<1x32xf32>
    %623 = vector.multi_reduction <minimumf>, %621, %cst_190 [2] : vector<1x32x32xf32> to vector<1x32xf32>
    %624 = vector.shape_cast %623 : vector<1x32xf32> to vector<1x32x1xf32>
    %625 = vector.broadcast %624 : vector<1x32x1xf32> to vector<1x32x32xf32>
    %626 = arith.cmpf ole, %621, %625 : vector<1x32x32xf32>
    %c32_i32_191 = arith.constant 32 : i32
    %627 = vector.broadcast %c32_i32_191 : i32 to vector<1x32x32xi32>
    %628 = arith.select %626, %1, %627 : vector<1x32x32xi1>, vector<1x32x32xi32>
    %cst_192 = arith.constant dense<2147483647> : vector<1x32xi32>
    %629 = vector.multi_reduction <minsi>, %628, %cst_192 [2] : vector<1x32x32xi32> to vector<1x32xi32>
    %630 = vector.shape_cast %629 : vector<1x32xi32> to vector<1x32x1xi32>
    %631 = vector.broadcast %630 : vector<1x32x1xi32> to vector<1x32x32xi32>
    %632 = arith.cmpi eq, %1, %631 : vector<1x32x32xi32>
    %633 = arith.extui %632 : vector<1x32x32xi1> to vector<1x32x32xi32>
    %634 = arith.sitofp %633 : vector<1x32x32xi32> to vector<1x32x32xf32>
    %635 = arith.truncf %634 : vector<1x32x32xf32> to vector<1x32x32xbf16>
    "tpu.trace_start"() <{level = 10 : i32, message = "bij,bjf->bif"}> : () -> ()
    %cst_193 = arith.constant dense<0.000000e+00> : vector<1x32x256xf32>
    %636 = tpu.matmul %635, %519, %cst_193 {dimension_numbers = #tpu.dot_dimension_numbers<[2], [1], [1], [2], [0, 0, 0, 1, 1, 2], [0], [0]>} : vector<1x32x32xbf16>, vector<1x32x256xbf16>, vector<1x32x256xf32> -> vector<1x32x256xf32>
    %cst_194 = arith.constant 0x7F800000 : f32
    "tpu.trace_stop"() : () -> ()
    %637 = vector.broadcast %cst_194 : f32 to vector<1x32x32xf32>
    %638 = arith.select %632, %637, %621 : vector<1x32x32xi1>, vector<1x32x32xf32>
    %639 = arith.maximumf %622, %636 : vector<1x32x256xf32>
    %cst_195 = arith.constant dense<0x7F800000> : vector<1x32xf32>
    %640 = vector.multi_reduction <minimumf>, %638, %cst_195 [2] : vector<1x32x32xf32> to vector<1x32xf32>
    %641 = vector.shape_cast %640 : vector<1x32xf32> to vector<1x32x1xf32>
    %642 = vector.broadcast %641 : vector<1x32x1xf32> to vector<1x32x32xf32>
    %643 = arith.cmpf ole, %638, %642 : vector<1x32x32xf32>
    %c32_i32_196 = arith.constant 32 : i32
    %644 = vector.broadcast %c32_i32_196 : i32 to vector<1x32x32xi32>
    %645 = arith.select %643, %1, %644 : vector<1x32x32xi1>, vector<1x32x32xi32>
    %cst_197 = arith.constant dense<2147483647> : vector<1x32xi32>
    %646 = vector.multi_reduction <minsi>, %645, %cst_197 [2] : vector<1x32x32xi32> to vector<1x32xi32>
    %647 = vector.shape_cast %646 : vector<1x32xi32> to vector<1x32x1xi32>
    %648 = vector.broadcast %647 : vector<1x32x1xi32> to vector<1x32x32xi32>
    %649 = arith.cmpi eq, %1, %648 : vector<1x32x32xi32>
    %650 = arith.extui %649 : vector<1x32x32xi1> to vector<1x32x32xi32>
    %651 = arith.sitofp %650 : vector<1x32x32xi32> to vector<1x32x32xf32>
    %652 = arith.truncf %651 : vector<1x32x32xf32> to vector<1x32x32xbf16>
    "tpu.trace_start"() <{level = 10 : i32, message = "bij,bjf->bif"}> : () -> ()
    %cst_198 = arith.constant dense<0.000000e+00> : vector<1x32x256xf32>
    %653 = tpu.matmul %652, %519, %cst_198 {dimension_numbers = #tpu.dot_dimension_numbers<[2], [1], [1], [2], [0, 0, 0, 1, 1, 2], [0], [0]>} : vector<1x32x32xbf16>, vector<1x32x256xbf16>, vector<1x32x256xf32> -> vector<1x32x256xf32>
    "tpu.trace_stop"() : () -> ()
    %654 = arith.maximumf %639, %653 : vector<1x32x256xf32>
    %655 = arith.addf %505, %654 : vector<1x32x256xf32>
    %cst_199 = arith.constant 0.000000e+00 : f32
    %656 = vector.broadcast %cst_199 : f32 to vector<1x32x256xf32>
    %657 = arith.maximumf %655, %656 : vector<1x32x256xf32>
    %658 = vector.shape_cast %165 : vector<1x32x64xf32> to vector<32x64xf32>
    %c0_200 = arith.constant 0 : index
    %c0_201 = arith.constant 0 : index
    %659 = vector.load %arg10[%c0_200, %c0_201] : memref<64x1024xf32, #tpu.memory_space<vmem>>, vector<64x1024xf32>
    %cst_202 = arith.constant dense<0.000000e+00> : vector<32x1024xf32>
    %660 = tpu.matmul %658, %659, %cst_202 {dimension_numbers = #tpu.dot_dimension_numbers<[1], [0], [0], [1], [0, 0, 1, 1], [], []>} : vector<32x64xf32>, vector<64x1024xf32>, vector<32x1024xf32> -> vector<32x1024xf32>
    %661 = vector.shape_cast %329 : vector<1x32x64xf32> to vector<32x64xf32>
    %c0_203 = arith.constant 0 : index
    %c0_204 = arith.constant 0 : index
    %662 = vector.load %arg11[%c0_203, %c0_204] : memref<64x1024xf32, #tpu.memory_space<vmem>>, vector<64x1024xf32>
    %cst_205 = arith.constant dense<0.000000e+00> : vector<32x1024xf32>
    %663 = tpu.matmul %661, %662, %cst_205 {dimension_numbers = #tpu.dot_dimension_numbers<[1], [0], [0], [1], [0, 0, 1, 1], [], []>} : vector<32x64xf32>, vector<64x1024xf32>, vector<32x1024xf32> -> vector<32x1024xf32>
    %664 = arith.addf %660, %663 : vector<32x1024xf32>
    %665 = vector.shape_cast %493 : vector<1x32x128xf32> to vector<32x128xf32>
    %c0_206 = arith.constant 0 : index
    %c0_207 = arith.constant 0 : index
    %666 = vector.load %arg12[%c0_206, %c0_207] : memref<128x1024xf32, #tpu.memory_space<vmem>>, vector<128x1024xf32>
    %cst_208 = arith.constant dense<0.000000e+00> : vector<32x1024xf32>
    %667 = tpu.matmul %665, %666, %cst_208 {dimension_numbers = #tpu.dot_dimension_numbers<[1], [0], [0], [1], [0, 0, 1, 1], [], []>} : vector<32x128xf32>, vector<128x1024xf32>, vector<32x1024xf32> -> vector<32x1024xf32>
    %668 = arith.addf %664, %667 : vector<32x1024xf32>
    %669 = vector.shape_cast %657 : vector<1x32x256xf32> to vector<32x256xf32>
    %c0_209 = arith.constant 0 : index
    %c0_210 = arith.constant 0 : index
    %670 = vector.load %arg13[%c0_209, %c0_210] : memref<256x1024xf32, #tpu.memory_space<vmem>>, vector<256x1024xf32>
    %cst_211 = arith.constant dense<0.000000e+00> : vector<32x1024xf32>
    %671 = tpu.matmul %669, %670, %cst_211 {dimension_numbers = #tpu.dot_dimension_numbers<[1], [0], [0], [1], [0, 0, 1, 1], [], []>} : vector<32x256xf32>, vector<256x1024xf32>, vector<32x1024xf32> -> vector<32x1024xf32>
    %672 = arith.addf %668, %671 : vector<32x1024xf32>
    %c0_212 = arith.constant 0 : index
    %c0_213 = arith.constant 0 : index
    %673 = vector.load %arg14[%c0_212, %c0_213] : memref<1x1024xf32, #tpu.memory_space<vmem>>, vector<1x1024xf32>
    %674 = vector.broadcast %673 : vector<1x1024xf32> to vector<32x1024xf32>
    %675 = arith.addf %672, %674 : vector<32x1024xf32>
    %cst_214 = arith.constant 0.000000e+00 : f32
    %676 = vector.broadcast %cst_214 : f32 to vector<32x1024xf32>
    %677 = arith.maximumf %675, %676 : vector<32x1024xf32>
    %678 = vector.shape_cast %677 : vector<32x1024xf32> to vector<1x32x1024xf32>
    %cst_215 = arith.constant dense<0xFF800000> : vector<1x1024xf32>
    %679 = vector.multi_reduction <maximumf>, %678, %cst_215 [1] : vector<1x32x1024xf32> to vector<1x1024xf32>
    %680 = vector.shape_cast %679 : vector<1x1024xf32> to vector<1x1x1024xf32>
    %c0_216 = arith.constant 0 : index
    %c0_217 = arith.constant 0 : index
    %c0_218 = arith.constant 0 : index
    %681 = vector.load %arg15[%c0_216, %c0_217, %c0_218] : memref<1x1x2048xf32, #tpu.memory_space<vmem>>, vector<1x1x1024xf32>
    tpu.vector_store %arg15[%c0_216, %c0_217, %c0_218], %680 {strides = array<i32>} : memref<1x1x2048xf32, #tpu.memory_space<vmem>>, vector<1x1x1024xf32>,
    %cst_219 = arith.constant dense<0.000000e+00> : vector<1x1024xf32>
    %682 = vector.multi_reduction <add>, %678, %cst_219 [1] : vector<1x32x1024xf32> to vector<1x1024xf32>
    %683 = vector.shape_cast %682 : vector<1x1024xf32> to vector<1x1x1024xf32>
    %cst_220 = arith.constant 3.125000e-02 : f32
    %684 = vector.broadcast %cst_220 : f32 to vector<1x1x1024xf32>
    %685 = arith.mulf %683, %684 : vector<1x1x1024xf32>
    %c0_221 = arith.constant 0 : index
    %c0_222 = arith.constant 0 : index
    %c1024 = arith.constant 1024 : index
    %686 = vector.load %arg15[%c0_221, %c0_222, %c1024] : memref<1x1x2048xf32, #tpu.memory_space<vmem>>, vector<1x1x1024xf32>
    tpu.vector_store %arg15[%c0_221, %c0_222, %c1024], %685 {strides = array<i32>} : memref<1x1x2048xf32, #tpu.memory_space<vmem>>, vector<1x1x1024xf32>,
    return
  }
  func.func @transform_0(%arg0: i32) -> (i32, i32, i32) {
    %c0_i32 = arith.constant 0 : i32
    %c0_i32_0 = arith.constant 0 : i32
    %c0_i32_1 = arith.constant 0 : i32
    return %arg0, %c0_i32, %c0_i32_0 : i32, i32, i32
  }
  func.func @transform_1(%arg0: i32) -> (i32, i32) {
    %c0_i32 = arith.constant 0 : i32
    %c0_i32_0 = arith.constant 0 : i32
    %c0_i32_1 = arith.constant 0 : i32
    return %c0_i32, %c0_i32_0 : i32, i32
  }
  func.func @transform_2(%arg0: i32) -> (i32, i32) {
    %c0_i32 = arith.constant 0 : i32
    %c0_i32_0 = arith.constant 0 : i32
    %c0_i32_1 = arith.constant 0 : i32
    return %c0_i32, %c0_i32_0 : i32, i32
  }
  func.func @transform_3(%arg0: i32) -> (i32, i32) {
    %c0_i32 = arith.constant 0 : i32
    %c0_i32_0 = arith.constant 0 : i32
    %c0_i32_1 = arith.constant 0 : i32
    return %c0_i32, %c0_i32_0 : i32, i32
  }
  func.func @transform_4(%arg0: i32) -> (i32, i32) {
    %c0_i32 = arith.constant 0 : i32
    %c0_i32_0 = arith.constant 0 : i32
    %c0_i32_1 = arith.constant 0 : i32
    return %c0_i32, %c0_i32_0 : i32, i32
  }
  func.func @transform_5(%arg0: i32) -> (i32, i32) {
    %c0_i32 = arith.constant 0 : i32
    %c0_i32_0 = arith.constant 0 : i32
    %c0_i32_1 = arith.constant 0 : i32
    return %c0_i32, %c0_i32_0 : i32, i32
  }
  func.func @transform_6(%arg0: i32) -> (i32, i32) {
    %c0_i32 = arith.constant 0 : i32
    %c0_i32_0 = arith.constant 0 : i32
    %c0_i32_1 = arith.constant 0 : i32
    return %c0_i32, %c0_i32_0 : i32, i32
  }
  func.func @transform_7(%arg0: i32) -> (i32, i32) {
    %c0_i32 = arith.constant 0 : i32
    %c0_i32_0 = arith.constant 0 : i32
    %c0_i32_1 = arith.constant 0 : i32
    return %c0_i32, %c0_i32_0 : i32, i32
  }
  func.func @transform_8(%arg0: i32) -> (i32, i32) {
    %c0_i32 = arith.constant 0 : i32
    %c0_i32_0 = arith.constant 0 : i32
    %c0_i32_1 = arith.constant 0 : i32
    return %c0_i32, %c0_i32_0 : i32, i32
  }
  func.func @transform_9(%arg0: i32) -> (i32, i32) {
    %c0_i32 = arith.constant 0 : i32
    %c0_i32_0 = arith.constant 0 : i32
    %c0_i32_1 = arith.constant 0 : i32
    return %c0_i32, %c0_i32_0 : i32, i32
  }
  func.func @transform_10(%arg0: i32) -> (i32, i32) {
    %c0_i32 = arith.constant 0 : i32
    %c0_i32_0 = arith.constant 0 : i32
    %c0_i32_1 = arith.constant 0 : i32
    return %c0_i32, %c0_i32_0 : i32, i32
  }
  func.func @transform_11(%arg0: i32) -> (i32, i32) {
    %c0_i32 = arith.constant 0 : i32
    %c0_i32_0 = arith.constant 0 : i32
    %c0_i32_1 = arith.constant 0 : i32
    return %c0_i32, %c0_i32_0 : i32, i32
  }
  func.func @transform_12(%arg0: i32) -> (i32, i32) {
    %c0_i32 = arith.constant 0 : i32
    %c0_i32_0 = arith.constant 0 : i32
    %c0_i32_1 = arith.constant 0 : i32
    return %c0_i32, %c0_i32_0 : i32, i32
  }
  func.func @transform_13(%arg0: i32) -> (i32, i32) {
    %c0_i32 = arith.constant 0 : i32
    %c0_i32_0 = arith.constant 0 : i32
    %c0_i32_1 = arith.constant 0 : i32
    return %c0_i32, %c0_i32_0 : i32, i32
  }
  func.func @transform_14(%arg0: i32) -> (i32, i32, i32) {
    %c0_i32 = arith.constant 0 : i32
    %c0_i32_0 = arith.constant 0 : i32
    %c0_i32_1 = arith.constant 0 : i32
    return %arg0, %c0_i32, %c0_i32_0 : i32, i32, i32
  }
}

</mosaic_0001>

<bundles_post_ra>
// kernel: tpu_custom_call.1
= control target key start
LH: loop header
LB: loop body
LE: loop exit
PB: predicated region body
PF: predicated region fallthrough
CT: control target
= control target key end

     0   :  { %s14329_s0 = inlined_call_operand.vmem [shape: f32[2,32,3], index: 0, kind: input, shape index: {}]   ;;  %s14330_s1 = inlined_call_operand.vmem [shape: f32[3,128], index: 1, kind: input, shape index: {}]   ;;  %s14331_s2 = inlined_call_operand.vmem [shape: f32[1,64], index: 2, kind: input, shape index: {}]   ;;  %s14332_s3 = inlined_call_operand.vmem [shape: f32[64,128], index: 3, kind: input, shape index: {}]   ;;  %s14333_s4 = inlined_call_operand.vmem [shape: f32[1,64], index: 4, kind: input, shape index: {}]   ;;  %s14334_s5 = inlined_call_operand.hbm [shape: f32[64,256], index: 5, kind: input, shape index: {}]   ;;  %s14335_s6 = inlined_call_operand.vmem [shape: f32[1,128], index: 6, kind: input, shape index: {}]   ;;  %s14336_s7 = inlined_call_operand.hbm [shape: f32[128,512], index: 7, kind: input, shape index: {}]   ;;  %s14337_s8 = inlined_call_operand.vmem [shape: f32[1,256], index: 8, kind: input, shape index: {}]   ;;  %s14338_s9 = inlined_call_operand.hbm [shape: f32[64,1024], index: 9, kind: input, shape index: {}]   ;;  %s14339_s10 = inlined_call_operand.hbm [shape: f32[64,1024], index: 10, kind: input, shape index: {}]   ;;  %s14340_s11 = inlined_call_operand.hbm [shape: f32[128,1024], index: 11, kind: input, shape index: {}]   ;;  %s14341_s12 = inlined_call_operand.hbm [shape: f32[256,1024], index: 12, kind: input, shape index: {}]   ;;  %s14342_s13 = inlined_call_operand.vmem [shape: f32[1,1024], index: 13, kind: input, shape index: {}]   ;;  %s14343_s14 = inlined_call_operand.hbm [shape: f32[2,1,2048], index: 14, kind: output, shape index: {}]  }
   0x1   :  { %14381 = sst [smem:[#allocation43_spill]] %s14336_s7 }
   0x2   :  { %14382 = sst [smem:[#allocation44_spill]] %s14337_s8 }
   0x3   :  { %14383 = sst [smem:[#allocation45_spill]] %s14342_s13 }
   0x4   :  { %14384 = sst [smem:[#allocation46_spill]] %s14343_s14 }
   0x5   :  { %19 = vsyncpa [#allocation3], 0 }
   0x6   :  { %20 = vsyncpa [#allocation6], 0 }
   0x7   :  { %21 = vsyncpa [#allocation9], 0 }
   0x8   :  { %22 = vsyncpa [#allocation12], 0 }
   0x9   :  { %23 = vsyncpa [#allocation4], 0 }
   0xa   :  { %25 = vsyncpa [#allocation4 + $0x1], 0  ;;  %s11370_s29 = smov 0   ;;  %s11372_s30 = smov 0  }
   0xb   :  { %s11374_s15 = smov 0   ;;  %s11376_s16 = smov 0  }
   0xc LB: > { %14385 = sst [smem:[#allocation19_spill]] %s11264_s29  ;;  %s11391_s17 = sadd.s32 4294967295, %s11276_s16   ;;  %s11276_s16 = sphi %s11376_s16, %s14506_s16   ;;  %s11272_s15 = sphi %s11374_s15, %s14509_s15   ;;  %s11268_s30 = sphi %s11372_s30, %s14508_s30   ;;  %s11264_s29 = sphi %s11370_s29, %s14507_s29  }
   0xd   : > { %14386 = sst [smem:[#allocation20_spill]] %s11268_s30  ;;  %s9459_s18 = sadd.s32 4294967294, %s11276_s16  }
   0xe   : > { %14387 = sst [smem:[#allocation21_spill]] %s11272_s15  ;;  %s11395_s19 = sadd.s32 1, %s11276_s16  }
   0xf   : > { %14388 = sst [smem:[#allocation22_spill]] %s11276_s16  ;;  %s337_s20 = sadd.s32 1, %s11272_s15 }
  0x10   : > { %14389 = sst [smem:[#allocation23_spill]] %s11395_s19  ;;  %s334_s21 = ssub.s32 %s11276_s16, %s11395_s19 }
  0x11   : > { %p347_p0 = scmp.ne.s32.totalorder %s11272_s15, %s11268_s30  ;;  %p335_p1 = scmp.eq.s32.totalorder %s334_s21, 0 }
  0x12   : > { %p348_p2 = scmp.eq.s32.totalorder %s11391_s17, 1  ;;  %p353_p3 = scmp.ne.s32.totalorder %s11268_s30, %s11264_s29 }
  0x13   : > { %p354_p4 = scmp.eq.s32.totalorder %s9459_s18, 1  ;;  %p9460_p7 = scmp.ge.s32.totalorder %s11276_s16, 1 }
  0x14   : > { %s11406_s22 = scalar_select %p335_p1, %s11272_s15, %s337_s20  }
  0x15   : > { %p11408_p5 = por %p348_p2, %p347_p0  ;;  %p11412_p6 = por %p354_p4, %p353_p3 }
  0x16   : > { %14390 = sst [smem:[#allocation24_spill]] %s11406_s22  ;;  %p361_p8 = scmp.lt.s32.totalorder %s11276_s16, 3 }
  0x17   : > { %s14391_s23 = scalar_select %p11408_p5, 1, 0 }
  0x18   : > { %s14393_s24 = scalar_select %p11412_p6, 1, 0 }
  0x19   : > { %14392 = sst [smem:[#allocation25_spill]] %s14391_s23  ;;  %p14350_p9 = scmp.eq.s32.totalorder %s11391_s17, 0 }
  0x1a   : > { %14394 = sst [smem:[#allocation26_spill]] %s14393_s24  ;;  %p11419_p10 = pnand %p9460_p7, %p361_p8 }
  0x1b   : > { %s11278_s26 = smov [#allocation5]   ;;  %s11279_s18 = smov [#allocation8]  }
  0x1c   : > { %s14395_s25 = scalar_select %p11419_p10, 1, 0 }
  0x1d   : > { %s401_s27 = sshll.u32 %s11278_s26, 4  ;;  %p10946_p11 = pneg %p11419_p10  ;;  %s402_s27 = int_to_ptr.vmem [resolvable:$true] %s401_s27 }
  0x1e   : > { %s430_s20 = sshll.u32 %s11279_s18, 4  ;;  %s14397_s7 = sld [smem:[#allocation43_spill]]  ;;  %s431_s20 = int_to_ptr.vmem [resolvable:$true] %s430_s20 }
  0x1f   : > { %p11427_p12 = pnand %p14350_p9, %p10946_p11 }
  0x21   : > { %p11439_p0 = pneg %p11427_p12 }
  0x24   : > { %s11030_s15 = scalar_lea.hbm %s14397_s7, 8192 }
  0x25   : > { %p11031_p13 = scmp.ne.s32.totalorder %s14397_s7, %s11030_s15  ;;  %p11037_p3 = scmp.lt.u32.totalorder %s11030_s15, %s14397_s7 }
  0x27   : > { %p11033_p1 = pnand %p11439_p0, %p11031_p13 }
  0x29   : > { %p11034_p2 = pneg %p11033_p1 }
  0x2b   : > { %p11039_p4 = pnand %p11037_p3, %p11034_p2 }
  0x2d   : > { %11042 = shalt.err (!%p11039_p4)
}
  0x2e   : > { %s11043_s22 = scalar_lea.vmem %s402_s27, 8192  ;;  %p11051_p9 = scmp.lt.s32.totalorder %s402_s27, %s402_s27 }
  0x2f   : > { %p11044_p7 = scmp.ne.s32.totalorder %s402_s27, %s11043_s22  ;;  %p11052_p6 = scmp.lt.s32.totalorder %s11043_s22, %s11043_s22 }
  0x31   : > { %p11046_p8 = pnand %p11044_p7, %p11439_p0  ;;  %p11053_p5 = por %p11052_p6, %p11051_p9 }
  0x33   : > { %p11047_p11 = pneg %p11046_p8 }
  0x35   : > { %p11054_p10 = pnand %p11053_p5, %p11047_p11 }
  0x37   : > { %11057 = shalt.err (!%p11054_p10)
}
  0x38   : > { %s11280_s19 = smov 512   ;;  %s11281_s24 = smov 32  }
  0x39   : > { %10952 = dma.hbm_to_vmem [thread:$0]  (!%p11427_p12), %s14397_s7, 8192, %s402_s27, [#allocation6], %s11280_s19, %s11280_s19, %s11281_s24  }
  0x3a   : > { %s11282_s16 = smov [#allocation2]   ;;  %s11058_s23 = scalar_lea.hbm %s14339_s10, 8192 }
  0x3b   : > { %s385_s18 = sshll.u32 %s11282_s16, 4  ;;  %p11059_p5 = scmp.ne.s32.totalorder %s14339_s10, %s11058_s23  ;;  %s386_s18 = int_to_ptr.vmem [resolvable:$true] %s385_s18 }
  0x3c   : > { %p11065_p10 = scmp.lt.u32.totalorder %s11058_s23, %s14339_s10 }
  0x3d   : > { %p11061_p6 = pnand %p11059_p5, %p11439_p0 }
  0x3f   : > { %p11062_p9 = pneg %p11061_p6 }
  0x41   : > { %p11067_p13 = pnand %p11065_p10, %p11062_p9 }
  0x43   : > { %11070 = shalt.err (!%p11067_p13)
}
  0x44   : > { %s11071_s27 = scalar_lea.vmem %s431_s20, 8192  ;;  %p11079_p4 = scmp.lt.s32.totalorder %s431_s20, %s431_s20 }
  0x45   : > { %p11072_p1 = scmp.ne.s32.totalorder %s431_s20, %s11071_s27  ;;  %p11080_p7 = scmp.lt.s32.totalorder %s11071_s27, %s11071_s27 }
  0x47   : > { %p11074_p2 = pnand %p11072_p1, %p11439_p0  ;;  %p11081_p8 = por %p11080_p7, %p11079_p4 }
  0x49   : > { %p11075_p3 = pneg %p11074_p2 }
  0x4b   : > { %p11082_p11 = pnand %p11081_p8, %p11075_p3 }
  0x4d   : > { %11085 = shalt.err (!%p11082_p11)
}
  0x4e   : > { %s14357_s14 = smov 1024   ;;  %s14359_s30 = smov 64  }
  0x4f   : > { %10958 = dma.hbm_to_vmem [thread:$0]  (!%p11427_p12), %s14339_s10, 8192, %s431_s20, [#allocation9], %s14357_s14, %s14357_s14, %s14359_s30  }
  0x50   : > { %s11086_s24 = scalar_lea.hbm %s14334_s5, 2048 }
  0x51   : > { %p11087_p5 = scmp.ne.s32.totalorder %s14334_s5, %s11086_s24  ;;  %p11093_p10 = scmp.lt.u32.totalorder %s11086_s24, %s14334_s5 }
  0x53   : > { %p11089_p6 = pnand %p11087_p5, %p11439_p0 }
  0x55   : > { %p11090_p9 = pneg %p11089_p6 }
  0x57   : > { %p11095_p13 = pnand %p11093_p10, %p11090_p9 }
  0x59   : > { %11098 = shalt.err (!%p11095_p13)
}
  0x5a   : > { %s11099_s22 = scalar_lea.vmem %s386_s18, 2048  ;;  %p11107_p4 = scmp.lt.s32.totalorder %s386_s18, %s386_s18 }
  0x5b   : > { %p11100_p1 = scmp.ne.s32.totalorder %s386_s18, %s11099_s22  ;;  %p11108_p7 = scmp.lt.s32.totalorder %s11099_s22, %s11099_s22 }
  0x5d   : > { %p11102_p2 = pnand %p11100_p1, %p11439_p0  ;;  %p11109_p8 = por %p11108_p7, %p11107_p4 }
  0x5f   : > { %p11103_p3 = pneg %p11102_p2 }
  0x61   : > { %p11110_p11 = pnand %p11109_p8, %p11103_p3 }
  0x63   : > { %11113 = shalt.err (!%p11110_p11)
}
  0x64   : > { %s11285_s20 = smov 256   ;;  %s11286_s27 = smov 16  }
  0x65   : > { %10949 = dma.hbm_to_vmem [thread:$0]  (!%p11427_p12), %s14334_s5, 2048, %s386_s18, [#allocation3], %s11285_s20, %s11285_s20, %s11286_s27  }
  0x66   : > { %s11287_s23 = smov [#allocation7]   ;;  %s11288_s24 = smov [#allocation10]  }
  0x67   : > { %s417_s19 = sshll.u32 %s11287_s23, 4  ;;  %s443_s29 = sshll.u32 %s11288_s24, 4  ;;  %s418_s19 = int_to_ptr.vmem [resolvable:$true] %s417_s19  ;;  %s444_s29 = int_to_ptr.vmem [resolvable:$true] %s443_s29 }
  0x68   : > { %s11114_s21 = scalar_lea.hbm %s14338_s9, 8192 }
  0x69   : > { %p11115_p5 = scmp.ne.s32.totalorder %s14338_s9, %s11114_s21  ;;  %p11121_p10 = scmp.lt.u32.totalorder %s11114_s21, %s14338_s9 }
  0x6b   : > { %p11117_p6 = pnand %p11115_p5, %p11439_p0 }
  0x6d   : > { %p11118_p9 = pneg %p11117_p6 }
  0x6f   : > { %p11123_p13 = pnand %p11121_p10, %p11118_p9 }
  0x71   : > { %11126 = shalt.err (!%p11123_p13)
}
  0x72   : > { %s11127_s18 = scalar_lea.vmem %s418_s19, 8192  ;;  %p11135_p4 = scmp.lt.s32.totalorder %s418_s19, %s418_s19 }
  0x73   : > { %p11128_p1 = scmp.ne.s32.totalorder %s418_s19, %s11127_s18  ;;  %p11136_p7 = scmp.lt.s32.totalorder %s11127_s18, %s11127_s18 }
  0x75   : > { %p11130_p2 = pnand %p11128_p1, %p11439_p0  ;;  %p11137_p8 = por %p11136_p7, %p11135_p4 }
  0x77   : > { %p11131_p3 = pneg %p11130_p2 }
  0x79   : > { %p11138_p11 = pnand %p11137_p8, %p11131_p3 }
  0x7b   : > { %11141 = shalt.err (!%p11138_p11)
}
  0x7c   : > { %s14399_s14 = smov 64   ;;  %s14400_s20 = smov 1024  }
  0x7d   : > { %10955 = dma.hbm_to_vmem [thread:$0]  (!%p11427_p12), %s14338_s9, 8192, %s418_s19, [#allocation6], %s14400_s20, %s14400_s20, %s14399_s14  }
  0x7e   : > { %s11142_s13 = scalar_lea.hbm %s14340_s11, 16384 }
  0x7f   : > { %p11143_p5 = scmp.ne.s32.totalorder %s14340_s11, %s11142_s13  ;;  %p11149_p10 = scmp.lt.u32.totalorder %s11142_s13, %s14340_s11 }
  0x81   : > { %p11145_p6 = pnand %p11143_p5, %p11439_p0 }
  0x83   : > { %p11146_p9 = pneg %p11145_p6 }
  0x85   : > { %p11151_p13 = pnand %p11149_p10, %p11146_p9 }
  0x87   : > { %11154 = shalt.err (!%p11151_p13)
}
  0x88   : > { %s11155_s21 = scalar_lea.vmem %s444_s29, 16384  ;;  %p11163_p4 = scmp.lt.s32.totalorder %s444_s29, %s444_s29 }
  0x89   : > { %p11156_p1 = scmp.ne.s32.totalorder %s444_s29, %s11155_s21  ;;  %p11164_p7 = scmp.lt.s32.totalorder %s11155_s21, %s11155_s21 }
  0x8b   : > { %p11158_p2 = pnand %p11156_p1, %p11439_p0  ;;  %p11165_p8 = por %p11164_p7, %p11163_p4 }
  0x8d   : > { %p11159_p3 = pneg %p11158_p2 }
  0x8f   : > { %p11166_p11 = pnand %p11165_p8, %p11159_p3 }
  0x91   : > { %11169 = shalt.err (!%p11166_p11)
}
  0x92   : > { %10961 = dma.hbm_to_vmem [thread:$0]  (!%p11427_p12), %s14340_s11, 16384, %s444_s29, [#allocation9], %s14400_s20, %s14400_s20, %s14399_s14  }
  0x93   : > { %s11289_s18 = smov [#allocation11]   ;;  %s11170_s8 = scalar_lea.hbm %s14341_s12, 32768 }
  0x94   : > { %s456_s7 = sshll.u32 %s11289_s18, 4  ;;  %p11171_p5 = scmp.ne.s32.totalorder %s14341_s12, %s11170_s8  ;;  %s457_s7 = int_to_ptr.vmem [resolvable:$true] %s456_s7 }
  0x95   : > { %p11177_p10 = scmp.lt.u32.totalorder %s11170_s8, %s14341_s12 }
  0x96   : > { %p11173_p6 = pnand %p11171_p5, %p11439_p0 }
  0x98   : > { %p11174_p9 = pneg %p11173_p6 }
  0x9a   : > { %p11179_p13 = pnand %p11177_p10, %p11174_p9 }
  0x9c   : > { %11182 = shalt.err (!%p11179_p13)
}
  0x9d   : > { %s11183_s29 = scalar_lea.vmem %s457_s7, 32768  ;;  %p11191_p4 = scmp.lt.s32.totalorder %s457_s7, %s457_s7 }
  0x9e   : > { %p11184_p1 = scmp.ne.s32.totalorder %s457_s7, %s11183_s29  ;;  %p11192_p7 = scmp.lt.s32.totalorder %s11183_s29, %s11183_s29 }
  0xa0   : > { %p11186_p2 = pnand %p11184_p1, %p11439_p0  ;;  %p11193_p8 = por %p11192_p7, %p11191_p4 }
  0xa2   : > { %p11187_p3 = pneg %p11186_p2 }
  0xa4   : > { %p11194_p11 = pnand %p11193_p8, %p11187_p3 }
  0xa6   : > { %11197 = shalt.err (!%p11194_p11)
}
  0xa7   : > { %10964 = dma.hbm_to_vmem [thread:$0]  (!%p11427_p12), %s14341_s12, 32768, %s457_s7, [#allocation12], %s14400_s20, %s14400_s20, %s14399_s14  }
  0xa8   : > { %p14401_p5 = scmp.ne.s32.totalorder %s14395_s25, 0 }
  0xaa   : > { %483 = sbr.rel (%p14401_p5) target bundleno = 16527 (0x408f), region = 76 }
  0xb1   : > { %p14402_p0 = scmp.eq.s32.totalorder %s11391_s17, 0 }
  0xb3   : > { %11243 = dma.done.wait (%p14402_p0), [#allocation3], 2048   ;;  %p14403_p6 = pmov %p14402_p0 }
  0xb4   : > { %p14404_p9 = pmov %p14402_p0 }
  0xb5   : > { %11245 = vsyncadd (%p14403_p6), [#allocation3], 4294965248 }
  0xb6   : > { %11247 = dma.done.wait (%p14404_p9), [#allocation6], 16384   ;;  %p14405_p10 = pmov %p14402_p0 }
  0xb7   : > { %p14406_p13 = pmov %p14402_p0 }
  0xb8   : > { %11249 = vsyncadd (%p14405_p10), [#allocation6], 4294950912 }
  0xb9   : > { %11251 = dma.done.wait (%p14406_p13), [#allocation9], 24576   ;;  %p14407_p12 = pmov %p14402_p0 }
  0xba   : > { %p14408_p1 = pmov %p14402_p0 }
  0xbb   : > { %11253 = vsyncadd (%p14407_p12), [#allocation9], 4294942720 }
  0xbc   : > { %11255 = dma.done.wait (%p14408_p1), [#allocation12], 32768   ;;  %p14409_p2 = pmov %p14402_p0 }
  0xbd   : > { %p549_p3 = scmp.lt.s32.totalorder %s11391_s17, 1  ;;  %vm563_vm0 = vcmask 23552   ;;  %v559_v15 = vlaneseq  ;;  %vm809_vm2 = vcmask 130112   ;;  %vm816_vm3 = vcmask 195712   ;;  %s11291_s18 = smov 64  }
  0xbe   : > { %11257 = vsyncadd (%p14409_p2), [#allocation12], 4294934528  ;;  %vm823_vm4 = vcmask 261312   ;;  %vm856_vm5 = vcmask 261120   ;;  %vm576_vm14 = vcmask 1042432   ;;  %s14472_s23 = sld [smem:[#allocation44_spill]] }
  0xbf   : > { %s550_s25 = scalar_select %p549_p3, %s11391_s17, 1  ;;  %vm11582_vm1 = vmpackc.low %vm563_vm0, %vm563_vm0  ;;  %v11621_v16 = vand.u32 127, %v559_v15  ;;  %v11623_v18 = vshrl.u32 %v559_v15, 7 }
  0xc0   : > { %s14497_s29 = sld [smem:[#allocation45_spill]]  ;;  %s14498_s16 = sld [smem:[#allocation20_spill]] }
  0xc1   : > { %s9747_s28 = sshll.u32 %s550_s25, 5  ;;  %v804_v19 = vadd.s32 4294967288, %v11621_v16  ;;  %v811_v20 = vadd.s32 4294967280, %v11621_v16  ;;  %v11629_v21 = vsub.s32 %v11621_v16, %v11623_v18  ;;  %v818_v25 = vadd.s32 4294967272, %v11621_v16  ;;  %s9748_s26 = sshll.u32 %s11391_s17, 8 }
  0xc2   : > { %s553_s20 = scalar_lea.vmem %s14329_s0, %s9747_s28  ;;  %s14499_s28 = sld [smem:[#allocation25_spill]] }
  0xc3   : > { %v555_v1 = vld [vmem:[%s553_s20] sm:$0xff]  ;;  %v11586_v2 = vld [vmem:[%s553_s20 + $0x8] sm:$0xff]  ;;  %v11588_v3 = vld [vmem:[%s553_s20 + $0x10] sm:$0xff]  ;;  %v11632_v22 = vsub.s32 %v804_v19, %v11623_v18  ;;  %v11636_v26 = vsub.s32 %v811_v20, %v11623_v18  ;;  %v11641_v29 = vsub.s32 %v818_v25, %v11623_v18  ;;  %s11294_s27 = smov [#allocation13]  }
  0xc4   : > { %v10172_v4 = vpack.c.bf16 %v11586_v2, %v555_v1  ;;  %v11591_v5 = vld [vmem:[%s553_s20 + $0x18] sm:$0xff]  ;;  %9910 = vmatprep.mubr.msk.f32.mxu1 %vm563_vm0, %v555_v1  ;;  %v780_v6 = vmul.f32 %v555_v1, %v555_v1  ;;  %v782_v7 = vmul.f32 %v11588_v3, %v11588_v3  ;;  %v781_v8 = vmul.f32 %v11586_v2, %v11586_v2  ;;  %s11202_s8 = sshll.u32 %s11294_s27, 4  ;;  %s11203_s8 = int_to_ptr.vmem [resolvable:$false] %s11202_s8 }
  0xc5   : > { %v10178_v9 = vpack.c.bf16 %v11591_v5, %v11588_v3  ;;  %v783_v10 = vmul.f32 %v11591_v5, %v11591_v5  ;;  %9896 = vmatprep.mubr.msk.f32.mxu0 %vm563_vm0, %v555_v1  ;;  %s11204_s13 = scalar_lea.vmem %s11203_s8, 512 }
  0xc6   : > { %10174 = vmatprep.subr.msk.bf16.mxu1 %vm11582_vm1, %v10172_v4  ;;  %v784_v11 = vsel %vm563_vm0, %v780_v6, 0.0  ;;  %v790_v12 = vsel %vm563_vm0, %v782_v7, 0.0  ;;  %v787_v13 = vsel %vm563_vm0, %v781_v8, 0.0  ;;  %s546_s21 = sand.u32 1, %s14498_s16  }
  0xc7   : > { %10177 = vmatpush3.bf16.xpose.msk.msra.mxu1 %vm11582_vm1, %v10172_v4  ;;  %785 = vadd.xlane.f32.xlu0 %v784_v11  ;;  %v793_v14 = vsel %vm563_vm0, %v783_v10, 0.0  ;;  %s9475_s25 = sshll.u32 %s546_s21, 4  ;;  %s9326_s17 = scalar_lea.sflag [#allocation4], %s546_s21 }
  0xc8   : > { %10180 = vmatprep.subr.msk.bf16.mxu1 %vm11582_vm1, %v10178_v9  ;;  %791 = vadd.xlane.f32.xlu1 %v790_v12  ;;  %s548_s14 = scalar_lea.vmem [#allocation13], %s9475_s25  ;;  %p14501_p7 = scmp.ne.s32.totalorder %s14499_s28, 0 }
  0xc9   : > { %s9340_s20 = sshll.u32 %s548_s14, 4  ;;  %s14289_s20 = int_to_ptr.vmem [resolvable:$true] %s9340_s20 }
  0xca   : > { %s11198_s30 = scalar_lea.vmem %s14289_s20, 256  ;;  %p11205_p5 = scmp.lt.s32.totalorder %s14289_s20, %s11203_s8 }
  0xcb   : > { %788 = vadd.xlane.f32.xlu0 %v787_v13  ;;  %p11199_p4 = scmp.ne.s32.totalorder %s14289_s20, %s11198_s30  ;;  %p11206_p0 = scmp.lt.s32.totalorder %s11204_s13, %s11198_s30 }
  0xcc   : > { %794 = vadd.xlane.f32.xlu1 %v793_v14 }
  0xcd   : > { %p11200_p8 = pnand %p11199_p4, %p14501_p7  ;;  %p11207_p6 = por %p11206_p0, %p11205_p5 }
  0xcf   : > { %10183 = vmatpush3.bf16.xpose.msk.msra.mxu1 %vm11582_vm1, %v10178_v9  ;;  %p11201_p11 = pneg %p11200_p8 }
  0xd1   : > { %p11208_p9 = pnand %p11207_p6, %p11201_p11 }
  0xd6   : > { %9911 = vmatmul.mubr.msk.f32.vlgmr.msra.gmra.mrb[0].mxu1 %vm563_vm0, %v11586_v2 }
  0xd7   : > { %9913 = vmatprep.mubr.msk.f32.mxu1 %vm563_vm0, %v11588_v3 }
  0xda   : > { %9914 = vmatmul.mubr.msk.f32.gmra.mrb[2].mxu1 %vm563_vm0, %v11591_v5 }
 0x154   : > { %v786_v17 = vpop.xlane.xlu0 %785 }
 0x155   : > { %v792_v23 = vpop.xlane.xlu1 %791  ;;  %v803_v27 = vrot.slane %v786_v17, %v11629_v21 }
 0x156   : > { %v815_v30 = vrot.slane %v792_v23, %v11636_v26 }
 0x158   : > { %v789_v24 = vpop.xlane.xlu0 %788 }
 0x159   : > { %v808_v28 = vrot.slane %v789_v24, %v11632_v22  ;;  %v795_v31 = vpop.xlane.xlu1 %794 }
 0x15a   : > { %v822_v33 = vrot.slane %v795_v31, %v11641_v29 }
 0x15b   : > { %v810_v32 = vsel %vm809_vm2, %v808_v28, %v803_v27 }
 0x15c   : > { %v817_v34 = vsel %vm816_vm3, %v815_v30, %v810_v32 }
 0x15d   : > { %v824_v35 = vsel %vm823_vm4, %v822_v33, %v817_v34 }
 0x15e   : > { %v839_v37 = vadd.f32 %v824_v35, %v789_v24  ;;  %v838_v40 = vadd.f32 %v824_v35, %v786_v17  ;;  %v841_v45 = vadd.f32 %v824_v35, %v795_v31  ;;  %v840_v50 = vadd.f32 %v824_v35, %v792_v23 }
 0x1a9   : > { %v9912_v36 = vpop.f32.mrb[0].mxu1 }
 0x1aa   : > { %v843_v38 = vmul.f32 2.0, %v9912_v36  ;;  %v761_v39 = vpop.f32.mrb[1].mxu1 }
 0x1ab   : > { %v842_v41 = vmul.f32 2.0, %v761_v39 }
 0x1ac   : > { %v847_v42 = vsub.f32 %v839_v37, %v843_v38 }
 0x1ad   : > { %v846_v43 = vsub.f32 %v838_v40, %v842_v41  ;;  %v9915_v44 = vpop.f32.mrb[2].mxu1  ;;  %v561_v41 = vld [vmem:[%s14330_s1] sm:$0x7] }
 0x1ae   : > { %v11648_v46 = vmax.f32 %v847_v42, 0.0  ;;  %v845_v47 = vmul.f32 2.0, %v9915_v44  ;;  %v771_v48 = vpop.f32.mrb[3].mxu1  ;;  %9894 = vmatprep.subr.msk.mxu0 %vm576_vm14, %v561_v41 }
 0x1af   : > { %v11650_v49 = vmax.f32 %v846_v43, 0.0  ;;  %v844_v51 = vmul.f32 2.0, %v771_v48  ;;  %9895 = vmatpush3.msk.msra.mxu0 %vm576_vm14, %v561_v41 }
 0x1b0   : > { %v849_v52 = vsub.f32 %v841_v45, %v845_v47  ;;  %v860_v53 = vsel %vm856_vm5, %v11648_v46, inf  ;;  %9897 = vmatmul.mubr.msk.f32.vlgmr.msra.gmra.mrb[0].mxu0 %vm563_vm0, %v11586_v2 }
 0x1b1   : > { %v848_v54 = vsub.f32 %v840_v50, %v844_v51  ;;  %861 = vmin.xlane.f32.xlu1 %v860_v53  ;;  %v857_v55 = vsel %vm856_vm5, %v11650_v49, inf  ;;  %9899 = vmatprep.mubr.msk.f32.mxu0 %vm563_vm0, %v11588_v3 }
 0x1b2   : > { %v11656_v56 = vmax.f32 %v849_v52, 0.0  ;;  %858 = vmin.xlane.f32.xlu0 %v857_v55 }
 0x1b3   : > { %v11658_v57 = vmax.f32 %v848_v54, 0.0 }
 0x1b4   : > { %v866_v58 = vsel %vm856_vm5, %v11656_v56, inf  ;;  %9900 = vmatmul.mubr.msk.f32.gmra.mrb[2].mxu0 %vm563_vm0, %v11591_v5 }
 0x1b5   : > { %867 = vmin.xlane.f32.xlu1 %v866_v58  ;;  %v863_v59 = vsel %vm856_vm5, %v11658_v57, inf }
 0x1b6   : > { %864 = vmin.xlane.f32.xlu0 %v863_v59 }
 0x23e   : > { %v862_v60 = vpop.xlane.xlu1 %861 }
 0x23f   : > { %vm870_vm6 = vcmp.le.f32.partialorder %v11648_v46, %v862_v60  ;;  %v859_v61 = vpop.xlane.xlu0 %858 }
 0x240   : > { %v874_v62 = vsel %vm870_vm6, %v11621_v16, 32  ;;  %vm869_vm7 = vcmp.le.f32.partialorder %v11650_v49, %v859_v61 }
 0x241   : > { %v873_v63 = vsel %vm869_vm7, %v11621_v16, 32  ;;  %v892_v0 = vsel %vm856_vm5, %v874_v62, 2147483647  ;;  %v14361_v62 = vmov 0.0  }
 0x242   : > { %v868_v1 = vpop.xlane.xlu1 %867  ;;  %v894_v4 = vshra.s32 %v892_v0, 16  ;;  %v877_v6 = vsel %vm856_vm5, %v873_v63, 2147483647  ;;  %v893_v23 = vand.u32 65535, %v892_v0 }
 0x243   : > { %vm872_vm8 = vcmp.le.f32.partialorder %v11656_v56, %v868_v1  ;;  %v865_v7 = vpop.xlane.xlu0 %864  ;;  %v879_v8 = vshra.s32 %v877_v6, 16  ;;  %v878_v24 = vand.u32 65535, %v877_v6 }
 0x244   : > { %v876_v9 = vsel %vm872_vm8, %v11621_v16, 32  ;;  %vm871_vm9 = vcmp.le.f32.partialorder %v11658_v57, %v865_v7  ;;  %v896_v10 = vcvt.s32.f32 %v894_v4  ;;  %v895_v27 = vcvt.s32.f32 %v893_v23 }
 0x245   : > { %v875_v11 = vsel %vm871_vm9, %v11621_v16, 32  ;;  %v881_v12 = vcvt.s32.f32 %v879_v8  ;;  %v922_v13 = vsel %vm856_vm5, %v876_v9, 2147483647  ;;  %v880_v31 = vcvt.s32.f32 %v878_v24 }
 0x246   : > { %897 = vmin.xlane.f32.xlu1 %v896_v10  ;;  %v924_v14 = vshra.s32 %v922_v13, 16  ;;  %v907_v15 = vsel %vm856_vm5, %v875_v11, 2147483647  ;;  %v923_v28 = vand.u32 65535, %v922_v13 }
 0x247   : > { %882 = vmin.xlane.f32.xlu0 %v881_v12  ;;  %v909_v17 = vshra.s32 %v907_v15, 16  ;;  %v908_v32 = vand.u32 65535, %v907_v15 }
 0x248   : > { %v926_v19 = vcvt.s32.f32 %v924_v14  ;;  %v925_v36 = vcvt.s32.f32 %v923_v28 }
 0x249   : > { %v911_v20 = vcvt.s32.f32 %v909_v17  ;;  %v910_v38 = vcvt.s32.f32 %v908_v32 }
 0x24a   : > { %927 = vmin.xlane.f32.xlu1 %v926_v19 }
 0x24b   : > { %912 = vmin.xlane.f32.xlu0 %v911_v20 }
 0x2d3   : > { %v898_v25 = vpop.xlane.xlu1 %897 }
 0x2d4   : > { %v883_v30 = vpop.xlane.xlu0 %882  ;;  %vm899_vm10 = vcmp.eq.f32.partialorder %v896_v10, %v898_v25  ;;  %v904_v42 = vcvt.f32.s32 %v898_v25 }
 0x2d5   : > { %v900_v33 = vsel %vm899_vm10, %v895_v27, inf  ;;  %vm884_vm11 = vcmp.eq.f32.partialorder %v881_v12, %v883_v30  ;;  %v889_v43 = vcvt.f32.s32 %v883_v30 }
 0x2d6   : > { %901 = vmin.xlane.f32.xlu1 %v900_v33  ;;  %v885_v34 = vsel %vm884_vm11, %v880_v31, inf  ;;  %v905_v45 = vshll.u32 %v904_v42, 16 }
 0x2d7   : > { %v928_v35 = vpop.xlane.xlu1 %927  ;;  %886 = vmin.xlane.f32.xlu0 %v885_v34  ;;  %v890_v52 = vshll.u32 %v889_v43, 16 }
 0x2d8   : > { %v913_v37 = vpop.xlane.xlu0 %912  ;;  %vm929_vm12 = vcmp.eq.f32.partialorder %v926_v19, %v928_v35  ;;  %v934_v47 = vcvt.f32.s32 %v928_v35 }
 0x2d9   : > { %v930_v39 = vsel %vm929_vm12, %v925_v36, inf  ;;  %vm914_vm13 = vcmp.eq.f32.partialorder %v911_v20, %v913_v37  ;;  %v919_v48 = vcvt.f32.s32 %v913_v37 }
 0x2da   : > { %931 = vmin.xlane.f32.xlu1 %v930_v39  ;;  %v915_v40 = vsel %vm914_vm13, %v910_v38, inf  ;;  %v935_v2 = vshll.u32 %v934_v47, 16 }
 0x2db   : > { %916 = vmin.xlane.f32.xlu0 %v915_v40  ;;  %v920_v59 = vshll.u32 %v919_v48, 16 }
 0x363   : > { %v902_v44 = vpop.xlane.xlu1 %901 }
 0x364   : > { %v903_v50 = vcvt.f32.s32 %v902_v44  ;;  %v887_v51 = vpop.xlane.xlu0 %886 }
 0x365   : > { %v888_v53 = vcvt.f32.s32 %v887_v51 }
 0x366   : > { %v906_v54 = vadd.s32 %v905_v45, %v903_v50 }
 0x367   : > { %v891_v55 = vadd.s32 %v890_v52, %v888_v53  ;;  %v932_v58 = vpop.xlane.xlu1 %931 }
 0x368   : > { %v933_v60 = vcvt.f32.s32 %v932_v58  ;;  %v917_v3 = vpop.xlane.xlu0 %916  ;;  %vm938_vm15 = vcmp.eq.s32.totalorder %v11621_v16, %v906_v54 }
 0x369   : > { %v918_v5 = vcvt.f32.s32 %v917_v3  ;;  %v11687_v61 = vsel %vm938_vm15, inf, %v11648_v46  ;;  %v9493_v63 = vsel %vm938_vm15, 1.0, %v14361_v62  ;;  %vm937_vm0 = vcmp.eq.s32.totalorder %v11621_v16, %v891_v55 }
 0x36a   : > { %v936_v0 = vadd.s32 %v935_v2, %v933_v60  ;;  %v1021_v1 = vsel %vm856_vm5, %v11687_v61, inf  ;;  %v11694_v4 = vsel %vm937_vm0, inf, %v11650_v49  ;;  %v9492_v6 = vsel %vm937_vm0, 1.0, %v14361_v62 }
 0x36b   : > { %v921_v7 = vadd.s32 %v920_v59, %v918_v5  ;;  %1022 = vmin.xlane.f32.xlu1 %v1021_v1  ;;  %v1018_v46 = vsel %vm856_vm5, %v11694_v4, inf  ;;  %v949_v8 = vpack.c.bf16 %v9493_v63, %v9492_v6 }
 0x36c   : > { %1019 = vmin.xlane.f32.xlu0 %v1018_v46  ;;  %vm940_vm1 = vcmp.eq.s32.totalorder %v11621_v16, %v936_v0 }
 0x36d   : > { %9920 = vmatprep.mubr.msk.bf16.mxu0 %vm856_vm5, %v949_v8  ;;  %v11702_v9 = vsel %vm940_vm1, inf, %v11656_v56  ;;  %v11705_v10 = vsel %vm940_vm1, 1.0, %v14361_v62  ;;  %vm939_vm6 = vcmp.eq.s32.totalorder %v11621_v16, %v921_v7 }
 0x36e   : > { %v1027_v49 = vsel %vm856_vm5, %v11702_v9, inf  ;;  %v11711_v11 = vsel %vm939_vm6, inf, %v11658_v57  ;;  %v11714_v12 = vsel %vm939_vm6, 1.0, %v14361_v62 }
 0x36f   : > { %1028 = vmin.xlane.f32.xlu1 %v1027_v49  ;;  %v1024_v13 = vsel %vm856_vm5, %v11711_v11, inf  ;;  %v950_v56 = vpack.c.bf16 %v11705_v10, %v11714_v12 }
 0x370   : > { %1025 = vmin.xlane.f32.xlu0 %v1024_v13 }
 0x3f8   : > { %v1023_v14 = vpop.xlane.xlu1 %1022 }
 0x3f9   : > { %vm1031_vm7 = vcmp.le.f32.partialorder %v11687_v61, %v1023_v14  ;;  %v1020_v15 = vpop.xlane.xlu0 %1019 }
 0x3fa   : > { %v1035_v17 = vsel %vm1031_vm7, %v11621_v16, 32  ;;  %vm1030_vm8 = vcmp.le.f32.partialorder %v11694_v4, %v1020_v15 }
 0x3fb   : > { %v1034_v57 = vsel %vm1030_vm8, %v11621_v16, 32  ;;  %v1053_v19 = vsel %vm856_vm5, %v1035_v17, 2147483647 }
 0x3fc   : > { %v1029_v20 = vpop.xlane.xlu1 %1028  ;;  %v1055_v23 = vshra.s32 %v1053_v19, 16  ;;  %v1038_v24 = vsel %vm856_vm5, %v1034_v57, 2147483647  ;;  %v1054_v39 = vand.u32 65535, %v1053_v19 }
 0x3fd   : > { %vm1033_vm9 = vcmp.le.f32.partialorder %v11702_v9, %v1029_v20  ;;  %v1026_v25 = vpop.xlane.xlu0 %1025  ;;  %v1040_v27 = vshra.s32 %v1038_v24, 16  ;;  %v1039_v40 = vand.u32 65535, %v1038_v24 }
 0x3fe   : > { %v1037_v28 = vsel %vm1033_vm9, %v11621_v16, 32  ;;  %vm1032_vm10 = vcmp.le.f32.partialorder %v11711_v11, %v1026_v25  ;;  %v1057_v30 = vcvt.s32.f32 %v1055_v23  ;;  %v1056_v42 = vcvt.s32.f32 %v1054_v39 }
 0x3ff   : > { %v1036_v31 = vsel %vm1032_vm10, %v11621_v16, 32  ;;  %v1042_v32 = vcvt.s32.f32 %v1040_v27  ;;  %v1083_v33 = vsel %vm856_vm5, %v1037_v28, 2147483647  ;;  %v1041_v45 = vcvt.s32.f32 %v1039_v40 }
 0x400   : > { %1058 = vmin.xlane.f32.xlu1 %v1057_v30  ;;  %v1085_v34 = vshra.s32 %v1083_v33, 16  ;;  %v1068_v35 = vsel %vm856_vm5, %v1036_v31, 2147483647  ;;  %v1084_v43 = vand.u32 65535, %v1083_v33 }
 0x401   : > { %1043 = vmin.xlane.f32.xlu0 %v1042_v32  ;;  %v1070_v36 = vshra.s32 %v1068_v35, 16  ;;  %v1069_v47 = vand.u32 65535, %v1068_v35 }
 0x402   : > { %v1087_v37 = vcvt.s32.f32 %v1085_v34  ;;  %v1086_v52 = vcvt.s32.f32 %v1084_v43 }
 0x403   : > { %v1072_v38 = vcvt.s32.f32 %v1070_v36  ;;  %v1071_v54 = vcvt.s32.f32 %v1069_v47 }
 0x404   : > { %1088 = vmin.xlane.f32.xlu1 %v1087_v37 }
 0x405   : > { %1073 = vmin.xlane.f32.xlu0 %v1072_v38 }
 0x48d   : > { %v1059_v41 = vpop.xlane.xlu1 %1058 }
 0x48e   : > { %v1044_v44 = vpop.xlane.xlu0 %1043  ;;  %vm1060_vm11 = vcmp.eq.f32.partialorder %v1057_v30, %v1059_v41  ;;  %v1065_v2 = vcvt.f32.s32 %v1059_v41 }
 0x48f   : > { %v1061_v48 = vsel %vm1060_vm11, %v1056_v42, inf  ;;  %vm1045_vm12 = vcmp.eq.f32.partialorder %v1042_v32, %v1044_v44  ;;  %v1050_v59 = vcvt.f32.s32 %v1044_v44 }
 0x490   : > { %1062 = vmin.xlane.f32.xlu1 %v1061_v48  ;;  %v1046_v50 = vsel %vm1045_vm12, %v1041_v45, inf  ;;  %v1066_v3 = vshll.u32 %v1065_v2, 16 }
 0x491   : > { %v1089_v51 = vpop.xlane.xlu1 %1088  ;;  %1047 = vmin.xlane.f32.xlu0 %v1046_v50  ;;  %v1051_v6 = vshll.u32 %v1050_v59, 16 }
 0x492   : > { %v1074_v53 = vpop.xlane.xlu0 %1073  ;;  %vm1090_vm13 = vcmp.eq.f32.partialorder %v1087_v37, %v1089_v51  ;;  %v1095_v5 = vcvt.f32.s32 %v1089_v51 }
 0x493   : > { %v1091_v55 = vsel %vm1090_vm13, %v1086_v52, inf  ;;  %vm1075_vm14 = vcmp.eq.f32.partialorder %v1072_v38, %v1074_v53  ;;  %v1080_v63 = vcvt.f32.s32 %v1074_v53 }
 0x494   : > { %1092 = vmin.xlane.f32.xlu1 %v1091_v55  ;;  %v1076_v58 = vsel %vm1075_vm14, %v1071_v54, inf  ;;  %v1096_v13 = vshll.u32 %v1095_v5, 16 }
 0x495   : > { %1077 = vmin.xlane.f32.xlu0 %v1076_v58  ;;  %v1081_v14 = vshll.u32 %v1080_v63, 16 }
 0x51d   : > { %v1063_v60 = vpop.xlane.xlu1 %1062 }
 0x51e   : > { %v1064_v0 = vcvt.f32.s32 %v1063_v60  ;;  %v1048_v1 = vpop.xlane.xlu0 %1047 }
 0x51f   : > { %v1049_v7 = vcvt.f32.s32 %v1048_v1 }
 0x520   : > { %v1067_v46 = vadd.s32 %v1066_v3, %v1064_v0 }
 0x521   : > { %v1052_v8 = vadd.s32 %v1051_v6, %v1049_v7  ;;  %v1093_v49 = vpop.xlane.xlu1 %1092 }
 0x522   : > { %v1094_v15 = vcvt.f32.s32 %v1093_v49  ;;  %v1078_v17 = vpop.xlane.xlu0 %1077  ;;  %vm1099_vm15 = vcmp.eq.s32.totalorder %v11621_v16, %v1067_v46 }
 0x523   : > { %v1079_v57 = vcvt.f32.s32 %v1078_v17  ;;  %v11734_v19 = vsel %vm1099_vm15, inf, %v11687_v61  ;;  %v11737_v20 = vsel %vm1099_vm15, 1.0, %v14361_v62  ;;  %vm1098_vm0 = vcmp.eq.s32.totalorder %v11621_v16, %v1052_v8 }
 0x524   : > { %v1097_v23 = vadd.s32 %v1096_v13, %v1094_v15  ;;  %v1178_v24 = vsel %vm856_vm5, %v11734_v19, inf  ;;  %v11743_v25 = vsel %vm1098_vm0, inf, %v11694_v4  ;;  %v11746_v27 = vsel %vm1098_vm0, 1.0, %v14361_v62 }
 0x525   : > { %v1082_v28 = vadd.s32 %v1081_v14, %v1079_v57  ;;  %1179 = vmin.xlane.f32.xlu1 %v1178_v24  ;;  %v1175_v61 = vsel %vm856_vm5, %v11743_v25, inf  ;;  %v1110_v30 = vpack.c.bf16 %v11737_v20, %v11746_v27  ;;  %v2122_v20 = vld [vmem:[%s14332_s3 + $0x8] sm:$0xff]  ;;  %v2123_v27 = vld [vmem:[%s14332_s3 + $0x10] sm:$0xff] }
 0x526   : > { %1176 = vmin.xlane.f32.xlu0 %v1175_v61  ;;  %vm1101_vm1 = vcmp.eq.s32.totalorder %v11621_v16, %v1097_v23 }
 0x527   : > { %v11754_v31 = vsel %vm1101_vm1, inf, %v11702_v9  ;;  %v11757_v4 = vsel %vm1101_vm1, 1.0, %v14361_v62  ;;  %vm1100_vm6 = vcmp.eq.s32.totalorder %v11621_v16, %v1082_v28 }
 0x528   : > { %v1184_v32 = vsel %vm856_vm5, %v11754_v31, inf  ;;  %v11763_v33 = vsel %vm1100_vm6, inf, %v11711_v11  ;;  %v11766_v34 = vsel %vm1100_vm6, 1.0, %v14361_v62 }
 0x529   : > { %1185 = vmin.xlane.f32.xlu1 %v1184_v32  ;;  %v1181_v35 = vsel %vm856_vm5, %v11763_v33, inf  ;;  %v1111_v9 = vpack.c.bf16 %v11757_v4, %v11766_v34  ;;  %v2124_v4 = vld [vmem:[%s14332_s3 + $0x18] sm:$0xff] }
 0x52a   : > { %1182 = vmin.xlane.f32.xlu0 %v1181_v35  ;;  %v10188_v34 = vpack.c.bf16 %v2124_v4, %v2123_v27  ;;  %v2125_v27 = vld [vmem:[%s14332_s3 + $0x20] sm:$0xff] }
 0x5b2   : > { %v1180_v36 = vpop.xlane.xlu1 %1179 }
 0x5b3   : > { %vm1188_vm7 = vcmp.le.f32.partialorder %v11734_v19, %v1180_v36  ;;  %v1177_v37 = vpop.xlane.xlu0 %1176 }
 0x5b4   : > { %v1192_v38 = vsel %vm1188_vm7, %v11621_v16, 32  ;;  %vm1187_vm8 = vcmp.le.f32.partialorder %v11743_v25, %v1177_v37 }
 0x5b5   : > { %v1191_v11 = vsel %vm1187_vm8, %v11621_v16, 32  ;;  %v1210_v39 = vsel %vm856_vm5, %v1192_v38, 2147483647 }
 0x5b6   : > { %v1186_v40 = vpop.xlane.xlu1 %1185  ;;  %v1212_v41 = vshra.s32 %v1210_v39, 16  ;;  %v1195_v42 = vsel %vm856_vm5, %v1191_v11, 2147483647  ;;  %v1211_v2 = vand.u32 65535, %v1210_v39 }
 0x5b7   : > { %vm1190_vm9 = vcmp.le.f32.partialorder %v11754_v31, %v1186_v40  ;;  %v1183_v43 = vpop.xlane.xlu0 %1182  ;;  %v1197_v44 = vshra.s32 %v1195_v42, 16  ;;  %v1196_v59 = vand.u32 65535, %v1195_v42 }
 0x5b8   : > { %v1194_v45 = vsel %vm1190_vm9, %v11621_v16, 32  ;;  %vm1189_vm10 = vcmp.le.f32.partialorder %v11763_v33, %v1183_v43  ;;  %v1214_v47 = vcvt.s32.f32 %v1212_v41  ;;  %v1213_v3 = vcvt.s32.f32 %v1211_v2 }
 0x5b9   : > { %v1193_v48 = vsel %vm1189_vm10, %v11621_v16, 32  ;;  %v1199_v50 = vcvt.s32.f32 %v1197_v44  ;;  %v1240_v51 = vsel %vm856_vm5, %v1194_v45, 2147483647  ;;  %v1198_v0 = vcvt.s32.f32 %v1196_v59 }
 0x5ba   : > { %1215 = vmin.xlane.f32.xlu1 %v1214_v47  ;;  %v1242_v52 = vshra.s32 %v1240_v51, 16  ;;  %v1225_v53 = vsel %vm856_vm5, %v1193_v48, 2147483647  ;;  %v1241_v5 = vand.u32 65535, %v1240_v51 }
 0x5bb   : > { %1200 = vmin.xlane.f32.xlu0 %v1199_v50  ;;  %v1227_v54 = vshra.s32 %v1225_v53, 16  ;;  %v1226_v1 = vand.u32 65535, %v1225_v53 }
 0x5bc   : > { %v1244_v55 = vcvt.s32.f32 %v1242_v52  ;;  %v1243_v8 = vcvt.s32.f32 %v1241_v5 }
 0x5bd   : > { %v1229_v58 = vcvt.s32.f32 %v1227_v54  ;;  %v1228_v13 = vcvt.s32.f32 %v1226_v1 }
 0x5be   : > { %1245 = vmin.xlane.f32.xlu1 %v1244_v55 }
 0x5bf   : > { %1230 = vmin.xlane.f32.xlu0 %v1229_v58 }
 0x647   : > { %v1216_v60 = vpop.xlane.xlu1 %1215 }
 0x648   : > { %v1201_v63 = vpop.xlane.xlu0 %1200  ;;  %vm1217_vm11 = vcmp.eq.f32.partialorder %v1214_v47, %v1216_v60  ;;  %v1222_v17 = vcvt.f32.s32 %v1216_v60 }
 0x649   : > { %v1218_v6 = vsel %vm1217_vm11, %v1213_v3, inf  ;;  %vm1202_vm12 = vcmp.eq.f32.partialorder %v1199_v50, %v1201_v63  ;;  %v1207_v57 = vcvt.f32.s32 %v1201_v63 }
 0x64a   : > { %1219 = vmin.xlane.f32.xlu1 %v1218_v6  ;;  %v1203_v7 = vsel %vm1202_vm12, %v1198_v0, inf  ;;  %v1223_v24 = vshll.u32 %v1222_v17, 16 }
 0x64b   : > { %v1246_v46 = vpop.xlane.xlu1 %1245  ;;  %1204 = vmin.xlane.f32.xlu0 %v1203_v7  ;;  %v1208_v36 = vshll.u32 %v1207_v57, 16 }
 0x64c   : > { %v1231_v49 = vpop.xlane.xlu0 %1230  ;;  %vm1247_vm13 = vcmp.eq.f32.partialorder %v1244_v55, %v1246_v46  ;;  %v1252_v28 = vcvt.f32.s32 %v1246_v46 }
 0x64d   : > { %v1248_v14 = vsel %vm1247_vm13, %v1243_v8, inf  ;;  %vm1232_vm14 = vcmp.eq.f32.partialorder %v1229_v58, %v1231_v49  ;;  %v1237_v61 = vcvt.f32.s32 %v1231_v49 }
 0x64e   : > { %1249 = vmin.xlane.f32.xlu1 %v1248_v14  ;;  %v1233_v15 = vsel %vm1232_vm14, %v1228_v13, inf  ;;  %v1253_v40 = vshll.u32 %v1252_v28, 16 }
 0x64f   : > { %1234 = vmin.xlane.f32.xlu0 %v1233_v15  ;;  %v1238_v41 = vshll.u32 %v1237_v61, 16 }
 0x6d7   : > { %v1220_v23 = vpop.xlane.xlu1 %1219 }
 0x6d8   : > { %v1221_v32 = vcvt.f32.s32 %v1220_v23  ;;  %v1205_v35 = vpop.xlane.xlu0 %1204 }
 0x6d9   : > { %v1206_v37 = vcvt.f32.s32 %v1205_v35 }
 0x6da   : > { %v1224_v38 = vadd.s32 %v1223_v24, %v1221_v32 }
 0x6db   : > { %v1209_v11 = vadd.s32 %v1208_v36, %v1206_v37  ;;  %v1250_v39 = vpop.xlane.xlu1 %1249 }
 0x6dc   : > { %v1251_v42 = vcvt.f32.s32 %v1250_v39  ;;  %v1235_v43 = vpop.xlane.xlu0 %1234  ;;  %vm1256_vm15 = vcmp.eq.s32.totalorder %v11621_v16, %v1224_v38 }
 0x6dd   : > { %v1236_v44 = vcvt.f32.s32 %v1235_v43  ;;  %v11786_v45 = vsel %vm1256_vm15, inf, %v11734_v19  ;;  %v9505_v47 = vsel %vm1256_vm15, 1.0, %v14361_v62  ;;  %vm1255_vm0 = vcmp.eq.s32.totalorder %v11621_v16, %v1209_v11 }
 0x6de   : > { %v1254_v48 = vadd.s32 %v1253_v40, %v1251_v42  ;;  %v1335_v50 = vsel %vm856_vm5, %v11786_v45, inf  ;;  %v11793_v51 = vsel %vm1255_vm0, inf, %v11743_v25  ;;  %v9504_v52 = vsel %vm1255_vm0, 1.0, %v14361_v62 }
 0x6df   : > { %v1239_v53 = vadd.s32 %v1238_v41, %v1236_v44  ;;  %1336 = vmin.xlane.f32.xlu1 %v1335_v50  ;;  %v1332_v54 = vsel %vm856_vm5, %v11793_v51, inf  ;;  %v1267_v19 = vpack.c.bf16 %v9505_v47, %v9504_v52 }
 0x6e0   : > { %1333 = vmin.xlane.f32.xlu0 %v1332_v54  ;;  %vm1258_vm1 = vcmp.eq.s32.totalorder %v11621_v16, %v1254_v48 }
 0x6e1   : > { %9936 = vmatprep.mubr.msk.bf16.mxu1 %vm856_vm5, %v1267_v19  ;;  %v11801_v55 = vsel %vm1258_vm1, inf, %v11754_v31  ;;  %v11804_v58 = vsel %vm1258_vm1, 1.0, %v14361_v62  ;;  %vm1257_vm6 = vcmp.eq.s32.totalorder %v11621_v16, %v1239_v53 }
 0x6e2   : > { %v1341_v25 = vsel %vm856_vm5, %v11801_v55, inf  ;;  %v11810_v2 = vsel %vm1257_vm6, inf, %v11763_v33  ;;  %v11813_v59 = vsel %vm1257_vm6, 1.0, %v14361_v62 }
 0x6e3   : > { %1342 = vmin.xlane.f32.xlu1 %v1341_v25  ;;  %v1338_v60 = vsel %vm856_vm5, %v11810_v2, inf  ;;  %v1268_v31 = vpack.c.bf16 %v11804_v58, %v11813_v59 }
 0x6e4   : > { %1339 = vmin.xlane.f32.xlu0 %v1338_v60 }
 0x76c   : > { %v1337_v3 = vpop.xlane.xlu1 %1336 }
 0x76d   : > { %vm1345_vm7 = vcmp.le.f32.partialorder %v11786_v45, %v1337_v3  ;;  %v1334_v5 = vpop.xlane.xlu0 %1333 }
 0x76e   : > { %v1349_v63 = vsel %vm1345_vm7, %v11621_v16, 32  ;;  %vm1344_vm8 = vcmp.le.f32.partialorder %v11793_v51, %v1334_v5 }
 0x76f   : > { %v1348_v33 = vsel %vm1344_vm8, %v11621_v16, 32  ;;  %v1367_v0 = vsel %vm856_vm5, %v1349_v63, 2147483647 }
 0x770   : > { %v1343_v1 = vpop.xlane.xlu1 %1342  ;;  %v1369_v6 = vshra.s32 %v1367_v0, 16  ;;  %v1352_v7 = vsel %vm856_vm5, %v1348_v33, 2147483647  ;;  %v1368_v32 = vand.u32 65535, %v1367_v0 }
 0x771   : > { %vm1347_vm9 = vcmp.le.f32.partialorder %v11801_v55, %v1343_v1  ;;  %v1340_v46 = vpop.xlane.xlu0 %1339  ;;  %v1354_v8 = vshra.s32 %v1352_v7, 16  ;;  %v1353_v35 = vand.u32 65535, %v1352_v7 }
 0x772   : > { %v1351_v49 = vsel %vm1347_vm9, %v11621_v16, 32  ;;  %vm1346_vm10 = vcmp.le.f32.partialorder %v11810_v2, %v1340_v46  ;;  %v1371_v13 = vcvt.s32.f32 %v1369_v6  ;;  %v1370_v37 = vcvt.s32.f32 %v1368_v32 }
 0x773   : > { %v1350_v14 = vsel %vm1346_vm10, %v11621_v16, 32  ;;  %v1356_v15 = vcvt.s32.f32 %v1354_v8  ;;  %v1397_v17 = vsel %vm856_vm5, %v1351_v49, 2147483647  ;;  %v1355_v39 = vcvt.s32.f32 %v1353_v35 }
 0x774   : > { %1372 = vmin.xlane.f32.xlu1 %v1371_v13  ;;  %v1399_v57 = vshra.s32 %v1397_v17, 16  ;;  %v1382_v23 = vsel %vm856_vm5, %v1350_v14, 2147483647  ;;  %v1398_v38 = vand.u32 65535, %v1397_v17 }
 0x775   : > { %1357 = vmin.xlane.f32.xlu0 %v1356_v15  ;;  %v1384_v24 = vshra.s32 %v1382_v23, 16  ;;  %v1383_v40 = vand.u32 65535, %v1382_v23 }
 0x776   : > { %v1401_v28 = vcvt.s32.f32 %v1399_v57  ;;  %v1400_v44 = vcvt.s32.f32 %v1398_v38 }
 0x777   : > { %v1386_v61 = vcvt.s32.f32 %v1384_v24  ;;  %v1385_v48 = vcvt.s32.f32 %v1383_v40 }
 0x778   : > { %1402 = vmin.xlane.f32.xlu1 %v1401_v28 }
 0x779   : > { %1387 = vmin.xlane.f32.xlu0 %v1386_v61 }
 0x801   : > { %v1373_v36 = vpop.xlane.xlu1 %1372 }
 0x802   : > { %v1358_v11 = vpop.xlane.xlu0 %1357  ;;  %vm1374_vm11 = vcmp.eq.f32.partialorder %v1371_v13, %v1373_v36  ;;  %v1379_v53 = vcvt.f32.s32 %v1373_v36 }
 0x803   : > { %v1375_v41 = vsel %vm1374_vm11, %v1370_v37, inf  ;;  %vm1359_vm12 = vcmp.eq.f32.partialorder %v1356_v15, %v1358_v11  ;;  %v1364_v54 = vcvt.f32.s32 %v1358_v11 }
 0x804   : > { %1376 = vmin.xlane.f32.xlu1 %v1375_v41  ;;  %v1360_v42 = vsel %vm1359_vm12, %v1355_v39, inf  ;;  %v1380_v25 = vshll.u32 %v1379_v53, 16 }
 0x805   : > { %v1403_v43 = vpop.xlane.xlu1 %1402  ;;  %1361 = vmin.xlane.f32.xlu0 %v1360_v42  ;;  %v1365_v33 = vshll.u32 %v1364_v54, 16 }
 0x806   : > { %v1388_v47 = vpop.xlane.xlu0 %1387  ;;  %vm1404_vm13 = vcmp.eq.f32.partialorder %v1401_v28, %v1403_v43  ;;  %v1409_v60 = vcvt.f32.s32 %v1403_v43 }
 0x807   : > { %v1405_v50 = vsel %vm1404_vm13, %v1400_v44, inf  ;;  %vm1389_vm14 = vcmp.eq.f32.partialorder %v1386_v61, %v1388_v47  ;;  %v1394_v3 = vcvt.f32.s32 %v1388_v47 }
 0x808   : > { %1406 = vmin.xlane.f32.xlu1 %v1405_v50  ;;  %v1390_v52 = vsel %vm1389_vm14, %v1385_v48, inf  ;;  %v1410_v46 = vshll.u32 %v1409_v60, 16 }
 0x809   : > { %1391 = vmin.xlane.f32.xlu0 %v1390_v52  ;;  %v1395_v8 = vshll.u32 %v1394_v3, 16 }
 0x891   : > { %v1377_v19 = vpop.xlane.xlu1 %1376 }
 0x892   : > { %v1378_v5 = vcvt.f32.s32 %v1377_v19  ;;  %v1362_v63 = vpop.xlane.xlu0 %1361 }
 0x893   : > { %v1363_v0 = vcvt.f32.s32 %v1362_v63 }
 0x894   : > { %v1381_v1 = vadd.s32 %v1380_v25, %v1378_v5 }
 0x895   : > { %v1366_v6 = vadd.s32 %v1365_v33, %v1363_v0  ;;  %v1407_v7 = vpop.xlane.xlu1 %1406 }
 0x896   : > { %v1408_v49 = vcvt.f32.s32 %v1407_v7  ;;  %v1392_v13 = vpop.xlane.xlu0 %1391  ;;  %vm1413_vm15 = vcmp.eq.s32.totalorder %v11621_v16, %v1381_v1 }
 0x897   : > { %v1393_v14 = vcvt.f32.s32 %v1392_v13  ;;  %v11833_v15 = vsel %vm1413_vm15, inf, %v11786_v45  ;;  %v11836_v17 = vsel %vm1413_vm15, 1.0, %v14361_v62  ;;  %vm1412_vm0 = vcmp.eq.s32.totalorder %v11621_v16, %v1366_v6 }
 0x898   : > { %v1411_v57 = vadd.s32 %v1410_v46, %v1408_v49  ;;  %v1492_v23 = vsel %vm856_vm5, %v11833_v15, inf  ;;  %v11842_v24 = vsel %vm1412_vm0, inf, %v11793_v51  ;;  %v11845_v28 = vsel %vm1412_vm0, 1.0, %v14361_v62 }
 0x899   : > { %v1396_v61 = vadd.s32 %v1395_v8, %v1393_v14  ;;  %1493 = vmin.xlane.f32.xlu1 %v1492_v23  ;;  %v1489_v45 = vsel %vm856_vm5, %v11842_v24, inf  ;;  %v1424_v32 = vpack.c.bf16 %v11836_v17, %v11845_v28 }
 0x89a   : > { %1490 = vmin.xlane.f32.xlu0 %v1489_v45  ;;  %vm1415_vm1 = vcmp.eq.s32.totalorder %v11621_v16, %v1411_v57 }
 0x89b   : > { %v11853_v35 = vsel %vm1415_vm1, inf, %v11801_v55  ;;  %v11856_v51 = vsel %vm1415_vm1, 1.0, %v14361_v62  ;;  %vm1414_vm6 = vcmp.eq.s32.totalorder %v11621_v16, %v1396_v61 }
 0x89c   : > { %v1498_v36 = vsel %vm856_vm5, %v11853_v35, inf  ;;  %v11862_v37 = vsel %vm1414_vm6, inf, %v11810_v2  ;;  %v11865_v38 = vsel %vm1414_vm6, 1.0, %v14361_v62 }
 0x89d   : > { %1499 = vmin.xlane.f32.xlu1 %v1498_v36  ;;  %v1495_v11 = vsel %vm856_vm5, %v11862_v37, inf  ;;  %v1425_v55 = vpack.c.bf16 %v11856_v51, %v11865_v38 }
 0x89e   : > { %1496 = vmin.xlane.f32.xlu0 %v1495_v11 }
 0x926   : > { %v1494_v39 = vpop.xlane.xlu1 %1493 }
 0x927   : > { %vm1502_vm7 = vcmp.le.f32.partialorder %v11833_v15, %v1494_v39  ;;  %v1491_v40 = vpop.xlane.xlu0 %1490 }
 0x928   : > { %v1506_v41 = vsel %vm1502_vm7, %v11621_v16, 32  ;;  %vm1501_vm8 = vcmp.le.f32.partialorder %v11842_v24, %v1491_v40 }
 0x929   : > { %v1505_v2 = vsel %vm1501_vm8, %v11621_v16, 32  ;;  %v1524_v42 = vsel %vm856_vm5, %v1506_v41, 2147483647 }
 0x92a   : > { %v1500_v43 = vpop.xlane.xlu1 %1499  ;;  %v1526_v44 = vshra.s32 %v1524_v42, 16  ;;  %v1509_v47 = vsel %vm856_vm5, %v1505_v2, 2147483647  ;;  %v1525_v0 = vand.u32 65535, %v1524_v42 }
 0x92b   : > { %vm1504_vm9 = vcmp.le.f32.partialorder %v11853_v35, %v1500_v43  ;;  %v1497_v48 = vpop.xlane.xlu0 %1496  ;;  %v1511_v50 = vshra.s32 %v1509_v47, 16  ;;  %v1510_v1 = vand.u32 65535, %v1509_v47 }
 0x92c   : > { %v1508_v52 = vsel %vm1504_vm9, %v11621_v16, 32  ;;  %vm1503_vm10 = vcmp.le.f32.partialorder %v11862_v37, %v1497_v48  ;;  %v1528_v53 = vcvt.s32.f32 %v1526_v44  ;;  %v1527_v7 = vcvt.s32.f32 %v1525_v0 }
 0x92d   : > { %v1507_v54 = vsel %vm1503_vm10, %v11621_v16, 32  ;;  %v1513_v19 = vcvt.s32.f32 %v1511_v50  ;;  %v1554_v25 = vsel %vm856_vm5, %v1508_v52, 2147483647  ;;  %v1512_v49 = vcvt.s32.f32 %v1510_v1 }
 0x92e   : > { %1529 = vmin.xlane.f32.xlu1 %v1528_v53  ;;  %v1556_v60 = vshra.s32 %v1554_v25, 16  ;;  %v1539_v3 = vsel %vm856_vm5, %v1507_v54, 2147483647  ;;  %v1555_v46 = vand.u32 65535, %v1554_v25 }
 0x92f   : > { %1514 = vmin.xlane.f32.xlu0 %v1513_v19  ;;  %v1541_v5 = vshra.s32 %v1539_v3, 16  ;;  %v1540_v13 = vand.u32 65535, %v1539_v3 }
 0x930   : > { %v1558_v63 = vcvt.s32.f32 %v1556_v60  ;;  %v1557_v61 = vcvt.s32.f32 %v1555_v46 }
 0x931   : > { %v1543_v33 = vcvt.s32.f32 %v1541_v5  ;;  %v1542_v36 = vcvt.s32.f32 %v1540_v13 }
 0x932   : > { %1559 = vmin.xlane.f32.xlu1 %v1558_v63 }
 0x933   : > { %1544 = vmin.xlane.f32.xlu0 %v1543_v33 }
 0x9bb   : > { %v1530_v6 = vpop.xlane.xlu1 %1529 }
 0x9bc   : > { %v1515_v8 = vpop.xlane.xlu0 %1514  ;;  %vm1531_vm11 = vcmp.eq.f32.partialorder %v1528_v53, %v1530_v6  ;;  %v1536_v40 = vcvt.f32.s32 %v1530_v6 }
 0x9bd   : > { %v1532_v14 = vsel %vm1531_vm11, %v1527_v7, inf  ;;  %vm1516_vm12 = vcmp.eq.f32.partialorder %v1513_v19, %v1515_v8  ;;  %v1521_v41 = vcvt.f32.s32 %v1515_v8 }
 0x9be   : > { %1533 = vmin.xlane.f32.xlu1 %v1532_v14  ;;  %v1517_v57 = vsel %vm1516_vm12, %v1512_v49, inf  ;;  %v1537_v42 = vshll.u32 %v1536_v40, 16 }
 0x9bf   : > { %v1560_v23 = vpop.xlane.xlu1 %1559  ;;  %1518 = vmin.xlane.f32.xlu0 %v1517_v57  ;;  %v1522_v50 = vshll.u32 %v1521_v41, 16 }
 0x9c0   : > { %v1545_v45 = vpop.xlane.xlu0 %1544  ;;  %vm1561_vm13 = vcmp.eq.f32.partialorder %v1558_v63, %v1560_v23  ;;  %v1566_v43 = vcvt.f32.s32 %v1560_v23 }
 0x9c1   : > { %v1562_v11 = vsel %vm1561_vm13, %v1557_v61, inf  ;;  %vm1546_vm14 = vcmp.eq.f32.partialorder %v1543_v33, %v1545_v45  ;;  %v1551_v44 = vcvt.f32.s32 %v1545_v45 }
 0x9c2   : > { %1563 = vmin.xlane.f32.xlu1 %v1562_v11  ;;  %v1547_v39 = vsel %vm1546_vm14, %v1542_v36, inf  ;;  %v1567_v25 = vshll.u32 %v1566_v43, 16 }
 0x9c3   : > { %1548 = vmin.xlane.f32.xlu0 %v1547_v39  ;;  %v1552_v60 = vshll.u32 %v1551_v44, 16 }
 0xa4b   : > { %v1534_v2 = vpop.xlane.xlu1 %1533 }
 0xa4c   : > { %v1535_v47 = vcvt.f32.s32 %v1534_v2  ;;  %v1519_v48 = vpop.xlane.xlu0 %1518 }
 0xa4d   : > { %v1520_v52 = vcvt.f32.s32 %v1519_v48 }
 0xa4e   : > { %v1538_v53 = vadd.s32 %v1537_v42, %v1535_v47 }
 0xa4f   : > { %v1523_v54 = vadd.s32 %v1522_v50, %v1520_v52  ;;  %v1564_v19 = vpop.xlane.xlu1 %1563 }
 0xa50   : > { %v1565_v3 = vcvt.f32.s32 %v1564_v19  ;;  %v1549_v5 = vpop.xlane.xlu0 %1548  ;;  %vm1570_vm15 = vcmp.eq.s32.totalorder %v11621_v16, %v1538_v53 }
 0xa51   : > { %v1550_v63 = vcvt.f32.s32 %v1549_v5  ;;  %v11885_v33 = vsel %vm1570_vm15, inf, %v11833_v15  ;;  %v11888_v0 = vsel %vm1570_vm15, 1.0, %v14361_v62  ;;  %vm1569_vm0 = vcmp.eq.s32.totalorder %v11621_v16, %v1523_v54 }
 0xa52   : > { %v1568_v1 = vadd.s32 %v1567_v25, %v1565_v3  ;;  %v1649_v6 = vsel %vm856_vm5, %v11885_v33, inf  ;;  %v11894_v7 = vsel %vm1569_vm0, inf, %v11842_v24  ;;  %v11897_v46 = vsel %vm1569_vm0, 1.0, %v14361_v62 }
 0xa53   : > { %v1553_v8 = vadd.s32 %v1552_v60, %v1550_v63  ;;  %1650 = vmin.xlane.f32.xlu1 %v1649_v6  ;;  %v1646_v15 = vsel %vm856_vm5, %v11894_v7, inf  ;;  %v1581_v49 = vpack.c.bf16 %v11888_v0, %v11897_v46 }
 0xa54   : > { %1647 = vmin.xlane.f32.xlu0 %v1646_v15  ;;  %vm1572_vm1 = vcmp.eq.s32.totalorder %v11621_v16, %v1568_v1 }
 0xa55   : > { %v11905_v13 = vsel %vm1572_vm1, inf, %v11853_v35  ;;  %v11908_v24 = vsel %vm1572_vm1, 1.0, %v14361_v62  ;;  %vm1571_vm6 = vcmp.eq.s32.totalorder %v11621_v16, %v1553_v8 }
 0xa56   : > { %v1655_v14 = vsel %vm856_vm5, %v11905_v13, inf  ;;  %v11914_v57 = vsel %vm1571_vm6, inf, %v11862_v37  ;;  %v11917_v23 = vsel %vm1571_vm6, 1.0, %v14361_v62 }
 0xa57   : > { %1656 = vmin.xlane.f32.xlu1 %v1655_v14  ;;  %v1652_v61 = vsel %vm856_vm5, %v11914_v57, inf  ;;  %v1582_v35 = vpack.c.bf16 %v11908_v24, %v11917_v23 }
 0xa58   : > { %1653 = vmin.xlane.f32.xlu0 %v1652_v61 }
 0xae0   : > { %v1651_v45 = vpop.xlane.xlu1 %1650 }
 0xae1   : > { %vm1659_vm7 = vcmp.le.f32.partialorder %v11885_v33, %v1651_v45  ;;  %v1648_v36 = vpop.xlane.xlu0 %1647 }
 0xae2   : > { %v1663_v11 = vsel %vm1659_vm7, %v11621_v16, 32  ;;  %vm1658_vm8 = vcmp.le.f32.partialorder %v11894_v7, %v1648_v36 }
 0xae3   : > { %v1662_v37 = vsel %vm1658_vm8, %v11621_v16, 32  ;;  %v1681_v39 = vsel %vm856_vm5, %v1663_v11, 2147483647 }
 0xae4   : > { %v1657_v40 = vpop.xlane.xlu1 %1656  ;;  %v1683_v41 = vshra.s32 %v1681_v39, 16  ;;  %v1666_v2 = vsel %vm856_vm5, %v1662_v37, 2147483647  ;;  %v1682_v3 = vand.u32 65535, %v1681_v39 }
 0xae5   : > { %vm1661_vm9 = vcmp.le.f32.partialorder %v11905_v13, %v1657_v40  ;;  %v1654_v42 = vpop.xlane.xlu0 %1653  ;;  %v1668_v43 = vshra.s32 %v1666_v2, 16  ;;  %v1667_v5 = vand.u32 65535, %v1666_v2 }
 0xae6   : > { %v1665_v44 = vsel %vm1661_vm9, %v11621_v16, 32  ;;  %vm1660_vm10 = vcmp.le.f32.partialorder %v11914_v57, %v1654_v42  ;;  %v1685_v47 = vcvt.s32.f32 %v1683_v41  ;;  %v1684_v1 = vcvt.s32.f32 %v1682_v3 }
 0xae7   : > { %v1664_v48 = vsel %vm1660_vm10, %v11621_v16, 32  ;;  %v1670_v50 = vcvt.s32.f32 %v1668_v43  ;;  %v1711_v52 = vsel %vm856_vm5, %v1665_v44, 2147483647  ;;  %v1669_v15 = vcvt.s32.f32 %v1667_v5 }
 0xae8   : > { %1686 = vmin.xlane.f32.xlu1 %v1685_v47  ;;  %v1713_v53 = vshra.s32 %v1711_v52, 16  ;;  %v1696_v54 = vsel %vm856_vm5, %v1664_v48, 2147483647  ;;  %v1712_v6 = vand.u32 65535, %v1711_v52 }
 0xae9   : > { %1671 = vmin.xlane.f32.xlu0 %v1670_v50  ;;  %v1698_v19 = vshra.s32 %v1696_v54, 16  ;;  %v1697_v14 = vand.u32 65535, %v1696_v54 }
 0xaea   : > { %v1715_v25 = vcvt.s32.f32 %v1713_v53  ;;  %v1714_v11 = vcvt.s32.f32 %v1712_v6 }
 0xaeb   : > { %v1700_v60 = vcvt.s32.f32 %v1698_v19  ;;  %v1699_v40 = vcvt.s32.f32 %v1697_v14 }
 0xaec   : > { %1716 = vmin.xlane.f32.xlu1 %v1715_v25 }
 0xaed   : > { %1701 = vmin.xlane.f32.xlu0 %v1700_v60 }
 0xb75   : > { %v1687_v63 = vpop.xlane.xlu1 %1686 }
 0xb76   : > { %v1672_v8 = vpop.xlane.xlu0 %1671  ;;  %vm1688_vm11 = vcmp.eq.f32.partialorder %v1685_v47, %v1687_v63  ;;  %v1693_v2 = vcvt.f32.s32 %v1687_v63 }
 0xb77   : > { %v1689_v61 = vsel %vm1688_vm11, %v1684_v1, inf  ;;  %vm1673_vm12 = vcmp.eq.f32.partialorder %v1670_v50, %v1672_v8  ;;  %v1678_v42 = vcvt.f32.s32 %v1672_v8 }
 0xb78   : > { %1690 = vmin.xlane.f32.xlu1 %v1689_v61  ;;  %v1674_v45 = vsel %vm1673_vm12, %v1669_v15, inf  ;;  %v1694_v44 = vshll.u32 %v1693_v2, 16 }
 0xb79   : > { %v1717_v36 = vpop.xlane.xlu1 %1716  ;;  %1675 = vmin.xlane.f32.xlu0 %v1674_v45  ;;  %v1679_v53 = vshll.u32 %v1678_v42, 16 }
 0xb7a   : > { %v1702_v37 = vpop.xlane.xlu0 %1701  ;;  %vm1718_vm13 = vcmp.eq.f32.partialorder %v1715_v25, %v1717_v36  ;;  %v1723_v47 = vcvt.f32.s32 %v1717_v36 }
 0xb7b   : > { %v1719_v41 = vsel %vm1718_vm13, %v1714_v11, inf  ;;  %vm1703_vm14 = vcmp.eq.f32.partialorder %v1700_v60, %v1702_v37  ;;  %v1708_v48 = vcvt.f32.s32 %v1702_v37 }
 0xb7c   : > { %1720 = vmin.xlane.f32.xlu1 %v1719_v41  ;;  %v1704_v39 = vsel %vm1703_vm14, %v1699_v40, inf  ;;  %v1724_v25 = vshll.u32 %v1723_v47, 16 }
 0xb7d   : > { %1705 = vmin.xlane.f32.xlu0 %v1704_v39  ;;  %v1709_v1 = vshll.u32 %v1708_v48, 16 }
 0xc05   : > { %v1691_v43 = vpop.xlane.xlu1 %1690 }
 0xc06   : > { %v1692_v50 = vcvt.f32.s32 %v1691_v43  ;;  %v1676_v52 = vpop.xlane.xlu0 %1675 }
 0xc07   : > { %v1677_v54 = vcvt.f32.s32 %v1676_v52 }
 0xc08   : > { %v1695_v19 = vadd.s32 %v1694_v44, %v1692_v50 }
 0xc09   : > { %v1680_v3 = vadd.s32 %v1679_v53, %v1677_v54  ;;  %v1721_v5 = vpop.xlane.xlu1 %1720 }
 0xc0a   : > { %v1722_v6 = vcvt.f32.s32 %v1721_v5  ;;  %v1706_v60 = vpop.xlane.xlu0 %1705  ;;  %vm1727_vm15 = vcmp.eq.s32.totalorder %v11621_v16, %v1695_v19 }
 0xc0b   : > { %v1707_v15 = vcvt.f32.s32 %v1706_v60  ;;  %v11937_v63 = vsel %vm1727_vm15, inf, %v11885_v33  ;;  %v11940_v8 = vsel %vm1727_vm15, 1.0, %v14361_v62  ;;  %vm1726_vm0 = vcmp.eq.s32.totalorder %v11621_v16, %v1680_v3 }
 0xc0c   : > { %v1725_v14 = vadd.s32 %v1724_v25, %v1722_v6  ;;  %v1806_v61 = vsel %vm856_vm5, %v11937_v63, inf  ;;  %v11946_v45 = vsel %vm1726_vm0, inf, %v11894_v7  ;;  %v11949_v36 = vsel %vm1726_vm0, 1.0, %v14361_v62 }
 0xc0d   : > { %v1710_v11 = vadd.s32 %v1709_v1, %v1707_v15  ;;  %1807 = vmin.xlane.f32.xlu1 %v1806_v61  ;;  %v1803_v33 = vsel %vm856_vm5, %v11946_v45, inf  ;;  %v14412_v10 = vpack.c.bf16 %v11940_v8, %v11949_v36  ;;  %v14414_v8 = vmov 0.0  }
 0xc0e   : > { %1804 = vmin.xlane.f32.xlu0 %v1803_v33  ;;  %vm1729_vm1 = vcmp.eq.s32.totalorder %v11621_v16, %v1725_v14 }
 0xc0f   : > { %v11957_v40 = vsel %vm1729_vm1, inf, %v11905_v13  ;;  %v11960_v7 = vsel %vm1729_vm1, 1.0, %v14361_v62  ;;  %vm1728_vm6 = vcmp.eq.s32.totalorder %v11621_v16, %v1710_v11 }
 0xc10   : > { %v1812_v41 = vsel %vm856_vm5, %v11957_v40, inf  ;;  %v11966_v39 = vsel %vm1728_vm6, inf, %v11914_v57  ;;  %v11969_v2 = vsel %vm1728_vm6, 1.0, %v14361_v62 }
 0xc11   : > { %1813 = vmin.xlane.f32.xlu1 %v1812_v41  ;;  %v1809_v42 = vsel %vm856_vm5, %v11966_v39, inf  ;;  %v14413_v12 = vpack.c.bf16 %v11960_v7, %v11969_v2 }
 0xc12   : > { %1810 = vmin.xlane.f32.xlu0 %v1809_v42 }
 0xc9a   : > { %v1808_v43 = vpop.xlane.xlu1 %1807 }
 0xc9b   : > { %vm1816_vm7 = vcmp.le.f32.partialorder %v11937_v63, %v1808_v43  ;;  %v1805_v44 = vpop.xlane.xlu0 %1804 }
 0xc9c   : > { %v1820_v47 = vsel %vm1816_vm7, %v11621_v16, 32  ;;  %vm1815_vm8 = vcmp.le.f32.partialorder %v11946_v45, %v1805_v44 }
 0xc9d   : > { %v1819_v57 = vsel %vm1815_vm8, %v11621_v16, 32  ;;  %v1838_v48 = vsel %vm856_vm5, %v1820_v47, 2147483647 }
 0xc9e   : > { %v1814_v50 = vpop.xlane.xlu1 %1813  ;;  %v1840_v52 = vshra.s32 %v1838_v48, 16  ;;  %v1823_v53 = vsel %vm856_vm5, %v1819_v57, 2147483647  ;;  %v1839_v33 = vand.u32 65535, %v1838_v48 }
 0xc9f   : > { %vm1818_vm9 = vcmp.le.f32.partialorder %v11957_v40, %v1814_v50  ;;  %v1811_v54 = vpop.xlane.xlu0 %1810  ;;  %v1825_v19 = vshra.s32 %v1823_v53, 16  ;;  %v1824_v41 = vand.u32 65535, %v1823_v53 }
 0xca0   : > { %v1822_v3 = vsel %vm1818_vm9, %v11621_v16, 32  ;;  %vm1817_vm10 = vcmp.le.f32.partialorder %v11966_v39, %v1811_v54  ;;  %v1842_v5 = vcvt.s32.f32 %v1840_v52  ;;  %v1841_v43 = vcvt.s32.f32 %v1839_v33 }
 0xca1   : > { %v1821_v25 = vsel %vm1817_vm10, %v11621_v16, 32  ;;  %v1827_v1 = vcvt.s32.f32 %v1825_v19  ;;  %v1868_v6 = vsel %vm856_vm5, %v1822_v3, 2147483647  ;;  %v1826_v57 = vcvt.s32.f32 %v1824_v41 }
 0xca2   : > { %1843 = vmin.xlane.f32.xlu1 %v1842_v5  ;;  %v1870_v60 = vshra.s32 %v1868_v6, 16  ;;  %v1853_v15 = vsel %vm856_vm5, %v1821_v25, 2147483647  ;;  %v1869_v44 = vand.u32 65535, %v1868_v6 }
 0xca3   : > { %1828 = vmin.xlane.f32.xlu0 %v1827_v1  ;;  %v1855_v14 = vshra.s32 %v1853_v15, 16  ;;  %v1854_v50 = vand.u32 65535, %v1853_v15 }
 0xca4   : > { %v1872_v61 = vcvt.s32.f32 %v1870_v60  ;;  %v1871_v3 = vcvt.s32.f32 %v1869_v44 }
 0xca5   : > { %v1857_v11 = vcvt.s32.f32 %v1855_v14  ;;  %v1856_v60 = vcvt.s32.f32 %v1854_v50 }
 0xca6   : > { %1873 = vmin.xlane.f32.xlu1 %v1872_v61 }
 0xca7   : > { %1858 = vmin.xlane.f32.xlu0 %v1857_v11 }
 0xd2f   : > { %v1844_v42 = vpop.xlane.xlu1 %1843 }
 0xd30   : > { %v1829_v47 = vpop.xlane.xlu0 %1828  ;;  %vm1845_vm11 = vcmp.eq.f32.partialorder %v1842_v5, %v1844_v42  ;;  %v1850_v53 = vcvt.f32.s32 %v1844_v42 }
 0xd31   : > { %v1846_v52 = vsel %vm1845_vm11, %v1841_v43, inf  ;;  %vm1830_vm12 = vcmp.eq.f32.partialorder %v1827_v1, %v1829_v47  ;;  %v1835_v6 = vcvt.f32.s32 %v1829_v47 }
 0xd32   : > { %1847 = vmin.xlane.f32.xlu1 %v1846_v52  ;;  %v1831_v54 = vsel %vm1830_vm12, %v1826_v57, inf  ;;  %v1851_v33 = vshll.u32 %v1850_v53, 16 }
 0xd33   : > { %v1874_v19 = vpop.xlane.xlu1 %1873  ;;  %1832 = vmin.xlane.f32.xlu0 %v1831_v54  ;;  %v1836_v57 = vshll.u32 %v1835_v6, 16 }
 0xd34   : > { %v1859_v25 = vpop.xlane.xlu0 %1858  ;;  %vm1875_vm13 = vcmp.eq.f32.partialorder %v1872_v61, %v1874_v19  ;;  %v1880_v15 = vcvt.f32.s32 %v1874_v19 }
 0xd35   : > { %v1876_v14 = vsel %vm1875_vm13, %v1871_v3, inf  ;;  %vm1860_vm14 = vcmp.eq.f32.partialorder %v1857_v11, %v1859_v25  ;;  %v1865_v41 = vcvt.f32.s32 %v1859_v25 }
 0xd36   : > { %1877 = vmin.xlane.f32.xlu1 %v1876_v14  ;;  %v1861_v48 = vsel %vm1860_vm14, %v1856_v60, inf  ;;  %v1881_v61 = vshll.u32 %v1880_v15, 16 }
 0xd37   : > { %1862 = vmin.xlane.f32.xlu0 %v1861_v48  ;;  %v1866_v50 = vshll.u32 %v1865_v41, 16 }
 0xdbf   : > { %v1848_v5 = vpop.xlane.xlu1 %1847 }
 0xdc0   : > { %v1849_v1 = vcvt.f32.s32 %v1848_v5  ;;  %v1833_v43 = vpop.xlane.xlu0 %1832 }
 0xdc1   : > { %v1834_v52 = vcvt.f32.s32 %v1833_v43 }
 0xdc2   : > { %v1852_v54 = vadd.s32 %v1851_v33, %v1849_v1 }
 0xdc3   : > { %v1837_v44 = vadd.s32 %v1836_v57, %v1834_v52  ;;  %v1878_v13 = vpop.xlane.xlu1 %1877 }
 0xdc4   : > { %v1879_v3 = vcvt.f32.s32 %v1878_v13  ;;  %v1863_v11 = vpop.xlane.xlu0 %1862  ;;  %vm1884_vm15 = vcmp.eq.s32.totalorder %v11621_v16, %v1852_v54 }
 0xdc5   : > { %v1864_v60 = vcvt.f32.s32 %v1863_v11  ;;  %v1953_v42 = vsel %vm1884_vm15, inf, %v11937_v63  ;;  %v11990_v47 = vsel %vm1884_vm15, 1.0, %v14361_v62  ;;  %vm1883_vm0 = vcmp.eq.s32.totalorder %v11621_v16, %v1837_v44 }
 0xdc6   : > { %v1882_v19 = vadd.s32 %v1881_v61, %v1879_v3  ;;  %v1963_v25 = vsel %vm856_vm5, %v1953_v42, inf  ;;  %v1952_v14 = vsel %vm1883_vm0, inf, %v11946_v45  ;;  %v11996_v48 = vsel %vm1883_vm0, 1.0, %v14361_v62 }
 0xdc7   : > { %v1867_v13 = vadd.s32 %v1866_v50, %v1864_v60  ;;  %1964 = vmin.xlane.f32.xlu1 %v1963_v25  ;;  %v1960_v53 = vsel %vm856_vm5, %v1952_v14, inf  ;;  %v1895_v63 = vpack.c.bf16 %v11990_v47, %v11996_v48 }
 0xdc8   : > { %1961 = vmin.xlane.f32.xlu0 %v1960_v53  ;;  %vm1886_vm1 = vcmp.eq.s32.totalorder %v11621_v16, %v1882_v19 }
 0xdc9   : > { %v1955_v6 = vsel %vm1886_vm1, inf, %v11957_v40  ;;  %v12004_v5 = vsel %vm1886_vm1, 1.0, %v14361_v62  ;;  %vm1885_vm6 = vcmp.eq.s32.totalorder %v11621_v16, %v1867_v13  ;;  %v12015_v40 = vpop.f32.mrb[0].mxu0 }
 0xdca   : > { %v1969_v45 = vsel %vm856_vm5, %v1955_v6, inf  ;;  %v1954_v33 = vsel %vm1885_vm6, inf, %v11966_v39  ;;  %v12010_v15 = vsel %vm1885_vm6, 1.0, %v14361_v62  ;;  %v12017_v43 = vpop.f32.mrb[1].mxu0 }
 0xdcb   : > { %1970 = vmin.xlane.f32.xlu1 %v1969_v45  ;;  %v1966_v41 = vsel %vm856_vm5, %v1954_v33, inf  ;;  %v1896_v1 = vpack.c.bf16 %v12004_v5, %v12010_v15  ;;  %v854_v57 = vpack.c.bf16 %v12015_v40, %v12017_v43  ;;  %v12021_v52 = vpop.f32.mrb[2].mxu0 }
 0xdcc   : > { %1967 = vmin.xlane.f32.xlu0 %v1966_v41  ;;  %v12023_v39 = vpop.f32.mrb[3].mxu0 }
 0xdcd   : > { %v855_v54 = vpack.c.bf16 %v12021_v52, %v12023_v39 }
 0xe54   : > { %v1965_v44 = vpop.xlane.xlu1 %1964 }
 0xe55   : > { %vm1973_vm7 = vcmp.le.f32.partialorder %v1953_v42, %v1965_v44  ;;  %v1962_v61 = vpop.xlane.xlu0 %1961 }
 0xe56   : > { %v1977_v50 = vsel %vm1973_vm7, %v11621_v16, 32  ;;  %vm1972_vm8 = vcmp.le.f32.partialorder %v1952_v14, %v1962_v61  ;;  %vm2130_vm7 = vcmask 523264  }
 0xe57   : > { %v1976_v3 = vsel %vm1972_vm8, %v11621_v16, 32  ;;  %v1995_v11 = vsel %vm856_vm5, %v1977_v50, 2147483647  ;;  %vm12166_vm8 = vmpackc.low %vm2130_vm7, %vm2130_vm7 }
 0xe58   : > { %v1971_v60 = vpop.xlane.xlu1 %1970  ;;  %v1997_v19 = vshra.s32 %v1995_v11, 16  ;;  %v1980_v25 = vsel %vm856_vm5, %v1976_v3, 2147483647 }
 0xe59   : > { %vm1975_vm9 = vcmp.le.f32.partialorder %v1955_v6, %v1971_v60  ;;  %v1968_v13 = vpop.xlane.xlu0 %1967  ;;  %v1982_v53 = vshra.s32 %v1980_v25, 16  ;;  %v1996_v6 = vand.u32 65535, %v1995_v11 }
 0xe5a   : > { %v1979_v45 = vsel %vm1975_vm9, %v11621_v16, 32  ;;  %vm1974_vm10 = vcmp.le.f32.partialorder %v1954_v33, %v1968_v13  ;;  %v1999_v41 = vcvt.s32.f32 %v1997_v19  ;;  %v1981_v33 = vand.u32 65535, %v1980_v25 }
 0xe5b   : > { %v1978_v42 = vsel %vm1974_vm10, %v11621_v16, 32  ;;  %v1984_v44 = vcvt.s32.f32 %v1982_v53  ;;  %v2025_v14 = vsel %vm856_vm5, %v1979_v45, 2147483647  ;;  %v1998_v13 = vcvt.s32.f32 %v1996_v6 }
 0xe5c   : > { %2000 = vmin.xlane.f32.xlu1 %v1999_v41  ;;  %v2027_v61 = vshra.s32 %v2025_v14, 16  ;;  %v2010_v50 = vsel %vm856_vm5, %v1978_v42, 2147483647  ;;  %v2026_v60 = vand.u32 65535, %v2025_v14  ;;  %v1983_v42 = vcvt.s32.f32 %v1981_v33 }
 0xe5d   : > { %1985 = vmin.xlane.f32.xlu0 %v1984_v44  ;;  %v2012_v62 = vshra.s32 %v2010_v50, 16  ;;  %v2011_v53 = vand.u32 65535, %v2010_v50 }
 0xe5e   : > { %v2029_v37 = vcvt.s32.f32 %v2027_v61 }
 0xe5f   : > { %v2014_v3 = vcvt.s32.f32 %v2012_v62  ;;  %v2013_v25 = vcvt.s32.f32 %v2011_v53 }
 0xe60   : > { %2030 = vmin.xlane.f32.xlu1 %v2029_v37 }
 0xe61   : > { %2015 = vmin.xlane.f32.xlu0 %v2014_v3 }
 0xe71   : > { %955 = vrot.lane.b32.xlu1 %v855_v54, %s11291_s18 }
 0xe77   : > { %953 = vrot.lane.b32.xlu0 %v854_v57, %s11291_s18  ;;  %v2028_v57 = vcvt.s32.f32 %v2026_v60 }
 0xee9   : > { %v12037_v19 = vpop.xlane.xlu1 %2000 }
 0xeea   : > { %v12039_v45 = vpop.xlane.xlu0 %1985  ;;  %vm2002_vm11 = vcmp.eq.f32.partialorder %v1999_v41, %v12037_v19 }
 0xeeb   : > { %v2003_v62 = vsel %vm2002_vm11, %v1998_v13, inf  ;;  %vm1987_vm12 = vcmp.eq.f32.partialorder %v1984_v44, %v12039_v45  ;;  %v1992_v58 = vcvt.f32.s32 %v12039_v45 }
 0xeec   : > { %2004 = vmin.xlane.f32.xlu0 %v2003_v62  ;;  %v1988_v61 = vsel %vm1987_vm12, %v1983_v42, inf }
 0xeed   : > { %v12043_v54 = vpop.xlane.xlu1 %2030  ;;  %1989 = vmin.xlane.f32.xlu1 %v1988_v61  ;;  %v1993_v38 = vshll.u32 %v1992_v58, 16 }
 0xeee   : > { %v12045_v11 = vpop.xlane.xlu0 %2015  ;;  %vm2032_vm13 = vcmp.eq.f32.partialorder %v2029_v37, %v12043_v54  ;;  %v2037_v17 = vcvt.f32.s32 %v12043_v54 }
 0xeef   : > { %vm2017_vm14 = vcmp.eq.f32.partialorder %v2014_v3, %v12045_v11  ;;  %v2033_v14 = vsel %vm2032_vm13, %v2028_v57, inf  ;;  %v2022_v28 = vcvt.f32.s32 %v12045_v11 }
 0xef0   : > { %v2018_v50 = vsel %vm2017_vm14, %v2013_v25, inf }
 0xef1   : > { %2019 = vmin.xlane.f32.xlu0 %v2018_v50  ;;  %2034 = vmin.xlane.f32.xlu1 %v2033_v14  ;;  %v956_v6 = vpop.permute.xlu1 %955  ;;  %v2023_v24 = vshll.u32 %v2022_v28, 16  ;;  %v2128_v28 = vld [vmem:[%s14332_s3 + $0x38] sm:$0xff] }
 0xef2   : > { %v954_v41 = vpop.permute.xlu0 %953 }
 0xef3   : > { %9916 = vmatprep.subr.bf16.mxu0 %v954_v41  ;;  %9932 = vmatprep.subr.bf16.mxu1 %v954_v41 }
 0xef4   : > { %9917 = vmatpush3.bf16.msra.mxu0 %v954_v41  ;;  %9933 = vmatpush3.bf16.msra.mxu1 %v954_v41 }
 0xef5   : > { %9918 = vmatprep.subr.bf16.mxu0 %v956_v6  ;;  %9934 = vmatprep.subr.bf16.mxu1 %v956_v6 }
 0xef8   : > { %9919 = vmatpush3.bf16.msra.mxu0 %v956_v6  ;;  %9935 = vmatpush3.bf16.msra.mxu1 %v956_v6 }
 0xef9   : > { %9924 = vmatprep.subr.bf16.mxu0 %v954_v41  ;;  %9948 = vmatprep.subr.bf16.mxu1 %v954_v41 }
 0xefb   : > { %9921 = vmatmul.mubr.msk.bf16.vlgmr.msra.gmra.mrb[4].mxu0 %vm856_vm5, %v950_v56  ;;  %9937 = vmatmul.mubr.msk.bf16.vlgmr.msra.gmra.mrb[4].mxu1 %vm856_vm5, %v1268_v31  ;;  %v2121_v56 = vld [vmem:[%s14332_s3] sm:$0xff] }
 0xefc   : > { %9925 = vmatpush3.bf16.msra.mxu0 %v954_v41  ;;  %9928 = vmatprep.mubr.msk.bf16.mxu0 %vm856_vm5, %v1110_v30  ;;  %v10184_v30 = vpack.c.bf16 %v2122_v20, %v2121_v56 }
 0xefd   : > { %9949 = vmatpush3.bf16.msra.mxu1 %v954_v41  ;;  %9952 = vmatprep.mubr.msk.bf16.mxu1 %vm856_vm5, %v1581_v49  ;;  %v2038_v49 = vshll.u32 %v2037_v17, 16  ;;  %v2127_v17 = vld [vmem:[%s14332_s3 + $0x30] sm:$0xff] }
 0xefe   : > { %9926 = vmatprep.subr.bf16.mxu0 %v956_v6  ;;  %9950 = vmatprep.subr.bf16.mxu1 %v956_v6 }
 0xf00   : > { %9927 = vmatpush3.bf16.msra.mxu0 %v956_v6 }
 0xf01   : > { %9951 = vmatpush3.bf16.msra.mxu1 %v956_v6  ;;  %9940 = vmatprep.subr.bf16.mxu0 %v954_v41 }
 0xf02   : > { %671 = vrot.lane.b32.xlu1 %v12015_v40, %s11291_s18  ;;  %9964 = vmatprep.subr.bf16.mxu1 %v954_v41 }
 0xf03   : > { %9929 = vmatmul.mubr.msk.bf16.vlgmr.msra.gmra.mrb[8].mxu0 %vm856_vm5, %v1111_v9  ;;  %v2007_v9 = vcvt.f32.s32 %v12037_v19 }
 0xf04   : > { %9953 = vmatmul.mubr.msk.bf16.vlgmr.msra.gmra.mrb[8].mxu1 %vm856_vm5, %v1582_v35  ;;  %9941 = vmatpush3.bf16.msra.mxu0 %v954_v41 }
 0xf05   : > { %9944 = vmatprep.mubr.msk.bf16.mxu0 %vm856_vm5, %v1424_v32  ;;  %9965 = vmatpush3.bf16.msra.mxu1 %v954_v41  ;;  %v2008_v31 = vshll.u32 %v2007_v9, 16 }
 0xf06   : > { %9968 = vmatprep.mubr.msk.bf16.mxu1 %vm856_vm5, %v1895_v63  ;;  %673 = vrot.lane.b32.xlu1 %v12023_v39, %s11291_s18 }
 0xf07   : > { %669 = vrot.lane.b32.xlu0 %v12017_v43, %s11291_s18  ;;  %9942 = vmatprep.subr.bf16.mxu0 %v956_v6 }
 0xf08   : > { %9966 = vmatprep.subr.bf16.mxu1 %v956_v6  ;;  %9943 = vmatpush3.bf16.msra.mxu0 %v956_v6 }
 0xf09   : > { %9967 = vmatpush3.bf16.msra.mxu1 %v956_v6  ;;  %9956 = vmatprep.subr.bf16.mxu0 %v954_v41 }
 0xf0a   : > { %675 = vrot.lane.b32.xlu1 %v12021_v52, %s11291_s18  ;;  %10185 = vmatprep.subr.bf16.mxu1 %v10184_v30 }
 0xf0b   : > { %9945 = vmatmul.mubr.msk.bf16.vlgmr.msra.gmra.mrb[12].mxu0 %vm856_vm5, %v1425_v55 }
 0xf0c   : > { %9969 = vmatmul.mubr.msk.bf16.vlgmr.msra.gmra.mrb[12].mxu1 %vm856_vm5, %v1896_v1  ;;  %9957 = vmatpush3.bf16.msra.mxu0 %v954_v41 }
 0xf0d   : > { %9960 = vmatprep.mubr.msk.bf16.mxu0 %vm856_vm5, %v14412_v10  ;;  %9958 = vmatprep.subr.bf16.mxu0 %v956_v6 }
 0xf0e   : > { %10187 = vmatpush3.bf16.msra.mxu1 %v10184_v30  ;;  %v2126_v30 = vld [vmem:[%s14332_s3 + $0x28] sm:$0xff] }
 0xf0f   : > { %10189 = vmatprep.subr.bf16.mxu1 %v10188_v34 }
 0xf10   : > { %9959 = vmatpush3.bf16.msra.mxu0 %v956_v6 }
 0xf11   : > { %9972 = vmatprep.subr.bf16.mxu0 %v954_v41 }
 0xf12   : > { %10191 = vmatpush3.bf16.msra.mxu1 %v10188_v34  ;;  %v10192_v34 = vpack.c.bf16 %v2126_v30, %v2125_v27 }
 0xf13   : > { %9961 = vmatmul.mubr.msk.bf16.vlgmr.msra.gmra.mrb[16].mxu0 %vm856_vm5, %v14413_v12 }
 0xf14   : > { %9973 = vmatpush3.bf16.msra.mxu0 %v954_v41  ;;  %10193 = vmatprep.subr.bf16.mxu1 %v10192_v34 }
 0xf15   : > { %9974 = vmatprep.subr.bf16.mxu0 %v956_v6 }
 0xf16   : > { %10195 = vmatpush3.bf16.msra.mxu1 %v10192_v34 }
 0xf18   : > { %9975 = vmatpush3.bf16.msra.mxu0 %v956_v6 }
 0xf79   : > { %v2005_v59 = vpop.xlane.xlu0 %2004 }
 0xf7a   : > { %v2006_v32 = vcvt.f32.s32 %v2005_v59  ;;  %v1990_v51 = vpop.xlane.xlu1 %1989 }
 0xf7b   : > { %v1991_v55 = vcvt.f32.s32 %v1990_v51 }
 0xf7c   : > { %v2009_v0 = vadd.s32 %v2008_v31, %v2006_v32 }
 0xf7d   : > { %v1994_v46 = vadd.s32 %v1993_v38, %v1991_v55  ;;  %v10196_v55 = vpack.c.bf16 %v2128_v28, %v2127_v17 }
 0xf7e   : > { %vm2041_vm15 = vcmp.eq.s32.totalorder %v11621_v16, %v2009_v0  ;;  %v2020_v23 = vpop.xlane.xlu0 %2019  ;;  %v2035_v35 = vpop.xlane.xlu1 %2034 }
 0xf7f   : > { %v9535_v36 = vsel %vm2041_vm15, 1.0, %v14414_v8  ;;  %vm2040_vm0 = vcmp.eq.s32.totalorder %v11621_v16, %v1994_v46  ;;  %v2021_v37 = vcvt.f32.s32 %v2020_v23  ;;  %v2036_v7 = vcvt.f32.s32 %v2035_v35  ;;  %10197 = vmatprep.subr.bf16.mxu1 %v10196_v55 }
 0xf80   : > { %v9534_v2 = vsel %vm2040_vm0, 1.0, %v14414_v8  ;;  %10199 = vmatpush3.bf16.msra.mxu1 %v10196_v55 }
 0xf81   : > { %v2024_v47 = vadd.s32 %v2023_v24, %v2021_v37  ;;  %v2039_v48 = vadd.s32 %v2038_v49, %v2036_v7  ;;  %v2052_v63 = vpack.c.bf16 %v9535_v36, %v9534_v2 }
 0xf83   : > { %vm2042_vm1 = vcmp.eq.s32.totalorder %v11621_v16, %v2024_v47  ;;  %vm2043_vm6 = vcmp.eq.s32.totalorder %v11621_v16, %v2039_v48  ;;  %9976 = vmatprep.mubr.msk.bf16.mxu0 %vm856_vm5, %v2052_v63 }
 0xf84   : > { %v9536_v5 = vsel %vm2042_vm1, 1.0, %v14414_v8  ;;  %v9537_v15 = vsel %vm2043_vm6, 1.0, %v14414_v8 }
 0xf85   : > { %v2053_v1 = vpack.c.bf16 %v9537_v15, %v9536_v5 }
 0xf87   : > { %9977 = vmatmul.mubr.msk.bf16.vlgmr.msra.gmra.mrb[20].mxu0 %vm856_vm5, %v2053_v1 }
 0xfce   : > { %v9922_v44 = vpop.f32.mrb[4].mxu0  ;;  %v9938_v3 = vpop.f32.mrb[4].mxu1 }
 0xfcf   : > { %v999_v33 = vpop.f32.mrb[5].mxu0  ;;  %v1309_v60 = vpop.f32.mrb[5].mxu1 }
 0xfd0   : > { %v9923_v19 = vpop.f32.mrb[6].mxu0  ;;  %v9939_v13 = vpop.f32.mrb[6].mxu1 }
 0xfd1   : > { %v1002_v53 = vpop.f32.mrb[7].mxu0  ;;  %v1312_v45 = vpop.f32.mrb[7].mxu1 }
 0xfd6   : > { %v9930_v42 = vpop.f32.mrb[8].mxu0 }
 0xfd7   : > { %v1173_v62 = vmax.f32 %v9922_v44, %v9930_v42  ;;  %v9954_v61 = vpop.f32.mrb[8].mxu1  ;;  %v1152_v54 = vpop.f32.mrb[9].mxu0 }
 0xfd8   : > { %v1171_v57 = vmax.f32 %v999_v33, %v1152_v54  ;;  %v1623_v11 = vpop.f32.mrb[9].mxu1  ;;  %v9931_v25 = vpop.f32.mrb[10].mxu0  ;;  %v9483_v54 = vld [vmem:[%s14331_s2] ss:$0 sm:$0xff] }
 0xfd9   : > { %v1174_v14 = vmax.f32 %v9923_v19, %v9931_v25  ;;  %v9955_v50 = vpop.f32.mrb[10].mxu1  ;;  %v1155_v41 = vpop.f32.mrb[11].mxu0  ;;  %v1330_v6 = vmax.f32 %v1173_v62, %v9938_v3 }
 0xfda   : > { %v1172_v10 = vmax.f32 %v1002_v53, %v1155_v41  ;;  %v1626_v12 = vpop.f32.mrb[11].mxu1  ;;  %v1328_v56 = vmax.f32 %v1171_v57, %v1309_v60 }
 0xfdb   : > { %v1331_v20 = vmax.f32 %v1174_v14, %v9939_v13  ;;  %v672_v13 = vpop.permute.xlu1 %671 }
 0xfdc   : > { %v1329_v4 = vmax.f32 %v1172_v10, %v1312_v45  ;;  %v670_v45 = vpop.permute.xlu0 %669 }
 0xfde   : > { %v9946_v9 = vpop.f32.mrb[12].mxu0 }
 0xfdf   : > { %v1487_v58 = vmax.f32 %v1330_v6, %v9946_v9  ;;  %v9970_v59 = vpop.f32.mrb[12].mxu1  ;;  %v1466_v31 = vpop.f32.mrb[13].mxu0 }
 0xfe0   : > { %v1485_v32 = vmax.f32 %v1328_v56, %v1466_v31  ;;  %v1937_v51 = vpop.f32.mrb[13].mxu1  ;;  %v9947_v38 = vpop.f32.mrb[14].mxu0 }
 0xfe1   : > { %v1488_v0 = vmax.f32 %v1331_v20, %v9947_v38  ;;  %v9971_v46 = vpop.f32.mrb[14].mxu1  ;;  %v1469_v49 = vpop.f32.mrb[15].mxu0  ;;  %v1644_v24 = vmax.f32 %v1487_v58, %v9954_v61  ;;  %v681_v61 = vsub.f32 %v12017_v43, %v670_v45 }
 0xfe2   : > { %v1486_v23 = vmax.f32 %v1329_v4, %v1469_v49  ;;  %v1940_v35 = vpop.f32.mrb[15].mxu1  ;;  %v1642_v36 = vmax.f32 %v1485_v32, %v1623_v11  ;;  %v674_v53 = vpop.permute.xlu1 %673  ;;  %v682_v11 = vsub.f32 %v12015_v40, %v672_v13 }
 0xfe3   : > { %v1645_v37 = vmax.f32 %v1488_v0, %v9955_v50  ;;  %v683_v62 = vsub.f32 %v12023_v39, %v674_v53  ;;  %v691_v6 = vadd.f32 %v9483_v54, %v681_v61 }
 0xfe4   : > { %v1643_v7 = vmax.f32 %v1486_v23, %v1626_v12  ;;  %v692_v43 = vadd.f32 %v9483_v54, %v682_v11 }
 0xfe5   : > { %v693_v14 = vadd.f32 %v9483_v54, %v683_v62 }
 0xfe6   : > { %v9962_v2 = vpop.f32.mrb[16].mxu0  ;;  %v676_v42 = vpop.permute.xlu1 %675 }
 0xfe7   : > { %v1801_v47 = vmax.f32 %v1644_v24, %v9962_v2  ;;  %v1780_v48 = vpop.f32.mrb[17].mxu0  ;;  %v684_v57 = vsub.f32 %v12021_v52, %v676_v42 }
 0xfe8   : > { %v1799_v63 = vmax.f32 %v1642_v36, %v1780_v48  ;;  %v9963_v5 = vpop.f32.mrb[18].mxu0 }
 0xfe9   : > { %v1802_v15 = vmax.f32 %v1645_v37, %v9963_v5  ;;  %v1783_v1 = vpop.f32.mrb[19].mxu0  ;;  %v1958_v44 = vmax.f32 %v1801_v47, %v9970_v59  ;;  %v694_v56 = vadd.f32 %v9483_v54, %v684_v57 }
 0xfea   : > { %v1800_v3 = vmax.f32 %v1643_v7, %v1783_v1  ;;  %v1956_v33 = vmax.f32 %v1799_v63, %v1937_v51 }
 0xfeb   : > { %v1959_v60 = vmax.f32 %v1802_v15, %v9971_v46 }
 0xfec   : > { %v1957_v19 = vmax.f32 %v1800_v3, %v1940_v35 }
0x105a   : > { %v9978_v25 = vpop.f32.mrb[20].mxu0 }
0x105b   : > { %v2111_v50 = vmax.f32 %v1958_v44, %v9978_v25  ;;  %v2094_v41 = vpop.f32.mrb[21].mxu0 }
0x105c   : > { %v2109_v10 = vmax.f32 %v1956_v33, %v2094_v41  ;;  %v9979_v12 = vpop.f32.mrb[22].mxu0 }
0x105d   : > { %v2115_v20 = vadd.f32 %v2111_v50, %v693_v14  ;;  %v2112_v39 = vmax.f32 %v1959_v60, %v9979_v12  ;;  %v2097_v27 = vpop.f32.mrb[23].mxu0 }
0x105e   : > { %v2113_v30 = vadd.f32 %v2109_v10, %v691_v6  ;;  %v2110_v4 = vmax.f32 %v1957_v19, %v2097_v27 }
0x105f   : > { %v2116_v34 = vadd.f32 %v2112_v39, %v694_v56  ;;  %v12150_v9 = vmax.f32 %v2115_v20, 0.0 }
0x1060   : > { %v12152_v52 = vmax.f32 %v2113_v30, 0.0  ;;  %v2114_v40 = vadd.f32 %v2110_v4, %v692_v43 }
0x1061   : > { %v12154_v58 = vmax.f32 %v2116_v34, 0.0  ;;  %v2345_v38 = vmul.f32 %v12150_v9, %v12150_v9 }
0x1062   : > { %v12156_v59 = vmax.f32 %v2114_v40, 0.0  ;;  %9996 = vmatprep.mubr.msk.f32.mxu1 %vm2130_vm7, %v12152_v52  ;;  %10010 = vmatprep.mubr.msk.f32.mxu0 %vm2130_vm7, %v12152_v52  ;;  %v2343_v31 = vmul.f32 %v12152_v52, %v12152_v52 }
0x1063   : > { %v10206_v0 = vpack.c.bf16 %v12154_v58, %v12150_v9  ;;  %v2353_v46 = vsel %vm2130_vm7, %v2345_v38, 0.0  ;;  %v2346_v49 = vmul.f32 %v12154_v58, %v12154_v58 }
0x1064   : > { %9997 = vmatmul.mubr.msk.f32.vlgmr.msra.gmra.mrb[16].mxu1 %vm2130_vm7, %v12156_v59  ;;  %v2347_v28 = vsel %vm2130_vm7, %v2343_v31, 0.0  ;;  %v10200_v32 = vpack.c.bf16 %v12156_v59, %v12152_v52  ;;  %v2344_v51 = vmul.f32 %v12156_v59, %v12156_v59 }
0x1065   : > { %2348 = vadd.xlane.f32.xlu0 %v2347_v28  ;;  %9999 = vmatprep.mubr.msk.f32.mxu1 %vm2130_vm7, %v12150_v9  ;;  %v2356_v24 = vsel %vm2130_vm7, %v2346_v49, 0.0 }
0x1066   : > { %10202 = vmatprep.subr.msk.bf16.mxu0 %vm12166_vm8, %v10200_v32  ;;  %v2350_v55 = vsel %vm2130_vm7, %v2344_v51, 0.0 }
0x1067   : > { %2351 = vadd.xlane.f32.xlu1 %v2350_v55  ;;  %10205 = vmatpush3.bf16.xpose.msk.msra.mxu0 %vm12166_vm8, %v10200_v32 }
0x1068   : > { %10000 = vmatmul.mubr.msk.f32.gmra.mrb[18].mxu1 %vm2130_vm7, %v12154_v58  ;;  %10208 = vmatprep.subr.msk.bf16.mxu0 %vm12166_vm8, %v10206_v0 }
0x1069   : > { %2354 = vadd.xlane.f32.xlu0 %v2353_v46 }
0x106d   : > { %2357 = vadd.xlane.f32.xlu0 %v2356_v24 }
0x106f   : > { %10211 = vmatpush3.bf16.xpose.msk.msra.mxu0 %vm12166_vm8, %v10206_v0 }
0x1076   : > { %10011 = vmatmul.mubr.msk.f32.vlgmr.msra.gmra.mrb[24].mxu0 %vm2130_vm7, %v12156_v59 }
0x1077   : > { %10013 = vmatprep.mubr.msk.f32.mxu0 %vm2130_vm7, %v12150_v9 }
0x107a   : > { %10014 = vmatmul.mubr.msk.f32.gmra.mrb[26].mxu0 %vm2130_vm7, %v12154_v58 }
0x10f2   : > { %v2349_v23 = vpop.xlane.xlu0 %2348 }
0x10f3   : > { %v2366_v1 = vrot.slane %v2349_v23, %v11629_v21 }
0x10f4   : > { %v2352_v47 = vpop.xlane.xlu1 %2351 }
0x10f5   : > { %v2370_v5 = vrot.slane %v2352_v47, %v11632_v22 }
0x10f6   : > { %v2355_v7 = vpop.xlane.xlu0 %2354 }
0x10f7   : > { %v2375_v44 = vrot.slane %v2355_v7, %v11636_v26  ;;  %v2371_v3 = vsel %vm809_vm2, %v2370_v5, %v2366_v1 }
0x10f9   : > { %v2376_v60 = vsel %vm816_vm3, %v2375_v44, %v2371_v3 }
0x10fa   : > { %v2358_v15 = vpop.xlane.xlu0 %2357 }
0x10fb   : > { %v2380_v33 = vrot.slane %v2358_v15, %v11641_v29 }
0x10fd   : > { %v2381_v19 = vsel %vm823_vm4, %v2380_v33, %v2376_v60 }
0x10fe   : > { %v2390_v53 = vadd.f32 %v2381_v19, %v2352_v47  ;;  %v2389_v62 = vadd.f32 %v2381_v19, %v2349_v23  ;;  %v2392_v25 = vadd.f32 %v2381_v19, %v2358_v15  ;;  %v2391_v10 = vadd.f32 %v2381_v19, %v2355_v7 }
0x1137   : > { %v12204_v35 = vpop.f32.mrb[16].mxu1 }
0x1138   : > { %v12206_v36 = vpop.f32.mrb[17].mxu1 }
0x113b   : > { %v12210_v2 = vpop.f32.mrb[18].mxu1 }
0x113c   : > { %v12212_v48 = vpop.f32.mrb[19].mxu1 }
0x1149   : > { %v10012_v13 = vpop.f32.mrb[24].mxu0 }
0x114a   : > { %v2394_v45 = vmul.f32 2.0, %v10012_v13  ;;  %v2324_v42 = vpop.f32.mrb[25].mxu0 }
0x114b   : > { %v2393_v61 = vmul.f32 2.0, %v2324_v42 }
0x114c   : > { %v2398_v54 = vsub.f32 %v2390_v53, %v2394_v45 }
0x114d   : > { %v2397_v57 = vsub.f32 %v2389_v62, %v2393_v61  ;;  %v10015_v11 = vpop.f32.mrb[26].mxu0 }
0x114e   : > { %v12223_v14 = vmax.f32 %v2398_v54, 0.0  ;;  %v2396_v50 = vmul.f32 2.0, %v10015_v11  ;;  %v2334_v41 = vpop.f32.mrb[27].mxu0 }
0x114f   : > { %v12225_v6 = vmax.f32 %v2397_v57, 0.0  ;;  %v2395_v12 = vmul.f32 2.0, %v2334_v41 }
0x1150   : > { %v2400_v56 = vsub.f32 %v2392_v25, %v2396_v50  ;;  %v2410_v20 = vsel %vm856_vm5, %v12223_v14, inf }
0x1151   : > { %v2399_v39 = vsub.f32 %v2391_v10, %v2395_v12  ;;  %2411 = vmin.xlane.f32.xlu1 %v2410_v20  ;;  %v2407_v27 = vsel %vm856_vm5, %v12225_v6, inf }
0x1152   : > { %v12231_v43 = vmax.f32 %v2400_v56, 0.0  ;;  %2408 = vmin.xlane.f32.xlu0 %v2407_v27 }
0x1153   : > { %v12233_v30 = vmax.f32 %v2399_v39, 0.0 }
0x1154   : > { %v2416_v4 = vsel %vm856_vm5, %v12231_v43, inf }
0x1155   : > { %2417 = vmin.xlane.f32.xlu1 %v2416_v4  ;;  %v2413_v34 = vsel %vm856_vm5, %v12233_v30, inf }
0x1156   : > { %2414 = vmin.xlane.f32.xlu0 %v2413_v34 }
0x11de   : > { %v2412_v40 = vpop.xlane.xlu1 %2411 }
0x11df   : > { %vm2420_vm9 = vcmp.le.f32.partialorder %v12223_v14, %v2412_v40  ;;  %v2409_v31 = vpop.xlane.xlu0 %2408 }
0x11e0   : > { %v2424_v28 = vsel %vm2420_vm9, %v11621_v16, 32  ;;  %vm2419_vm10 = vcmp.le.f32.partialorder %v12225_v6, %v2409_v31 }
0x11e1   : > { %v2442_v32 = vsel %vm856_vm5, %v2424_v28, 2147483647  ;;  %v2423_v51 = vsel %vm2419_vm10, %v11621_v16, 32 }
0x11e2   : > { %v2427_v38 = vsel %vm856_vm5, %v2423_v51, 2147483647  ;;  %v2418_v55 = vpop.xlane.xlu1 %2417  ;;  %v2444_v0 = vshra.s32 %v2442_v32, 16  ;;  %v2443_v60 = vand.u32 65535, %v2442_v32 }
0x11e3   : > { %vm2422_vm11 = vcmp.le.f32.partialorder %v12231_v43, %v2418_v55  ;;  %v2415_v46 = vpop.xlane.xlu0 %2414  ;;  %v2429_v49 = vshra.s32 %v2427_v38, 16  ;;  %v2428_v19 = vand.u32 65535, %v2427_v38 }
0x11e4   : > { %v2426_v24 = vsel %vm2422_vm11, %v11621_v16, 32  ;;  %vm2421_vm12 = vcmp.le.f32.partialorder %v12233_v30, %v2415_v46  ;;  %v2446_v23 = vcvt.s32.f32 %v2444_v0  ;;  %v2445_v53 = vcvt.s32.f32 %v2443_v60 }
0x11e5   : > { %v2472_v7 = vsel %vm856_vm5, %v2426_v24, 2147483647  ;;  %v2425_v47 = vsel %vm2421_vm12, %v11621_v16, 32  ;;  %v2431_v5 = vcvt.s32.f32 %v2429_v49  ;;  %v2430_v62 = vcvt.s32.f32 %v2428_v19 }
0x11e6   : > { %v2457_v15 = vsel %vm856_vm5, %v2425_v47, 2147483647  ;;  %2447 = vmin.xlane.f32.xlu1 %v2446_v23  ;;  %v2474_v1 = vshra.s32 %v2472_v7, 16  ;;  %v2473_v45 = vand.u32 65535, %v2472_v7 }
0x11e7   : > { %2432 = vmin.xlane.f32.xlu0 %v2431_v5  ;;  %v2459_v44 = vshra.s32 %v2457_v15, 16  ;;  %v2458_v61 = vand.u32 65535, %v2457_v15 }
0x11e8   : > { %v2476_v3 = vcvt.s32.f32 %v2474_v1  ;;  %v2475_v25 = vcvt.s32.f32 %v2473_v45 }
0x11e9   : > { %v2461_v33 = vcvt.s32.f32 %v2459_v44  ;;  %v2460_v41 = vcvt.s32.f32 %v2458_v61 }
0x11ea   : > { %2477 = vmin.xlane.f32.xlu1 %v2476_v3 }
0x11eb   : > { %2462 = vmin.xlane.f32.xlu0 %v2461_v33 }
0x1273   : > { %v2448_v13 = vpop.xlane.xlu1 %2447 }
0x1274   : > { %v2433_v42 = vpop.xlane.xlu0 %2432  ;;  %vm2449_vm13 = vcmp.eq.f32.partialorder %v2446_v23, %v2448_v13  ;;  %v2454_v56 = vcvt.f32.s32 %v2448_v13 }
0x1275   : > { %v2450_v54 = vsel %vm2449_vm13, %v2445_v53, inf  ;;  %vm2434_vm14 = vcmp.eq.f32.partialorder %v2431_v5, %v2433_v42  ;;  %v2439_v20 = vcvt.f32.s32 %v2433_v42 }
0x1276   : > { %2451 = vmin.xlane.f32.xlu1 %v2450_v54  ;;  %v2435_v57 = vsel %vm2434_vm14, %v2430_v62, inf  ;;  %v2455_v27 = vshll.u32 %v2454_v56, 16 }
0x1277   : > { %v2478_v11 = vpop.xlane.xlu1 %2477  ;;  %2436 = vmin.xlane.f32.xlu0 %v2435_v57  ;;  %v2440_v28 = vshll.u32 %v2439_v20, 16 }
0x1278   : > { %v2463_v50 = vpop.xlane.xlu0 %2462  ;;  %vm2479_vm15 = vcmp.eq.f32.partialorder %v2476_v3, %v2478_v11  ;;  %v2484_v4 = vcvt.f32.s32 %v2478_v11 }
0x1279   : > { %v2480_v10 = vsel %vm2479_vm15, %v2475_v25, inf  ;;  %vm2464_vm0 = vcmp.eq.f32.partialorder %v2461_v33, %v2463_v50  ;;  %v2469_v34 = vcvt.f32.s32 %v2463_v50 }
0x127a   : > { %2481 = vmin.xlane.f32.xlu1 %v2480_v10  ;;  %v2465_v12 = vsel %vm2464_vm0, %v2460_v41, inf  ;;  %v2485_v0 = vshll.u32 %v2484_v4, 16 }
0x127b   : > { %2466 = vmin.xlane.f32.xlu0 %v2465_v12  ;;  %v2470_v46 = vshll.u32 %v2469_v34, 16 }
0x1303   : > { %v2452_v39 = vpop.xlane.xlu1 %2451 }
0x1304   : > { %v2453_v40 = vcvt.f32.s32 %v2452_v39  ;;  %v2437_v31 = vpop.xlane.xlu0 %2436 }
0x1305   : > { %v2438_v32 = vcvt.f32.s32 %v2437_v31 }
0x1306   : > { %v2456_v51 = vadd.s32 %v2455_v27, %v2453_v40 }
0x1307   : > { %v2441_v38 = vadd.s32 %v2440_v28, %v2438_v32  ;;  %v2482_v55 = vpop.xlane.xlu1 %2481 }
0x1308   : > { %v2483_v49 = vcvt.f32.s32 %v2482_v55  ;;  %v2467_v24 = vpop.xlane.xlu0 %2466  ;;  %vm2488_vm1 = vcmp.eq.s32.totalorder %v11621_v16, %v2456_v51 }
0x1309   : > { %v2468_v23 = vcvt.f32.s32 %v2467_v24  ;;  %v12253_v7 = vsel %vm2488_vm1, inf, %v12223_v14  ;;  %v9554_v47 = vsel %vm2488_vm1, 1.0, %v14414_v8  ;;  %vm2487_vm6 = vcmp.eq.s32.totalorder %v11621_v16, %v2441_v38 }
0x130a   : > { %v2486_v5 = vadd.s32 %v2485_v0, %v2483_v49  ;;  %v2571_v15 = vsel %vm856_vm5, %v12253_v7, inf  ;;  %v12260_v1 = vsel %vm2487_vm6, inf, %v12225_v6  ;;  %v9553_v44 = vsel %vm2487_vm6, 1.0, %v14414_v8 }
0x130b   : > { %v2471_v3 = vadd.s32 %v2470_v46, %v2468_v23  ;;  %2572 = vmin.xlane.f32.xlu1 %v2571_v15  ;;  %v2568_v33 = vsel %vm856_vm5, %v12260_v1, inf  ;;  %v2499_v14 = vpack.c.bf16 %v9554_v47, %v9553_v44 }
0x130c   : > { %2569 = vmin.xlane.f32.xlu0 %v2568_v33  ;;  %vm2490_vm9 = vcmp.eq.s32.totalorder %v11621_v16, %v2486_v5 }
0x130d   : > { %10020 = vmatprep.mubr.msk.bf16.mxu1 %vm856_vm5, %v2499_v14  ;;  %v12268_v60 = vsel %vm2490_vm9, inf, %v12231_v43  ;;  %v12271_v19 = vsel %vm2490_vm9, 1.0, %v14414_v8  ;;  %vm2489_vm10 = vcmp.eq.s32.totalorder %v11621_v16, %v2471_v3 }
0x130e   : > { %v2577_v6 = vsel %vm856_vm5, %v12268_v60, inf  ;;  %v12277_v13 = vsel %vm2489_vm10, inf, %v12233_v30  ;;  %v12280_v53 = vsel %vm2489_vm10, 1.0, %v14414_v8 }
0x130f   : > { %2578 = vmin.xlane.f32.xlu1 %v2577_v6  ;;  %v2574_v45 = vsel %vm856_vm5, %v12277_v13, inf }
0x1310   : > { %2575 = vmin.xlane.f32.xlu0 %v2574_v45 }
0x1398   : > { %v2573_v42 = vpop.xlane.xlu1 %2572 }
0x1399   : > { %vm2581_vm11 = vcmp.le.f32.partialorder %v12253_v7, %v2573_v42  ;;  %v2570_v62 = vpop.xlane.xlu0 %2569 }
0x139a   : > { %v2585_v61 = vsel %vm2581_vm11, %v11621_v16, 32  ;;  %vm2580_vm12 = vcmp.le.f32.partialorder %v12260_v1, %v2570_v62 }
0x139b   : > { %v2603_v30 = vsel %vm856_vm5, %v2585_v61, 2147483647  ;;  %v2584_v54 = vsel %vm2580_vm12, %v11621_v16, 32 }
0x139c   : > { %v2588_v57 = vsel %vm856_vm5, %v2584_v54, 2147483647  ;;  %v2579_v11 = vpop.xlane.xlu1 %2578  ;;  %v2605_v25 = vshra.s32 %v2603_v30, 16  ;;  %v2604_v28 = vand.u32 65535, %v2603_v30 }
0x139d   : > { %vm2583_vm13 = vcmp.le.f32.partialorder %v12268_v60, %v2579_v11  ;;  %v2576_v50 = vpop.xlane.xlu0 %2575  ;;  %v2590_v41 = vshra.s32 %v2588_v57, 16  ;;  %v2589_v32 = vand.u32 65535, %v2588_v57 }
0x139e   : > { %v2587_v10 = vsel %vm2583_vm13, %v11621_v16, 32  ;;  %vm2582_vm14 = vcmp.le.f32.partialorder %v12277_v13, %v2576_v50  ;;  %v2607_v12 = vcvt.s32.f32 %v2605_v25  ;;  %v2606_v38 = vcvt.s32.f32 %v2604_v28 }
0x139f   : > { %v2633_v56 = vsel %vm856_vm5, %v2587_v10, 2147483647  ;;  %v2586_v20 = vsel %vm2582_vm14, %v11621_v16, 32  ;;  %v2592_v39 = vcvt.s32.f32 %v2590_v41  ;;  %v2591_v46 = vcvt.s32.f32 %v2589_v32 }
0x13a0   : > { %v2618_v27 = vsel %vm856_vm5, %v2586_v20, 2147483647  ;;  %2608 = vmin.xlane.f32.xlu1 %v2607_v12  ;;  %v2635_v4 = vshra.s32 %v2633_v56, 16  ;;  %v2634_v55 = vand.u32 65535, %v2633_v56 }
0x13a1   : > { %2593 = vmin.xlane.f32.xlu0 %v2592_v39  ;;  %v2620_v34 = vshra.s32 %v2618_v27, 16  ;;  %v2619_v49 = vand.u32 65535, %v2618_v27 }
0x13a2   : > { %v2637_v40 = vcvt.s32.f32 %v2635_v4  ;;  %v2636_v5 = vcvt.s32.f32 %v2634_v55 }
0x13a3   : > { %v2622_v31 = vcvt.s32.f32 %v2620_v34  ;;  %v2621_v44 = vcvt.s32.f32 %v2619_v49 }
0x13a4   : > { %2638 = vmin.xlane.f32.xlu1 %v2637_v40 }
0x13a5   : > { %2623 = vmin.xlane.f32.xlu0 %v2622_v31 }
0x142d   : > { %v2609_v51 = vpop.xlane.xlu1 %2608 }
0x142e   : > { %v2594_v0 = vpop.xlane.xlu0 %2593  ;;  %vm2610_vm15 = vcmp.eq.f32.partialorder %v2607_v12, %v2609_v51  ;;  %v2615_v14 = vcvt.f32.s32 %v2609_v51 }
0x142f   : > { %v2611_v24 = vsel %vm2610_vm15, %v2606_v38, inf  ;;  %vm2595_vm0 = vcmp.eq.f32.partialorder %v2592_v39, %v2594_v0  ;;  %v2600_v6 = vcvt.f32.s32 %v2594_v0 }
0x1430   : > { %2612 = vmin.xlane.f32.xlu1 %v2611_v24  ;;  %v2596_v23 = vsel %vm2595_vm0, %v2591_v46, inf  ;;  %v2616_v42 = vshll.u32 %v2615_v14, 16 }
0x1431   : > { %v2639_v47 = vpop.xlane.xlu1 %2638  ;;  %2597 = vmin.xlane.f32.xlu0 %v2596_v23  ;;  %v2601_v57 = vshll.u32 %v2600_v6, 16 }
0x1432   : > { %v2624_v15 = vpop.xlane.xlu0 %2623  ;;  %vm2640_vm1 = vcmp.eq.f32.partialorder %v2637_v40, %v2639_v47  ;;  %v2645_v62 = vcvt.f32.s32 %v2639_v47 }
0x1433   : > { %v2641_v3 = vsel %vm2640_vm1, %v2636_v5, inf  ;;  %vm2625_vm6 = vcmp.eq.f32.partialorder %v2622_v31, %v2624_v15  ;;  %v2630_v61 = vcvt.f32.s32 %v2624_v15 }
0x1434   : > { %2642 = vmin.xlane.f32.xlu1 %v2641_v3  ;;  %v2626_v33 = vsel %vm2625_vm6, %v2621_v44, inf  ;;  %v2646_v10 = vshll.u32 %v2645_v62, 16 }
0x1435   : > { %2627 = vmin.xlane.f32.xlu0 %v2626_v33  ;;  %v2631_v12 = vshll.u32 %v2630_v61, 16 }
0x14bd   : > { %v2613_v45 = vpop.xlane.xlu1 %2612 }
0x14be   : > { %v2614_v30 = vcvt.f32.s32 %v2613_v45  ;;  %v2598_v54 = vpop.xlane.xlu0 %2597 }
0x14bf   : > { %v2599_v11 = vcvt.f32.s32 %v2598_v54 }
0x14c0   : > { %v2617_v25 = vadd.s32 %v2616_v42, %v2614_v30 }
0x14c1   : > { %v2602_v50 = vadd.s32 %v2601_v57, %v2599_v11  ;;  %v2643_v41 = vpop.xlane.xlu1 %2642 }
0x14c2   : > { %v2644_v56 = vcvt.f32.s32 %v2643_v41  ;;  %v2628_v20 = vpop.xlane.xlu0 %2627  ;;  %vm2649_vm9 = vcmp.eq.s32.totalorder %v11621_v16, %v2617_v25 }
0x14c3   : > { %v2629_v39 = vcvt.f32.s32 %v2628_v20  ;;  %v12300_v27 = vsel %vm2649_vm9, inf, %v12253_v7  ;;  %v9560_v4 = vsel %vm2649_vm9, 1.0, %v14414_v8  ;;  %vm2648_vm10 = vcmp.eq.s32.totalorder %v11621_v16, %v2602_v50 }
0x14c4   : > { %v2647_v34 = vadd.s32 %v2646_v10, %v2644_v56  ;;  %v2728_v40 = vsel %vm856_vm5, %v12300_v27, inf  ;;  %v12307_v31 = vsel %vm2648_vm10, inf, %v12260_v1  ;;  %v9559_v28 = vsel %vm2648_vm10, 1.0, %v14414_v8 }
0x14c5   : > { %v2632_v32 = vadd.s32 %v2631_v12, %v2629_v39  ;;  %2729 = vmin.xlane.f32.xlu1 %v2728_v40  ;;  %v2725_v51 = vsel %vm856_vm5, %v12307_v31, inf  ;;  %v2660_v7 = vpack.c.bf16 %v9560_v4, %v9559_v28 }
0x14c6   : > { %2726 = vmin.xlane.f32.xlu0 %v2725_v51  ;;  %vm2651_vm11 = vcmp.eq.s32.totalorder %v11621_v16, %v2647_v34 }
0x14c7   : > { %10028 = vmatprep.mubr.msk.bf16.mxu0 %vm856_vm5, %v2660_v7  ;;  %v12315_v38 = vsel %vm2651_vm11, inf, %v12268_v60  ;;  %v12318_v55 = vsel %vm2651_vm11, 1.0, %v14414_v8  ;;  %vm2650_vm12 = vcmp.eq.s32.totalorder %v11621_v16, %v2632_v32 }
0x14c8   : > { %v2734_v1 = vsel %vm856_vm5, %v12315_v38, inf  ;;  %v12324_v0 = vsel %vm2650_vm12, inf, %v12277_v13  ;;  %v12327_v46 = vsel %vm2650_vm12, 1.0, %v14414_v8 }
0x14c9   : > { %2735 = vmin.xlane.f32.xlu1 %v2734_v1  ;;  %v2731_v49 = vsel %vm856_vm5, %v12324_v0, inf }
0x14ca   : > { %2732 = vmin.xlane.f32.xlu0 %v2731_v49 }
0x1552   : > { %v2730_v24 = vpop.xlane.xlu1 %2729 }
0x1553   : > { %vm2738_vm13 = vcmp.le.f32.partialorder %v12300_v27, %v2730_v24  ;;  %v2727_v23 = vpop.xlane.xlu0 %2726 }
0x1554   : > { %v2742_v47 = vsel %vm2738_vm13, %v11621_v16, 32  ;;  %vm2737_vm14 = vcmp.le.f32.partialorder %v12307_v31, %v2727_v23 }
0x1555   : > { %v2760_v13 = vsel %vm856_vm5, %v2742_v47, 2147483647  ;;  %v2741_v5 = vsel %vm2737_vm14, %v11621_v16, 32 }
0x1556   : > { %v2745_v15 = vsel %vm856_vm5, %v2741_v5, 2147483647  ;;  %v2736_v44 = vpop.xlane.xlu1 %2735  ;;  %v2762_v3 = vshra.s32 %v2760_v13, 16  ;;  %v2761_v50 = vand.u32 65535, %v2760_v13 }
0x1557   : > { %vm2740_vm15 = vcmp.le.f32.partialorder %v12315_v38, %v2736_v44  ;;  %v2733_v33 = vpop.xlane.xlu0 %2732  ;;  %v2747_v14 = vshra.s32 %v2745_v15, 16  ;;  %v2746_v41 = vand.u32 65535, %v2745_v15 }
0x1558   : > { %v2744_v6 = vsel %vm2740_vm15, %v11621_v16, 32  ;;  %vm2739_vm0 = vcmp.le.f32.partialorder %v12324_v0, %v2733_v33  ;;  %v2764_v45 = vcvt.s32.f32 %v2762_v3  ;;  %v2763_v12 = vcvt.s32.f32 %v2761_v50 }
0x1559   : > { %v2790_v42 = vsel %vm856_vm5, %v2744_v6, 2147483647  ;;  %v2743_v62 = vsel %vm2739_vm0, %v11621_v16, 32  ;;  %v2749_v61 = vcvt.s32.f32 %v2747_v14  ;;  %v2748_v39 = vcvt.s32.f32 %v2746_v41 }
0x155a   : > { %v2775_v30 = vsel %vm856_vm5, %v2743_v62, 2147483647  ;;  %2765 = vmin.xlane.f32.xlu1 %v2764_v45  ;;  %v2792_v54 = vshra.s32 %v2790_v42, 16  ;;  %v2791_v56 = vand.u32 65535, %v2790_v42 }
0x155b   : > { %2750 = vmin.xlane.f32.xlu0 %v2749_v61  ;;  %v2777_v57 = vshra.s32 %v2775_v30, 16  ;;  %v2776_v4 = vand.u32 65535, %v2775_v30 }
0x155c   : > { %v2794_v11 = vcvt.s32.f32 %v2792_v54  ;;  %v2793_v32 = vcvt.s32.f32 %v2791_v56 }
0x155d   : > { %v2779_v25 = vcvt.s32.f32 %v2777_v57  ;;  %v2778_v7 = vcvt.s32.f32 %v2776_v4 }
0x155e   : > { %2795 = vmin.xlane.f32.xlu1 %v2794_v11 }
0x155f   : > { %2780 = vmin.xlane.f32.xlu0 %v2779_v25 }
0x15e7   : > { %v2766_v10 = vpop.xlane.xlu1 %2765 }
0x15e8   : > { %v2751_v20 = vpop.xlane.xlu0 %2750  ;;  %vm2767_vm1 = vcmp.eq.f32.partialorder %v2764_v45, %v2766_v10  ;;  %v2772_v24 = vcvt.f32.s32 %v2766_v10 }
0x15e9   : > { %v2768_v34 = vsel %vm2767_vm1, %v2763_v12, inf  ;;  %vm2752_vm6 = vcmp.eq.f32.partialorder %v2749_v61, %v2751_v20  ;;  %v2757_v23 = vcvt.f32.s32 %v2751_v20 }
0x15ea   : > { %2769 = vmin.xlane.f32.xlu1 %v2768_v34  ;;  %v2753_v40 = vsel %vm2752_vm6, %v2748_v39, inf  ;;  %v2773_v13 = vshll.u32 %v2772_v24, 16 }
0x15eb   : > { %v2796_v28 = vpop.xlane.xlu1 %2795  ;;  %2754 = vmin.xlane.f32.xlu0 %v2753_v40  ;;  %v2758_v33 = vshll.u32 %v2757_v23, 16 }
0x15ec   : > { %v2781_v51 = vpop.xlane.xlu0 %2780  ;;  %vm2797_vm9 = vcmp.eq.f32.partialorder %v2794_v11, %v2796_v28  ;;  %v2802_v5 = vcvt.f32.s32 %v2796_v28 }
0x15ed   : > { %v2798_v1 = vsel %vm2797_vm9, %v2793_v32, inf  ;;  %vm2782_vm10 = vcmp.eq.f32.partialorder %v2779_v25, %v2781_v51  ;;  %v2787_v15 = vcvt.f32.s32 %v2781_v51 }
0x15ee   : > { %2799 = vmin.xlane.f32.xlu1 %v2798_v1  ;;  %v2783_v49 = vsel %vm2782_vm10, %v2778_v7, inf  ;;  %v2803_v62 = vshll.u32 %v2802_v5, 16 }
0x15ef   : > { %2784 = vmin.xlane.f32.xlu0 %v2783_v49  ;;  %v2788_v61 = vshll.u32 %v2787_v15, 16 }
0x1677   : > { %v2770_v47 = vpop.xlane.xlu1 %2769 }
0x1678   : > { %v2771_v44 = vcvt.f32.s32 %v2770_v47  ;;  %v2755_v3 = vpop.xlane.xlu0 %2754 }
0x1679   : > { %v2756_v14 = vcvt.f32.s32 %v2755_v3 }
0x167a   : > { %v2774_v6 = vadd.s32 %v2773_v13, %v2771_v44 }
0x167b   : > { %v2759_v45 = vadd.s32 %v2758_v33, %v2756_v14  ;;  %v2800_v42 = vpop.xlane.xlu1 %2799 }
0x167c   : > { %v2801_v30 = vcvt.f32.s32 %v2800_v42  ;;  %v2785_v54 = vpop.xlane.xlu0 %2784  ;;  %vm2806_vm11 = vcmp.eq.s32.totalorder %v11621_v16, %v2774_v6 }
0x167d   : > { %v2786_v57 = vcvt.f32.s32 %v2785_v54  ;;  %v12347_v11 = vsel %vm2806_vm11, inf, %v12300_v27  ;;  %v12350_v25 = vsel %vm2806_vm11, 1.0, %v14414_v8  ;;  %vm2805_vm12 = vcmp.eq.s32.totalorder %v11621_v16, %v2759_v45 }
0x167e   : > { %v2804_v50 = vadd.s32 %v2803_v62, %v2801_v30  ;;  %v2885_v41 = vsel %vm856_vm5, %v12347_v11, inf  ;;  %v12356_v10 = vsel %vm2805_vm12, inf, %v12307_v31  ;;  %v12359_v12 = vsel %vm2805_vm12, 1.0, %v14414_v8 }
0x167f   : > { %v2789_v56 = vadd.s32 %v2788_v61, %v2786_v57  ;;  %2886 = vmin.xlane.f32.xlu1 %v2885_v41  ;;  %v2882_v27 = vsel %vm856_vm5, %v12356_v10, inf }
0x1680   : > { %2883 = vmin.xlane.f32.xlu0 %v2882_v27  ;;  %vm2808_vm13 = vcmp.eq.s32.totalorder %v11621_v16, %v2804_v50 }
0x1681   : > { %v12367_v39 = vsel %vm2808_vm13, inf, %v12315_v38  ;;  %v12370_v31 = vsel %vm2808_vm13, 1.0, %v14414_v8  ;;  %vm2807_vm14 = vcmp.eq.s32.totalorder %v11621_v16, %v2789_v56 }
0x1682   : > { %v2891_v4 = vsel %vm856_vm5, %v12367_v39, inf  ;;  %v12376_v34 = vsel %vm2807_vm14, inf, %v12324_v0  ;;  %v12379_v40 = vsel %vm2807_vm14, 1.0, %v14414_v8 }
0x1683   : > { %2892 = vmin.xlane.f32.xlu1 %v2891_v4  ;;  %v2888_v28 = vsel %vm856_vm5, %v12376_v34, inf }
0x1684   : > { %2889 = vmin.xlane.f32.xlu0 %v2888_v28 }
0x170c   : > { %v2887_v32 = vpop.xlane.xlu1 %2886 }
0x170d   : > { %vm2895_vm15 = vcmp.le.f32.partialorder %v12347_v11, %v2887_v32  ;;  %v2884_v51 = vpop.xlane.xlu0 %2883 }
0x170e   : > { %v2899_v7 = vsel %vm2895_vm15, %v11621_v16, 32  ;;  %vm2894_vm0 = vcmp.le.f32.partialorder %v12356_v10, %v2884_v51 }
0x170f   : > { %v2917_v0 = vsel %vm856_vm5, %v2899_v7, 2147483647  ;;  %v2898_v1 = vsel %vm2894_vm0, %v11621_v16, 32 }
0x1710   : > { %v2902_v49 = vsel %vm856_vm5, %v2898_v1, 2147483647  ;;  %v2893_v24 = vpop.xlane.xlu1 %2892  ;;  %v2919_v23 = vshra.s32 %v2917_v0, 16  ;;  %v2918_v61 = vand.u32 65535, %v2917_v0 }
0x1711   : > { %vm2897_vm1 = vcmp.le.f32.partialorder %v12367_v39, %v2893_v24  ;;  %v2890_v47 = vpop.xlane.xlu0 %2889  ;;  %v2904_v13 = vshra.s32 %v2902_v49, 16  ;;  %v2903_v30 = vand.u32 65535, %v2902_v49 }
0x1712   : > { %v2901_v5 = vsel %vm2897_vm1, %v11621_v16, 32  ;;  %vm2896_vm6 = vcmp.le.f32.partialorder %v12376_v34, %v2890_v47  ;;  %v2921_v15 = vcvt.s32.f32 %v2919_v23  ;;  %v2920_v57 = vcvt.s32.f32 %v2918_v61 }
0x1713   : > { %v2947_v44 = vsel %vm856_vm5, %v2901_v5, 2147483647  ;;  %v2900_v3 = vsel %vm2896_vm6, %v11621_v16, 32  ;;  %v2906_v33 = vcvt.s32.f32 %v2904_v13  ;;  %v2905_v56 = vcvt.s32.f32 %v2903_v30 }
0x1714   : > { %v2932_v14 = vsel %vm856_vm5, %v2900_v3, 2147483647  ;;  %2922 = vmin.xlane.f32.xlu1 %v2921_v15  ;;  %v2949_v6 = vshra.s32 %v2947_v44, 16  ;;  %v2948_v50 = vand.u32 65535, %v2947_v44 }
0x1715   : > { %2907 = vmin.xlane.f32.xlu0 %v2906_v33  ;;  %v2934_v45 = vshra.s32 %v2932_v14, 16  ;;  %v2933_v27 = vand.u32 65535, %v2932_v14 }
0x1716   : > { %v2951_v42 = vcvt.s32.f32 %v2949_v6  ;;  %v2950_v51 = vcvt.s32.f32 %v2948_v50 }
0x1717   : > { %v2936_v62 = vcvt.s32.f32 %v2934_v45  ;;  %v2935_v1 = vcvt.s32.f32 %v2933_v27 }
0x1718   : > { %2952 = vmin.xlane.f32.xlu1 %v2951_v42 }
0x1719   : > { %2937 = vmin.xlane.f32.xlu0 %v2936_v62 }
0x17a1   : > { %v2923_v54 = vpop.xlane.xlu1 %2922 }
0x17a2   : > { %v2908_v41 = vpop.xlane.xlu0 %2907  ;;  %vm2924_vm9 = vcmp.eq.f32.partialorder %v2921_v15, %v2923_v54  ;;  %v2929_v49 = vcvt.f32.s32 %v2923_v54 }
0x17a3   : > { %v2925_v4 = vsel %vm2924_vm9, %v2920_v57, inf  ;;  %vm2909_vm10 = vcmp.eq.f32.partialorder %v2906_v33, %v2908_v41  ;;  %v2914_v23 = vcvt.f32.s32 %v2908_v41 }
0x17a4   : > { %2926 = vmin.xlane.f32.xlu1 %v2925_v4  ;;  %v2910_v28 = vsel %vm2909_vm10, %v2905_v56, inf  ;;  %v2930_v13 = vshll.u32 %v2929_v49, 16 }
0x17a5   : > { %v2953_v32 = vpop.xlane.xlu1 %2952  ;;  %2911 = vmin.xlane.f32.xlu0 %v2910_v28  ;;  %v2915_v33 = vshll.u32 %v2914_v23, 16 }
0x17a6   : > { %v2938_v7 = vpop.xlane.xlu0 %2937  ;;  %vm2954_vm11 = vcmp.eq.f32.partialorder %v2951_v42, %v2953_v32  ;;  %v2959_v5 = vcvt.f32.s32 %v2953_v32 }
0x17a7   : > { %v2955_v24 = vsel %vm2954_vm11, %v2950_v51, inf  ;;  %vm2939_vm12 = vcmp.eq.f32.partialorder %v2936_v62, %v2938_v7  ;;  %v2944_v15 = vcvt.f32.s32 %v2938_v7 }
0x17a8   : > { %2956 = vmin.xlane.f32.xlu1 %v2955_v24  ;;  %v2940_v0 = vsel %vm2939_vm12, %v2935_v1, inf  ;;  %v2960_v42 = vshll.u32 %v2959_v5, 16 }
0x17a9   : > { %2941 = vmin.xlane.f32.xlu0 %v2940_v0  ;;  %v2945_v30 = vshll.u32 %v2944_v15, 16 }
0x1831   : > { %v2927_v47 = vpop.xlane.xlu1 %2926 }
0x1832   : > { %v2928_v44 = vcvt.f32.s32 %v2927_v47  ;;  %v2912_v3 = vpop.xlane.xlu0 %2911 }
0x1833   : > { %v2913_v14 = vcvt.f32.s32 %v2912_v3 }
0x1834   : > { %v2931_v6 = vadd.s32 %v2930_v13, %v2928_v44 }
0x1835   : > { %v2916_v45 = vadd.s32 %v2915_v33, %v2913_v14  ;;  %v2957_v61 = vpop.xlane.xlu1 %2956 }
0x1836   : > { %v2958_v57 = vcvt.f32.s32 %v2957_v61  ;;  %v2942_v62 = vpop.xlane.xlu0 %2941  ;;  %vm2963_vm13 = vcmp.eq.s32.totalorder %v11621_v16, %v2931_v6 }
0x1837   : > { %v2943_v50 = vcvt.f32.s32 %v2942_v62  ;;  %v12399_v54 = vsel %vm2963_vm13, inf, %v12347_v11  ;;  %v12402_v41 = vsel %vm2963_vm13, 1.0, %v14414_v8  ;;  %vm2962_vm14 = vcmp.eq.s32.totalorder %v11621_v16, %v2916_v45 }
0x1838   : > { %v2961_v56 = vadd.s32 %v2960_v42, %v2958_v57  ;;  %v3042_v27 = vsel %vm856_vm5, %v12399_v54, inf  ;;  %v12408_v4 = vsel %vm2962_vm14, inf, %v12356_v10  ;;  %v12411_v28 = vsel %vm2962_vm14, 1.0, %v14414_v8 }
0x1839   : > { %v2946_v32 = vadd.s32 %v2945_v30, %v2943_v50  ;;  %3043 = vmin.xlane.f32.xlu1 %v3042_v27  ;;  %v3039_v11 = vsel %vm856_vm5, %v12408_v4, inf }
0x183a   : > { %3040 = vmin.xlane.f32.xlu0 %v3039_v11  ;;  %vm2965_vm15 = vcmp.eq.s32.totalorder %v11621_v16, %v2961_v56 }
0x183b   : > { %v12419_v7 = vsel %vm2965_vm15, inf, %v12367_v39  ;;  %v12422_v10 = vsel %vm2965_vm15, 1.0, %v14414_v8  ;;  %vm2964_vm0 = vcmp.eq.s32.totalorder %v11621_v16, %v2946_v32 }
0x183c   : > { %v3048_v1 = vsel %vm856_vm5, %v12419_v7, inf  ;;  %v12428_v24 = vsel %vm2964_vm0, inf, %v12376_v34  ;;  %v12431_v0 = vsel %vm2964_vm0, 1.0, %v14414_v8 }
0x183d   : > { %3049 = vmin.xlane.f32.xlu1 %v3048_v1  ;;  %v3045_v49 = vsel %vm856_vm5, %v12428_v24, inf }
0x183e   : > { %3046 = vmin.xlane.f32.xlu0 %v3045_v49 }
0x18c6   : > { %v3044_v23 = vpop.xlane.xlu1 %3043 }
0x18c7   : > { %vm3052_vm1 = vcmp.le.f32.partialorder %v12399_v54, %v3044_v23  ;;  %v3041_v47 = vpop.xlane.xlu0 %3040 }
0x18c8   : > { %v3056_v13 = vsel %vm3052_vm1, %v11621_v16, 32  ;;  %vm3051_vm6 = vcmp.le.f32.partialorder %v12408_v4, %v3041_v47 }
0x18c9   : > { %v3074_v34 = vsel %vm856_vm5, %v3056_v13, 2147483647  ;;  %v3055_v5 = vsel %vm3051_vm6, %v11621_v16, 32 }
0x18ca   : > { %v3059_v15 = vsel %vm856_vm5, %v3055_v5, 2147483647  ;;  %v3050_v44 = vpop.xlane.xlu1 %3049  ;;  %v3076_v3 = vshra.s32 %v3074_v34, 16  ;;  %v3075_v32 = vand.u32 65535, %v3074_v34 }
0x18cb   : > { %vm3054_vm9 = vcmp.le.f32.partialorder %v12419_v7, %v3050_v44  ;;  %v3047_v33 = vpop.xlane.xlu0 %3046  ;;  %v3061_v14 = vshra.s32 %v3059_v15, 16  ;;  %v3060_v11 = vand.u32 65535, %v3059_v15 }
0x18cc   : > { %v3058_v6 = vsel %vm3054_vm9, %v11621_v16, 32  ;;  %vm3053_vm10 = vcmp.le.f32.partialorder %v12428_v24, %v3047_v33  ;;  %v3078_v45 = vcvt.s32.f32 %v3076_v3  ;;  %v3077_v49 = vcvt.s32.f32 %v3075_v32 }
0x18cd   : > { %v3104_v61 = vsel %vm856_vm5, %v3058_v6, 2147483647  ;;  %v3057_v42 = vsel %vm3053_vm10, %v11621_v16, 32  ;;  %v3063_v30 = vcvt.s32.f32 %v3061_v14  ;;  %v3062_v13 = vcvt.s32.f32 %v3060_v11 }
0x18ce   : > { %v3089_v57 = vsel %vm856_vm5, %v3057_v42, 2147483647  ;;  %3079 = vmin.xlane.f32.xlu1 %v3078_v45  ;;  %v3106_v62 = vshra.s32 %v3104_v61, 16  ;;  %v3105_v23 = vand.u32 65535, %v3104_v61 }
0x18cf   : > { %3064 = vmin.xlane.f32.xlu0 %v3063_v30  ;;  %v3091_v50 = vshra.s32 %v3089_v57, 16  ;;  %v3090_v5 = vand.u32 65535, %v3089_v57 }
0x18d0   : > { %v3108_v56 = vcvt.s32.f32 %v3106_v62  ;;  %v3107_v14 = vcvt.s32.f32 %v3105_v23 }
0x18d1   : > { %v3093_v27 = vcvt.s32.f32 %v3091_v50  ;;  %v3092_v42 = vcvt.s32.f32 %v3090_v5 }
0x18d2   : > { %3109 = vmin.xlane.f32.xlu1 %v3108_v56 }
0x18d3   : > { %3094 = vmin.xlane.f32.xlu0 %v3093_v27 }
0x195b   : > { %v3080_v1 = vpop.xlane.xlu1 %3079 }
0x195c   : > { %v3065_v47 = vpop.xlane.xlu0 %3064  ;;  %vm3081_vm11 = vcmp.eq.f32.partialorder %v3078_v45, %v3080_v1  ;;  %v3086_v15 = vcvt.f32.s32 %v3080_v1 }
0x195d   : > { %v3082_v44 = vsel %vm3081_vm11, %v3077_v49, inf  ;;  %vm3066_vm12 = vcmp.eq.f32.partialorder %v3063_v30, %v3065_v47  ;;  %v3071_v61 = vcvt.f32.s32 %v3065_v47 }
0x195e   : > { %3083 = vmin.xlane.f32.xlu1 %v3082_v44  ;;  %v3067_v3 = vsel %vm3066_vm12, %v3062_v13, inf  ;;  %v3087_v50 = vshll.u32 %v3086_v15, 16 }
0x195f   : > { %v3110_v33 = vpop.xlane.xlu1 %3109  ;;  %3068 = vmin.xlane.f32.xlu0 %v3067_v3  ;;  %v3072_v49 = vshll.u32 %v3071_v61, 16 }
0x1960   : > { %v3095_v6 = vpop.xlane.xlu0 %3094  ;;  %vm3111_vm13 = vcmp.eq.f32.partialorder %v3108_v56, %v3110_v33  ;;  %v3116_v57 = vcvt.f32.s32 %v3110_v33 }
0x1961   : > { %v3112_v62 = vsel %vm3111_vm13, %v3107_v14, inf  ;;  %vm3096_vm14 = vcmp.eq.f32.partialorder %v3093_v27, %v3095_v6  ;;  %v3101_v32 = vcvt.f32.s32 %v3095_v6 }
0x1962   : > { %3113 = vmin.xlane.f32.xlu1 %v3112_v62  ;;  %v3097_v34 = vsel %vm3096_vm14, %v3092_v42, inf  ;;  %v3117_v56 = vshll.u32 %v3116_v57, 16 }
0x1963   : > { %3098 = vmin.xlane.f32.xlu0 %v3097_v34  ;;  %v3102_v5 = vshll.u32 %v3101_v32, 16 }
0x19eb   : > { %v3084_v45 = vpop.xlane.xlu1 %3083 }
0x19ec   : > { %v3085_v30 = vcvt.f32.s32 %v3084_v45  ;;  %v3069_v11 = vpop.xlane.xlu0 %3068 }
0x19ed   : > { %v3070_v13 = vcvt.f32.s32 %v3069_v11 }
0x19ee   : > { %v3088_v44 = vadd.s32 %v3087_v50, %v3085_v30 }
0x19ef   : > { %v3073_v23 = vadd.s32 %v3072_v49, %v3070_v13  ;;  %v3114_v3 = vpop.xlane.xlu1 %3113 }
0x19f0   : > { %v3115_v14 = vcvt.f32.s32 %v3114_v3  ;;  %v3099_v27 = vpop.xlane.xlu0 %3098  ;;  %vm3120_vm15 = vcmp.eq.s32.totalorder %v11621_v16, %v3088_v44 }
0x19f1   : > { %v3100_v42 = vcvt.f32.s32 %v3099_v27  ;;  %v12451_v1 = vsel %vm3120_vm15, inf, %v12399_v54  ;;  %v12454_v47 = vsel %vm3120_vm15, 1.0, %v14414_v8  ;;  %vm3119_vm0 = vcmp.eq.s32.totalorder %v11621_v16, %v3073_v23 }
0x19f2   : > { %v3118_v33 = vadd.s32 %v3117_v56, %v3115_v14  ;;  %v3199_v6 = vsel %vm856_vm5, %v12451_v1, inf  ;;  %v12460_v62 = vsel %vm3119_vm0, inf, %v12408_v4  ;;  %v12463_v34 = vsel %vm3119_vm0, 1.0, %v14414_v8 }
0x19f3   : > { %v3103_v15 = vadd.s32 %v3102_v5, %v3100_v42  ;;  %3200 = vmin.xlane.f32.xlu1 %v3199_v6  ;;  %v3196_v54 = vsel %vm856_vm5, %v12460_v62, inf }
0x19f4   : > { %3197 = vmin.xlane.f32.xlu0 %v3196_v54  ;;  %vm3122_vm1 = vcmp.eq.s32.totalorder %v11621_v16, %v3118_v33 }
0x19f5   : > { %v12471_v45 = vsel %vm3122_vm1, inf, %v12419_v7  ;;  %v12474_v4 = vsel %vm3122_vm1, 1.0, %v14414_v8  ;;  %vm3121_vm6 = vcmp.eq.s32.totalorder %v11621_v16, %v3103_v15 }
0x19f6   : > { %v3205_v50 = vsel %vm856_vm5, %v12471_v45, inf  ;;  %v12480_v57 = vsel %vm3121_vm6, inf, %v12428_v24  ;;  %v12483_v32 = vsel %vm3121_vm6, 1.0, %v14414_v8 }
0x19f7   : > { %3206 = vmin.xlane.f32.xlu1 %v3205_v50  ;;  %v3202_v30 = vsel %vm856_vm5, %v12480_v57, inf }
0x19f8   : > { %3203 = vmin.xlane.f32.xlu0 %v3202_v30 }
0x1a80   : > { %v3201_v11 = vpop.xlane.xlu1 %3200 }
0x1a81   : > { %vm3209_vm9 = vcmp.le.f32.partialorder %v12451_v1, %v3201_v11  ;;  %v3198_v49 = vpop.xlane.xlu0 %3197 }
0x1a82   : > { %v3213_v13 = vsel %vm3209_vm9, %v11621_v16, 32  ;;  %vm3208_vm10 = vcmp.le.f32.partialorder %v12460_v62, %v3198_v49 }
0x1a83   : > { %v3231_v24 = vsel %vm856_vm5, %v3213_v13, 2147483647  ;;  %v3212_v44 = vsel %vm3208_vm10, %v11621_v16, 32 }
0x1a84   : > { %v3216_v23 = vsel %vm856_vm5, %v3212_v44, 2147483647  ;;  %v3207_v3 = vpop.xlane.xlu1 %3206  ;;  %v3233_v56 = vshra.s32 %v3231_v24, 16  ;;  %v3232_v13 = vand.u32 65535, %v3231_v24 }
0x1a85   : > { %vm3211_vm11 = vcmp.le.f32.partialorder %v12471_v45, %v3207_v3  ;;  %v3204_v5 = vpop.xlane.xlu0 %3203  ;;  %v3218_v14 = vshra.s32 %v3216_v23, 16  ;;  %v3217_v44 = vand.u32 65535, %v3216_v23 }
0x1a86   : > { %v3215_v27 = vsel %vm3211_vm11, %v11621_v16, 32  ;;  %vm3210_vm12 = vcmp.le.f32.partialorder %v12480_v57, %v3204_v5  ;;  %v3235_v42 = vcvt.s32.f32 %v3233_v56  ;;  %v3234_v5 = vcvt.s32.f32 %v3232_v13 }
0x1a87   : > { %v3261_v33 = vsel %vm856_vm5, %v3215_v27, 2147483647  ;;  %v3214_v6 = vsel %vm3210_vm12, %v11621_v16, 32  ;;  %v3220_v15 = vcvt.s32.f32 %v3218_v14  ;;  %v3219_v27 = vcvt.s32.f32 %v3217_v44 }
0x1a88   : > { %v3246_v54 = vsel %vm856_vm5, %v3214_v6, 2147483647  ;;  %3236 = vmin.xlane.f32.xlu1 %v3235_v42  ;;  %v3263_v50 = vshra.s32 %v3261_v33, 16  ;;  %v3262_v56 = vand.u32 65535, %v3261_v33 }
0x1a89   : > { %3221 = vmin.xlane.f32.xlu0 %v3220_v15  ;;  %v3248_v30 = vshra.s32 %v3246_v54, 16  ;;  %v3247_v61 = vand.u32 65535, %v3246_v54 }
0x1a8a   : > { %v3265_v11 = vcvt.s32.f32 %v3263_v50  ;;  %v3264_v38 = vcvt.s32.f32 %v3262_v56 }
0x1a8b   : > { %v3250_v49 = vcvt.s32.f32 %v3248_v30  ;;  %v3249_v30 = vcvt.s32.f32 %v3247_v61 }
0x1a8c   : > { %3266 = vmin.xlane.f32.xlu1 %v3265_v11 }
0x1a8d   : > { %3251 = vmin.xlane.f32.xlu0 %v3250_v49 }
0x1b15   : > { %v3237_v3 = vpop.xlane.xlu1 %3236 }
0x1b16   : > { %v3222_v7 = vpop.xlane.xlu0 %3221  ;;  %vm3238_vm13 = vcmp.eq.f32.partialorder %v3235_v42, %v3237_v3  ;;  %v3243_v23 = vcvt.f32.s32 %v3237_v3 }
0x1b17   : > { %v3239_v14 = vsel %vm3238_vm13, %v3234_v5, inf  ;;  %vm3223_vm14 = vcmp.eq.f32.partialorder %v3220_v15, %v3222_v7  ;;  %v3228_v33 = vcvt.f32.s32 %v3222_v7 }
0x1b18   : > { %3240 = vmin.xlane.f32.xlu1 %v3239_v14  ;;  %v3224_v6 = vsel %vm3223_vm14, %v3219_v27, inf  ;;  %v3244_v13 = vshll.u32 %v3243_v23, 16 }
0x1b19   : > { %v3267_v39 = vpop.xlane.xlu1 %3266  ;;  %3225 = vmin.xlane.f32.xlu0 %v3224_v6  ;;  %v3229_v27 = vshll.u32 %v3228_v33, 16 }
0x1b1a   : > { %v3252_v50 = vpop.xlane.xlu0 %3251  ;;  %vm3268_vm15 = vcmp.eq.f32.partialorder %v3265_v11, %v3267_v39  ;;  %v3273_v54 = vcvt.f32.s32 %v3267_v39 }
0x1b1b   : > { %v3269_v51 = vsel %vm3268_vm15, %v3264_v38, inf  ;;  %vm3253_vm0 = vcmp.eq.f32.partialorder %v3250_v49, %v3252_v50  ;;  %v3258_v44 = vcvt.f32.s32 %v3252_v50 }
0x1b1c   : > { %3270 = vmin.xlane.f32.xlu1 %v3269_v51  ;;  %v3254_v24 = vsel %vm3253_vm0, %v3249_v30, inf  ;;  %v3274_v11 = vshll.u32 %v3273_v54, 16 }
0x1b1d   : > { %3255 = vmin.xlane.f32.xlu0 %v3254_v24  ;;  %v3259_v61 = vshll.u32 %v3258_v44, 16 }
0x1ba5   : > { %v3241_v42 = vpop.xlane.xlu1 %3240 }
0x1ba6   : > { %v3242_v15 = vcvt.f32.s32 %v3241_v42  ;;  %v3226_v5 = vpop.xlane.xlu0 %3225 }
0x1ba7   : > { %v3227_v14 = vcvt.f32.s32 %v3226_v5 }
0x1ba8   : > { %v3245_v6 = vadd.s32 %v3244_v13, %v3242_v15 }
0x1ba9   : > { %v3230_v56 = vadd.s32 %v3229_v27, %v3227_v14  ;;  %v3271_v20 = vpop.xlane.xlu1 %3270 }
0x1baa   : > { %v3272_v38 = vcvt.f32.s32 %v3271_v20  ;;  %v3256_v49 = vpop.xlane.xlu0 %3255  ;;  %vm3277_vm1 = vcmp.eq.s32.totalorder %v11621_v16, %v3245_v6 }
0x1bab   : > { %v3257_v51 = vcvt.f32.s32 %v3256_v49  ;;  %v12503_v7 = vsel %vm3277_vm1, inf, %v12451_v1  ;;  %v12506_v39 = vsel %vm3277_vm1, 1.0, %v14414_v8  ;;  %vm3276_vm6 = vcmp.eq.s32.totalorder %v11621_v16, %v3230_v56 }
0x1bac   : > { %v3275_v3 = vadd.s32 %v3274_v11, %v3272_v38  ;;  %v3356_v50 = vsel %vm856_vm5, %v12503_v7, inf  ;;  %v12512_v30 = vsel %vm3276_vm6, inf, %v12460_v62  ;;  %v12515_v20 = vsel %vm3276_vm6, 1.0, %v14414_v8 }
0x1bad   : > { %v3260_v24 = vadd.s32 %v3259_v61, %v3257_v51  ;;  %3357 = vmin.xlane.f32.xlu1 %v3356_v50  ;;  %v3353_v1 = vsel %vm856_vm5, %v12512_v30, inf }
0x1bae   : > { %3354 = vmin.xlane.f32.xlu0 %v3353_v1  ;;  %vm3279_vm9 = vcmp.eq.s32.totalorder %v11621_v16, %v3275_v3 }
0x1baf   : > { %v12523_v33 = vsel %vm3279_vm9, inf, %v12471_v45  ;;  %v12526_v62 = vsel %vm3279_vm9, 1.0, %v14414_v8  ;;  %vm3278_vm10 = vcmp.eq.s32.totalorder %v11621_v16, %v3260_v24 }
0x1bb0   : > { %v3362_v42 = vsel %vm856_vm5, %v12523_v33, inf  ;;  %v12532_v13 = vsel %vm3278_vm10, inf, %v12480_v57  ;;  %v12535_v54 = vsel %vm3278_vm10, 1.0, %v14414_v8 }
0x1bb1   : > { %3363 = vmin.xlane.f32.xlu1 %v3362_v42  ;;  %v3359_v44 = vsel %vm856_vm5, %v12532_v13, inf }
0x1bb2   : > { %3360 = vmin.xlane.f32.xlu0 %v3359_v44 }
0x1c3a   : > { %v3358_v15 = vpop.xlane.xlu1 %3357 }
0x1c3b   : > { %vm3366_vm11 = vcmp.le.f32.partialorder %v12503_v7, %v3358_v15  ;;  %v3355_v5 = vpop.xlane.xlu0 %3354 }
0x1c3c   : > { %v3370_v27 = vsel %vm3366_vm11, %v11621_v16, 32  ;;  %vm3365_vm12 = vcmp.le.f32.partialorder %v12512_v30, %v3355_v5 }
0x1c3d   : > { %v3388_v57 = vsel %vm856_vm5, %v3370_v27, 2147483647  ;;  %v3369_v14 = vsel %vm3365_vm12, %v11621_v16, 32 }
0x1c3e   : > { %v3373_v6 = vsel %vm856_vm5, %v3369_v14, 2147483647  ;;  %v3364_v56 = vpop.xlane.xlu1 %3363  ;;  %v3390_v11 = vshra.s32 %v3388_v57, 16  ;;  %v3389_v27 = vand.u32 65535, %v3388_v57 }
0x1c3f   : > { %vm3368_vm13 = vcmp.le.f32.partialorder %v12523_v33, %v3364_v56  ;;  %v3361_v61 = vpop.xlane.xlu0 %3360  ;;  %v3375_v38 = vshra.s32 %v3373_v6, 16  ;;  %v3374_v14 = vand.u32 65535, %v3373_v6 }
0x1c40   : > { %v3372_v49 = vsel %vm3368_vm13, %v11621_v16, 32  ;;  %vm3367_vm14 = vcmp.le.f32.partialorder %v12532_v13, %v3361_v61  ;;  %v3392_v51 = vcvt.s32.f32 %v3390_v11  ;;  %v3391_v61 = vcvt.s32.f32 %v3389_v27 }
0x1c41   : > { %v3418_v3 = vsel %vm856_vm5, %v3372_v49, 2147483647  ;;  %v3371_v50 = vsel %vm3367_vm14, %v11621_v16, 32  ;;  %v3377_v24 = vcvt.s32.f32 %v3375_v38  ;;  %v3376_v49 = vcvt.s32.f32 %v3374_v14 }
0x1c42   : > { %v3403_v1 = vsel %vm856_vm5, %v3371_v50, 2147483647  ;;  %3393 = vmin.xlane.f32.xlu1 %v3392_v51  ;;  %v3420_v42 = vshra.s32 %v3418_v3, 16  ;;  %v3419_v11 = vand.u32 65535, %v3418_v3 }
0x1c43   : > { %3378 = vmin.xlane.f32.xlu0 %v3377_v24  ;;  %v3405_v44 = vshra.s32 %v3403_v1, 16  ;;  %v3404_v23 = vand.u32 65535, %v3403_v1 }
0x1c44   : > { %v3422_v15 = vcvt.s32.f32 %v3420_v42  ;;  %v3421_v43 = vcvt.s32.f32 %v3419_v11 }
0x1c45   : > { %v3407_v5 = vcvt.s32.f32 %v3405_v44  ;;  %v3406_v44 = vcvt.s32.f32 %v3404_v23 }
0x1c46   : > { %3423 = vmin.xlane.f32.xlu1 %v3422_v15 }
0x1c47   : > { %3408 = vmin.xlane.f32.xlu0 %v3407_v5 }
0x1ccf   : > { %v3394_v56 = vpop.xlane.xlu1 %3393 }
0x1cd0   : > { %v3379_v45 = vpop.xlane.xlu0 %3378  ;;  %vm3395_vm15 = vcmp.eq.f32.partialorder %v3392_v51, %v3394_v56  ;;  %v3400_v6 = vcvt.f32.s32 %v3394_v56 }
0x1cd1   : > { %v3396_v38 = vsel %vm3395_vm15, %v3391_v61, inf  ;;  %vm3380_vm0 = vcmp.eq.f32.partialorder %v3377_v24, %v3379_v45  ;;  %v3385_v3 = vcvt.f32.s32 %v3379_v45 }
0x1cd2   : > { %3397 = vmin.xlane.f32.xlu1 %v3396_v38  ;;  %v3381_v50 = vsel %vm3380_vm0, %v3376_v49, inf  ;;  %v3401_v27 = vshll.u32 %v3400_v6, 16 }
0x1cd3   : > { %v3424_v60 = vpop.xlane.xlu1 %3423  ;;  %3382 = vmin.xlane.f32.xlu0 %v3381_v50  ;;  %v3386_v49 = vshll.u32 %v3385_v3, 16 }
0x1cd4   : > { %v3409_v42 = vpop.xlane.xlu0 %3408  ;;  %vm3425_vm1 = vcmp.eq.f32.partialorder %v3422_v15, %v3424_v60  ;;  %v3430_v1 = vcvt.f32.s32 %v3424_v60 }
0x1cd5   : > { %v3426_v37 = vsel %vm3425_vm1, %v3421_v43, inf  ;;  %vm3410_vm6 = vcmp.eq.f32.partialorder %v3407_v5, %v3409_v42  ;;  %v3415_v14 = vcvt.f32.s32 %v3409_v42 }
0x1cd6   : > { %3427 = vmin.xlane.f32.xlu1 %v3426_v37  ;;  %v3411_v57 = vsel %vm3410_vm6, %v3406_v44, inf  ;;  %v3431_v15 = vshll.u32 %v3430_v1, 16 }
0x1cd7   : > { %3412 = vmin.xlane.f32.xlu0 %v3411_v57  ;;  %v3416_v23 = vshll.u32 %v3415_v14, 16 }
0x1d5f   : > { %v3398_v51 = vpop.xlane.xlu1 %3397 }
0x1d60   : > { %v3399_v24 = vcvt.f32.s32 %v3398_v51  ;;  %v3383_v61 = vpop.xlane.xlu0 %3382 }
0x1d61   : > { %v3384_v38 = vcvt.f32.s32 %v3383_v61 }
0x1d62   : > { %v3402_v50 = vadd.s32 %v3401_v27, %v3399_v24 }
0x1d63   : > { %v3387_v11 = vadd.s32 %v3386_v49, %v3384_v38  ;;  %v3428_v63 = vpop.xlane.xlu1 %3427 }
0x1d64   : > { %v3429_v43 = vcvt.f32.s32 %v3428_v63  ;;  %v3413_v5 = vpop.xlane.xlu0 %3412  ;;  %vm3434_vm9 = vcmp.eq.s32.totalorder %v11621_v16, %v3402_v50 }
0x1d65   : > { %v3414_v37 = vcvt.f32.s32 %v3413_v5  ;;  %v3503_v45 = vsel %vm3434_vm9, inf, %v12503_v7  ;;  %v12556_v56 = vsel %vm3434_vm9, 1.0, %v14414_v8  ;;  %vm3433_vm10 = vcmp.eq.s32.totalorder %v11621_v16, %v3387_v11 }
0x1d66   : > { %v3432_v60 = vadd.s32 %v3431_v15, %v3429_v43  ;;  %v3513_v42 = vsel %vm856_vm5, %v3503_v45, inf  ;;  %v3502_v44 = vsel %vm3433_vm10, inf, %v12512_v30  ;;  %v12562_v57 = vsel %vm3433_vm10, 1.0, %v14414_v8 }
0x1d67   : > { %v3417_v63 = vadd.s32 %v3416_v23, %v3414_v37  ;;  %3514 = vmin.xlane.f32.xlu1 %v3513_v42  ;;  %v3510_v6 = vsel %vm856_vm5, %v3502_v44, inf  ;;  %v3445_v7 = vpack.c.bf16 %v12556_v56, %v12562_v57 }
0x1d68   : > { %3511 = vmin.xlane.f32.xlu0 %v3510_v6  ;;  %vm3436_vm11 = vcmp.eq.s32.totalorder %v11621_v16, %v3432_v60 }
0x1d69   : > { %v3505_v3 = vsel %vm3436_vm11, inf, %v12523_v33  ;;  %v12570_v51 = vsel %vm3436_vm11, 1.0, %v14414_v8  ;;  %vm3435_vm12 = vcmp.eq.s32.totalorder %v11621_v16, %v3417_v63 }
0x1d6a   : > { %v3519_v30 = vsel %vm856_vm5, %v3505_v3, inf  ;;  %v3504_v27 = vsel %vm3435_vm12, inf, %v12532_v13  ;;  %v12576_v1 = vsel %vm3435_vm12, 1.0, %v14414_v8 }
0x1d6b   : > { %3520 = vmin.xlane.f32.xlu1 %v3519_v30  ;;  %v3516_v14 = vsel %vm856_vm5, %v3504_v27, inf  ;;  %v3446_v24 = vpack.c.bf16 %v12570_v51, %v12576_v1 }
0x1d6c   : > { %3517 = vmin.xlane.f32.xlu0 %v3516_v14 }
0x1df4   : > { %v3515_v33 = vpop.xlane.xlu1 %3514 }
0x1df5   : > { %vm3523_vm13 = vcmp.le.f32.partialorder %v3503_v45, %v3515_v33  ;;  %v3512_v61 = vpop.xlane.xlu0 %3511 }
0x1df6   : > { %v3527_v49 = vsel %vm3523_vm13, %v11621_v16, 32  ;;  %vm3522_vm14 = vcmp.le.f32.partialorder %v3502_v44, %v3512_v61 }
0x1df7   : > { %v3545_v38 = vsel %vm856_vm5, %v3527_v49, 2147483647  ;;  %v3526_v13 = vsel %vm3522_vm14, %v11621_v16, 32 }
0x1df8   : > { %v3530_v50 = vsel %vm856_vm5, %v3526_v13, 2147483647  ;;  %v3521_v11 = vpop.xlane.xlu1 %3520  ;;  %v3547_v15 = vshra.s32 %v3545_v38, 16  ;;  %v3546_v33 = vand.u32 65535, %v3545_v38 }
0x1df9   : > { %vm3525_vm15 = vcmp.le.f32.partialorder %v3505_v3, %v3521_v11  ;;  %v3518_v23 = vpop.xlane.xlu0 %3517  ;;  %v3532_v43 = vshra.s32 %v3530_v50, 16  ;;  %v14417_v3 = vpack.c.bf16 %v12210_v2, %v12212_v48  ;;  %v3531_v61 = vand.u32 65535, %v3530_v50 }
0x1dfa   : > { %v3529_v5 = vsel %vm3525_vm15, %v11621_v16, 32  ;;  %vm3524_vm0 = vcmp.le.f32.partialorder %v3504_v27, %v3518_v23  ;;  %v3549_v37 = vcvt.s32.f32 %v3547_v15  ;;  %v14418_v27 = vpack.c.bf16 %v12204_v35, %v12206_v36 }
0x1dfb   : > { %v3575_v45 = vsel %vm856_vm5, %v3529_v5, 2147483647  ;;  %v3528_v60 = vsel %vm3524_vm0, %v11621_v16, 32  ;;  %v3534_v42 = vcvt.s32.f32 %v3532_v43  ;;  %v3548_v13 = vcvt.s32.f32 %v3546_v33 }
0x1dfc   : > { %v3560_v44 = vsel %vm856_vm5, %v3528_v60, 2147483647  ;;  %3550 = vmin.xlane.f32.xlu1 %v3549_v37  ;;  %v3577_v63 = vshra.s32 %v3575_v45, 16  ;;  %v3576_v11 = vand.u32 65535, %v3575_v45  ;;  %v3533_v23 = vcvt.s32.f32 %v3531_v61 }
0x1dfd   : > { %3535 = vmin.xlane.f32.xlu0 %v3534_v42  ;;  %v3562_v6 = vshra.s32 %v3560_v44, 16  ;;  %v3561_v43 = vand.u32 65535, %v3560_v44 }
0x1dfe   : > { %v3579_v30 = vcvt.s32.f32 %v3577_v63  ;;  %v3578_v38 = vcvt.s32.f32 %v3576_v11 }
0x1dff   : > { %v3564_v14 = vcvt.s32.f32 %v3562_v6  ;;  %v3563_v45 = vcvt.s32.f32 %v3561_v43 }
0x1e00   : > { %3580 = vmin.xlane.f32.xlu1 %v3579_v30 }
0x1e01   : > { %3565 = vmin.xlane.f32.xlu0 %v3564_v14 }
0x1e11   : > { %2505 = vrot.lane.b32.xlu1 %v14417_v3, %s11291_s18  ;;  %v14421_v3 = vpack.c.bf16 %v12350_v25, %v12359_v12  ;;  %v14427_v25 = vpack.c.bf16 %v12474_v4, %v12483_v32  ;;  %v14428_v12 = vpack.c.bf16 %v12526_v62, %v12535_v54  ;;  %v3675_v32 = vld [vmem:[#allocation2 + $0x20] sm:$0xff] }
0x1e17   : > { %2503 = vrot.lane.b32.xlu0 %v14418_v27, %s11291_s18  ;;  %v14422_v27 = vpack.c.bf16 %v12402_v41, %v12411_v28  ;;  %v3671_v41 = vld [vmem:[#allocation2] sm:$0xff] }
0x1e89   : > { %v12597_v49 = vpop.xlane.xlu1 %3550 }
0x1e8a   : > { %v12599_v15 = vpop.xlane.xlu0 %3535  ;;  %vm3552_vm1 = vcmp.eq.f32.partialorder %v3549_v37, %v12597_v49  ;;  %v3557_v62 = vcvt.f32.s32 %v12597_v49 }
0x1e8b   : > { %v3553_v5 = vsel %vm3552_vm1, %v3548_v13, inf  ;;  %vm3537_vm6 = vcmp.eq.f32.partialorder %v3534_v42, %v12599_v15  ;;  %v3542_v54 = vcvt.f32.s32 %v12599_v15 }
0x1e8c   : > { %3554 = vmin.xlane.f32.xlu0 %v3553_v5  ;;  %v3538_v60 = vsel %vm3537_vm6, %v3533_v23, inf  ;;  %v3558_v57 = vshll.u32 %v3557_v62, 16 }
0x1e8d   : > { %v12603_v63 = vpop.xlane.xlu1 %3580  ;;  %3539 = vmin.xlane.f32.xlu1 %v3538_v60  ;;  %v3543_v33 = vshll.u32 %v3542_v54, 16  ;;  %v3680_v54 = vld [vmem:[#allocation2 + $0x48] sm:$0xff] }
0x1e8e   : > { %v12605_v50 = vpop.xlane.xlu0 %3565  ;;  %vm3582_vm9 = vcmp.eq.f32.partialorder %v3579_v30, %v12603_v63  ;;  %v14419_v30 = vpack.c.bf16 %v12271_v19, %v12280_v53  ;;  %v14423_v19 = vpack.c.bf16 %v12370_v31, %v12379_v40  ;;  %v14424_v53 = vpack.c.bf16 %v12422_v10, %v12431_v0  ;;  %v3672_v31 = vld [vmem:[#allocation2 + $0x8] sm:$0xff]  ;;  %v3674_v40 = vld [vmem:[#allocation2 + $0x18] sm:$0xff]  ;;  %v3673_v10 = vld [vmem:[#allocation2 + $0x10] sm:$0xff] }
0x1e8f   : > { %v3583_v6 = vsel %vm3582_vm9, %v3578_v38, inf  ;;  %vm3567_vm10 = vcmp.eq.f32.partialorder %v3564_v14, %v12605_v50  ;;  %v14420_v14 = vpack.c.bf16 %v12318_v55, %v12327_v46  ;;  %v14425_v55 = vpack.c.bf16 %v12454_v47, %v12463_v34  ;;  %v3676_v0 = vld [vmem:[#allocation2 + $0x28] sm:$0xff]  ;;  %v3678_v47 = vld [vmem:[#allocation2 + $0x38] sm:$0xff] }
0x1e90   : > { %v3568_v37 = vsel %vm3567_vm10, %v3563_v45, inf  ;;  %v14426_v46 = vpack.c.bf16 %v12506_v39, %v12515_v20  ;;  %v10212_v28 = vpack.c.bf16 %v3674_v40, %v3672_v31  ;;  %v10214_v34 = vpack.c.bf16 %v3673_v10, %v3671_v41  ;;  %v3677_v39 = vld [vmem:[#allocation2 + $0x30] sm:$0xff] }
0x1e91   : > { %3584 = vmin.xlane.f32.xlu1 %v3583_v6  ;;  %3569 = vmin.xlane.f32.xlu0 %v3568_v37  ;;  %v2506_v42 = vpop.permute.xlu1 %2505  ;;  %v10216_v4 = vpack.c.bf16 %v3678_v47, %v3676_v0  ;;  %v10218_v20 = vpack.c.bf16 %v3677_v39, %v3675_v32  ;;  %v3572_v51 = vcvt.f32.s32 %v12605_v50 }
0x1e92   : > { %v2504_v44 = vpop.permute.xlu0 %2503 }
0x1e93   : > { %10016 = vmatprep.subr.bf16.mxu1 %v2504_v44  ;;  %10024 = vmatprep.subr.bf16.mxu0 %v2504_v44  ;;  %v3573_v43 = vshll.u32 %v3572_v51, 16 }
0x1e94   : > { %10017 = vmatpush3.bf16.msra.mxu1 %v2504_v44  ;;  %10025 = vmatpush3.bf16.msra.mxu0 %v2504_v44 }
0x1e95   : > { %10018 = vmatprep.subr.bf16.mxu1 %v2506_v42  ;;  %10026 = vmatprep.subr.bf16.mxu0 %v2506_v42 }
0x1e98   : > { %10019 = vmatpush3.bf16.msra.mxu1 %v2506_v42  ;;  %10027 = vmatpush3.bf16.msra.mxu0 %v2506_v42 }
0x1e99   : > { %10032 = vmatprep.subr.bf16.mxu1 %v2504_v44  ;;  %10040 = vmatprep.subr.bf16.mxu0 %v2504_v44 }
0x1e9b   : > { %10021 = vmatmul.mubr.msk.bf16.vlgmr.msra.gmra.mrb[20].mxu1 %vm856_vm5, %v14419_v30  ;;  %10029 = vmatmul.mubr.msk.bf16.vlgmr.msra.gmra.mrb[28].mxu0 %vm856_vm5, %v14420_v14 }
0x1e9c   : > { %10033 = vmatpush3.bf16.msra.mxu1 %v2504_v44  ;;  %10036 = vmatprep.mubr.msk.bf16.mxu1 %vm856_vm5, %v14421_v3 }
0x1e9d   : > { %10041 = vmatpush3.bf16.msra.mxu0 %v2504_v44  ;;  %10044 = vmatprep.mubr.msk.bf16.mxu0 %vm856_vm5, %v14422_v27 }
0x1e9e   : > { %10034 = vmatprep.subr.bf16.mxu1 %v2506_v42  ;;  %10042 = vmatprep.subr.bf16.mxu0 %v2506_v42 }
0x1ea0   : > { %10035 = vmatpush3.bf16.msra.mxu1 %v2506_v42 }
0x1ea1   : > { %10043 = vmatpush3.bf16.msra.mxu0 %v2506_v42  ;;  %10048 = vmatprep.subr.bf16.mxu1 %v2504_v44 }
0x1ea2   : > { %10056 = vmatprep.subr.bf16.mxu0 %v2504_v44  ;;  %2234 = vrot.lane.b32.xlu1 %v12204_v35, %s11291_s18 }
0x1ea3   : > { %10037 = vmatmul.mubr.msk.bf16.vlgmr.msra.gmra.mrb[24].mxu1 %vm856_vm5, %v14423_v19 }
0x1ea4   : > { %10045 = vmatmul.mubr.msk.bf16.vlgmr.msra.gmra.mrb[32].mxu0 %vm856_vm5, %v14424_v53  ;;  %10049 = vmatpush3.bf16.msra.mxu1 %v2504_v44 }
0x1ea5   : > { %10052 = vmatprep.mubr.msk.bf16.mxu1 %vm856_vm5, %v14425_v55  ;;  %10057 = vmatpush3.bf16.msra.mxu0 %v2504_v44 }
0x1ea6   : > { %10060 = vmatprep.mubr.msk.bf16.mxu0 %vm856_vm5, %v14426_v46  ;;  %10050 = vmatprep.subr.bf16.mxu1 %v2506_v42 }
0x1ea7   : > { %10058 = vmatprep.subr.bf16.mxu0 %v2506_v42  ;;  %2236 = vrot.lane.b32.xlu1 %v12212_v48, %s11291_s18 }
0x1ea8   : > { %2232 = vrot.lane.b32.xlu0 %v12206_v36, %s11291_s18  ;;  %10051 = vmatpush3.bf16.msra.mxu1 %v2506_v42 }
0x1ea9   : > { %10059 = vmatpush3.bf16.msra.mxu0 %v2506_v42  ;;  %10064 = vmatprep.subr.bf16.mxu1 %v2504_v44 }
0x1eaa   : > { %10072 = vmatprep.subr.bf16.mxu0 %v2504_v44 }
0x1eab   : > { %2238 = vrot.lane.b32.xlu1 %v12210_v2, %s11291_s18  ;;  %10053 = vmatmul.mubr.msk.bf16.vlgmr.msra.gmra.mrb[28].mxu1 %vm856_vm5, %v14427_v25  ;;  %s14500_s18 = sld [smem:[#allocation46_spill]] }
0x1eac   : > { %10061 = vmatmul.mubr.msk.bf16.vlgmr.msra.gmra.mrb[36].mxu0 %vm856_vm5, %v14428_v12  ;;  %10065 = vmatpush3.bf16.msra.mxu1 %v2504_v44 }
0x1ead   : > { %10068 = vmatprep.mubr.msk.bf16.mxu1 %vm856_vm5, %v3445_v7  ;;  %10073 = vmatpush3.bf16.msra.mxu0 %v2504_v44  ;;  %v3587_v7 = vcvt.f32.s32 %v12603_v63 }
0x1eae   : > { %10066 = vmatprep.subr.bf16.mxu1 %v2506_v42  ;;  %10074 = vmatprep.subr.bf16.mxu0 %v2506_v42 }
0x1eaf   : > { %v3588_v23 = vshll.u32 %v3587_v7, 16 }
0x1eb0   : > { %10067 = vmatpush3.bf16.msra.mxu1 %v2506_v42 }
0x1eb1   : > { %10075 = vmatpush3.bf16.msra.mxu0 %v2506_v42  ;;  %10213 = vmatprep.subr.bf16.mxu1 %v10212_v28  ;;  %s14287_s7 = scalar_lea.hbm %s14500_s18, %s9748_s26 }
0x1eb3   : > { %10069 = vmatmul.mubr.msk.bf16.vlgmr.msra.gmra.mrb[32].mxu1 %vm856_vm5, %v3446_v24 }
0x1eb4   : > { %3764 = vmatprep.mubr.f32.mxu1 %v14414_v8  ;;  %10215 = vmatpush1.bf16.msra.mxu1 %v10214_v34 }
0x1eb5   : > { %10217 = vmatprep.subr.bf16.mxu1 %v10216_v4 }
0x1eb8   : > { %10219 = vmatpush1.bf16.msra.mxu1 %v10218_v20 }
0x1f19   : > { %v3555_v56 = vpop.xlane.xlu0 %3554 }
0x1f1a   : > { %v3556_v1 = vcvt.f32.s32 %v3555_v56  ;;  %v3540_v24 = vpop.xlane.xlu1 %3539  ;;  %v3682_v56 = vld [vmem:[#allocation2 + $0x58] sm:$0xff] }
0x1f1b   : > { %v3541_v61 = vcvt.f32.s32 %v3540_v24  ;;  %v3679_v24 = vld [vmem:[#allocation2 + $0x40] sm:$0xff] }
0x1f1c   : > { %v3559_v13 = vadd.s32 %v3558_v57, %v3556_v1  ;;  %v10220_v1 = vpack.c.bf16 %v3682_v56, %v3680_v54 }
0x1f1d   : > { %v3544_v11 = vadd.s32 %v3543_v33, %v3541_v61  ;;  %v3681_v33 = vld [vmem:[#allocation2 + $0x50] sm:$0xff] }
0x1f1e   : > { %vm3591_vm11 = vcmp.eq.s32.totalorder %v11621_v16, %v3559_v13  ;;  %v3585_v5 = vpop.xlane.xlu1 %3584  ;;  %v3570_v49 = vpop.xlane.xlu0 %3569  ;;  %v10222_v13 = vpack.c.bf16 %v3681_v33, %v3679_v24  ;;  %10221 = vmatprep.subr.bf16.mxu1 %v10220_v1 }
0x1f1f   : > { %v9596_v15 = vsel %vm3591_vm11, 1.0, %v14414_v8  ;;  %vm3590_vm12 = vcmp.eq.s32.totalorder %v11621_v16, %v3544_v11  ;;  %v3586_v60 = vcvt.f32.s32 %v3585_v5  ;;  %v3571_v63 = vcvt.f32.s32 %v3570_v49 }
0x1f20   : > { %v9595_v38 = vsel %vm3590_vm12, 1.0, %v14414_v8  ;;  %10223 = vmatpush1.bf16.msra.mxu1 %v10222_v13 }
0x1f21   : > { %v3589_v50 = vadd.s32 %v3588_v23, %v3586_v60  ;;  %v3574_v45 = vadd.s32 %v3573_v43, %v3571_v63  ;;  %v3602_v6 = vpack.c.bf16 %v9596_v15, %v9595_v38  ;;  %v3684_v23 = vld [vmem:[#allocation2 + $0x68] sm:$0xff]  ;;  %v3686_v43 = vld [vmem:[#allocation2 + $0x78] sm:$0xff]  ;;  %v3683_v15 = vld [vmem:[#allocation2 + $0x60] sm:$0xff] }
0x1f22   : > { %v10224_v49 = vpack.c.bf16 %v3686_v43, %v3684_v23  ;;  %v3685_v60 = vld [vmem:[#allocation2 + $0x70] sm:$0xff] }
0x1f23   : > { %vm3593_vm13 = vcmp.eq.s32.totalorder %v11621_v16, %v3589_v50  ;;  %vm3592_vm14 = vcmp.eq.s32.totalorder %v11621_v16, %v3574_v45  ;;  %10076 = vmatprep.mubr.msk.bf16.mxu0 %vm856_vm5, %v3602_v6  ;;  %v10226_v45 = vpack.c.bf16 %v3685_v60, %v3683_v15 }
0x1f24   : > { %v9598_v37 = vsel %vm3593_vm13, 1.0, %v14414_v8  ;;  %v9597_v44 = vsel %vm3592_vm14, 1.0, %v14414_v8  ;;  %10225 = vmatprep.subr.bf16.mxu1 %v10224_v49 }
0x1f25   : > { %v3603_v42 = vpack.c.bf16 %v9598_v37, %v9597_v44  ;;  %10227 = vmatpush1.bf16.msra.mxu1 %v10226_v45 }
0x1f27   : > { %10077 = vmatmul.mubr.msk.bf16.vlgmr.msra.gmra.mrb[40].mxu0 %vm856_vm5, %v3603_v42 }
0x1f6e   : > { %v10022_v30 = vpop.f32.mrb[20].mxu1  ;;  %v10030_v14 = vpop.f32.mrb[28].mxu0 }
0x1f6f   : > { %v2723_v3 = vmax.f32 %v10022_v30, %v10030_v14  ;;  %v2549_v27 = vpop.f32.mrb[21].mxu1  ;;  %v2702_v19 = vpop.f32.mrb[29].mxu0 }
0x1f70   : > { %v2721_v53 = vmax.f32 %v2549_v27, %v2702_v19  ;;  %v10023_v55 = vpop.f32.mrb[22].mxu1  ;;  %v10031_v46 = vpop.f32.mrb[30].mxu0 }
0x1f71   : > { %v2724_v25 = vmax.f32 %v10023_v55, %v10031_v46  ;;  %v2552_v12 = vpop.f32.mrb[23].mxu1  ;;  %v2705_v31 = vpop.f32.mrb[31].mxu0 }
0x1f72   : > { %v2722_v40 = vmax.f32 %v2552_v12, %v2705_v31 }
0x1f76   : > { %v10038_v41 = vpop.f32.mrb[24].mxu1 }
0x1f77   : > { %v2880_v28 = vmax.f32 %v2723_v3, %v10038_v41  ;;  %v10046_v10 = vpop.f32.mrb[32].mxu0  ;;  %v2859_v0 = vpop.f32.mrb[25].mxu1 }
0x1f78   : > { %v2878_v47 = vmax.f32 %v2721_v53, %v2859_v0  ;;  %v3016_v34 = vpop.f32.mrb[33].mxu0  ;;  %v10039_v4 = vpop.f32.mrb[26].mxu1 }
0x1f79   : > { %v3037_v32 = vmax.f32 %v2880_v28, %v10046_v10  ;;  %v2881_v39 = vmax.f32 %v2724_v25, %v10039_v4  ;;  %v10047_v20 = vpop.f32.mrb[34].mxu0  ;;  %v2862_v62 = vpop.f32.mrb[27].mxu1 }
0x1f7a   : > { %v3035_v57 = vmax.f32 %v2878_v47, %v3016_v34  ;;  %v2879_v7 = vmax.f32 %v2722_v40, %v2862_v62  ;;  %v3019_v51 = vpop.f32.mrb[35].mxu0  ;;  %v2235_v47 = vpop.permute.xlu1 %2234  ;;  %v9544_v62 = vld [vmem:[%s14333_s4] ss:$0 sm:$0xff] }
0x1f7b   : > { %v3038_v61 = vmax.f32 %v2881_v39, %v10047_v20  ;;  %v2233_v4 = vpop.permute.xlu0 %2232  ;;  %v2245_v56 = vsub.f32 %v12204_v35, %v2235_v47 }
0x1f7c   : > { %v3036_v11 = vmax.f32 %v2879_v7, %v3019_v51  ;;  %v2244_v20 = vsub.f32 %v12206_v36, %v2233_v4 }
0x1f7d   : > { %v2255_v36 = vadd.f32 %v9544_v62, %v2245_v56 }
0x1f7e   : > { %v10054_v5 = vpop.f32.mrb[28].mxu1  ;;  %v2237_v34 = vpop.permute.xlu1 %2236  ;;  %v2254_v24 = vadd.f32 %v9544_v62, %v2244_v20 }
0x1f7f   : > { %v3194_v63 = vmax.f32 %v3037_v32, %v10054_v5  ;;  %v10062_v38 = vpop.f32.mrb[36].mxu0  ;;  %v3173_v50 = vpop.f32.mrb[29].mxu1  ;;  %v2246_v39 = vsub.f32 %v12212_v48, %v2237_v34 }
0x1f80   : > { %v3192_v6 = vmax.f32 %v3035_v57, %v3173_v50  ;;  %v3330_v37 = vpop.f32.mrb[37].mxu0  ;;  %v10055_v44 = vpop.f32.mrb[30].mxu1 }
0x1f81   : > { %v3351_v42 = vmax.f32 %v3194_v63, %v10062_v38  ;;  %v3195_v30 = vmax.f32 %v3038_v61, %v10055_v44  ;;  %v10063_v14 = vpop.f32.mrb[38].mxu0  ;;  %v3176_v3 = vpop.f32.mrb[31].mxu1  ;;  %v2256_v7 = vadd.f32 %v9544_v62, %v2246_v39 }
0x1f82   : > { %v3349_v27 = vmax.f32 %v3192_v6, %v3330_v37  ;;  %v3193_v19 = vmax.f32 %v3036_v11, %v3176_v3  ;;  %v3333_v53 = vpop.f32.mrb[39].mxu0  ;;  %v2239_v32 = vpop.permute.xlu1 %2238 }
0x1f83   : > { %v3352_v55 = vmax.f32 %v3195_v30, %v10063_v14  ;;  %v2247_v54 = vsub.f32 %v12210_v2, %v2239_v32 }
0x1f84   : > { %v3350_v46 = vmax.f32 %v3193_v19, %v3333_v53 }
0x1f85   : > { %v2257_v13 = vadd.f32 %v9544_v62, %v2247_v54 }
0x1f86   : > { %v10070_v25 = vpop.f32.mrb[32].mxu1 }
0x1f87   : > { %v3508_v12 = vmax.f32 %v3351_v42, %v10070_v25  ;;  %v3487_v31 = vpop.f32.mrb[33].mxu1 }
0x1f88   : > { %v3506_v40 = vmax.f32 %v3349_v27, %v3487_v31  ;;  %v10071_v41 = vpop.f32.mrb[34].mxu1 }
0x1f89   : > { %v3509_v28 = vmax.f32 %v3352_v55, %v10071_v41  ;;  %v3490_v10 = vpop.f32.mrb[35].mxu1 }
0x1f8a   : > { %v3507_v0 = vmax.f32 %v3350_v46, %v3490_v10 }
0x1ffa   : > { %v10078_v57 = vpop.f32.mrb[40].mxu0 }
0x1ffb   : > { %v3661_v51 = vmax.f32 %v3508_v12, %v10078_v57  ;;  %v3644_v1 = vpop.f32.mrb[41].mxu0 }
0x1ffc   : > { %v3659_v33 = vmax.f32 %v3506_v40, %v3644_v1  ;;  %v10079_v61 = vpop.f32.mrb[42].mxu0 }
0x1ffd   : > { %v3665_v11 = vadd.f32 %v3661_v51, %v2256_v7  ;;  %v3662_v48 = vmax.f32 %v3509_v28, %v10079_v61  ;;  %v3647_v23 = vpop.f32.mrb[43].mxu0 }
0x1ffe   : > { %v3663_v43 = vadd.f32 %v3659_v33, %v2254_v24  ;;  %v3660_v5 = vmax.f32 %v3507_v0, %v3647_v23 }
0x1fff   : > { %v3666_v49 = vadd.f32 %v3662_v48, %v2257_v13  ;;  %v12687_v15 = vmax.f32 %v3665_v11, 0.0 }
0x2000   : > { %v12689_v2 = vmax.f32 %v3663_v43, 0.0  ;;  %v3664_v35 = vadd.f32 %v3660_v5, %v2255_v36 }
0x2001   : > { %v12691_v60 = vmax.f32 %v3666_v49, 0.0  ;;  %v3890_v37 = vmul.f32 %v12687_v15, %v12687_v15 }
0x2002   : > { %v12693_v63 = vmax.f32 %v3664_v35, 0.0  ;;  %9601 = vmatmul.mubr.msk.f32.vlgmr.msra.gmra.mrb[36].mxu1 %vm2130_vm7, %v12689_v2  ;;  %10088 = vmatprep.mubr.msk.f32.mxu0 %vm2130_vm7, %v12689_v2  ;;  %v3888_v38 = vmul.f32 %v12689_v2, %v12689_v2 }
0x2003   : > { %3770 = vmatprep.mubr.f32.mxu1 %v14414_v8  ;;  %v10234_v42 = vpack.c.bf16 %v12691_v60, %v12687_v15  ;;  %v3898_v30 = vsel %vm2130_vm7, %v3890_v37, 0.0  ;;  %v3891_v14 = vmul.f32 %v12691_v60, %v12691_v60 }
0x2004   : > { %v3892_v50 = vsel %vm2130_vm7, %v3888_v38, 0.0  ;;  %v10228_v45 = vpack.c.bf16 %v12693_v63, %v12689_v2  ;;  %v3889_v6 = vmul.f32 %v12693_v63, %v12693_v63 }
0x2005   : > { %3893 = vadd.xlane.f32.xlu0 %v3892_v50  ;;  %v3901_v3 = vsel %vm2130_vm7, %v3891_v14, 0.0 }
0x2006   : > { %9602 = vmatmul.mubr.msk.f32.gmra.mrb[38].mxu1 %vm2130_vm7, %v12693_v63  ;;  %10230 = vmatprep.subr.msk.bf16.mxu0 %vm12166_vm8, %v10228_v45  ;;  %v3895_v44 = vsel %vm2130_vm7, %v3889_v6, 0.0 }
0x2007   : > { %3896 = vadd.xlane.f32.xlu1 %v3895_v44  ;;  %10233 = vmatpush3.bf16.xpose.msk.msra.mxu0 %vm12166_vm8, %v10228_v45 }
0x2008   : > { %10236 = vmatprep.subr.msk.bf16.mxu0 %vm12166_vm8, %v10234_v42  ;;  %3776 = vmatprep.mubr.f32.mxu1 %v14414_v8 }
0x2009   : > { %3899 = vadd.xlane.f32.xlu0 %v3898_v30 }
0x200a   : > { %9603 = vmatmul.mubr.msk.f32.gmra.mrb[40].mxu1 %vm2130_vm7, %v12687_v15 }
0x200b   : > { %3782 = vmatprep.mubr.f32.mxu1 %v14414_v8 }
0x200d   : > { %3902 = vadd.xlane.f32.xlu0 %v3901_v3 }
0x200e   : > { %9604 = vmatmul.mubr.msk.f32.gmra.mrb[42].mxu1 %vm2130_vm7, %v12691_v60 }
0x200f   : > { %10239 = vmatpush3.bf16.xpose.msk.msra.mxu0 %vm12166_vm8, %v10234_v42 }
0x2016   : > { %10089 = vmatmul.mubr.msk.f32.vlgmr.msra.gmra.mrb[44].mxu0 %vm2130_vm7, %v12693_v63 }
0x2017   : > { %10091 = vmatprep.mubr.msk.f32.mxu0 %vm2130_vm7, %v12687_v15 }
0x201a   : > { %10092 = vmatmul.mubr.msk.f32.gmra.mrb[46].mxu0 %vm2130_vm7, %v12691_v60 }
0x2092   : > { %v3894_v27 = vpop.xlane.xlu0 %3893 }
0x2093   : > { %v3911_v34 = vrot.slane %v3894_v27, %v11629_v21 }
0x2094   : > { %v3897_v40 = vpop.xlane.xlu1 %3896 }
0x2095   : > { %v3915_v10 = vrot.slane %v3897_v40, %v11632_v22 }
0x2096   : > { %v3900_v17 = vpop.xlane.xlu0 %3899 }
0x2097   : > { %v3920_v32 = vrot.slane %v3900_v17, %v11636_v26  ;;  %v3916_v20 = vsel %vm809_vm2, %v3915_v10, %v3911_v34 }
0x2099   : > { %v3921_v57 = vsel %vm816_vm3, %v3920_v32, %v3916_v20 }
0x209a   : > { %v3903_v47 = vpop.xlane.xlu0 %3902 }
0x209b   : > { %v3925_v62 = vrot.slane %v3903_v47, %v11641_v29 }
0x209d   : > { %v3926_v7 = vsel %vm823_vm4, %v3925_v62, %v3921_v57 }
0x209e   : > { %v3935_v1 = vadd.f32 %v3926_v7, %v3897_v40  ;;  %v3934_v61 = vadd.f32 %v3926_v7, %v3894_v27  ;;  %v3937_v36 = vadd.f32 %v3926_v7, %v3903_v47  ;;  %v3936_v38 = vadd.f32 %v3926_v7, %v3900_v17 }
0x20d5   : > { %v12738_v19 = vpop.f32.mrb[36].mxu1 }
0x20d6   : > { %v12740_v53 = vpop.f32.mrb[37].mxu1 }
0x20d9   : > { %v12744_v46 = vpop.f32.mrb[38].mxu1 }
0x20da   : > { %v12746_v25 = vpop.f32.mrb[39].mxu1 }
0x20db   : > { %v12752_v31 = vpack.c.bf16 %v12746_v25, %v12740_v53 }
0x20dd   : > { %v12754_v41 = vpop.f32.mrb[40].mxu1  ;;  %10094 = vmatprep.subr.bf16.mxu0 %v12752_v31  ;;  %10102 = vmatprep.subr.bf16.mxu1 %v12752_v31 }
0x20de   : > { %v12758_v28 = vpop.f32.mrb[41].mxu1  ;;  %10095 = vmatpush3.bf16.msra.mxu0 %v12752_v31  ;;  %10103 = vmatpush3.bf16.msra.mxu1 %v12752_v31 }
0x20e1   : > { %v12766_v4 = vpop.f32.mrb[42].mxu1 }
0x20e2   : > { %v12769_v39 = vpop.f32.mrb[43].mxu1 }
0x20e3   : > { %v12777_v56 = vpack.c.bf16 %v12769_v39, %v12758_v28 }
0x20e5   : > { %10096 = vmatprep.subr.bf16.mxu0 %v12777_v56  ;;  %10104 = vmatprep.subr.bf16.mxu1 %v12777_v56 }
0x20e6   : > { %10097 = vmatpush3.bf16.msra.mxu0 %v12777_v56  ;;  %10105 = vmatpush3.bf16.msra.mxu1 %v12777_v56 }
0x20e7   : > { %10110 = vmatprep.subr.bf16.mxu0 %v12752_v31  ;;  %10118 = vmatprep.subr.bf16.mxu1 %v12752_v31 }
0x20e9   : > { %v10090_v51 = vpop.f32.mrb[44].mxu0 }
0x20ea   : > { %v3939_v24 = vmul.f32 2.0, %v10090_v51  ;;  %v3869_v33 = vpop.f32.mrb[45].mxu0 }
0x20eb   : > { %v3938_v13 = vmul.f32 2.0, %v3869_v33 }
0x20ec   : > { %v3943_v11 = vsub.f32 %v3935_v1, %v3939_v24 }
0x20ed   : > { %v3942_v48 = vsub.f32 %v3934_v61, %v3938_v13  ;;  %v10093_v23 = vpop.f32.mrb[46].mxu0 }
0x20ee   : > { %v12787_v43 = vmax.f32 %v3943_v11, 0.0  ;;  %v3941_v5 = vmul.f32 2.0, %v10093_v23  ;;  %v3879_v49 = vpop.f32.mrb[47].mxu0 }
0x20ef   : > { %v12789_v35 = vmax.f32 %v3942_v48, 0.0  ;;  %v3940_v50 = vmul.f32 2.0, %v3879_v49 }
0x20f0   : > { %v3945_v45 = vsub.f32 %v3937_v36, %v3941_v5  ;;  %v3955_v6 = vsel %vm856_vm5, %v12787_v43, inf }
0x20f1   : > { %v3944_v37 = vsub.f32 %v3936_v38, %v3940_v50  ;;  %3956 = vmin.xlane.f32.xlu1 %v3955_v6  ;;  %v3952_v44 = vsel %vm856_vm5, %v12789_v35, inf }
0x20f2   : > { %v12795_v42 = vmax.f32 %v3945_v45, 0.0  ;;  %3953 = vmin.xlane.f32.xlu0 %v3952_v44 }
0x20f3   : > { %v12797_v30 = vmax.f32 %v3944_v37, 0.0 }
0x20f4   : > { %v3961_v14 = vsel %vm856_vm5, %v12795_v42, inf }
0x20f5   : > { %3962 = vmin.xlane.f32.xlu1 %v3961_v14  ;;  %v3958_v3 = vsel %vm856_vm5, %v12797_v30, inf }
0x20f6   : > { %3959 = vmin.xlane.f32.xlu0 %v3958_v3 }
0x217e   : > { %v3957_v27 = vpop.xlane.xlu1 %3956 }
0x217f   : > { %vm3965_vm8 = vcmp.le.f32.partialorder %v12787_v43, %v3957_v27  ;;  %v3954_v17 = vpop.xlane.xlu0 %3953 }
0x2180   : > { %v3969_v40 = vsel %vm3965_vm8, %v11621_v16, 32  ;;  %vm3964_vm15 = vcmp.le.f32.partialorder %v12789_v35, %v3954_v17 }
0x2181   : > { %v3987_v10 = vsel %vm856_vm5, %v3969_v40, 2147483647  ;;  %v3968_v47 = vsel %vm3964_vm15, %v11621_v16, 32 }
0x2182   : > { %v3972_v34 = vsel %vm856_vm5, %v3968_v47, 2147483647  ;;  %v3963_v32 = vpop.xlane.xlu1 %3962  ;;  %v3989_v20 = vshra.s32 %v3987_v10, 16  ;;  %v3988_v36 = vand.u32 65535, %v3987_v10 }
0x2183   : > { %vm3967_vm0 = vcmp.le.f32.partialorder %v12795_v42, %v3963_v32  ;;  %v3960_v62 = vpop.xlane.xlu0 %3959  ;;  %v3974_v57 = vshra.s32 %v3972_v34, 16  ;;  %v3973_v5 = vand.u32 65535, %v3972_v34 }
0x2184   : > { %v3971_v7 = vsel %vm3967_vm0, %v11621_v16, 32  ;;  %vm3966_vm1 = vcmp.le.f32.partialorder %v12797_v30, %v3960_v62  ;;  %v3991_v51 = vcvt.s32.f32 %v3989_v20  ;;  %v3990_v38 = vcvt.s32.f32 %v3988_v36 }
0x2185   : > { %v4017_v1 = vsel %vm856_vm5, %v3971_v7, 2147483647  ;;  %v3970_v24 = vsel %vm3966_vm1, %v11621_v16, 32  ;;  %v3976_v33 = vcvt.s32.f32 %v3974_v57  ;;  %v3975_v6 = vcvt.s32.f32 %v3973_v5 }
0x2186   : > { %v4002_v61 = vsel %vm856_vm5, %v3970_v24, 2147483647  ;;  %3992 = vmin.xlane.f32.xlu1 %v3991_v51  ;;  %v4019_v13 = vshra.s32 %v4017_v1, 16  ;;  %v4018_v50 = vand.u32 65535, %v4017_v1 }
0x2187   : > { %3977 = vmin.xlane.f32.xlu0 %v3976_v33  ;;  %v4004_v11 = vshra.s32 %v4002_v61, 16  ;;  %v4003_v37 = vand.u32 65535, %v4002_v61 }
0x2188   : > { %v4021_v48 = vcvt.s32.f32 %v4019_v13  ;;  %v4020_v27 = vcvt.s32.f32 %v4018_v50 }
0x2189   : > { %v4006_v23 = vcvt.s32.f32 %v4004_v11  ;;  %v4005_v40 = vcvt.s32.f32 %v4003_v37 }
0x218a   : > { %4022 = vmin.xlane.f32.xlu1 %v4021_v48 }
0x218b   : > { %4007 = vmin.xlane.f32.xlu0 %v4006_v23 }
0x2213   : > { %v3993_v49 = vpop.xlane.xlu1 %3992 }
0x2214   : > { %v3978_v45 = vpop.xlane.xlu0 %3977  ;;  %vm3994_vm6 = vcmp.eq.f32.partialorder %v3991_v51, %v3993_v49  ;;  %v3999_v34 = vcvt.f32.s32 %v3993_v49 }
0x2215   : > { %v3995_v44 = vsel %vm3994_vm6, %v3990_v38, inf  ;;  %vm3979_vm9 = vcmp.eq.f32.partialorder %v3976_v33, %v3978_v45  ;;  %v3984_v32 = vcvt.f32.s32 %v3978_v45 }
0x2216   : > { %3996 = vmin.xlane.f32.xlu1 %v3995_v44  ;;  %v3980_v14 = vsel %vm3979_vm9, %v3975_v6, inf  ;;  %v4000_v62 = vshll.u32 %v3999_v34, 16 }
0x2217   : > { %v4023_v3 = vpop.xlane.xlu1 %4022  ;;  %3981 = vmin.xlane.f32.xlu0 %v3980_v14  ;;  %v3985_v24 = vshll.u32 %v3984_v32, 16 }
0x2218   : > { %v4008_v17 = vpop.xlane.xlu0 %4007  ;;  %vm4024_vm10 = vcmp.eq.f32.partialorder %v4021_v48, %v4023_v3  ;;  %v4029_v57 = vcvt.f32.s32 %v4023_v3 }
0x2219   : > { %v4025_v47 = vsel %vm4024_vm10, %v4020_v27, inf  ;;  %vm4009_vm11 = vcmp.eq.f32.partialorder %v4006_v23, %v4008_v17  ;;  %v4014_v7 = vcvt.f32.s32 %v4008_v17 }
0x221a   : > { %4026 = vmin.xlane.f32.xlu1 %v4025_v47  ;;  %v4010_v10 = vsel %vm4009_vm11, %v4005_v40, inf  ;;  %v4030_v48 = vshll.u32 %v4029_v57, 16 }
0x221b   : > { %4011 = vmin.xlane.f32.xlu0 %v4010_v10  ;;  %v4015_v36 = vshll.u32 %v4014_v7, 16 }
0x22a3   : > { %v3997_v20 = vpop.xlane.xlu1 %3996 }
0x22a4   : > { %v3998_v51 = vcvt.f32.s32 %v3997_v20  ;;  %v3982_v1 = vpop.xlane.xlu0 %3981 }
0x22a5   : > { %v3983_v33 = vcvt.f32.s32 %v3982_v1 }
0x22a6   : > { %v4001_v61 = vadd.s32 %v4000_v62, %v3998_v51 }
0x22a7   : > { %v3986_v13 = vadd.s32 %v3985_v24, %v3983_v33  ;;  %v4027_v11 = vpop.xlane.xlu1 %4026 }
0x22a8   : > { %v4028_v5 = vcvt.f32.s32 %v4027_v11  ;;  %v4012_v23 = vpop.xlane.xlu0 %4011  ;;  %vm4033_vm12 = vcmp.eq.s32.totalorder %v11621_v16, %v4001_v61 }
0x22a9   : > { %v4013_v38 = vcvt.f32.s32 %v4012_v23  ;;  %v12817_v49 = vsel %vm4033_vm12, inf, %v12787_v43  ;;  %v9615_v50 = vsel %vm4033_vm12, 1.0, %v14414_v8  ;;  %vm4032_vm13 = vcmp.eq.s32.totalorder %v11621_v16, %v3986_v13 }
0x22aa   : > { %v4031_v45 = vadd.s32 %v4030_v48, %v4028_v5  ;;  %v4108_v6 = vsel %vm856_vm5, %v12817_v49, inf  ;;  %v12824_v37 = vsel %vm4032_vm13, inf, %v12789_v35  ;;  %v9614_v44 = vsel %vm4032_vm13, 1.0, %v14414_v8 }
0x22ab   : > { %v4016_v14 = vadd.s32 %v4015_v36, %v4013_v38  ;;  %4109 = vmin.xlane.f32.xlu1 %v4108_v6  ;;  %v4105_v3 = vsel %vm856_vm5, %v12824_v37, inf  ;;  %v4044_v43 = vpack.c.bf16 %v9615_v50, %v9614_v44 }
0x22ac   : > { %4106 = vmin.xlane.f32.xlu0 %v4105_v3  ;;  %vm4035_vm14 = vcmp.eq.s32.totalorder %v11621_v16, %v4031_v45 }
0x22ad   : > { %10098 = vmatprep.mubr.msk.bf16.mxu0 %vm856_vm5, %v4044_v43  ;;  %v12832_v27 = vsel %vm4035_vm14, inf, %v12795_v42  ;;  %v9617_v17 = vsel %vm4035_vm14, 1.0, %v14414_v8  ;;  %vm4034_vm8 = vcmp.eq.s32.totalorder %v11621_v16, %v4016_v14 }
0x22ae   : > { %v4114_v35 = vsel %vm856_vm5, %v12832_v27, inf  ;;  %v12839_v40 = vsel %vm4034_vm8, inf, %v12797_v30  ;;  %v9616_v47 = vsel %vm4034_vm8, 1.0, %v14414_v8 }
0x22af   : > { %4115 = vmin.xlane.f32.xlu1 %v4114_v35  ;;  %v4111_v10 = vsel %vm856_vm5, %v12839_v40, inf  ;;  %v4045_v34 = vpack.c.bf16 %v9617_v17, %v9616_v47 }
0x22b0   : > { %4112 = vmin.xlane.f32.xlu0 %v4111_v10 }
0x22b1   : > { %10099 = vmatmul.mubr.msk.bf16.vlgmr.msra.gmra.mrb[48].mxu0 %vm856_vm5, %v4045_v34 }
0x22b2   : > { %10111 = vmatpush3.bf16.msra.mxu0 %v12752_v31 }
0x22b3   : > { %10112 = vmatprep.subr.bf16.mxu0 %v12777_v56 }
0x22b6   : > { %10113 = vmatpush3.bf16.msra.mxu0 %v12777_v56 }
0x22b7   : > { %10126 = vmatprep.subr.bf16.mxu0 %v12752_v31 }
0x2338   : > { %v4110_v42 = vpop.xlane.xlu1 %4109 }
0x2339   : > { %vm4118_vm15 = vcmp.le.f32.partialorder %v12817_v49, %v4110_v42  ;;  %v4107_v30 = vpop.xlane.xlu0 %4106 }
0x233a   : > { %v4122_v32 = vsel %vm4118_vm15, %v11621_v16, 32  ;;  %vm4117_vm0 = vcmp.le.f32.partialorder %v12824_v37, %v4107_v30 }
0x233b   : > { %v4140_v20 = vsel %vm856_vm5, %v4122_v32, 2147483647  ;;  %v4121_v62 = vsel %vm4117_vm0, %v11621_v16, 32 }
0x233c   : > { %v4125_v57 = vsel %vm856_vm5, %v4121_v62, 2147483647  ;;  %v4116_v7 = vpop.xlane.xlu1 %4115  ;;  %v4142_v51 = vshra.s32 %v4140_v20, 16  ;;  %v4141_v3 = vand.u32 65535, %v4140_v20 }
0x233d   : > { %vm4120_vm1 = vcmp.le.f32.partialorder %v12832_v27, %v4116_v7  ;;  %v4113_v1 = vpop.xlane.xlu0 %4112  ;;  %v4127_v24 = vshra.s32 %v4125_v57, 16  ;;  %v4126_v43 = vand.u32 65535, %v4125_v57 }
0x233e   : > { %v4124_v33 = vsel %vm4120_vm1, %v11621_v16, 32  ;;  %vm4119_vm6 = vcmp.le.f32.partialorder %v12839_v40, %v4113_v1  ;;  %v4144_v61 = vcvt.s32.f32 %v4142_v51  ;;  %v4143_v35 = vcvt.s32.f32 %v4141_v3 }
0x233f   : > { %v4170_v13 = vsel %vm856_vm5, %v4124_v33, 2147483647  ;;  %v4123_v11 = vsel %vm4119_vm6, %v11621_v16, 32  ;;  %v4129_v48 = vcvt.s32.f32 %v4127_v24  ;;  %v4128_v34 = vcvt.s32.f32 %v4126_v43 }
0x2340   : > { %v4155_v36 = vsel %vm856_vm5, %v4123_v11, 2147483647  ;;  %4145 = vmin.xlane.f32.xlu1 %v4144_v61  ;;  %v4172_v5 = vshra.s32 %v4170_v13, 16  ;;  %v4171_v47 = vand.u32 65535, %v4170_v13 }
0x2341   : > { %4130 = vmin.xlane.f32.xlu0 %v4129_v48  ;;  %v4157_v23 = vshra.s32 %v4155_v36, 16  ;;  %v4156_v42 = vand.u32 65535, %v4155_v36 }
0x2342   : > { %v4174_v38 = vcvt.s32.f32 %v4172_v5  ;;  %v4173_v7 = vcvt.s32.f32 %v4171_v47 }
0x2343   : > { %v4159_v50 = vcvt.s32.f32 %v4157_v23  ;;  %v4158_v1 = vcvt.s32.f32 %v4156_v42 }
0x2344   : > { %4175 = vmin.xlane.f32.xlu1 %v4174_v38 }
0x2345   : > { %4160 = vmin.xlane.f32.xlu0 %v4159_v50 }
0x2384   : > { %v12861_v45 = vpop.f32.mrb[48].mxu0 }
0x2385   : > { %v12863_v6 = vpop.f32.mrb[49].mxu0 }
0x2386   : > { %v12865_v44 = vpop.f32.mrb[50].mxu0 }
0x2387   : > { %v12867_v14 = vpop.f32.mrb[51].mxu0 }
0x23cd   : > { %v4146_v17 = vpop.xlane.xlu1 %4145 }
0x23ce   : > { %v4131_v10 = vpop.xlane.xlu0 %4130  ;;  %vm4147_vm9 = vcmp.eq.f32.partialorder %v4144_v61, %v4146_v17  ;;  %v4152_v57 = vcvt.f32.s32 %v4146_v17 }
0x23cf   : > { %v4148_v30 = vsel %vm4147_vm9, %v4143_v35, inf  ;;  %vm4132_vm10 = vcmp.eq.f32.partialorder %v4129_v48, %v4131_v10  ;;  %v4137_v33 = vcvt.f32.s32 %v4131_v10 }
0x23d0   : > { %4149 = vmin.xlane.f32.xlu1 %v4148_v30  ;;  %v4133_v32 = vsel %vm4132_vm10, %v4128_v34, inf  ;;  %v4153_v13 = vshll.u32 %v4152_v57, 16 }
0x23d1   : > { %v4176_v62 = vpop.xlane.xlu1 %4175  ;;  %4134 = vmin.xlane.f32.xlu0 %v4133_v32  ;;  %v4138_v23 = vshll.u32 %v4137_v33, 16 }
0x23d2   : > { %v4161_v51 = vpop.xlane.xlu0 %4160  ;;  %vm4177_vm11 = vcmp.eq.f32.partialorder %v4174_v38, %v4176_v62  ;;  %v4182_v11 = vcvt.f32.s32 %v4176_v62 }
0x23d3   : > { %v4178_v24 = vsel %vm4177_vm11, %v4173_v7, inf  ;;  %vm4162_vm12 = vcmp.eq.f32.partialorder %v4159_v50, %v4161_v51  ;;  %v4167_v36 = vcvt.f32.s32 %v4161_v51 }
0x23d4   : > { %4179 = vmin.xlane.f32.xlu1 %v4178_v24  ;;  %v4163_v20 = vsel %vm4162_vm12, %v4158_v1, inf  ;;  %v4183_v38 = vshll.u32 %v4182_v11, 16 }
0x23d5   : > { %4164 = vmin.xlane.f32.xlu0 %v4163_v20  ;;  %v4168_v34 = vshll.u32 %v4167_v36, 16 }
0x245d   : > { %v4150_v61 = vpop.xlane.xlu1 %4149 }
0x245e   : > { %v4151_v48 = vcvt.f32.s32 %v4150_v61  ;;  %v4135_v5 = vpop.xlane.xlu0 %4134 }
0x245f   : > { %v4136_v3 = vcvt.f32.s32 %v4135_v5 }
0x2460   : > { %v4154_v43 = vadd.s32 %v4153_v13, %v4151_v48 }
0x2461   : > { %v4139_v35 = vadd.s32 %v4138_v23, %v4136_v3  ;;  %v4180_v47 = vpop.xlane.xlu1 %4179 }
0x2462   : > { %v4181_v42 = vcvt.f32.s32 %v4180_v47  ;;  %v4165_v50 = vpop.xlane.xlu0 %4164  ;;  %vm4186_vm13 = vcmp.eq.s32.totalorder %v11621_v16, %v4154_v43 }
0x2463   : > { %v4166_v30 = vcvt.f32.s32 %v4165_v50  ;;  %v12871_v17 = vsel %vm4186_vm13, inf, %v12817_v49  ;;  %v9621_v10 = vsel %vm4186_vm13, 1.0, %v14414_v8  ;;  %vm4185_vm14 = vcmp.eq.s32.totalorder %v11621_v16, %v4139_v35 }
0x2464   : > { %v4184_v32 = vadd.s32 %v4183_v38, %v4181_v42  ;;  %v4265_v62 = vsel %vm856_vm5, %v12871_v17, inf  ;;  %v12878_v7 = vsel %vm4185_vm14, inf, %v12824_v37  ;;  %v9620_v51 = vsel %vm4185_vm14, 1.0, %v14414_v8 }
0x2465   : > { %v4169_v1 = vadd.s32 %v4168_v34, %v4166_v30  ;;  %4266 = vmin.xlane.f32.xlu1 %v4265_v62  ;;  %v4262_v24 = vsel %vm856_vm5, %v12878_v7, inf  ;;  %v4197_v49 = vpack.c.bf16 %v9621_v10, %v9620_v51 }
0x2466   : > { %4263 = vmin.xlane.f32.xlu0 %v4262_v24  ;;  %vm4188_vm8 = vcmp.eq.s32.totalorder %v11621_v16, %v4184_v32 }
0x2467   : > { %10106 = vmatprep.mubr.msk.bf16.mxu1 %vm856_vm5, %v4197_v49  ;;  %v12886_v20 = vsel %vm4188_vm8, inf, %v12832_v27  ;;  %v9623_v57 = vsel %vm4188_vm8, 1.0, %v14414_v8  ;;  %vm4187_vm15 = vcmp.eq.s32.totalorder %v11621_v16, %v4169_v1 }
0x2468   : > { %v4271_v37 = vsel %vm856_vm5, %v12886_v20, inf  ;;  %v12893_v33 = vsel %vm4187_vm15, inf, %v12839_v40  ;;  %v9622_v61 = vsel %vm4187_vm15, 1.0, %v14414_v8 }
0x2469   : > { %4272 = vmin.xlane.f32.xlu1 %v4271_v37  ;;  %v4268_v13 = vsel %vm856_vm5, %v12893_v33, inf  ;;  %v4198_v11 = vpack.c.bf16 %v9623_v57, %v9622_v61 }
0x246a   : > { %4269 = vmin.xlane.f32.xlu0 %v4268_v13 }
0x246b   : > { %10107 = vmatmul.mubr.msk.bf16.vlgmr.msra.gmra.mrb[44].mxu1 %vm856_vm5, %v4198_v11 }
0x246c   : > { %10119 = vmatpush3.bf16.msra.mxu1 %v12752_v31 }
0x246d   : > { %10120 = vmatprep.subr.bf16.mxu1 %v12777_v56 }
0x2470   : > { %10121 = vmatpush3.bf16.msra.mxu1 %v12777_v56 }
0x2471   : > { %10134 = vmatprep.subr.bf16.mxu1 %v12752_v31 }
0x24f2   : > { %v4267_v27 = vpop.xlane.xlu1 %4266 }
0x24f3   : > { %vm4275_vm0 = vcmp.le.f32.partialorder %v12871_v17, %v4267_v27  ;;  %v4264_v40 = vpop.xlane.xlu0 %4263 }
0x24f4   : > { %v4279_v36 = vsel %vm4275_vm0, %v11621_v16, 32  ;;  %vm4274_vm1 = vcmp.le.f32.partialorder %v12878_v7, %v4264_v40 }
0x24f5   : > { %v4297_v48 = vsel %vm856_vm5, %v4279_v36, 2147483647  ;;  %v4278_v5 = vsel %vm4274_vm1, %v11621_v16, 32 }
0x24f6   : > { %v4282_v23 = vsel %vm856_vm5, %v4278_v5, 2147483647  ;;  %v4273_v3 = vpop.xlane.xlu1 %4272  ;;  %v4299_v43 = vshra.s32 %v4297_v48, 16  ;;  %v4298_v40 = vand.u32 65535, %v4297_v48 }
0x24f7   : > { %vm4277_vm6 = vcmp.le.f32.partialorder %v12886_v20, %v4273_v3  ;;  %v4270_v35 = vpop.xlane.xlu0 %4269  ;;  %v4284_v47 = vshra.s32 %v4282_v23, 16  ;;  %v4283_v36 = vand.u32 65535, %v4282_v23 }
0x24f8   : > { %v4281_v38 = vsel %vm4277_vm6, %v11621_v16, 32  ;;  %vm4276_vm9 = vcmp.le.f32.partialorder %v12893_v33, %v4270_v35  ;;  %v4301_v34 = vcvt.s32.f32 %v4299_v43  ;;  %v4300_v3 = vcvt.s32.f32 %v4298_v40 }
0x24f9   : > { %v4327_v42 = vsel %vm856_vm5, %v4281_v38, 2147483647  ;;  %v4280_v50 = vsel %vm4276_vm9, %v11621_v16, 32  ;;  %v4286_v30 = vcvt.s32.f32 %v4284_v47  ;;  %v4285_v47 = vcvt.s32.f32 %v4283_v36 }
0x24fa   : > { %v4312_v10 = vsel %vm856_vm5, %v4280_v50, 2147483647  ;;  %4302 = vmin.xlane.f32.xlu1 %v4301_v34  ;;  %v4329_v32 = vshra.s32 %v4327_v42, 16  ;;  %v4328_v43 = vand.u32 65535, %v4327_v42 }
0x24fb   : > { %4287 = vmin.xlane.f32.xlu0 %v4286_v30  ;;  %v4314_v62 = vshra.s32 %v4312_v10, 16  ;;  %v4313_v38 = vand.u32 65535, %v4312_v10 }
0x24fc   : > { %v4331_v51 = vcvt.s32.f32 %v4329_v32  ;;  %v4330_v12 = vcvt.s32.f32 %v4328_v43 }
0x24fd   : > { %v4316_v1 = vcvt.s32.f32 %v4314_v62  ;;  %v4315_v55 = vcvt.s32.f32 %v4313_v38 }
0x24fe   : > { %4332 = vmin.xlane.f32.xlu1 %v4331_v51 }
0x24ff   : > { %4317 = vmin.xlane.f32.xlu0 %v4316_v1 }
0x253e   : > { %v12915_v24 = vpop.f32.mrb[44].mxu1 }
0x253f   : > { %v4260_v49 = vmax.f32 %v12861_v45, %v12915_v24  ;;  %v12919_v57 = vpop.f32.mrb[45].mxu1 }
0x2540   : > { %v4258_v37 = vmax.f32 %v12863_v6, %v12919_v57  ;;  %v12923_v61 = vpop.f32.mrb[46].mxu1 }
0x2541   : > { %v4261_v13 = vmax.f32 %v12865_v44, %v12923_v61  ;;  %v12927_v11 = vpop.f32.mrb[47].mxu1 }
0x2587   : > { %v4303_v5 = vpop.xlane.xlu1 %4302 }
0x2588   : > { %v4288_v35 = vpop.xlane.xlu0 %4287  ;;  %vm4304_vm10 = vcmp.eq.f32.partialorder %v4301_v34, %v4303_v5  ;;  %v4309_v23 = vcvt.f32.s32 %v4303_v5 }
0x2589   : > { %v4305_v50 = vsel %vm4304_vm10, %v4300_v3, inf  ;;  %vm4289_vm11 = vcmp.eq.f32.partialorder %v4286_v30, %v4288_v35  ;;  %v4294_v42 = vcvt.f32.s32 %v4288_v35 }
0x258a   : > { %4306 = vmin.xlane.f32.xlu1 %v4305_v50  ;;  %v4290_v32 = vsel %vm4289_vm11, %v4285_v47, inf  ;;  %v4310_v40 = vshll.u32 %v4309_v23, 16 }
0x258b   : > { %v4333_v62 = vpop.xlane.xlu1 %4332  ;;  %4291 = vmin.xlane.f32.xlu0 %v4290_v32  ;;  %v4295_v47 = vshll.u32 %v4294_v42, 16 }
0x258c   : > { %v4318_v54 = vpop.xlane.xlu0 %4317  ;;  %vm4334_vm12 = vcmp.eq.f32.partialorder %v4331_v51, %v4333_v62  ;;  %v4339_v10 = vcvt.f32.s32 %v4333_v62 }
0x258d   : > { %v4335_v0 = vsel %vm4334_vm12, %v4330_v12, inf  ;;  %vm4319_vm13 = vcmp.eq.f32.partialorder %v4316_v1, %v4318_v54  ;;  %v4324_v36 = vcvt.f32.s32 %v4318_v54 }
0x258e   : > { %4336 = vmin.xlane.f32.xlu1 %v4335_v0  ;;  %v4320_v48 = vsel %vm4319_vm13, %v4315_v55, inf  ;;  %v4340_v51 = vshll.u32 %v4339_v10, 16 }
0x258f   : > { %4321 = vmin.xlane.f32.xlu0 %v4320_v48  ;;  %v4325_v38 = vshll.u32 %v4324_v36, 16 }
0x2617   : > { %v4307_v34 = vpop.xlane.xlu1 %4306 }
0x2618   : > { %v4308_v30 = vcvt.f32.s32 %v4307_v34  ;;  %v4292_v3 = vpop.xlane.xlu0 %4291 }
0x2619   : > { %v4293_v50 = vcvt.f32.s32 %v4292_v3 }
0x261a   : > { %v4311_v32 = vadd.s32 %v4310_v40, %v4308_v30 }
0x261b   : > { %v4296_v43 = vadd.s32 %v4295_v47, %v4293_v50  ;;  %v4337_v27 = vpop.xlane.xlu1 %4336 }
0x261c   : > { %v4338_v12 = vcvt.f32.s32 %v4337_v27  ;;  %v4322_v1 = vpop.xlane.xlu0 %4321  ;;  %vm4343_vm14 = vcmp.eq.s32.totalorder %v11621_v16, %v4311_v32 }
0x261d   : > { %v4323_v55 = vcvt.f32.s32 %v4322_v1  ;;  %v12933_v0 = vsel %vm4343_vm14, inf, %v12871_v17  ;;  %v9627_v5 = vsel %vm4343_vm14, 1.0, %v14414_v8  ;;  %vm4342_vm8 = vcmp.eq.s32.totalorder %v11621_v16, %v4296_v43 }
0x261e   : > { %v4341_v54 = vadd.s32 %v4340_v51, %v4338_v12  ;;  %v4422_v35 = vsel %vm856_vm5, %v12933_v0, inf  ;;  %v12940_v62 = vsel %vm4342_vm8, inf, %v12878_v7  ;;  %v9626_v27 = vsel %vm4342_vm8, 1.0, %v14414_v8 }
0x261f   : > { %v4326_v48 = vadd.s32 %v4325_v38, %v4323_v55  ;;  %4423 = vmin.xlane.f32.xlu1 %v4422_v35  ;;  %v4419_v23 = vsel %vm856_vm5, %v12940_v62, inf  ;;  %v4354_v17 = vpack.c.bf16 %v9627_v5, %v9626_v27 }
0x2620   : > { %4420 = vmin.xlane.f32.xlu0 %v4419_v23  ;;  %vm4345_vm15 = vcmp.eq.s32.totalorder %v11621_v16, %v4341_v54 }
0x2621   : > { %10114 = vmatprep.mubr.msk.bf16.mxu0 %vm856_vm5, %v4354_v17  ;;  %v12948_v42 = vsel %vm4345_vm15, inf, %v12886_v20  ;;  %v9629_v34 = vsel %vm4345_vm15, 1.0, %v14414_v8  ;;  %vm4344_vm0 = vcmp.eq.s32.totalorder %v11621_v16, %v4326_v48 }
0x2622   : > { %v4428_v7 = vsel %vm856_vm5, %v12948_v42, inf  ;;  %v12955_v40 = vsel %vm4344_vm0, inf, %v12893_v33  ;;  %v9628_v10 = vsel %vm4344_vm0, 1.0, %v14414_v8 }
0x2623   : > { %4429 = vmin.xlane.f32.xlu1 %v4428_v7  ;;  %v4425_v36 = vsel %vm856_vm5, %v12955_v40, inf  ;;  %v4355_v30 = vpack.c.bf16 %v9629_v34, %v9628_v10 }
0x2624   : > { %4426 = vmin.xlane.f32.xlu0 %v4425_v36 }
0x2625   : > { %10115 = vmatmul.mubr.msk.bf16.vlgmr.msra.gmra.mrb[52].mxu0 %vm856_vm5, %v4355_v30 }
0x2626   : > { %10127 = vmatpush3.bf16.msra.mxu0 %v12752_v31 }
0x2627   : > { %10128 = vmatprep.subr.bf16.mxu0 %v12777_v56 }
0x262a   : > { %10129 = vmatpush3.bf16.msra.mxu0 %v12777_v56 }
0x262b   : > { %10142 = vmatprep.subr.bf16.mxu0 %v12752_v31 }
0x26ac   : > { %v4424_v20 = vpop.xlane.xlu1 %4423 }
0x26ad   : > { %vm4432_vm1 = vcmp.le.f32.partialorder %v12933_v0, %v4424_v20  ;;  %v4421_v33 = vpop.xlane.xlu0 %4420 }
0x26ae   : > { %v4436_v3 = vsel %vm4432_vm1, %v11621_v16, 32  ;;  %vm4431_vm6 = vcmp.le.f32.partialorder %v12940_v62, %v4421_v33 }
0x26af   : > { %v4454_v47 = vsel %vm856_vm5, %v4436_v3, 2147483647  ;;  %v4435_v50 = vsel %vm4431_vm6, %v11621_v16, 32 }
0x26b0   : > { %v4439_v32 = vsel %vm856_vm5, %v4435_v50, 2147483647  ;;  %v4430_v43 = vpop.xlane.xlu1 %4429  ;;  %v4456_v51 = vshra.s32 %v4454_v47, 16  ;;  %v14429_v50 = vmax.f32 %v12867_v14, %v12927_v11  ;;  %v4455_v45 = vand.u32 65535, %v4454_v47 }
0x26b1   : > { %vm4434_vm9 = vcmp.le.f32.partialorder %v12948_v42, %v4430_v43  ;;  %v4427_v38 = vpop.xlane.xlu0 %4426  ;;  %v4441_v12 = vshra.s32 %v4439_v32, 16  ;;  %v4440_v24 = vand.u32 65535, %v4439_v32 }
0x26b2   : > { %v4438_v1 = vsel %vm4434_vm9, %v11621_v16, 32  ;;  %vm4433_vm10 = vcmp.le.f32.partialorder %v12955_v40, %v4427_v38  ;;  %v4458_v55 = vcvt.s32.f32 %v4456_v51  ;;  %v4457_v51 = vcvt.s32.f32 %v4455_v45 }
0x26b3   : > { %v4484_v5 = vsel %vm856_vm5, %v4438_v1, 2147483647  ;;  %v4437_v54 = vsel %vm4433_vm10, %v11621_v16, 32  ;;  %v4443_v35 = vcvt.s32.f32 %v4441_v12  ;;  %v4442_v57 = vcvt.s32.f32 %v4440_v24 }
0x26b4   : > { %v4469_v27 = vsel %vm856_vm5, %v4437_v54, 2147483647  ;;  %4459 = vmin.xlane.f32.xlu1 %v4458_v55  ;;  %v4486_v48 = vshra.s32 %v4484_v5, 16  ;;  %v4485_v38 = vand.u32 65535, %v4484_v5 }
0x26b5   : > { %4444 = vmin.xlane.f32.xlu0 %v4443_v35  ;;  %v4471_v23 = vshra.s32 %v4469_v27, 16 }
0x26b6   : > { %v4488_v17 = vcvt.s32.f32 %v4486_v48 }
0x26b7   : > { %v4473_v34 = vcvt.s32.f32 %v4471_v23 }
0x26b8   : > { %4489 = vmin.xlane.f32.xlu1 %v4488_v17 }
0x26b9   : > { %4474 = vmin.xlane.f32.xlu0 %v4473_v34 }
0x26f8   : > { %v10116_v7 = vpop.f32.mrb[52].mxu0 }
0x26f9   : > { %v12980_v10 = vmax.f32 %v4260_v49, %v10116_v7  ;;  %v4396_v36 = vpop.f32.mrb[53].mxu0 }
0x26fa   : > { %v12985_v30 = vmax.f32 %v4258_v37, %v4396_v36  ;;  %v10117_v20 = vpop.f32.mrb[54].mxu0  ;;  %v4470_v37 = vand.u32 65535, %v4469_v27 }
0x26fb   : > { %v12990_v33 = vmax.f32 %v4261_v13, %v10117_v20  ;;  %v4399_v3 = vpop.f32.mrb[55].mxu0  ;;  %v4487_v13 = vcvt.s32.f32 %v4485_v38 }
0x26fc   : > { %v12995_v43 = vmax.f32 %v14429_v50, %v4399_v3  ;;  %v4472_v14 = vcvt.s32.f32 %v4470_v37 }
0x2741   : > { %v4460_v49 = vpop.xlane.xlu1 %4459 }
0x2742   : > { %v4445_v6 = vpop.xlane.xlu0 %4444  ;;  %vm4461_vm11 = vcmp.eq.f32.partialorder %v4458_v55, %v4460_v49  ;;  %v4466_v32 = vcvt.f32.s32 %v4460_v49 }
0x2743   : > { %v4462_v12 = vsel %vm4461_vm11, %v4457_v51, inf  ;;  %vm4446_vm12 = vcmp.eq.f32.partialorder %v4443_v35, %v4445_v6  ;;  %v4451_v5 = vcvt.f32.s32 %v4445_v6 }
0x2744   : > { %4463 = vmin.xlane.f32.xlu1 %v4462_v12  ;;  %v4447_v44 = vsel %vm4446_vm12, %v4442_v57, inf  ;;  %v4467_v54 = vshll.u32 %v4466_v32, 16 }
0x2745   : > { %v4490_v61 = vpop.xlane.xlu1 %4489  ;;  %4448 = vmin.xlane.f32.xlu0 %v4447_v44  ;;  %v4452_v7 = vshll.u32 %v4451_v5, 16 }
0x2746   : > { %v4475_v1 = vpop.xlane.xlu0 %4474  ;;  %vm4491_vm13 = vcmp.eq.f32.partialorder %v4488_v17, %v4490_v61  ;;  %v4496_v27 = vcvt.f32.s32 %v4490_v61 }
0x2747   : > { %v4492_v11 = vsel %vm4491_vm13, %v4487_v13, inf  ;;  %vm4476_vm14 = vcmp.eq.f32.partialorder %v4473_v34, %v4475_v1  ;;  %v4481_v48 = vcvt.f32.s32 %v4475_v1 }
0x2748   : > { %4493 = vmin.xlane.f32.xlu1 %v4492_v11  ;;  %v4477_v47 = vsel %vm4476_vm14, %v4472_v14, inf  ;;  %v4497_v17 = vshll.u32 %v4496_v27, 16 }
0x2749   : > { %4478 = vmin.xlane.f32.xlu0 %v4477_v47  ;;  %v4482_v45 = vshll.u32 %v4481_v48, 16 }
0x27d1   : > { %v4464_v55 = vpop.xlane.xlu1 %4463 }
0x27d2   : > { %v4465_v35 = vcvt.f32.s32 %v4464_v55  ;;  %v4449_v23 = vpop.xlane.xlu0 %4448 }
0x27d3   : > { %v4450_v36 = vcvt.f32.s32 %v4449_v23 }
0x27d4   : > { %v4468_v20 = vadd.s32 %v4467_v54, %v4465_v35 }
0x27d5   : > { %v4453_v3 = vadd.s32 %v4452_v7, %v4450_v36  ;;  %v4494_v50 = vpop.xlane.xlu1 %4493 }
0x27d6   : > { %v4495_v24 = vcvt.f32.s32 %v4494_v50  ;;  %v4479_v34 = vpop.xlane.xlu0 %4478  ;;  %vm4500_vm8 = vcmp.eq.s32.totalorder %v11621_v16, %v4468_v20 }
0x27d7   : > { %v4480_v51 = vcvt.f32.s32 %v4479_v34  ;;  %v12999_v49 = vsel %vm4500_vm8, inf, %v12933_v0  ;;  %v9633_v38 = vsel %vm4500_vm8, 1.0, %v14414_v8  ;;  %vm4499_vm15 = vcmp.eq.s32.totalorder %v11621_v16, %v4453_v3 }
0x27d8   : > { %v4498_v6 = vadd.s32 %v4497_v17, %v4495_v24  ;;  %v4579_v57 = vsel %vm856_vm5, %v12999_v49, inf  ;;  %v13006_v37 = vsel %vm4499_vm15, inf, %v12940_v62  ;;  %v9632_v12 = vsel %vm4499_vm15, 1.0, %v14414_v8 }
0x27d9   : > { %v4483_v44 = vadd.s32 %v4482_v45, %v4480_v51  ;;  %4580 = vmin.xlane.f32.xlu1 %v4579_v57  ;;  %v4576_v61 = vsel %vm856_vm5, %v13006_v37, inf  ;;  %v4511_v0 = vpack.c.bf16 %v9633_v38, %v9632_v12 }
0x27da   : > { %4577 = vmin.xlane.f32.xlu0 %v4576_v61  ;;  %vm4502_vm0 = vcmp.eq.s32.totalorder %v11621_v16, %v4498_v6 }
0x27db   : > { %10122 = vmatprep.mubr.msk.bf16.mxu1 %vm856_vm5, %v4511_v0  ;;  %v13014_v13 = vsel %vm4502_vm0, inf, %v12948_v42  ;;  %v9635_v1 = vsel %vm4502_vm0, 1.0, %v14414_v8  ;;  %vm4501_vm1 = vcmp.eq.s32.totalorder %v11621_v16, %v4483_v44 }
0x27dc   : > { %v4585_v62 = vsel %vm856_vm5, %v13014_v13, inf  ;;  %v13021_v14 = vsel %vm4501_vm1, inf, %v12955_v40  ;;  %v9634_v11 = vsel %vm4501_vm1, 1.0, %v14414_v8 }
0x27dd   : > { %4586 = vmin.xlane.f32.xlu1 %v4585_v62  ;;  %v4582_v47 = vsel %vm856_vm5, %v13021_v14, inf  ;;  %v4512_v32 = vpack.c.bf16 %v9635_v1, %v9634_v11 }
0x27de   : > { %4583 = vmin.xlane.f32.xlu0 %v4582_v47 }
0x27df   : > { %10123 = vmatmul.mubr.msk.bf16.vlgmr.msra.gmra.mrb[48].mxu1 %vm856_vm5, %v4512_v32 }
0x27e0   : > { %10135 = vmatpush3.bf16.msra.mxu1 %v12752_v31 }
0x27e1   : > { %10136 = vmatprep.subr.bf16.mxu1 %v12777_v56 }
0x27e4   : > { %10137 = vmatpush3.bf16.msra.mxu1 %v12777_v56 }
0x27e5   : > { %10150 = vmatprep.subr.bf16.mxu1 %v12752_v31 }
0x2866   : > { %v4581_v42 = vpop.xlane.xlu1 %4580 }
0x2867   : > { %vm4589_vm6 = vcmp.le.f32.partialorder %v12999_v49, %v4581_v42  ;;  %v4578_v40 = vpop.xlane.xlu0 %4577 }
0x2868   : > { %v4593_v5 = vsel %vm4589_vm6, %v11621_v16, 32  ;;  %vm4588_vm9 = vcmp.le.f32.partialorder %v13006_v37, %v4578_v40 }
0x2869   : > { %v4611_v55 = vsel %vm856_vm5, %v4593_v5, 2147483647  ;;  %v4592_v54 = vsel %vm4588_vm9, %v11621_v16, 32 }
0x286a   : > { %v4596_v27 = vsel %vm856_vm5, %v4592_v54, 2147483647  ;;  %v4587_v48 = vpop.xlane.xlu1 %4586  ;;  %v4613_v35 = vshra.s32 %v4611_v55, 16  ;;  %v4612_v11 = vand.u32 65535, %v4611_v55 }
0x286b   : > { %vm4591_vm10 = vcmp.le.f32.partialorder %v13014_v13, %v4587_v48  ;;  %v4584_v23 = vpop.xlane.xlu0 %4583  ;;  %v4598_v7 = vshra.s32 %v4596_v27, 16  ;;  %v4597_v47 = vand.u32 65535, %v4596_v27 }
0x286c   : > { %v4595_v36 = vsel %vm4591_vm10, %v11621_v16, 32  ;;  %vm4590_vm11 = vcmp.le.f32.partialorder %v13021_v14, %v4584_v23  ;;  %v4615_v20 = vcvt.s32.f32 %v4613_v35  ;;  %v4614_v42 = vcvt.s32.f32 %v4612_v11 }
0x286d   : > { %v4641_v3 = vsel %vm856_vm5, %v4595_v36, 2147483647  ;;  %v4594_v50 = vsel %vm4590_vm11, %v11621_v16, 32  ;;  %v4600_v17 = vcvt.s32.f32 %v4598_v7  ;;  %v4599_v54 = vcvt.s32.f32 %v4597_v47 }
0x286e   : > { %v4626_v45 = vsel %vm856_vm5, %v4594_v50, 2147483647  ;;  %4616 = vmin.xlane.f32.xlu1 %v4615_v20  ;;  %v4643_v24 = vshra.s32 %v4641_v3, 16  ;;  %v4642_v40 = vand.u32 65535, %v4641_v3 }
0x286f   : > { %4601 = vmin.xlane.f32.xlu0 %v4600_v17  ;;  %v4628_v34 = vshra.s32 %v4626_v45, 16  ;;  %v4627_v48 = vand.u32 65535, %v4626_v45 }
0x2870   : > { %v4645_v51 = vcvt.s32.f32 %v4643_v24  ;;  %v4644_v36 = vcvt.s32.f32 %v4642_v40 }
0x2871   : > { %v4630_v38 = vcvt.s32.f32 %v4628_v34  ;;  %v4629_v24 = vcvt.s32.f32 %v4627_v48 }
0x2872   : > { %4646 = vmin.xlane.f32.xlu1 %v4645_v51 }
0x2873   : > { %4631 = vmin.xlane.f32.xlu0 %v4630_v38 }
0x28b2   : > { %v13043_v6 = vpop.f32.mrb[48].mxu1 }
0x28b3   : > { %v4574_v57 = vmax.f32 %v12980_v10, %v13043_v6  ;;  %v13047_v12 = vpop.f32.mrb[49].mxu1 }
0x28b4   : > { %v4572_v44 = vmax.f32 %v12985_v30, %v13047_v12  ;;  %v13051_v61 = vpop.f32.mrb[50].mxu1 }
0x28b5   : > { %v4575_v0 = vmax.f32 %v12990_v33, %v13051_v61  ;;  %v13055_v1 = vpop.f32.mrb[51].mxu1 }
0x28fb   : > { %v4617_v32 = vpop.xlane.xlu1 %4616 }
0x28fc   : > { %v4602_v5 = vpop.xlane.xlu0 %4601  ;;  %vm4618_vm12 = vcmp.eq.f32.partialorder %v4615_v20, %v4617_v32  ;;  %v4623_v27 = vcvt.f32.s32 %v4617_v32 }
0x28fd   : > { %v4619_v35 = vsel %vm4618_vm12, %v4614_v42, inf  ;;  %vm4603_vm13 = vcmp.eq.f32.partialorder %v4600_v17, %v4602_v5  ;;  %v4608_v3 = vcvt.f32.s32 %v4602_v5 }
0x28fe   : > { %4620 = vmin.xlane.f32.xlu1 %v4619_v35  ;;  %v4604_v23 = vsel %vm4603_vm13, %v4599_v54, inf  ;;  %v4624_v11 = vshll.u32 %v4623_v27, 16 }
0x28ff   : > { %v4647_v7 = vpop.xlane.xlu1 %4646  ;;  %4605 = vmin.xlane.f32.xlu0 %v4604_v23  ;;  %v4609_v54 = vshll.u32 %v4608_v3, 16 }
0x2900   : > { %v4632_v50 = vpop.xlane.xlu0 %4631  ;;  %vm4648_vm14 = vcmp.eq.f32.partialorder %v4645_v51, %v4647_v7  ;;  %v4653_v45 = vcvt.f32.s32 %v4647_v7 }
0x2901   : > { %v4649_v34 = vsel %vm4648_vm14, %v4644_v36, inf  ;;  %vm4633_vm8 = vcmp.eq.f32.partialorder %v4630_v38, %v4632_v50  ;;  %v4638_v47 = vcvt.f32.s32 %v4632_v50 }
0x2902   : > { %4650 = vmin.xlane.f32.xlu1 %v4649_v34  ;;  %v4634_v55 = vsel %vm4633_vm8, %v4629_v24, inf  ;;  %v4654_v51 = vshll.u32 %v4653_v45, 16 }
0x2903   : > { %4635 = vmin.xlane.f32.xlu0 %v4634_v55  ;;  %v4639_v48 = vshll.u32 %v4638_v47, 16 }
0x298b   : > { %v4621_v20 = vpop.xlane.xlu1 %4620 }
0x298c   : > { %v4622_v17 = vcvt.f32.s32 %v4621_v20  ;;  %v4606_v42 = vpop.xlane.xlu0 %4605 }
0x298d   : > { %v4607_v35 = vcvt.f32.s32 %v4606_v42 }
0x298e   : > { %v4625_v23 = vadd.s32 %v4624_v11, %v4622_v17 }
0x298f   : > { %v4610_v40 = vadd.s32 %v4609_v54, %v4607_v35  ;;  %v4651_v62 = vpop.xlane.xlu1 %4650 }
0x2990   : > { %v4652_v36 = vcvt.f32.s32 %v4651_v62  ;;  %v4636_v38 = vpop.xlane.xlu0 %4635  ;;  %vm4657_vm15 = vcmp.eq.s32.totalorder %v11621_v16, %v4625_v23 }
0x2991   : > { %v4637_v24 = vcvt.f32.s32 %v4636_v38  ;;  %v13061_v32 = vsel %vm4657_vm15, inf, %v12999_v49  ;;  %v9639_v5 = vsel %vm4657_vm15, 1.0, %v14414_v8  ;;  %vm4656_vm0 = vcmp.eq.s32.totalorder %v11621_v16, %v4610_v40 }
0x2992   : > { %v4655_v7 = vadd.s32 %v4654_v51, %v4652_v36  ;;  %v4736_v50 = vsel %vm856_vm5, %v13061_v32, inf  ;;  %v13068_v34 = vsel %vm4656_vm0, inf, %v13006_v37  ;;  %v9638_v62 = vsel %vm4656_vm0, 1.0, %v14414_v8 }
0x2993   : > { %v4640_v55 = vadd.s32 %v4639_v48, %v4637_v24  ;;  %4737 = vmin.xlane.f32.xlu1 %v4736_v50  ;;  %v4733_v27 = vsel %vm856_vm5, %v13068_v34, inf  ;;  %v4668_v49 = vpack.c.bf16 %v9639_v5, %v9638_v62 }
0x2994   : > { %4734 = vmin.xlane.f32.xlu0 %v4733_v27  ;;  %vm4659_vm1 = vcmp.eq.s32.totalorder %v11621_v16, %v4655_v7 }
0x2995   : > { %10130 = vmatprep.mubr.msk.bf16.mxu0 %vm856_vm5, %v4668_v49  ;;  %v13076_v3 = vsel %vm4659_vm1, inf, %v13014_v13  ;;  %v9641_v20 = vsel %vm4659_vm1, 1.0, %v14414_v8  ;;  %vm4658_vm6 = vcmp.eq.s32.totalorder %v11621_v16, %v4640_v55 }
0x2996   : > { %v4742_v37 = vsel %vm856_vm5, %v13076_v3, inf  ;;  %v13083_v11 = vsel %vm4658_vm6, inf, %v13021_v14  ;;  %v9640_v45 = vsel %vm4658_vm6, 1.0, %v14414_v8 }
0x2997   : > { %4743 = vmin.xlane.f32.xlu1 %v4742_v37  ;;  %v4739_v47 = vsel %vm856_vm5, %v13083_v11, inf  ;;  %v4669_v17 = vpack.c.bf16 %v9641_v20, %v9640_v45 }
0x2998   : > { %4740 = vmin.xlane.f32.xlu0 %v4739_v47 }
0x2999   : > { %10131 = vmatmul.mubr.msk.bf16.vlgmr.msra.gmra.mrb[56].mxu0 %vm856_vm5, %v4669_v17 }
0x299a   : > { %10143 = vmatpush3.bf16.msra.mxu0 %v12752_v31 }
0x299b   : > { %10144 = vmatprep.subr.bf16.mxu0 %v12777_v56 }
0x299e   : > { %10145 = vmatpush3.bf16.msra.mxu0 %v12777_v56 }
0x2a20   : > { %v4738_v13 = vpop.xlane.xlu1 %4737 }
0x2a21   : > { %vm4746_vm9 = vcmp.le.f32.partialorder %v13061_v32, %v4738_v13  ;;  %v4735_v14 = vpop.xlane.xlu0 %4734 }
0x2a22   : > { %v4750_v42 = vsel %vm4746_vm9, %v11621_v16, 32  ;;  %vm4745_vm10 = vcmp.le.f32.partialorder %v13068_v34, %v4735_v14 }
0x2a23   : > { %v4768_v54 = vsel %vm856_vm5, %v4750_v42, 2147483647  ;;  %v4749_v35 = vsel %vm4745_vm10, %v11621_v16, 32 }
0x2a24   : > { %v4753_v23 = vsel %vm856_vm5, %v4749_v35, 2147483647  ;;  %v4744_v40 = vpop.xlane.xlu1 %4743  ;;  %v4770_v51 = vshra.s32 %v4768_v54, 16  ;;  %v14430_v35 = vmax.f32 %v12995_v43, %v13055_v1  ;;  %v4769_v10 = vand.u32 65535, %v4768_v54 }
0x2a25   : > { %vm4748_vm11 = vcmp.le.f32.partialorder %v13076_v3, %v4744_v40  ;;  %v4741_v48 = vpop.xlane.xlu0 %4740  ;;  %v4755_v36 = vshra.s32 %v4753_v23, 16  ;;  %v4754_v6 = vand.u32 65535, %v4753_v23 }
0x2a26   : > { %v4752_v38 = vsel %vm4748_vm11, %v11621_v16, 32  ;;  %vm4747_vm12 = vcmp.le.f32.partialorder %v13083_v11, %v4741_v48  ;;  %v4772_v24 = vcvt.s32.f32 %v4770_v51  ;;  %v4771_v51 = vcvt.s32.f32 %v4769_v10 }
0x2a27   : > { %v4798_v5 = vsel %vm856_vm5, %v4752_v38, 2147483647  ;;  %v4751_v7 = vsel %vm4747_vm12, %v11621_v16, 32  ;;  %v4757_v50 = vcvt.s32.f32 %v4755_v36  ;;  %v4756_v12 = vcvt.s32.f32 %v4754_v6 }
0x2a28   : > { %v4783_v62 = vsel %vm856_vm5, %v4751_v7, 2147483647  ;;  %4773 = vmin.xlane.f32.xlu1 %v4772_v24  ;;  %v4800_v55 = vshra.s32 %v4798_v5, 16  ;;  %v4799_v48 = vand.u32 65535, %v4798_v5 }
0x2a29   : > { %4758 = vmin.xlane.f32.xlu0 %v4757_v50  ;;  %v4785_v27 = vshra.s32 %v4783_v62, 16 }
0x2a2a   : > { %v4802_v49 = vcvt.s32.f32 %v4800_v55 }
0x2a2b   : > { %v4787_v20 = vcvt.s32.f32 %v4785_v27 }
0x2a2c   : > { %4803 = vmin.xlane.f32.xlu1 %v4802_v49 }
0x2a2d   : > { %4788 = vmin.xlane.f32.xlu0 %v4787_v20 }
0x2a6c   : > { %v10132_v37 = vpop.f32.mrb[56].mxu0 }
0x2a6d   : > { %v13107_v45 = vmax.f32 %v4574_v57, %v10132_v37  ;;  %v4710_v47 = vpop.f32.mrb[57].mxu0 }
0x2a6e   : > { %v13112_v17 = vmax.f32 %v4572_v44, %v4710_v47  ;;  %v10133_v13 = vpop.f32.mrb[58].mxu0  ;;  %v4784_v44 = vand.u32 65535, %v4783_v62 }
0x2a6f   : > { %v13117_v14 = vmax.f32 %v4575_v0, %v10133_v13  ;;  %v4713_v42 = vpop.f32.mrb[59].mxu0  ;;  %v4801_v0 = vcvt.s32.f32 %v4799_v48 }
0x2a70   : > { %v13122_v40 = vmax.f32 %v14430_v35, %v4713_v42  ;;  %v4786_v43 = vcvt.s32.f32 %v4784_v44 }
0x2ab5   : > { %v4774_v57 = vpop.xlane.xlu1 %4773 }
0x2ab6   : > { %v4759_v30 = vpop.xlane.xlu0 %4758  ;;  %vm4775_vm13 = vcmp.eq.f32.partialorder %v4772_v24, %v4774_v57  ;;  %v4780_v23 = vcvt.f32.s32 %v4774_v57 }
0x2ab7   : > { %v4776_v36 = vsel %vm4775_vm13, %v4771_v51, inf  ;;  %vm4760_vm14 = vcmp.eq.f32.partialorder %v4757_v50, %v4759_v30  ;;  %v4765_v5 = vcvt.f32.s32 %v4759_v30 }
0x2ab8   : > { %4777 = vmin.xlane.f32.xlu1 %v4776_v36  ;;  %v4761_v33 = vsel %vm4760_vm14, %v4756_v12, inf  ;;  %v4781_v7 = vshll.u32 %v4780_v23, 16 }
0x2ab9   : > { %v4804_v61 = vpop.xlane.xlu1 %4803  ;;  %4762 = vmin.xlane.f32.xlu0 %v4761_v33  ;;  %v4766_v37 = vshll.u32 %v4765_v5, 16 }
0x2aba   : > { %v4789_v38 = vpop.xlane.xlu0 %4788  ;;  %vm4805_vm8 = vcmp.eq.f32.partialorder %v4802_v49, %v4804_v61  ;;  %v4810_v62 = vcvt.f32.s32 %v4804_v61 }
0x2abb   : > { %v4806_v1 = vsel %vm4805_vm8, %v4801_v0, inf  ;;  %vm4790_vm15 = vcmp.eq.f32.partialorder %v4787_v20, %v4789_v38  ;;  %v4795_v55 = vcvt.f32.s32 %v4789_v38 }
0x2abc   : > { %4807 = vmin.xlane.f32.xlu1 %v4806_v1  ;;  %v4791_v54 = vsel %vm4790_vm15, %v4786_v43, inf  ;;  %v4811_v49 = vshll.u32 %v4810_v62, 16 }
0x2abd   : > { %4792 = vmin.xlane.f32.xlu0 %v4791_v54  ;;  %v4796_v10 = vshll.u32 %v4795_v55, 16 }
0x2b45   : > { %v4778_v24 = vpop.xlane.xlu1 %4777 }
0x2b46   : > { %v4779_v50 = vcvt.f32.s32 %v4778_v24  ;;  %v4763_v27 = vpop.xlane.xlu0 %4762 }
0x2b47   : > { %v4764_v47 = vcvt.f32.s32 %v4763_v27 }
0x2b48   : > { %v4782_v13 = vadd.s32 %v4781_v7, %v4779_v50 }
0x2b49   : > { %v4767_v42 = vadd.s32 %v4766_v37, %v4764_v47  ;;  %v4808_v35 = vpop.xlane.xlu1 %4807 }
0x2b4a   : > { %v4809_v6 = vcvt.f32.s32 %v4808_v35  ;;  %v4793_v20 = vpop.xlane.xlu0 %4792  ;;  %vm4814_vm0 = vcmp.eq.s32.totalorder %v11621_v16, %v4782_v13 }
0x2b4b   : > { %v4794_v51 = vcvt.f32.s32 %v4793_v20  ;;  %v13126_v57 = vsel %vm4814_vm0, inf, %v13061_v32  ;;  %v9645_v48 = vsel %vm4814_vm0, 1.0, %v14414_v8  ;;  %vm4813_vm1 = vcmp.eq.s32.totalorder %v11621_v16, %v4767_v42 }
0x2b4c   : > { %v4812_v30 = vadd.s32 %v4811_v49, %v4809_v6  ;;  %v4893_v12 = vsel %vm856_vm5, %v13126_v57, inf  ;;  %v13133_v44 = vsel %vm4813_vm1, inf, %v13068_v34  ;;  %v9644_v36 = vsel %vm4813_vm1, 1.0, %v14414_v8 }
0x2b4d   : > { %v4797_v33 = vadd.s32 %v4796_v10, %v4794_v51  ;;  %4894 = vmin.xlane.f32.xlu1 %v4893_v12  ;;  %v4890_v61 = vsel %vm856_vm5, %v13133_v44, inf  ;;  %v4825_v32 = vpack.c.bf16 %v9645_v48, %v9644_v36 }
0x2b4e   : > { %4891 = vmin.xlane.f32.xlu0 %v4890_v61  ;;  %vm4816_vm6 = vcmp.eq.s32.totalorder %v11621_v16, %v4812_v30 }
0x2b4f   : > { %10138 = vmatprep.mubr.msk.bf16.mxu1 %vm856_vm5, %v4825_v32  ;;  %v13141_v0 = vsel %vm4816_vm6, inf, %v13076_v3  ;;  %v9647_v38 = vsel %vm4816_vm6, 1.0, %v14414_v8  ;;  %vm4815_vm9 = vcmp.eq.s32.totalorder %v11621_v16, %v4797_v33 }
0x2b50   : > { %v4899_v34 = vsel %vm856_vm5, %v13141_v0, inf  ;;  %v13148_v43 = vsel %vm4815_vm9, inf, %v13083_v11  ;;  %v9646_v1 = vsel %vm4815_vm9, 1.0, %v14414_v8 }
0x2b51   : > { %4900 = vmin.xlane.f32.xlu1 %v4899_v34  ;;  %v4896_v54 = vsel %vm856_vm5, %v13148_v43, inf  ;;  %v4826_v23 = vpack.c.bf16 %v9647_v38, %v9646_v1 }
0x2b52   : > { %4897 = vmin.xlane.f32.xlu0 %v4896_v54 }
0x2b53   : > { %10139 = vmatmul.mubr.msk.bf16.vlgmr.msra.gmra.mrb[52].mxu1 %vm856_vm5, %v4826_v23 }
0x2b54   : > { %10151 = vmatpush3.bf16.msra.mxu1 %v12752_v31 }
0x2b55   : > { %10152 = vmatprep.subr.bf16.mxu1 %v12777_v56 }
0x2b58   : > { %10153 = vmatpush3.bf16.msra.mxu1 %v12777_v56 }
0x2bda   : > { %v4895_v3 = vpop.xlane.xlu1 %4894 }
0x2bdb   : > { %vm4903_vm10 = vcmp.le.f32.partialorder %v13126_v57, %v4895_v3  ;;  %v4892_v11 = vpop.xlane.xlu0 %4891 }
0x2bdc   : > { %v4907_v5 = vsel %vm4903_vm10, %v11621_v16, 32  ;;  %vm4902_vm11 = vcmp.le.f32.partialorder %v13133_v44, %v4892_v11 }
0x2bdd   : > { %v4925_v24 = vsel %vm856_vm5, %v4907_v5, 2147483647  ;;  %v4906_v7 = vsel %vm4902_vm11, %v11621_v16, 32 }
0x2bde   : > { %v4910_v62 = vsel %vm856_vm5, %v4906_v7, 2147483647  ;;  %v4901_v55 = vpop.xlane.xlu1 %4900  ;;  %v4927_v31 = vshra.s32 %v4925_v24, 16  ;;  %v4926_v38 = vand.u32 65535, %v4925_v24 }
0x2bdf   : > { %vm4905_vm12 = vcmp.le.f32.partialorder %v13141_v0, %v4901_v55  ;;  %v4898_v50 = vpop.xlane.xlu0 %4897  ;;  %v4912_v56 = vshra.s32 %v4910_v62, 16  ;;  %v4911_v34 = vand.u32 65535, %v4910_v62 }
0x2be0   : > { %v4909_v27 = vsel %vm4905_vm12, %v11621_v16, 32  ;;  %vm4904_vm13 = vcmp.le.f32.partialorder %v13148_v43, %v4898_v50  ;;  %v4929_v37 = vcvt.s32.f32 %v4927_v31  ;;  %v4928_v54 = vcvt.s32.f32 %v4926_v38 }
0x2be1   : > { %v4955_v47 = vsel %vm856_vm5, %v4909_v27, 2147483647  ;;  %v4908_v13 = vsel %vm4904_vm13, %v11621_v16, 32  ;;  %v4914_v42 = vcvt.s32.f32 %v4912_v56  ;;  %v4913_v11 = vcvt.s32.f32 %v4911_v34 }
0x2be2   : > { %v4940_v35 = vsel %vm856_vm5, %v4908_v13, 2147483647  ;;  %4930 = vmin.xlane.f32.xlu1 %v4929_v37  ;;  %v4957_v49 = vshra.s32 %v4955_v47, 16  ;;  %v4956_v23 = vand.u32 65535, %v4955_v47 }
0x2be3   : > { %4915 = vmin.xlane.f32.xlu0 %v4914_v42  ;;  %v4942_v10 = vshra.s32 %v4940_v35, 16  ;;  %v4941_v5 = vand.u32 65535, %v4940_v35 }
0x2be4   : > { %v4959_v6 = vcvt.s32.f32 %v4957_v49  ;;  %v4958_v50 = vcvt.s32.f32 %v4956_v23 }
0x2be5   : > { %v4944_v20 = vcvt.s32.f32 %v4942_v10  ;;  %v4943_v27 = vcvt.s32.f32 %v4941_v5 }
0x2be6   : > { %4960 = vmin.xlane.f32.xlu1 %v4959_v6 }
0x2be7   : > { %4945 = vmin.xlane.f32.xlu0 %v4944_v20 }
0x2c26   : > { %v13169_v51 = vpop.f32.mrb[52].mxu1 }
0x2c27   : > { %v4888_v48 = vmax.f32 %v13107_v45, %v13169_v51  ;;  %v13173_v30 = vpop.f32.mrb[53].mxu1 }
0x2c28   : > { %v4886_v12 = vmax.f32 %v13112_v17, %v13173_v30  ;;  %v13177_v36 = vpop.f32.mrb[54].mxu1 }
0x2c29   : > { %v4889_v33 = vmax.f32 %v13117_v14, %v13177_v36  ;;  %v13181_v61 = vpop.f32.mrb[55].mxu1 }
0x2c2a   : > { %v4887_v32 = vmax.f32 %v13122_v40, %v13181_v61 }
0x2c6f   : > { %v4931_v1 = vpop.xlane.xlu1 %4930 }
0x2c70   : > { %v4916_v3 = vpop.xlane.xlu0 %4915  ;;  %vm4932_vm14 = vcmp.eq.f32.partialorder %v4929_v37, %v4931_v1  ;;  %v4937_v62 = vcvt.f32.s32 %v4931_v1 }
0x2c71   : > { %v4933_v7 = vsel %vm4932_vm14, %v4928_v54, inf  ;;  %vm4917_vm8 = vcmp.eq.f32.partialorder %v4914_v42, %v4916_v3  ;;  %v4922_v47 = vcvt.f32.s32 %v4916_v3 }
0x2c72   : > { %4934 = vmin.xlane.f32.xlu1 %v4933_v7  ;;  %v4918_v55 = vsel %vm4917_vm8, %v4913_v11, inf  ;;  %v4938_v49 = vshll.u32 %v4937_v62, 16 }
0x2c73   : > { %v4961_v31 = vpop.xlane.xlu1 %4960  ;;  %4919 = vmin.xlane.f32.xlu0 %v4918_v55  ;;  %v4923_v34 = vshll.u32 %v4922_v47, 16 }
0x2c74   : > { %v4946_v56 = vpop.xlane.xlu0 %4945  ;;  %vm4962_vm15 = vcmp.eq.f32.partialorder %v4959_v6, %v4961_v31  ;;  %v4967_v35 = vcvt.f32.s32 %v4961_v31 }
0x2c75   : > { %v4963_v13 = vsel %vm4962_vm15, %v4958_v50, inf  ;;  %vm4947_vm0 = vcmp.eq.f32.partialorder %v4944_v20, %v4946_v56  ;;  %v4952_v10 = vcvt.f32.s32 %v4946_v56 }
0x2c76   : > { %4964 = vmin.xlane.f32.xlu1 %v4963_v13  ;;  %v4948_v24 = vsel %vm4947_vm0, %v4943_v27, inf  ;;  %v4968_v6 = vshll.u32 %v4967_v35, 16 }
0x2c77   : > { %4949 = vmin.xlane.f32.xlu0 %v4948_v24  ;;  %v4953_v5 = vshll.u32 %v4952_v10, 16 }
0x2cff   : > { %v4935_v37 = vpop.xlane.xlu1 %4934 }
0x2d00   : > { %v4936_v42 = vcvt.f32.s32 %v4935_v37  ;;  %v4920_v38 = vpop.xlane.xlu0 %4919 }
0x2d01   : > { %v4921_v54 = vcvt.f32.s32 %v4920_v38 }
0x2d02   : > { %v4939_v11 = vadd.s32 %v4938_v49, %v4936_v42 }
0x2d03   : > { %v4924_v23 = vadd.s32 %v4923_v34, %v4921_v54  ;;  %v4965_v7 = vpop.xlane.xlu1 %4964 }
0x2d04   : > { %v4966_v55 = vcvt.f32.s32 %v4965_v7  ;;  %v4950_v20 = vpop.xlane.xlu0 %4949  ;;  %vm4971_vm1 = vcmp.eq.s32.totalorder %v11621_v16, %v4939_v11 }
0x2d05   : > { %v4951_v50 = vcvt.f32.s32 %v4950_v20  ;;  %v5040_v1 = vsel %vm4971_vm1, inf, %v13126_v57  ;;  %v9651_v3 = vsel %vm4971_vm1, 1.0, %v14414_v8  ;;  %vm4970_vm6 = vcmp.eq.s32.totalorder %v11621_v16, %v4924_v23 }
0x2d06   : > { %v4969_v31 = vadd.s32 %v4968_v6, %v4966_v55  ;;  %v5050_v56 = vsel %vm856_vm5, %v5040_v1, inf  ;;  %v5039_v27 = vsel %vm4970_vm6, inf, %v13133_v44  ;;  %v9650_v13 = vsel %vm4970_vm6, 1.0, %v14414_v8 }
0x2d07   : > { %v4954_v24 = vadd.s32 %v4953_v5, %v4951_v50  ;;  %5051 = vmin.xlane.f32.xlu1 %v5050_v56  ;;  %v5047_v62 = vsel %vm856_vm5, %v5039_v27, inf  ;;  %v4982_v47 = vpack.c.bf16 %v9651_v3, %v9650_v13 }
0x2d08   : > { %5048 = vmin.xlane.f32.xlu0 %v5047_v62  ;;  %vm4973_vm9 = vcmp.eq.s32.totalorder %v11621_v16, %v4969_v31 }
0x2d09   : > { %10146 = vmatprep.mubr.msk.bf16.mxu0 %vm856_vm5, %v4982_v47  ;;  %v5042_v57 = vsel %vm4973_vm9, inf, %v13141_v0  ;;  %v9653_v37 = vsel %vm4973_vm9, 1.0, %v14414_v8  ;;  %vm4972_vm10 = vcmp.eq.s32.totalorder %v11621_v16, %v4954_v24 }
0x2d0a   : > { %v5056_v44 = vsel %vm856_vm5, %v5042_v57, inf  ;;  %v5041_v49 = vsel %vm4972_vm10, inf, %v13148_v43  ;;  %v9652_v35 = vsel %vm4972_vm10, 1.0, %v14414_v8 }
0x2d0b   : > { %5057 = vmin.xlane.f32.xlu1 %v5056_v44  ;;  %v5053_v10 = vsel %vm856_vm5, %v5041_v49, inf  ;;  %v4983_v42 = vpack.c.bf16 %v9653_v37, %v9652_v35 }
0x2d0c   : > { %5054 = vmin.xlane.f32.xlu0 %v5053_v10 }
0x2d0d   : > { %10147 = vmatmul.mubr.msk.bf16.vlgmr.msra.gmra.mrb[60].mxu0 %vm856_vm5, %v4983_v42 }
0x2d0e   : > { %5337 = vmatprep.mubr.f32.mxu0 %v14414_v8 }
0x2d94   : > { %v5052_v0 = vpop.xlane.xlu1 %5051 }
0x2d95   : > { %vm5060_vm11 = vcmp.le.f32.partialorder %v5040_v1, %v5052_v0  ;;  %v5049_v38 = vpop.xlane.xlu0 %5048 }
0x2d96   : > { %v5064_v34 = vsel %vm5060_vm11, %v11621_v16, 32  ;;  %vm5059_vm12 = vcmp.le.f32.partialorder %v5039_v27, %v5049_v38 }
0x2d97   : > { %v5082_v54 = vsel %vm856_vm5, %v5064_v34, 2147483647  ;;  %v5063_v43 = vsel %vm5059_vm12, %v11621_v16, 32 }
0x2d98   : > { %v5067_v11 = vsel %vm856_vm5, %v5063_v43, 2147483647  ;;  %v5058_v23 = vpop.xlane.xlu1 %5057  ;;  %v5084_v7 = vshra.s32 %v5082_v54, 16  ;;  %v5083_v45 = vand.u32 65535, %v5082_v54  ;;  %v5209_v54 = vld [vmem:[#allocation5 + $0x8] sm:$0xff] }
0x2d99   : > { %vm5062_vm13 = vcmp.le.f32.partialorder %v5042_v57, %v5058_v23  ;;  %v5055_v6 = vpop.xlane.xlu0 %5054  ;;  %v5069_v5 = vshra.s32 %v5067_v11, 16  ;;  %v5068_v51 = vand.u32 65535, %v5067_v11  ;;  %v5213_v43 = vld [vmem:[#allocation5 + $0x28] sm:$0xff]  ;;  %v5208_v11 = vld [vmem:[#allocation5] sm:$0xff] }
0x2d9a   : > { %v5066_v55 = vsel %vm5062_vm13, %v11621_v16, 32  ;;  %vm5061_vm14 = vcmp.le.f32.partialorder %v5041_v49, %v5055_v6  ;;  %v5086_v20 = vcvt.s32.f32 %v5084_v7  ;;  %v5085_v42 = vcvt.s32.f32 %v5083_v45  ;;  %v5212_v7 = vld [vmem:[#allocation5 + $0x20] sm:$0xff]  ;;  %v5211_v6 = vld [vmem:[#allocation5 + $0x18] sm:$0xff]  ;;  %v5233_v45 = vld [vmem:[#allocation5 + $0xc8] sm:$0xff] }
0x2d9b   : > { %v5112_v50 = vsel %vm856_vm5, %v5066_v55, 2147483647  ;;  %v5065_v1 = vsel %vm5061_vm14, %v11621_v16, 32  ;;  %v5071_v3 = vcvt.s32.f32 %v5069_v5  ;;  %v10240_v23 = vpack.c.bf16 %v5213_v43, %v5209_v54  ;;  %v5215_v5 = vld [vmem:[#allocation5 + $0x38] sm:$0xff]  ;;  %v5249_v54 = vld [vmem:[#allocation5 + $0x148] sm:$0xff] }
0x2d9c   : > { %v5097_v31 = vsel %vm856_vm5, %v5065_v1, 2147483647  ;;  %5087 = vmin.xlane.f32.xlu1 %v5086_v20  ;;  %v5114_v56 = vshra.s32 %v5112_v50, 16  ;;  %v5113_v17 = vand.u32 65535, %v5112_v50  ;;  %v10242_v55 = vpack.c.bf16 %v5212_v7, %v5208_v11  ;;  %v5217_v50 = vld [vmem:[#allocation5 + $0x48] sm:$0xff]  ;;  %v5248_v11 = vld [vmem:[#allocation5 + $0x140] sm:$0xff] }
0x2d9d   : > { %5072 = vmin.xlane.f32.xlu0 %v5071_v3  ;;  %v5099_v27 = vshra.s32 %v5097_v31, 16  ;;  %v5098_v14 = vand.u32 65535, %v5097_v31  ;;  %10241 = vmatprep.subr.bf16.mxu0 %v10240_v23  ;;  %v5221_v1 = vld [vmem:[#allocation5 + $0x68] sm:$0xff]  ;;  %v5220_v31 = vld [vmem:[#allocation5 + $0x60] sm:$0xff] }
0x2d9e   : > { %v5116_v13 = vcvt.s32.f32 %v5114_v56  ;;  %v5115_v61 = vcvt.s32.f32 %v5113_v17  ;;  %10243 = vmatpush1.bf16.msra.mxu0 %v10242_v55  ;;  %v10244_v56 = vpack.c.bf16 %v5221_v1, %v5217_v50  ;;  %v5253_v43 = vld [vmem:[#allocation5 + $0x168] sm:$0xff]  ;;  %v5252_v7 = vld [vmem:[#allocation5 + $0x160] sm:$0xff] }
0x2d9f   : > { %v5101_v24 = vcvt.s32.f32 %v5099_v27  ;;  %v5100_v0 = vcvt.s32.f32 %v5098_v14  ;;  %v10260_v23 = vpack.c.bf16 %v5253_v43, %v5249_v54  ;;  %v5261_v55 = vld [vmem:[#allocation5 + $0x1a8] sm:$0xff] }
0x2da0   : > { %5117 = vmin.xlane.f32.xlu1 %v5116_v13  ;;  %10245 = vmatprep.subr.bf16.mxu0 %v10244_v56 }
0x2da1   : > { %5102 = vmin.xlane.f32.xlu0 %v5101_v24 }
0x2de0   : > { %v10148_v62 = vpop.f32.mrb[60].mxu0 }
0x2de1   : > { %v13215_v47 = vmax.f32 %v4888_v48, %v10148_v62  ;;  %v5024_v57 = vpop.f32.mrb[61].mxu0 }
0x2de2   : > { %v13220_v37 = vmax.f32 %v4886_v12, %v5024_v57  ;;  %v10149_v44 = vpop.f32.mrb[62].mxu0  ;;  %v5070_v12 = vcvt.s32.f32 %v5068_v51  ;;  %v5224_v57 = vld [vmem:[#allocation5 + $0x80] sm:$0xff]  ;;  %v5237_v51 = vld [vmem:[#allocation5 + $0xe8] sm:$0xff] }
0x2de3   : > { %v13225_v49 = vmax.f32 %v4889_v33, %v10149_v44  ;;  %v5027_v35 = vpop.f32.mrb[63].mxu0  ;;  %v5228_v44 = vld [vmem:[#allocation5 + $0xa0] sm:$0xff]  ;;  %v10252_v17 = vpack.c.bf16 %v5237_v51, %v5233_v45 }
0x2de4   : > { %v13230_v10 = vmax.f32 %v4887_v32, %v5027_v35  ;;  %v10250_v35 = vpack.c.bf16 %v5228_v44, %v5224_v57 }
0x2e29   : > { %v13232_v48 = vpop.xlane.xlu1 %5087 }
0x2e2a   : > { %v13234_v30 = vpop.xlane.xlu0 %5072  ;;  %vm5089_vm8 = vcmp.eq.f32.partialorder %v5086_v20, %v13232_v48  ;;  %v10272_v20 = vpack.c.bf16 %v5215_v5, %v5211_v6  ;;  %v10262_v6 = vpack.c.bf16 %v5252_v7, %v5248_v11  ;;  %v5257_v5 = vld [vmem:[#allocation5 + $0x188] sm:$0xff]  ;;  %v5094_v50 = vcvt.f32.s32 %v13232_v48  ;;  %v5218_v7 = vld [vmem:[#allocation5 + $0x50] sm:$0xff] }
0x2e2b   : > { %v5090_v36 = vsel %vm5089_vm8, %v5085_v42, inf  ;;  %vm5074_vm15 = vcmp.eq.f32.partialorder %v5071_v3, %v13234_v30  ;;  %v5216_v3 = vld [vmem:[#allocation5 + $0x40] sm:$0xff]  ;;  %v5079_v1 = vcvt.f32.s32 %v13234_v30 }
0x2e2c   : > { %5091 = vmin.xlane.f32.xlu1 %v5090_v36  ;;  %v5075_v33 = vsel %vm5074_vm15, %v5070_v12, inf  ;;  %10273 = vmatprep.subr.bf16.mxu1 %v10272_v20  ;;  %v10246_v27 = vpack.c.bf16 %v5220_v31, %v5216_v3  ;;  %v5232_v42 = vld [vmem:[#allocation5 + $0xc0] sm:$0xff]  ;;  %v5241_v36 = vld [vmem:[#allocation5 + $0x108] sm:$0xff]  ;;  %v10264_v20 = vpack.c.bf16 %v5261_v55, %v5257_v5  ;;  %v5095_v31 = vshll.u32 %v5094_v50, 16  ;;  %v5227_v5 = vld [vmem:[#allocation5 + $0x98] sm:$0xff] }
0x2e2d   : > { %v13238_v40 = vpop.xlane.xlu1 %5117  ;;  %5076 = vmin.xlane.f32.xlu0 %v5075_v33  ;;  %v5236_v12 = vld [vmem:[#allocation5 + $0xe0] sm:$0xff]  ;;  %v5245_v33 = vld [vmem:[#allocation5 + $0x128] sm:$0xff]  ;;  %v5231_v55 = vld [vmem:[#allocation5 + $0xb8] sm:$0xff] }
0x2e2e   : > { %v13240_v32 = vpop.xlane.xlu0 %5102  ;;  %vm5119_vm0 = vcmp.eq.f32.partialorder %v5116_v13, %v13238_v40  ;;  %v5225_v13 = vld [vmem:[#allocation5 + $0x88] sm:$0xff]  ;;  %10247 = vmatpush1.bf16.msra.mxu0 %v10246_v27  ;;  %v10254_v14 = vpack.c.bf16 %v5236_v12, %v5232_v42  ;;  %v5124_v56 = vcvt.f32.s32 %v13238_v40  ;;  %v10280_v50 = vpack.c.bf16 %v5231_v55, %v5227_v5  ;;  %v5264_v5 = vld [vmem:[#allocation5 + $0x1c0] sm:$0xff] }
0x2e2f   : > { %v5120_v38 = vsel %vm5119_vm0, %v5115_v61, inf  ;;  %vm5104_vm1 = vcmp.eq.f32.partialorder %v5101_v24, %v13240_v32  ;;  %v5229_v24 = vld [vmem:[#allocation5 + $0xa8] sm:$0xff]  ;;  %v5240_v61 = vld [vmem:[#allocation5 + $0x100] sm:$0xff] }
0x2e30   : > { %5121 = vmin.xlane.f32.xlu1 %v5120_v38  ;;  %v5105_v34 = vsel %vm5104_vm1, %v5100_v0, inf  ;;  %v10248_v62 = vpack.c.bf16 %v5229_v24, %v5225_v13  ;;  %v10256_v0 = vpack.c.bf16 %v5245_v33, %v5241_v36  ;;  %v5244_v38 = vld [vmem:[#allocation5 + $0x120] sm:$0xff]  ;;  %v5080_v24 = vshll.u32 %v5079_v1, 16  ;;  %v5210_v33 = vld [vmem:[#allocation5 + $0x10] sm:$0xff] }
0x2e31   : > { %5106 = vmin.xlane.f32.xlu0 %v5105_v34  ;;  %v10258_v34 = vpack.c.bf16 %v5244_v38, %v5240_v61  ;;  %v5125_v51 = vshll.u32 %v5124_v56, 16  ;;  %v5214_v61 = vld [vmem:[#allocation5 + $0x30] sm:$0xff]  ;;  %v5223_v38 = vld [vmem:[#allocation5 + $0x78] sm:$0xff]  ;;  %v5268_v55 = vld [vmem:[#allocation5 + $0x1e0] sm:$0xff] }
0x2e32   : > { %10249 = vmatprep.subr.bf16.mxu0 %v10248_v62  ;;  %v5109_v62 = vcvt.f32.s32 %v13240_v32  ;;  %v10274_v43 = vpack.c.bf16 %v5214_v61, %v5210_v33  ;;  %v5226_v1 = vld [vmem:[#allocation5 + $0x90] sm:$0xff]  ;;  %v5239_v56 = vld [vmem:[#allocation5 + $0xf8] sm:$0xff]  ;;  %v5260_v33 = vld [vmem:[#allocation5 + $0x1a0] sm:$0xff] }
0x2e33   : > { %10251 = vmatpush1.bf16.msra.mxu0 %v10250_v35  ;;  %v5259_v61 = vld [vmem:[#allocation5 + $0x198] sm:$0xff] }
0x2e34   : > { %10253 = vmatprep.subr.bf16.mxu0 %v10252_v17  ;;  %v5110_v17 = vshll.u32 %v5109_v62, 16  ;;  %v5238_v62 = vld [vmem:[#allocation5 + $0xf0] sm:$0xff] }
0x2e37   : > { %10255 = vmatpush1.bf16.msra.mxu0 %v10254_v14 }
0x2e38   : > { %10257 = vmatprep.subr.bf16.mxu0 %v10256_v0  ;;  %v5219_v0 = vld [vmem:[#allocation5 + $0x58] sm:$0xff] }
0x2e3b   : > { %10259 = vmatpush1.bf16.msra.mxu0 %v10258_v34 }
0x2e3c   : > { %10261 = vmatprep.subr.bf16.mxu0 %v10260_v23  ;;  %v10276_v23 = vpack.c.bf16 %v5223_v38, %v5219_v0  ;;  %v5263_v38 = vld [vmem:[#allocation5 + $0x1b8] sm:$0xff] }
0x2e3f   : > { %10263 = vmatpush1.bf16.msra.mxu0 %v10262_v6  ;;  %v5222_v6 = vld [vmem:[#allocation5 + $0x70] sm:$0xff] }
0x2e40   : > { %10265 = vmatprep.subr.bf16.mxu0 %v10264_v20  ;;  %v10278_v20 = vpack.c.bf16 %v5222_v6, %v5218_v7  ;;  %v5269_v7 = vld [vmem:[#allocation5 + $0x1e8] sm:$0xff] }
0x2eb9   : > { %v5092_v3 = vpop.xlane.xlu1 %5091 }
0x2eba   : > { %v5093_v27 = vcvt.f32.s32 %v5092_v3  ;;  %v5077_v13 = vpop.xlane.xlu0 %5076  ;;  %v5230_v3 = vld [vmem:[#allocation5 + $0xb0] sm:$0xff] }
0x2ebb   : > { %v5078_v57 = vcvt.f32.s32 %v5077_v13 }
0x2ebc   : > { %v5096_v44 = vadd.s32 %v5095_v31, %v5093_v27  ;;  %v5235_v31 = vld [vmem:[#allocation5 + $0xd8] sm:$0xff]  ;;  %v10282_v27 = vpack.c.bf16 %v5230_v3, %v5226_v1  ;;  %v5266_v3 = vld [vmem:[#allocation5 + $0x1d0] sm:$0xff] }
0x2ebd   : > { %v5081_v35 = vadd.s32 %v5080_v24, %v5078_v57  ;;  %v5122_v45 = vpop.xlane.xlu1 %5121  ;;  %v10284_v13 = vpack.c.bf16 %v5239_v56, %v5235_v31  ;;  %v5234_v24 = vld [vmem:[#allocation5 + $0xd0] sm:$0xff]  ;;  %v5243_v57 = vld [vmem:[#allocation5 + $0x118] sm:$0xff] }
0x2ebe   : > { %vm5128_vm6 = vcmp.eq.s32.totalorder %v11621_v16, %v5096_v44  ;;  %v5123_v42 = vcvt.f32.s32 %v5122_v45  ;;  %v5107_v48 = vpop.xlane.xlu0 %5106  ;;  %v5247_v44 = vld [vmem:[#allocation5 + $0x138] sm:$0xff]  ;;  %v5270_v31 = vld [vmem:[#allocation5 + $0x1f0] sm:$0xff] }
0x2ebf   : > { %v9657_v30 = vsel %vm5128_vm6, 1.0, %v14414_v8  ;;  %vm5127_vm9 = vcmp.eq.s32.totalorder %v11621_v16, %v5081_v35  ;;  %v5108_v40 = vcvt.f32.s32 %v5107_v48  ;;  %v10286_v35 = vpack.c.bf16 %v5238_v62, %v5234_v24  ;;  %v5251_v48 = vld [vmem:[#allocation5 + $0x158] sm:$0xff] }
0x2ec0   : > { %v9656_v12 = vsel %vm5127_vm9, 1.0, %v14414_v8  ;;  %v5126_v14 = vadd.s32 %v5125_v51, %v5123_v42  ;;  %v10288_v45 = vpack.c.bf16 %v5247_v44, %v5243_v57  ;;  %v5242_v51 = vld [vmem:[#allocation5 + $0x110] sm:$0xff]  ;;  %v5271_v1 = vld [vmem:[#allocation5 + $0x1f8] sm:$0xff]  ;;  %v14431_v62 = vsub.f32 %v12754_v41, %v12758_v28 }
0x2ec1   : > { %v5111_v36 = vadd.s32 %v5110_v17, %v5108_v40  ;;  %v5139_v32 = vpack.c.bf16 %v9657_v30, %v9656_v12  ;;  %v5246_v42 = vld [vmem:[#allocation5 + $0x130] sm:$0xff]  ;;  %v5255_v17 = vld [vmem:[#allocation5 + $0x178] sm:$0xff]  ;;  %v14434_v41 = vsub.f32 %v12744_v46, %v12746_v25 }
0x2ec2   : > { %vm5130_vm10 = vcmp.eq.s32.totalorder %v11621_v16, %v5126_v14  ;;  %v10290_v30 = vpack.c.bf16 %v5246_v42, %v5242_v51  ;;  %v10292_v40 = vpack.c.bf16 %v5255_v17, %v5251_v48  ;;  %v5250_v12 = vld [vmem:[#allocation5 + $0x150] sm:$0xff]  ;;  %v14433_v17 = vsub.f32 %v12766_v4, %v12769_v39 }
0x2ec3   : > { %v9659_v34 = vsel %vm5130_vm10, 1.0, %v14414_v8  ;;  %vm5129_vm11 = vcmp.eq.s32.totalorder %v11621_v16, %v5111_v36  ;;  %10154 = vmatprep.mubr.msk.bf16.mxu1 %vm856_vm5, %v5139_v32  ;;  %v5254_v14 = vld [vmem:[#allocation5 + $0x170] sm:$0xff]  ;;  %v5256_v32 = vld [vmem:[#allocation5 + $0x180] sm:$0xff] }
0x2ec4   : > { %v9658_v54 = vsel %vm5129_vm11, 1.0, %v14414_v8  ;;  %v10294_v36 = vpack.c.bf16 %v5254_v14, %v5250_v12  ;;  %v10266_v0 = vpack.c.bf16 %v5260_v33, %v5256_v32 }
0x2ec5   : > { %v5140_v11 = vpack.c.bf16 %v9659_v34, %v9658_v54  ;;  %v5258_v34 = vld [vmem:[#allocation5 + $0x190] sm:$0xff] }
0x2ec6   : > { %v5262_v54 = vld [vmem:[#allocation5 + $0x1b0] sm:$0xff]  ;;  %10267 = vmatpush1.bf16.msra.mxu0 %v10266_v0 }
0x2ec7   : > { %10155 = vmatmul.mubr.msk.bf16.vlgmr.msra.gmra.mrb[56].mxu1 %vm856_vm5, %v5140_v11  ;;  %v10298_v11 = vpack.c.bf16 %v5262_v54, %v5258_v34 }
0x2ec8   : > { %10275 = vmatpush1.bf16.msra.mxu1 %v10274_v43  ;;  %5426 = vmatprep.mubr.f32.mxu1 %v14414_v8  ;;  %v10296_v43 = vpack.c.bf16 %v5263_v38, %v5259_v61 }
0x2ec9   : > { %10277 = vmatprep.subr.bf16.mxu1 %v10276_v23  ;;  %v5265_v23 = vld [vmem:[#allocation5 + $0x1c8] sm:$0xff] }
0x2eca   : > { %v10268_v6 = vpack.c.bf16 %v5269_v7, %v5265_v23 }
0x2ecc   : > { %10279 = vmatpush1.bf16.msra.mxu1 %v10278_v20  ;;  %v5267_v20 = vld [vmem:[#allocation5 + $0x1d8] sm:$0xff]  ;;  %10269 = vmatprep.subr.bf16.mxu0 %v10268_v6 }
0x2ecd   : > { %10281 = vmatprep.subr.bf16.mxu1 %v10280_v50  ;;  %v10270_v50 = vpack.c.bf16 %v5268_v55, %v5264_v5  ;;  %v10300_v56 = vpack.c.bf16 %v5271_v1, %v5267_v20 }
0x2ecf   : > { %10271 = vmatpush1.bf16.msra.mxu0 %v10270_v50 }
0x2ed0   : > { %10283 = vmatpush1.bf16.msra.mxu1 %v10282_v27  ;;  %v10302_v27 = vpack.c.bf16 %v5270_v31, %v5266_v3 }
0x2ed1   : > { %10285 = vmatprep.subr.bf16.mxu1 %v10284_v13  ;;  %v9605_v13 = vld [vmem:[%s14335_s6] ss:$0 sm:$0xff] }
0x2ed2   : > { %v3801_v57 = vadd.f32 %v9605_v13, %v14431_v62  ;;  %v3800_v28 = vadd.f32 %v9605_v13, %v14434_v41 }
0x2ed4   : > { %10287 = vmatpush1.bf16.msra.mxu1 %v10286_v35 }
0x2ed5   : > { %10289 = vmatprep.subr.bf16.mxu1 %v10288_v45  ;;  %v14432_v45 = vsub.f32 %v12738_v19, %v12740_v53 }
0x2ed7   : > { %v3799_v51 = vadd.f32 %v9605_v13, %v14432_v45 }
0x2ed8   : > { %10291 = vmatpush1.bf16.msra.mxu1 %v10290_v30  ;;  %v3802_v30 = vadd.f32 %v9605_v13, %v14433_v17 }
0x2ed9   : > { %10293 = vmatprep.subr.bf16.mxu1 %v10292_v40 }
0x2edc   : > { %10295 = vmatpush1.bf16.msra.mxu1 %v10294_v36 }
0x2edd   : > { %10297 = vmatprep.subr.bf16.mxu1 %v10296_v43 }
0x2ee0   : > { %10299 = vmatpush1.bf16.msra.mxu1 %v10298_v11 }
0x2ee1   : > { %10301 = vmatprep.subr.bf16.mxu1 %v10300_v56 }
0x2ee4   : > { %10303 = vmatpush1.bf16.msra.mxu1 %v10302_v27 }
0x2f9a   : > { %v10156_v24 = vpop.f32.mrb[56].mxu1 }
0x2f9b   : > { %v5198_v44 = vmax.f32 %v13215_v47, %v10156_v24  ;;  %v5181_v35 = vpop.f32.mrb[57].mxu1 }
0x2f9c   : > { %v5196_v42 = vmax.f32 %v13220_v37, %v5181_v35  ;;  %v10157_v48 = vpop.f32.mrb[58].mxu1 }
0x2f9d   : > { %v5202_v40 = vadd.f32 %v5198_v44, %v3801_v57  ;;  %v5199_v12 = vmax.f32 %v13225_v49, %v10157_v48  ;;  %v5184_v14 = vpop.f32.mrb[59].mxu1 }
0x2f9e   : > { %v5200_v47 = vadd.f32 %v5196_v42, %v3799_v51  ;;  %v5197_v36 = vmax.f32 %v13230_v10, %v5184_v14 }
0x2f9f   : > { %v5203_v19 = vadd.f32 %v5199_v12, %v3802_v30  ;;  %v13280_v32 = vmax.f32 %v5202_v40, 0.0 }
0x2fa0   : > { %v13278_v53 = vmax.f32 %v5200_v47, 0.0  ;;  %v5201_v37 = vadd.f32 %v5197_v36, %v3800_v28 }
0x2fa1   : > { %v13288_v46 = vmax.f32 %v5203_v19, 0.0  ;;  %v5565_v49 = vmul.f32 %v13280_v32, %v13280_v32 }
0x2fa2   : > { %v13282_v33 = vmax.f32 %v5201_v37, 0.0  ;;  %5338 = vmatmul.mubr.f32.vlgmr.msra.gmra.mrb[64].mxu0 %v13278_v53  ;;  %5427 = vmatmul.mubr.f32.vlgmr.msra.gmra.mrb[60].mxu1 %v13278_v53  ;;  %v5563_v4 = vmul.f32 %v13278_v53, %v13278_v53 }
0x2fa3   : > { %5343 = vmatprep.mubr.f32.mxu0 %v14414_v8  ;;  %5432 = vmatprep.mubr.f32.mxu1 %v14414_v8  ;;  %v10308_v10 = vpack.c.bf16 %v13288_v46, %v13280_v32  ;;  %v5566_v61 = vmul.f32 %v13288_v46, %v13288_v46 }
0x2fa4   : > { %5567 = vadd.xlane.f32.xlu0 %v5563_v4  ;;  %v5564_v25 = vmul.f32 %v13282_v33, %v13282_v33  ;;  %v10304_v39 = vpack.c.bf16 %v13282_v33, %v13278_v53 }
0x2fa6   : > { %5569 = vadd.xlane.f32.xlu1 %v5564_v25  ;;  %5344 = vmatmul.mubr.f32.gmra.mrb[66].mxu0 %v13282_v33 }
0x2fa7   : > { %5433 = vmatmul.mubr.f32.gmra.mrb[62].mxu1 %v13282_v33  ;;  %10305 = vmatprep.subr.bf16.mxu0 %v10304_v39 }
0x2fa8   : > { %10307 = vmatpush3.bf16.xpose.msra.mxu0 %v10304_v39  ;;  %5571 = vadd.xlane.f32.xlu0 %v5565_v49 }
0x2fa9   : > { %10309 = vmatprep.subr.bf16.mxu0 %v10308_v10  ;;  %5349 = vmatprep.mubr.f32.mxu0 %v14414_v8 }
0x2faa   : > { %5438 = vmatprep.mubr.f32.mxu1 %v14414_v8  ;;  %5350 = vmatmul.mubr.f32.gmra.mrb[68].mxu0 %v13280_v32 }
0x2fab   : > { %5439 = vmatmul.mubr.f32.gmra.mrb[64].mxu1 %v13280_v32  ;;  %5573 = vadd.xlane.f32.xlu1 %v5566_v61 }
0x2fac   : > { %5355 = vmatprep.mubr.f32.mxu0 %v14414_v8  ;;  %5444 = vmatprep.mubr.f32.mxu1 %v14414_v8 }
0x2fae   : > { %5356 = vmatmul.mubr.f32.gmra.mrb[70].mxu0 %v13288_v46 }
0x2faf   : > { %5445 = vmatmul.mubr.f32.gmra.mrb[66].mxu1 %v13288_v46  ;;  %10166 = vmatprep.mubr.f32.mxu0 %v13278_v53 }
0x2fb0   : > { %10311 = vmatpush3.bf16.xpose.msra.mxu0 %v10308_v10 }
0x2fb7   : > { %10167 = vmatmul.mubr.f32.vlgmr.msra.gmra.mrb[72].mxu0 %v13282_v33 }
0x2fb8   : > { %10169 = vmatprep.mubr.f32.mxu0 %v13280_v32 }
0x2fbb   : > { %10170 = vmatmul.mubr.f32.gmra.mrb[74].mxu0 %v13288_v46 }
0x3031   : > { %v5568_v11 = vpop.xlane.xlu0 %5567 }
0x3032   : > { %v5582_v35 = vrot.slane %v5568_v11, %v11629_v21 }
0x3033   : > { %v5570_v55 = vpop.xlane.xlu1 %5569 }
0x3034   : > { %v5586_v13 = vrot.slane %v5570_v55, %v11632_v22 }
0x3035   : > { %v5572_v56 = vpop.xlane.xlu0 %5571 }
0x3036   : > { %v5591_v45 = vrot.slane %v5572_v56, %v11636_v26  ;;  %v5587_v48 = vsel %vm809_vm2, %v5586_v13, %v5582_v35 }
0x3038   : > { %v5574_v51 = vpop.xlane.xlu1 %5573  ;;  %v5592_v28 = vsel %vm816_vm3, %v5591_v45, %v5587_v48 }
0x3039   : > { %v5596_v26 = vrot.slane %v5574_v51, %v11641_v29 }
0x303b   : > { %v5597_v47 = vsel %vm823_vm4, %v5596_v26, %v5592_v28 }
0x303c   : > { %v5606_v36 = vadd.f32 %v5597_v47, %v5570_v55  ;;  %v5605_v4 = vadd.f32 %v5597_v47, %v5568_v11  ;;  %v5608_v61 = vadd.f32 %v5597_v47, %v5574_v51  ;;  %v5607_v26 = vadd.f32 %v5597_v47, %v5572_v56 }
0x3075   : > { %v13316_v0 = vpop.f32.mrb[64].mxu0  ;;  %v13318_v38 = vpop.f32.mrb[60].mxu1 }
0x3076   : > { %14435 = vst [vmem:[#allocation27_spill] sm:$0xff] %v13316_v0  ;;  %14436 = vst [vmem:[#allocation28_spill] sm:$0xff] %v13318_v38  ;;  %v13322_v54 = vpop.f32.mrb[65].mxu0  ;;  %v13324_v43 = vpop.f32.mrb[61].mxu1 }
0x3077   : > { %14437 = vst [vmem:[#allocation29_spill] sm:$0xff] %v13322_v54  ;;  %14438 = vst [vmem:[#allocation30_spill] sm:$0xff] %v13324_v43 }
0x3079   : > { %v13328_v7 = vpop.f32.mrb[66].mxu0 }
0x307a   : > { %14439 = vst [vmem:[#allocation31_spill] sm:$0xff] %v13328_v7  ;;  %v13330_v6 = vpop.f32.mrb[62].mxu1  ;;  %v13332_v5 = vpop.f32.mrb[67].mxu0 }
0x307b   : > { %14440 = vst [vmem:[#allocation32_spill] sm:$0xff] %v13330_v6  ;;  %14441 = vst [vmem:[#allocation33_spill] sm:$0xff] %v13332_v5  ;;  %v13338_v50 = vpack.c.bf16 %v13330_v6, %v13318_v38  ;;  %v13340_v1 = vpop.f32.mrb[63].mxu1 }
0x307c   : > { %14442 = vst [vmem:[#allocation34_spill] sm:$0xff] %v13340_v1  ;;  %v13346_v31 = vpack.c.bf16 %v13340_v1, %v13324_v43 }
0x307d   : > { %v13348_v27 = vpop.f32.mrb[68].mxu0 }
0x307e   : > { %14443 = vst [vmem:[#allocation35_spill] sm:$0xff] %v13348_v27  ;;  %v13351_v24 = vpop.f32.mrb[64].mxu1  ;;  %5725 = vmatprep.subr.bf16.mxu1 %v13346_v31  ;;  %5882 = vmatprep.subr.bf16.mxu0 %v13346_v31  ;;  %v13355_v62 = vpop.f32.mrb[69].mxu0 }
0x307f   : > { %14444 = vst [vmem:[#allocation36_spill] sm:$0xff] %v13351_v24  ;;  %14445 = vst [vmem:[#allocation37_spill] sm:$0xff] %v13355_v62  ;;  %v13359_v44 = vpop.f32.mrb[65].mxu1  ;;  %5726 = vmatpush1.bf16.msra.mxu1 %v13338_v50  ;;  %5883 = vmatpush1.bf16.msra.mxu0 %v13338_v50 }
0x3080   : > { %14446 = vst [vmem:[#allocation38_spill] sm:$0xff] %v13359_v44 }
0x3081   : > { %v13367_v42 = vpop.f32.mrb[70].mxu0 }
0x3082   : > { %14447 = vst [vmem:[#allocation39_spill] sm:$0xff] %v13367_v42  ;;  %v13370_v17 = vpop.f32.mrb[66].mxu1  ;;  %v13372_v30 = vpop.f32.mrb[71].mxu0 }
0x3083   : > { %14448 = vst [vmem:[#allocation40_spill] sm:$0xff] %v13370_v17  ;;  %14449 = vst [vmem:[#allocation41_spill] sm:$0xff] %v13372_v30  ;;  %v13378_v21 = vpack.c.bf16 %v13370_v17, %v13351_v24  ;;  %v13380_v12 = vpop.f32.mrb[67].mxu1 }
0x3084   : > { %14450 = vst [vmem:[#allocation42_spill] sm:$0xff] %v13380_v12  ;;  %v13387_v41 = vpack.c.bf16 %v13380_v12, %v13359_v44 }
0x3086   : > { %5727 = vmatprep.subr.bf16.mxu1 %v13387_v41  ;;  %5884 = vmatprep.subr.bf16.mxu0 %v13387_v41 }
0x3087   : > { %5728 = vmatpush1.bf16.msra.mxu1 %v13378_v21  ;;  %5885 = vmatpush1.bf16.msra.mxu0 %v13378_v21 }
0x3088   : > { %6047 = vmatprep.subr.bf16.mxu1 %v13346_v31  ;;  %6212 = vmatprep.subr.bf16.mxu0 %v13346_v31 }
0x308a   : > { %v10168_v29 = vpop.f32.mrb[72].mxu0 }
0x308b   : > { %v5610_v19 = vmul.f32 2.0, %v10168_v29  ;;  %v5544_v37 = vpop.f32.mrb[73].mxu0 }
0x308c   : > { %v5609_v25 = vmul.f32 2.0, %v5544_v37 }
0x308d   : > { %v5614_v39 = vsub.f32 %v5606_v36, %v5610_v19 }
0x308e   : > { %v5613_v49 = vsub.f32 %v5605_v4, %v5609_v25  ;;  %v10171_v10 = vpop.f32.mrb[74].mxu0 }
0x308f   : > { %v13397_v13 = vmax.f32 %v5614_v39, 0.0  ;;  %v5612_v35 = vmul.f32 2.0, %v10171_v10  ;;  %v5554_v45 = vpop.f32.mrb[75].mxu0 }
0x3090   : > { %v13399_v48 = vmax.f32 %v5613_v49, 0.0  ;;  %v5611_v28 = vmul.f32 2.0, %v5554_v45 }
0x3091   : > { %v5616_v14 = vsub.f32 %v5608_v61, %v5612_v35  ;;  %v5628_v55 = vsel %vm856_vm5, %v13397_v13, inf }
0x3092   : > { %v5615_v29 = vsub.f32 %v5607_v26, %v5611_v28  ;;  %5629 = vmin.xlane.f32.xlu1 %v5628_v55  ;;  %v5625_v11 = vsel %vm856_vm5, %v13399_v48, inf }
0x3093   : > { %v13405_v36 = vmax.f32 %v5616_v14, 0.0  ;;  %5626 = vmin.xlane.f32.xlu0 %v5625_v11 }
0x3094   : > { %v13407_v51 = vmax.f32 %v5615_v29, 0.0 }
0x3095   : > { %v5634_v19 = vsel %vm856_vm5, %v13405_v36, inf }
0x3096   : > { %5635 = vmin.xlane.f32.xlu1 %v5634_v19  ;;  %v5631_v56 = vsel %vm856_vm5, %v13407_v51, inf }
0x3097   : > { %5632 = vmin.xlane.f32.xlu0 %v5631_v56 }
0x311f   : > { %v5630_v47 = vpop.xlane.xlu1 %5629 }
0x3120   : > { %vm5638_vm2 = vcmp.le.f32.partialorder %v13397_v13, %v5630_v47  ;;  %v5627_v37 = vpop.xlane.xlu0 %5626 }
0x3121   : > { %v5642_v4 = vsel %vm5638_vm2, %v11621_v16, 32  ;;  %vm5637_vm3 = vcmp.le.f32.partialorder %v13399_v48, %v5627_v37 }
0x3122   : > { %v5660_v14 = vsel %vm856_vm5, %v5642_v4, 2147483647  ;;  %v5641_v25 = vsel %vm5637_vm3, %v11621_v16, 32 }
0x3123   : > { %v5662_v39 = vshra.s32 %v5660_v14, 16  ;;  %v5645_v49 = vsel %vm856_vm5, %v5641_v25, 2147483647  ;;  %v5636_v10 = vpop.xlane.xlu1 %5635  ;;  %v5661_v4 = vand.u32 65535, %v5660_v14 }
0x3124   : > { %v5647_v61 = vshra.s32 %v5645_v49, 16  ;;  %vm5640_vm4 = vcmp.le.f32.partialorder %v13405_v36, %v5636_v10  ;;  %v5633_v35 = vpop.xlane.xlu0 %5632  ;;  %v5646_v25 = vand.u32 65535, %v5645_v49 }
0x3125   : > { %v5644_v45 = vsel %vm5640_vm4, %v11621_v16, 32  ;;  %vm5639_vm12 = vcmp.le.f32.partialorder %v13407_v51, %v5633_v35  ;;  %v5664_v26 = vcvt.s32.f32 %v5662_v39  ;;  %v5663_v39 = vcvt.s32.f32 %v5661_v4 }
0x3126   : > { %v5690_v28 = vsel %vm856_vm5, %v5644_v45, 2147483647  ;;  %v5643_v55 = vsel %vm5639_vm12, %v11621_v16, 32  ;;  %v5649_v29 = vcvt.s32.f32 %v5647_v61  ;;  %v5648_v22 = vcvt.s32.f32 %v5646_v25 }
0x3127   : > { %v5692_v11 = vshra.s32 %v5690_v28, 16  ;;  %v5675_v19 = vsel %vm856_vm5, %v5643_v55, 2147483647  ;;  %5665 = vmin.xlane.f32.xlu1 %v5664_v26  ;;  %v5691_v10 = vand.u32 65535, %v5690_v28  ;;  %v14363_v28 = vmov 0  }
0x3128   : > { %v5677_v56 = vshra.s32 %v5675_v19, 16  ;;  %5650 = vmin.xlane.f32.xlu0 %v5649_v29  ;;  %v5676_v40 = vand.u32 65535, %v5675_v19  ;;  %5757 = vmatprep.mubr.bf16.mxu1 %v14363_v28 }
0x3129   : > { %v5694_v47 = vcvt.s32.f32 %v5692_v11  ;;  %v5693_v3 = vcvt.s32.f32 %v5691_v10  ;;  %5914 = vmatprep.mubr.bf16.mxu0 %v14363_v28 }
0x312a   : > { %v5679_v37 = vcvt.s32.f32 %v5677_v56  ;;  %v5678_v56 = vcvt.s32.f32 %v5676_v40 }
0x312b   : > { %5695 = vmin.xlane.f32.xlu1 %v5694_v47 }
0x312c   : > { %5680 = vmin.xlane.f32.xlu0 %v5679_v37 }
0x31b4   : > { %v5666_v35 = vpop.xlane.xlu1 %5665 }
0x31b5   : > { %vm5667_vm13 = vcmp.eq.f32.partialorder %v5664_v26, %v5666_v35  ;;  %v5651_v45 = vpop.xlane.xlu0 %5650  ;;  %v5672_v26 = vcvt.f32.s32 %v5666_v35 }
0x31b6   : > { %vm5652_vm14 = vcmp.eq.f32.partialorder %v5649_v29, %v5651_v45  ;;  %v5668_v61 = vsel %vm5667_vm13, %v5663_v39, inf  ;;  %v5657_v29 = vcvt.f32.s32 %v5651_v45 }
0x31b7   : > { %5669 = vmin.xlane.f32.xlu1 %v5668_v61  ;;  %v5653_v55 = vsel %vm5652_vm14, %v5648_v22, inf  ;;  %v5673_v22 = vshll.u32 %v5672_v26, 16 }
0x31b8   : > { %v5696_v57 = vpop.xlane.xlu1 %5695  ;;  %5654 = vmin.xlane.f32.xlu0 %v5653_v55  ;;  %v5658_v39 = vshll.u32 %v5657_v29, 16 }
0x31b9   : > { %vm5697_vm8 = vcmp.eq.f32.partialorder %v5694_v47, %v5696_v57  ;;  %v5681_v11 = vpop.xlane.xlu0 %5680  ;;  %v5702_v4 = vcvt.f32.s32 %v5696_v57 }
0x31ba   : > { %vm5682_vm15 = vcmp.eq.f32.partialorder %v5679_v37, %v5681_v11  ;;  %v5698_v14 = vsel %vm5697_vm8, %v5693_v3, inf  ;;  %v5687_v25 = vcvt.f32.s32 %v5681_v11 }
0x31bb   : > { %5699 = vmin.xlane.f32.xlu1 %v5698_v14  ;;  %v5683_v49 = vsel %vm5682_vm15, %v5678_v56, inf  ;;  %v5703_v55 = vshll.u32 %v5702_v4, 16 }
0x31bc   : > { %5684 = vmin.xlane.f32.xlu0 %v5683_v49  ;;  %v5688_v56 = vshll.u32 %v5687_v25, 16 }
0x3244   : > { %v5670_v19 = vpop.xlane.xlu1 %5669 }
0x3245   : > { %v5671_v10 = vcvt.f32.s32 %v5670_v19  ;;  %v5655_v47 = vpop.xlane.xlu0 %5654 }
0x3246   : > { %v5656_v40 = vcvt.f32.s32 %v5655_v47 }
0x3247   : > { %v5674_v37 = vadd.s32 %v5673_v22, %v5671_v10 }
0x3248   : > { %v5659_v3 = vadd.s32 %v5658_v39, %v5656_v40  ;;  %v5700_v61 = vpop.xlane.xlu1 %5699 }
0x3249   : > { %vm5706_vm0 = vcmp.eq.s32.totalorder %v11621_v16, %v5674_v37  ;;  %v5701_v14 = vcvt.f32.s32 %v5700_v61  ;;  %v5685_v49 = vpop.xlane.xlu0 %5684 }
0x324a   : > { %v9663_v35 = vsel %vm5706_vm0, 1.0, %v14414_v8  ;;  %vm5705_vm1 = vcmp.eq.s32.totalorder %v11621_v16, %v5659_v3  ;;  %v5686_v45 = vcvt.f32.s32 %v5685_v49  ;;  %v13431_v57 = vsel %vm5706_vm0, inf, %v13397_v13 }
0x324b   : > { %v9662_v11 = vsel %vm5705_vm1, 1.0, %v14414_v8  ;;  %v5704_v26 = vadd.s32 %v5703_v55, %v5701_v14  ;;  %v5785_v29 = vsel %vm856_vm5, %v13431_v57, inf  ;;  %v13437_v19 = vsel %vm5705_vm1, inf, %v13399_v48 }
0x324c   : > { %v5717_v22 = vpack.c.bf16 %v9663_v35, %v9662_v11  ;;  %v5689_v4 = vadd.s32 %v5688_v56, %v5686_v45  ;;  %5786 = vmin.xlane.f32.xlu1 %v5785_v29  ;;  %v5782_v25 = vsel %vm856_vm5, %v13437_v19, inf }
0x324d   : > { %vm5708_vm6 = vcmp.eq.s32.totalorder %v11621_v16, %v5704_v26  ;;  %5783 = vmin.xlane.f32.xlu0 %v5782_v25 }
0x324e   : > { %vm5707_vm9 = vcmp.eq.s32.totalorder %v11621_v16, %v5689_v4  ;;  %9666 = vmatmul.mubr.msk.bf16.vlgmr.msra.gmra.mrb[68].mxu1 %vm856_vm5, %v5717_v22  ;;  %v13445_v13 = vsel %vm5708_vm6, inf, %v13405_v36  ;;  %v9665_v39 = vsel %vm5708_vm6, 1.0, %v14414_v8 }
0x324f   : > { %6048 = vmatpush1.bf16.msra.mxu1 %v13338_v50  ;;  %v5791_v48 = vsel %vm856_vm5, %v13445_v13, inf  ;;  %v13451_v10 = vsel %vm5707_vm9, inf, %v13407_v51  ;;  %5767 = vmatprep.mubr.bf16.mxu1 %v14363_v28  ;;  %v9664_v36 = vsel %vm5707_vm9, 1.0, %v14414_v8 }
0x3250   : > { %6049 = vmatprep.subr.bf16.mxu1 %v13387_v41  ;;  %5792 = vmin.xlane.f32.xlu1 %v5791_v48  ;;  %v5788_v47 = vsel %vm856_vm5, %v13451_v10, inf  ;;  %v5718_v40 = vpack.c.bf16 %v9665_v39, %v9664_v36 }
0x3251   : > { %5789 = vmin.xlane.f32.xlu0 %v5788_v47 }
0x3253   : > { %6050 = vmatpush1.bf16.msra.mxu1 %v13378_v21 }
0x3254   : > { %6377 = vmatprep.subr.bf16.mxu1 %v13346_v31 }
0x3256   : > { %9667 = vmatmul.mubr.msk.bf16.gmra.mrb[72].mxu1 %vm856_vm5, %v5718_v40 }
0x3257   : > { %6079 = vmatprep.mubr.bf16.mxu1 %v14363_v28 }
0x32d9   : > { %v5787_v51 = vpop.xlane.xlu1 %5786 }
0x32da   : > { %vm5795_vm10 = vcmp.le.f32.partialorder %v13431_v57, %v5787_v51  ;;  %v5784_v37 = vpop.xlane.xlu0 %5783 }
0x32db   : > { %v5799_v3 = vsel %vm5795_vm10, %v11621_v16, 32  ;;  %vm5794_vm11 = vcmp.le.f32.partialorder %v13437_v19, %v5784_v37 }
0x32dc   : > { %v5817_v61 = vsel %vm856_vm5, %v5799_v3, 2147483647  ;;  %v5798_v55 = vsel %vm5794_vm11, %v11621_v16, 32 }
0x32dd   : > { %v5819_v56 = vshra.s32 %v5817_v61, 16  ;;  %v5802_v14 = vsel %vm856_vm5, %v5798_v55, 2147483647  ;;  %v5793_v49 = vpop.xlane.xlu1 %5792 }
0x32de   : > { %v5804_v35 = vshra.s32 %v5802_v14, 16  ;;  %vm5797_vm2 = vcmp.le.f32.partialorder %v13445_v13, %v5793_v49  ;;  %v5790_v45 = vpop.xlane.xlu0 %5789 }
0x32df   : > { %v5801_v11 = vsel %vm5797_vm2, %v11621_v16, 32  ;;  %vm5796_vm3 = vcmp.le.f32.partialorder %v13451_v10, %v5790_v45  ;;  %v5821_v26 = vcvt.s32.f32 %v5819_v56  ;;  %v5818_v45 = vand.u32 65535, %v5817_v61 }
0x32e0   : > { %v5847_v29 = vsel %vm856_vm5, %v5801_v11, 2147483647  ;;  %v5800_v22 = vsel %vm5796_vm3, %v11621_v16, 32  ;;  %v5806_v4 = vcvt.s32.f32 %v5804_v35  ;;  %v5803_v11 = vand.u32 65535, %v5802_v14 }
0x32e1   : > { %v5849_v25 = vshra.s32 %v5847_v29, 16  ;;  %v5832_v48 = vsel %vm856_vm5, %v5800_v22, 2147483647  ;;  %5822 = vmin.xlane.f32.xlu1 %v5821_v26  ;;  %v5848_v22 = vand.u32 65535, %v5847_v29 }
0x32e2   : > { %v5834_v47 = vshra.s32 %v5832_v48, 16  ;;  %5807 = vmin.xlane.f32.xlu0 %v5806_v4  ;;  %v5833_v20 = vand.u32 65535, %v5832_v48  ;;  %v5805_v34 = vcvt.s32.f32 %v5803_v11 }
0x32e3   : > { %v5851_v39 = vcvt.s32.f32 %v5849_v25  ;;  %v5850_v17 = vcvt.s32.f32 %v5848_v22 }
0x32e4   : > { %v5836_v36 = vcvt.s32.f32 %v5834_v47  ;;  %v5820_v47 = vcvt.s32.f32 %v5818_v45  ;;  %v5835_v44 = vcvt.s32.f32 %v5833_v20 }
0x32e5   : > { %5852 = vmin.xlane.f32.xlu1 %v5851_v39 }
0x32e6   : > { %5837 = vmin.xlane.f32.xlu0 %v5836_v36 }
0x3321   : > { %v13475_v40 = vpop.f32.mrb[68].mxu1 }
0x3322   : > { %v13477_v51 = vpop.f32.mrb[69].mxu1 }
0x3323   : > { %v13479_v37 = vpop.f32.mrb[70].mxu1 }
0x3324   : > { %v13481_v3 = vpop.f32.mrb[71].mxu1 }
0x3329   : > { %v13483_v55 = vpop.f32.mrb[72].mxu1 }
0x332a   : > { %v13485_v56 = vpop.f32.mrb[73].mxu1 }
0x332b   : > { %v13487_v49 = vpop.f32.mrb[74].mxu1 }
0x332c   : > { %v13489_v35 = vpop.f32.mrb[75].mxu1 }
0x336e   : > { %v5823_v25 = vpop.xlane.xlu1 %5822 }
0x336f   : > { %vm5824_vm4 = vcmp.eq.f32.partialorder %v5821_v26, %v5823_v25  ;;  %v5808_v23 = vpop.xlane.xlu0 %5807  ;;  %v5829_v29 = vcvt.f32.s32 %v5823_v25 }
0x3370   : > { %vm5809_vm12 = vcmp.eq.f32.partialorder %v5806_v4, %v5808_v23  ;;  %v5825_v28 = vsel %vm5824_vm4, %v5820_v47, inf  ;;  %v5814_v48 = vcvt.f32.s32 %v5808_v23 }
0x3371   : > { %5826 = vmin.xlane.f32.xlu1 %v5825_v28  ;;  %v5810_v12 = vsel %vm5809_vm12, %v5805_v34, inf  ;;  %v5830_v45 = vshll.u32 %v5829_v29, 16 }
0x3372   : > { %v5853_v30 = vpop.xlane.xlu1 %5852  ;;  %5811 = vmin.xlane.f32.xlu0 %v5810_v12  ;;  %v5815_v34 = vshll.u32 %v5814_v48, 16 }
0x3373   : > { %vm5854_vm13 = vcmp.eq.f32.partialorder %v5851_v39, %v5853_v30  ;;  %v5838_v42 = vpop.xlane.xlu0 %5837  ;;  %v5859_v11 = vcvt.f32.s32 %v5853_v30 }
0x3374   : > { %vm5839_vm14 = vcmp.eq.f32.partialorder %v5836_v36, %v5838_v42  ;;  %v5855_v61 = vsel %vm5854_vm13, %v5850_v17, inf  ;;  %v5844_v4 = vcvt.f32.s32 %v5838_v42 }
0x3375   : > { %5856 = vmin.xlane.f32.xlu1 %v5855_v61  ;;  %v5840_v14 = vsel %vm5839_vm14, %v5835_v44, inf  ;;  %v5860_v24 = vshll.u32 %v5859_v11, 16 }
0x3376   : > { %5841 = vmin.xlane.f32.xlu0 %v5840_v14  ;;  %v5845_v20 = vshll.u32 %v5844_v4, 16 }
0x33fe   : > { %v5827_v26 = vpop.xlane.xlu1 %5826 }
0x33ff   : > { %v5828_v47 = vcvt.f32.s32 %v5827_v26  ;;  %v5812_v28 = vpop.xlane.xlu0 %5811  ;;  %v14451_v26 = vmov 0  }
0x3400   : > { %v5813_v62 = vcvt.f32.s32 %v5812_v28 }
0x3401   : > { %v5831_v12 = vadd.s32 %v5830_v45, %v5828_v47 }
0x3402   : > { %v5816_v22 = vadd.s32 %v5815_v34, %v5813_v62  ;;  %v5857_v39 = vpop.xlane.xlu1 %5856 }
0x3403   : > { %vm5863_vm8 = vcmp.eq.s32.totalorder %v11621_v16, %v5831_v12  ;;  %v5858_v17 = vcvt.f32.s32 %v5857_v39  ;;  %v5842_v44 = vpop.xlane.xlu0 %5841 }
0x3404   : > { %v9669_v36 = vsel %vm5863_vm8, 1.0, %v14414_v8  ;;  %vm5862_vm15 = vcmp.eq.s32.totalorder %v11621_v16, %v5816_v22  ;;  %v5843_v23 = vcvt.f32.s32 %v5842_v44  ;;  %v13495_v42 = vsel %vm5863_vm8, inf, %v13431_v57 }
0x3405   : > { %v9668_v30 = vsel %vm5862_vm15, 1.0, %v14414_v8  ;;  %v5861_v25 = vadd.s32 %v5860_v24, %v5858_v17  ;;  %v5950_v62 = vsel %vm856_vm5, %v13495_v42, inf  ;;  %v13501_v61 = vsel %vm5862_vm15, inf, %v13437_v19 }
0x3406   : > { %v5874_v14 = vpack.c.bf16 %v9669_v36, %v9668_v30  ;;  %v5846_v29 = vadd.s32 %v5845_v20, %v5843_v23  ;;  %5951 = vmin.xlane.f32.xlu1 %v5950_v62  ;;  %v5947_v48 = vsel %vm856_vm5, %v13501_v61, inf }
0x3407   : > { %vm5865_vm0 = vcmp.eq.s32.totalorder %v11621_v16, %v5861_v25  ;;  %5948 = vmin.xlane.f32.xlu0 %v5947_v48 }
0x3408   : > { %vm5864_vm1 = vcmp.eq.s32.totalorder %v11621_v16, %v5846_v29  ;;  %9672 = vmatmul.mubr.msk.bf16.vlgmr.msra.gmra.mrb[76].mxu0 %vm856_vm5, %v5874_v14  ;;  %v13509_v24 = vsel %vm5865_vm0, inf, %v13445_v13  ;;  %v9671_v11 = vsel %vm5865_vm0, 1.0, %v14414_v8 }
0x3409   : > { %6213 = vmatpush1.bf16.msra.mxu0 %v13338_v50  ;;  %v5956_v57 = vsel %vm856_vm5, %v13509_v24, inf  ;;  %v13515_v19 = vsel %vm5864_vm1, inf, %v13451_v10  ;;  %5924 = vmatprep.mubr.bf16.mxu0 %v14451_v26  ;;  %v9670_v13 = vsel %vm5864_vm1, 1.0, %v14414_v8 }
0x340a   : > { %6214 = vmatprep.subr.bf16.mxu0 %v13387_v41  ;;  %5957 = vmin.xlane.f32.xlu1 %v5956_v57  ;;  %v5953_v45 = vsel %vm856_vm5, %v13515_v19, inf  ;;  %v5875_v4 = vpack.c.bf16 %v9671_v11, %v9670_v13 }
0x340b   : > { %5954 = vmin.xlane.f32.xlu0 %v5953_v45 }
0x340d   : > { %6215 = vmatpush1.bf16.msra.mxu0 %v13378_v21 }
0x340e   : > { %6542 = vmatprep.subr.bf16.mxu0 %v13346_v31 }
0x3410   : > { %9673 = vmatmul.mubr.msk.bf16.gmra.mrb[80].mxu0 %vm856_vm5, %v5875_v4 }
0x3411   : > { %6244 = vmatprep.mubr.bf16.mxu0 %v14451_v26 }
0x3493   : > { %v5952_v10 = vpop.xlane.xlu1 %5951 }
0x3494   : > { %vm5960_vm6 = vcmp.le.f32.partialorder %v13495_v42, %v5952_v10  ;;  %v5949_v47 = vpop.xlane.xlu0 %5948 }
0x3495   : > { %v5964_v28 = vsel %vm5960_vm6, %v11621_v16, 32  ;;  %vm5959_vm9 = vcmp.le.f32.partialorder %v13501_v61, %v5949_v47 }
0x3496   : > { %v5982_v34 = vsel %vm856_vm5, %v5964_v28, 2147483647  ;;  %v5963_v12 = vsel %vm5959_vm9, %v11621_v16, 32 }
0x3497   : > { %v5984_v22 = vshra.s32 %v5982_v34, 16  ;;  %v5967_v39 = vsel %vm856_vm5, %v5963_v12, 2147483647  ;;  %v5958_v20 = vpop.xlane.xlu1 %5957  ;;  %v5983_v28 = vand.u32 65535, %v5982_v34 }
0x3498   : > { %v5969_v17 = vshra.s32 %v5967_v39, 16  ;;  %vm5962_vm10 = vcmp.le.f32.partialorder %v13509_v24, %v5958_v20  ;;  %v5955_v44 = vpop.xlane.xlu0 %5954  ;;  %v5968_v10 = vand.u32 65535, %v5967_v39 }
0x3499   : > { %v5966_v36 = vsel %vm5962_vm10, %v11621_v16, 32  ;;  %vm5961_vm11 = vcmp.le.f32.partialorder %v13515_v19, %v5955_v44  ;;  %v5986_v23 = vcvt.s32.f32 %v5984_v22 }
0x349a   : > { %v6012_v30 = vsel %vm856_vm5, %v5966_v36, 2147483647  ;;  %v5965_v25 = vsel %vm5961_vm11, %v11621_v16, 32  ;;  %v5971_v62 = vcvt.s32.f32 %v5969_v17  ;;  %v5985_v17 = vcvt.s32.f32 %v5983_v28 }
0x349b   : > { %v6014_v14 = vshra.s32 %v6012_v30, 16  ;;  %v5997_v29 = vsel %vm856_vm5, %v5965_v25, 2147483647  ;;  %5987 = vmin.xlane.f32.xlu1 %v5986_v23  ;;  %v6013_v13 = vand.u32 65535, %v6012_v30  ;;  %v5970_v6 = vcvt.s32.f32 %v5968_v10 }
0x349c   : > { %v5999_v48 = vshra.s32 %v5997_v29, 16  ;;  %5972 = vmin.xlane.f32.xlu0 %v5971_v62  ;;  %v5998_v1 = vand.u32 65535, %v5997_v29 }
0x349d   : > { %v6016_v57 = vcvt.s32.f32 %v6014_v14  ;;  %v6015_v14 = vcvt.s32.f32 %v6013_v13 }
0x349e   : > { %v6001_v45 = vcvt.s32.f32 %v5999_v48  ;;  %v6000_v38 = vcvt.s32.f32 %v5998_v1 }
0x349f   : > { %6017 = vmin.xlane.f32.xlu1 %v6016_v57 }
0x34a0   : > { %6002 = vmin.xlane.f32.xlu0 %v6001_v45 }
0x34db   : > { %v13539_v11 = vpop.f32.mrb[76].mxu0 }
0x34dc   : > { %v13543_v4 = vpop.f32.mrb[77].mxu0 }
0x34dd   : > { %v13547_v47 = vpop.f32.mrb[78].mxu0 }
0x34de   : > { %v13551_v12 = vpop.f32.mrb[79].mxu0 }
0x34e3   : > { %v13555_v20 = vpop.f32.mrb[80].mxu0 }
0x34e4   : > { %v13559_v44 = vpop.f32.mrb[81].mxu0 }
0x34e5   : > { %v13563_v25 = vpop.f32.mrb[82].mxu0 }
0x34e6   : > { %v13567_v48 = vpop.f32.mrb[83].mxu0 }
0x3528   : > { %v5988_v27 = vpop.xlane.xlu1 %5987 }
0x3529   : > { %vm5989_vm2 = vcmp.eq.f32.partialorder %v5986_v23, %v5988_v27  ;;  %v5973_v5 = vpop.xlane.xlu0 %5972  ;;  %v5994_v30 = vcvt.f32.s32 %v5988_v27 }
0x352a   : > { %vm5974_vm3 = vcmp.eq.f32.partialorder %v5971_v62, %v5973_v5  ;;  %v5990_v36 = vsel %vm5989_vm2, %v5985_v17, inf  ;;  %v5979_v29 = vcvt.f32.s32 %v5973_v5 }
0x352b   : > { %5991 = vmin.xlane.f32.xlu1 %v5990_v36  ;;  %v5975_v7 = vsel %vm5974_vm3, %v5970_v6, inf  ;;  %v5995_v28 = vshll.u32 %v5994_v30, 16 }
0x352c   : > { %v6018_v43 = vpop.xlane.xlu1 %6017  ;;  %5976 = vmin.xlane.f32.xlu0 %v5975_v7  ;;  %v5980_v6 = vshll.u32 %v5979_v29, 16 }
0x352d   : > { %vm6019_vm4 = vcmp.eq.f32.partialorder %v6016_v57, %v6018_v43  ;;  %v6003_v54 = vpop.xlane.xlu0 %6002  ;;  %v6024_v10 = vcvt.f32.s32 %v6018_v43 }
0x352e   : > { %vm6004_vm12 = vcmp.eq.f32.partialorder %v6001_v45, %v6003_v54  ;;  %v6020_v34 = vsel %vm6019_vm4, %v6015_v14, inf  ;;  %v6009_v62 = vcvt.f32.s32 %v6003_v54 }
0x352f   : > { %6021 = vmin.xlane.f32.xlu1 %v6020_v34  ;;  %v6005_v39 = vsel %vm6004_vm12, %v6000_v38, inf  ;;  %v6025_v0 = vshll.u32 %v6024_v10, 16 }
0x3530   : > { %6006 = vmin.xlane.f32.xlu0 %v6005_v39  ;;  %v6010_v1 = vshll.u32 %v6009_v62, 16 }
0x35b8   : > { %v5992_v23 = vpop.xlane.xlu1 %5991 }
0x35b9   : > { %v5993_v17 = vcvt.f32.s32 %v5992_v23  ;;  %v5977_v36 = vpop.xlane.xlu0 %5976 }
0x35ba   : > { %v5978_v22 = vcvt.f32.s32 %v5977_v36 }
0x35bb   : > { %v5996_v7 = vadd.s32 %v5995_v28, %v5993_v17 }
0x35bc   : > { %v5981_v13 = vadd.s32 %v5980_v6, %v5978_v22  ;;  %v6022_v57 = vpop.xlane.xlu1 %6021 }
0x35bd   : > { %vm6028_vm13 = vcmp.eq.s32.totalorder %v11621_v16, %v5996_v7  ;;  %v6023_v45 = vcvt.f32.s32 %v6022_v57  ;;  %v6007_v38 = vpop.xlane.xlu0 %6006 }
0x35be   : > { %v9675_v27 = vsel %vm6028_vm13, 1.0, %v14414_v8  ;;  %vm6027_vm14 = vcmp.eq.s32.totalorder %v11621_v16, %v5981_v13  ;;  %v6008_v5 = vcvt.f32.s32 %v6007_v38  ;;  %v13575_v54 = vsel %vm6028_vm13, inf, %v13495_v42 }
0x35bf   : > { %v9674_v43 = vsel %vm6027_vm14, 1.0, %v14414_v8  ;;  %v6026_v14 = vadd.s32 %v6025_v0, %v6023_v45  ;;  %v6115_v22 = vsel %vm856_vm5, %v13575_v54, inf  ;;  %v13581_v34 = vsel %vm6027_vm14, inf, %v13501_v61 }
0x35c0   : > { %v6039_v39 = vpack.c.bf16 %v9675_v27, %v9674_v43  ;;  %v6011_v30 = vadd.s32 %v6010_v1, %v6008_v5  ;;  %6116 = vmin.xlane.f32.xlu1 %v6115_v22  ;;  %v6112_v29 = vsel %vm856_vm5, %v13581_v34, inf }
0x35c1   : > { %vm6030_vm8 = vcmp.eq.s32.totalorder %v11621_v16, %v6026_v14  ;;  %6113 = vmin.xlane.f32.xlu0 %v6112_v29 }
0x35c2   : > { %vm6029_vm15 = vcmp.eq.s32.totalorder %v11621_v16, %v6011_v30  ;;  %9678 = vmatmul.mubr.msk.bf16.vlgmr.msra.gmra.mrb[76].mxu1 %vm856_vm5, %v6039_v39  ;;  %v13589_v0 = vsel %vm6030_vm8, inf, %v13509_v24  ;;  %v9677_v28 = vsel %vm6030_vm8, 1.0, %v14414_v8 }
0x35c3   : > { %6378 = vmatpush1.bf16.msra.mxu1 %v13338_v50  ;;  %v6121_v42 = vsel %vm856_vm5, %v13589_v0, inf  ;;  %v13595_v61 = vsel %vm6029_vm15, inf, %v13515_v19  ;;  %6089 = vmatprep.mubr.bf16.mxu1 %v14451_v26  ;;  %v9676_v24 = vsel %vm6029_vm15, 1.0, %v14414_v8 }
0x35c4   : > { %6379 = vmatprep.subr.bf16.mxu1 %v13387_v41  ;;  %6122 = vmin.xlane.f32.xlu1 %v6121_v42  ;;  %v6118_v23 = vsel %vm856_vm5, %v13595_v61, inf  ;;  %v6040_v10 = vpack.c.bf16 %v9677_v28, %v9676_v24  ;;  %v14452_v28 = vmax.f32 %v13475_v40, %v13539_v11  ;;  %v14456_v11 = vmax.f32 %v13483_v55, %v13555_v20 }
0x35c5   : > { %6119 = vmin.xlane.f32.xlu0 %v6118_v23 }
0x35c7   : > { %6380 = vmatpush1.bf16.msra.mxu1 %v13378_v21 }
0x35c8   : > { %6707 = vmatprep.subr.bf16.mxu1 %v13346_v31 }
0x35ca   : > { %9679 = vmatmul.mubr.msk.bf16.gmra.mrb[80].mxu1 %vm856_vm5, %v6040_v10 }
0x35cb   : > { %6409 = vmatprep.mubr.bf16.mxu1 %v14451_v26 }
0x364d   : > { %v6117_v19 = vpop.xlane.xlu1 %6116 }
0x364e   : > { %vm6125_vm0 = vcmp.le.f32.partialorder %v13575_v54, %v6117_v19  ;;  %v6114_v62 = vpop.xlane.xlu0 %6113  ;;  %v14453_v19 = vmax.f32 %v13477_v51, %v13543_v4  ;;  %v14457_v4 = vmax.f32 %v13485_v56, %v13559_v44 }
0x364f   : > { %v6129_v17 = vsel %vm6125_vm0, %v11621_v16, 32  ;;  %vm6124_vm1 = vcmp.le.f32.partialorder %v13581_v34, %v6114_v62 }
0x3650   : > { %v6147_v36 = vsel %vm856_vm5, %v6129_v17, 2147483647  ;;  %v6128_v6 = vsel %vm6124_vm1, %v11621_v16, 32 }
0x3651   : > { %v6149_v7 = vshra.s32 %v6147_v36, 16  ;;  %v6132_v13 = vsel %vm856_vm5, %v6128_v6, 2147483647  ;;  %v6123_v57 = vpop.xlane.xlu1 %6122  ;;  %v14454_v6 = vmax.f32 %v13479_v37, %v13547_v47  ;;  %v14458_v47 = vmax.f32 %v13487_v49, %v13563_v25 }
0x3652   : > { %v6134_v1 = vshra.s32 %v6132_v13, 16  ;;  %vm6127_vm6 = vcmp.le.f32.partialorder %v13589_v0, %v6123_v57  ;;  %v6120_v45 = vpop.xlane.xlu0 %6119  ;;  %v6148_v55 = vand.u32 65535, %v6147_v36  ;;  %v6133_v20 = vand.u32 65535, %v6132_v13 }
0x3653   : > { %v6131_v38 = vsel %vm6127_vm6, %v11621_v16, 32  ;;  %vm6126_vm9 = vcmp.le.f32.partialorder %v13595_v61, %v6120_v45  ;;  %v6151_v27 = vcvt.s32.f32 %v6149_v7 }
0x3654   : > { %v6177_v5 = vsel %vm856_vm5, %v6131_v38, 2147483647  ;;  %v6130_v43 = vsel %vm6126_vm9, %v11621_v16, 32  ;;  %v6136_v14 = vcvt.s32.f32 %v6134_v1  ;;  %v14455_v1 = vmax.f32 %v13481_v3, %v13551_v12 }
0x3655   : > { %v6179_v22 = vshra.s32 %v6177_v5, 16  ;;  %v6162_v39 = vsel %vm856_vm5, %v6130_v43, 2147483647  ;;  %6152 = vmin.xlane.f32.xlu1 %v6151_v27  ;;  %v14459_v12 = vmax.f32 %v13489_v35, %v13567_v48 }
0x3656   : > { %v6164_v30 = vshra.s32 %v6162_v39, 16  ;;  %6137 = vmin.xlane.f32.xlu0 %v6136_v14  ;;  %v6163_v56 = vand.u32 65535, %v6162_v39 }
0x3657   : > { %v6181_v29 = vcvt.s32.f32 %v6179_v22 }
0x3658   : > { %v6166_v42 = vcvt.s32.f32 %v6164_v30  ;;  %v6165_v48 = vcvt.s32.f32 %v6163_v56 }
0x3659   : > { %6182 = vmin.xlane.f32.xlu1 %v6181_v29 }
0x365a   : > { %6167 = vmin.xlane.f32.xlu0 %v6166_v42 }
0x3695   : > { %v6081_v23 = vpop.f32.mrb[76].mxu1 }
0x3696   : > { %v13622_v24 = vmax.f32 %v14452_v28, %v6081_v23  ;;  %v6083_v10 = vpop.f32.mrb[77].mxu1  ;;  %v6178_v23 = vand.u32 65535, %v6177_v5 }
0x3697   : > { %v13627_v62 = vmax.f32 %v14453_v19, %v6083_v10  ;;  %v6085_v17 = vpop.f32.mrb[78].mxu1  ;;  %v6150_v10 = vcvt.s32.f32 %v6148_v55  ;;  %v6135_v19 = vcvt.s32.f32 %v6133_v20 }
0x3698   : > { %v13632_v7 = vmax.f32 %v14454_v6, %v6085_v17  ;;  %v6087_v57 = vpop.f32.mrb[79].mxu1  ;;  %v6180_v6 = vcvt.s32.f32 %v6178_v23 }
0x3699   : > { %v13637_v45 = vmax.f32 %v14455_v1, %v6087_v57 }
0x369d   : > { %v6091_v40 = vpop.f32.mrb[80].mxu1 }
0x369e   : > { %v13642_v38 = vmax.f32 %v14456_v11, %v6091_v40  ;;  %v6093_v51 = vpop.f32.mrb[81].mxu1 }
0x369f   : > { %v13647_v43 = vmax.f32 %v14457_v4, %v6093_v51  ;;  %v6095_v37 = vpop.f32.mrb[82].mxu1 }
0x36a0   : > { %v13652_v22 = vmax.f32 %v14458_v47, %v6095_v37  ;;  %v6097_v3 = vpop.f32.mrb[83].mxu1 }
0x36a1   : > { %v13657_v30 = vmax.f32 %v14459_v12, %v6097_v3 }
0x36e2   : > { %v6153_v28 = vpop.xlane.xlu1 %6152 }
0x36e3   : > { %vm6154_vm10 = vcmp.eq.f32.partialorder %v6151_v27, %v6153_v28  ;;  %v6138_v44 = vpop.xlane.xlu0 %6137  ;;  %v6159_v5 = vcvt.f32.s32 %v6153_v28 }
0x36e4   : > { %vm6139_vm11 = vcmp.eq.f32.partialorder %v6136_v14, %v6138_v44  ;;  %v6155_v17 = vsel %vm6154_vm10, %v6150_v10, inf  ;;  %v6144_v39 = vcvt.f32.s32 %v6138_v44 }
0x36e5   : > { %6156 = vmin.xlane.f32.xlu1 %v6155_v17  ;;  %v6140_v49 = vsel %vm6139_vm11, %v6135_v19, inf  ;;  %v6160_v57 = vshll.u32 %v6159_v5, 16 }
0x36e6   : > { %v6183_v25 = vpop.xlane.xlu1 %6182  ;;  %6141 = vmin.xlane.f32.xlu0 %v6140_v49  ;;  %v6145_v51 = vshll.u32 %v6144_v39, 16 }
0x36e7   : > { %vm6184_vm2 = vcmp.eq.f32.partialorder %v6181_v29, %v6183_v25  ;;  %v6168_v35 = vpop.xlane.xlu0 %6167  ;;  %v6189_v1 = vcvt.f32.s32 %v6183_v25 }
0x36e8   : > { %vm6169_vm3 = vcmp.eq.f32.partialorder %v6166_v42, %v6168_v35  ;;  %v6185_v36 = vsel %vm6184_vm2, %v6180_v6, inf  ;;  %v6174_v14 = vcvt.f32.s32 %v6168_v35 }
0x36e9   : > { %6186 = vmin.xlane.f32.xlu1 %v6185_v36  ;;  %v6170_v13 = vsel %vm6169_vm3, %v6165_v48, inf  ;;  %v6190_v3 = vshll.u32 %v6189_v1, 16 }
0x36ea   : > { %6171 = vmin.xlane.f32.xlu0 %v6170_v13  ;;  %v6175_v12 = vshll.u32 %v6174_v14, 16 }
0x3772   : > { %v6157_v27 = vpop.xlane.xlu1 %6156 }
0x3773   : > { %v6158_v40 = vcvt.f32.s32 %v6157_v27  ;;  %v6142_v11 = vpop.xlane.xlu0 %6141 }
0x3774   : > { %v6143_v4 = vcvt.f32.s32 %v6142_v11 }
0x3775   : > { %v6161_v37 = vadd.s32 %v6160_v57, %v6158_v40 }
0x3776   : > { %v6146_v47 = vadd.s32 %v6145_v51, %v6143_v4  ;;  %v6187_v29 = vpop.xlane.xlu1 %6186 }
0x3777   : > { %vm6193_vm4 = vcmp.eq.s32.totalorder %v11621_v16, %v6161_v37  ;;  %v6188_v42 = vcvt.f32.s32 %v6187_v29  ;;  %v6172_v55 = vpop.xlane.xlu0 %6171 }
0x3778   : > { %v9681_v20 = vsel %vm6193_vm4, 1.0, %v14414_v8  ;;  %vm6192_vm12 = vcmp.eq.s32.totalorder %v11621_v16, %v6146_v47  ;;  %v6173_v23 = vcvt.f32.s32 %v6172_v55  ;;  %v13663_v28 = vsel %vm6193_vm4, inf, %v13575_v54 }
0x3779   : > { %v9680_v10 = vsel %vm6192_vm12, 1.0, %v14414_v8  ;;  %v6191_v56 = vadd.s32 %v6190_v3, %v6188_v42  ;;  %v6280_v44 = vsel %vm856_vm5, %v13663_v28, inf  ;;  %v13669_v19 = vsel %vm6192_vm12, inf, %v13581_v34 }
0x377a   : > { %v6204_v17 = vpack.c.bf16 %v9681_v20, %v9680_v10  ;;  %v6176_v49 = vadd.s32 %v6175_v12, %v6173_v23  ;;  %6281 = vmin.xlane.f32.xlu1 %v6280_v44  ;;  %v6277_v25 = vsel %vm856_vm5, %v13669_v19, inf }
0x377b   : > { %vm6195_vm13 = vcmp.eq.s32.totalorder %v11621_v16, %v6191_v56  ;;  %6278 = vmin.xlane.f32.xlu0 %v6277_v25 }
0x377c   : > { %vm6194_vm14 = vcmp.eq.s32.totalorder %v11621_v16, %v6176_v49  ;;  %9684 = vmatmul.mubr.msk.bf16.vlgmr.msra.gmra.mrb[84].mxu0 %vm856_vm5, %v6204_v17  ;;  %v13677_v54 = vsel %vm6195_vm13, inf, %v13589_v0  ;;  %v9683_v48 = vsel %vm6195_vm13, 1.0, %v14414_v8 }
0x377d   : > { %6543 = vmatpush1.bf16.msra.mxu0 %v13338_v50  ;;  %v6286_v34 = vsel %vm856_vm5, %v13677_v54, inf  ;;  %v13683_v6 = vsel %vm6194_vm14, inf, %v13595_v61  ;;  %6254 = vmatprep.mubr.bf16.mxu0 %v14451_v26  ;;  %v9682_v0 = vsel %vm6194_vm14, 1.0, %v14414_v8 }
0x377e   : > { %6544 = vmatprep.subr.bf16.mxu0 %v13387_v41  ;;  %6287 = vmin.xlane.f32.xlu1 %v6286_v34  ;;  %v6283_v35 = vsel %vm856_vm5, %v13683_v6, inf  ;;  %v6205_v36 = vpack.c.bf16 %v9683_v48, %v9682_v0 }
0x377f   : > { %6284 = vmin.xlane.f32.xlu0 %v6283_v35 }
0x3781   : > { %6545 = vmatpush1.bf16.msra.mxu0 %v13378_v21 }
0x3782   : > { %6872 = vmatprep.subr.bf16.mxu0 %v13346_v31 }
0x3784   : > { %9685 = vmatmul.mubr.msk.bf16.gmra.mrb[88].mxu0 %vm856_vm5, %v6205_v36 }
0x3785   : > { %6574 = vmatprep.mubr.bf16.mxu0 %v14451_v26 }
0x3807   : > { %v6282_v61 = vpop.xlane.xlu1 %6281 }
0x3808   : > { %vm6290_vm8 = vcmp.le.f32.partialorder %v13663_v28, %v6282_v61  ;;  %v6279_v13 = vpop.xlane.xlu0 %6278 }
0x3809   : > { %v6294_v5 = vsel %vm6290_vm8, %v11621_v16, 32  ;;  %vm6289_vm15 = vcmp.le.f32.partialorder %v13669_v19, %v6279_v13 }
0x380a   : > { %v6312_v39 = vsel %vm856_vm5, %v6294_v5, 2147483647  ;;  %v6293_v27 = vsel %vm6289_vm15, %v11621_v16, 32 }
0x380b   : > { %v6314_v57 = vshra.s32 %v6312_v39, 16  ;;  %v6297_v1 = vsel %vm856_vm5, %v6293_v27, 2147483647  ;;  %v6288_v31 = vpop.xlane.xlu1 %6287  ;;  %v6313_v27 = vand.u32 65535, %v6312_v39 }
0x380c   : > { %v6299_v14 = vshra.s32 %v6297_v1, 16  ;;  %vm6292_vm0 = vcmp.le.f32.partialorder %v13677_v54, %v6288_v31  ;;  %v6285_v40 = vpop.xlane.xlu0 %6284 }
0x380d   : > { %v6296_v11 = vsel %vm6292_vm0, %v11621_v16, 32  ;;  %vm6291_vm1 = vcmp.le.f32.partialorder %v13683_v6, %v6285_v40  ;;  %v6316_v51 = vcvt.s32.f32 %v6314_v57  ;;  %v6298_v57 = vand.u32 65535, %v6297_v1 }
0x380e   : > { %v6342_v4 = vsel %vm856_vm5, %v6296_v11, 2147483647  ;;  %v6295_v37 = vsel %vm6291_vm1, %v11621_v16, 32  ;;  %v6301_v47 = vcvt.s32.f32 %v6299_v14  ;;  %v6315_v40 = vcvt.s32.f32 %v6313_v27 }
0x380f   : > { %v6344_v29 = vshra.s32 %v6342_v4, 16  ;;  %v6327_v3 = vsel %vm856_vm5, %v6295_v37, 2147483647  ;;  %6317 = vmin.xlane.f32.xlu1 %v6316_v51  ;;  %v6343_v31 = vand.u32 65535, %v6342_v4 }
0x3810   : > { %v6329_v12 = vshra.s32 %v6327_v3, 16  ;;  %6302 = vmin.xlane.f32.xlu0 %v6301_v47  ;;  %v6328_v11 = vand.u32 65535, %v6327_v3 }
0x3811   : > { %v6346_v42 = vcvt.s32.f32 %v6344_v29  ;;  %v6300_v29 = vcvt.s32.f32 %v6298_v57  ;;  %v6345_v61 = vcvt.s32.f32 %v6343_v31 }
0x3812   : > { %v6331_v55 = vcvt.s32.f32 %v6329_v12  ;;  %v6330_v17 = vcvt.s32.f32 %v6328_v11 }
0x3813   : > { %6347 = vmin.xlane.f32.xlu1 %v6346_v42 }
0x3814   : > { %6332 = vmin.xlane.f32.xlu0 %v6331_v55 }
0x384f   : > { %v13707_v20 = vpop.f32.mrb[84].mxu0 }
0x3850   : > { %v6269_v23 = vmax.f32 %v13622_v24, %v13707_v20  ;;  %v13711_v10 = vpop.f32.mrb[85].mxu0 }
0x3851   : > { %v13715_v44 = vpop.f32.mrb[86].mxu0 }
0x3852   : > { %v13719_v49 = vpop.f32.mrb[87].mxu0 }
0x3857   : > { %v13723_v34 = vpop.f32.mrb[88].mxu0 }
0x3858   : > { %v13727_v48 = vpop.f32.mrb[89].mxu0  ;;  %v14463_v20 = vmax.f32 %v13642_v38, %v13723_v34 }
0x3859   : > { %v13731_v36 = vpop.f32.mrb[90].mxu0 }
0x385a   : > { %v13735_v13 = vpop.f32.mrb[91].mxu0 }
0x389c   : > { %v6318_v14 = vpop.xlane.xlu1 %6317 }
0x389d   : > { %vm6319_vm6 = vcmp.eq.f32.partialorder %v6316_v51, %v6318_v14  ;;  %v6303_v37 = vpop.xlane.xlu0 %6302  ;;  %v6324_v4 = vcvt.f32.s32 %v6318_v14 }
0x389e   : > { %vm6304_vm9 = vcmp.eq.f32.partialorder %v6301_v47, %v6303_v37  ;;  %v6320_v12 = vsel %vm6319_vm6, %v6315_v40, inf  ;;  %v6309_v3 = vcvt.f32.s32 %v6303_v37 }
0x389f   : > { %6321 = vmin.xlane.f32.xlu1 %v6320_v12  ;;  %v6305_v0 = vsel %vm6304_vm9, %v6300_v29, inf  ;;  %v6325_v27 = vshll.u32 %v6324_v4, 16 }
0x38a0   : > { %v6348_v35 = vpop.xlane.xlu1 %6347  ;;  %6306 = vmin.xlane.f32.xlu0 %v6305_v0  ;;  %v6310_v29 = vshll.u32 %v6309_v3, 16 }
0x38a1   : > { %vm6349_vm10 = vcmp.eq.f32.partialorder %v6346_v42, %v6348_v35  ;;  %v6333_v25 = vpop.xlane.xlu0 %6332  ;;  %v6354_v57 = vcvt.f32.s32 %v6348_v35 }
0x38a2   : > { %vm6334_vm11 = vcmp.eq.f32.partialorder %v6331_v55, %v6333_v25  ;;  %v6350_v39 = vsel %vm6349_vm10, %v6345_v61, inf  ;;  %v6339_v47 = vcvt.f32.s32 %v6333_v25 }
0x38a3   : > { %6351 = vmin.xlane.f32.xlu1 %v6350_v39  ;;  %v6335_v1 = vsel %vm6334_vm11, %v6330_v17, inf  ;;  %v6355_v56 = vshll.u32 %v6354_v57, 16 }
0x38a4   : > { %6336 = vmin.xlane.f32.xlu0 %v6335_v1  ;;  %v6340_v11 = vshll.u32 %v6339_v47, 16 }
0x392c   : > { %v6322_v51 = vpop.xlane.xlu1 %6321 }
0x392d   : > { %v6323_v40 = vcvt.f32.s32 %v6322_v51  ;;  %v6307_v12 = vpop.xlane.xlu0 %6306 }
0x392e   : > { %v6308_v5 = vcvt.f32.s32 %v6307_v12 }
0x392f   : > { %v6326_v0 = vadd.s32 %v6325_v27, %v6323_v40 }
0x3930   : > { %v6311_v31 = vadd.s32 %v6310_v29, %v6308_v5  ;;  %v6352_v42 = vpop.xlane.xlu1 %6351 }
0x3931   : > { %vm6358_vm2 = vcmp.eq.s32.totalorder %v11621_v16, %v6326_v0  ;;  %v6353_v55 = vcvt.f32.s32 %v6352_v42  ;;  %v6337_v17 = vpop.xlane.xlu0 %6336 }
0x3932   : > { %v9687_v61 = vsel %vm6358_vm2, 1.0, %v14414_v8  ;;  %vm6357_vm3 = vcmp.eq.s32.totalorder %v11621_v16, %v6311_v31  ;;  %v6338_v14 = vcvt.f32.s32 %v6337_v17  ;;  %v13743_v25 = vsel %vm6358_vm2, inf, %v13663_v28 }
0x3933   : > { %v9686_v35 = vsel %vm6357_vm3, 1.0, %v14414_v8  ;;  %v6356_v37 = vadd.s32 %v6355_v56, %v6353_v55  ;;  %v6445_v5 = vsel %vm856_vm5, %v13743_v25, inf  ;;  %v13749_v39 = vsel %vm6357_vm3, inf, %v13669_v19 }
0x3934   : > { %v6369_v1 = vpack.c.bf16 %v9687_v61, %v9686_v35  ;;  %v6341_v4 = vadd.s32 %v6340_v11, %v6338_v14  ;;  %6446 = vmin.xlane.f32.xlu1 %v6445_v5  ;;  %v6442_v3 = vsel %vm856_vm5, %v13749_v39, inf }
0x3935   : > { %vm6360_vm4 = vcmp.eq.s32.totalorder %v11621_v16, %v6356_v37  ;;  %6443 = vmin.xlane.f32.xlu0 %v6442_v3 }
0x3936   : > { %vm6359_vm12 = vcmp.eq.s32.totalorder %v11621_v16, %v6341_v4  ;;  %9690 = vmatmul.mubr.msk.bf16.vlgmr.msra.gmra.mrb[84].mxu1 %vm856_vm5, %v6369_v1  ;;  %v13757_v28 = vsel %vm6360_vm4, inf, %v13677_v54  ;;  %v9689_v27 = vsel %vm6360_vm4, 1.0, %v14414_v8 }
0x3937   : > { %6708 = vmatpush1.bf16.msra.mxu1 %v13338_v50  ;;  %v6451_v19 = vsel %vm856_vm5, %v13757_v28, inf  ;;  %v13763_v56 = vsel %vm6359_vm12, inf, %v13683_v6  ;;  %6419 = vmatprep.mubr.bf16.mxu1 %v14451_v26  ;;  %v9688_v54 = vsel %vm6359_vm12, 1.0, %v14414_v8 }
0x3938   : > { %6709 = vmatprep.subr.bf16.mxu1 %v13387_v41  ;;  %6452 = vmin.xlane.f32.xlu1 %v6451_v19  ;;  %v6448_v51 = vsel %vm856_vm5, %v13763_v56, inf  ;;  %v6370_v57 = vpack.c.bf16 %v9689_v27, %v9688_v54 }
0x3939   : > { %6449 = vmin.xlane.f32.xlu0 %v6448_v51 }
0x393b   : > { %6710 = vmatpush1.bf16.msra.mxu1 %v13378_v21 }
0x393e   : > { %9691 = vmatmul.mubr.msk.bf16.gmra.mrb[88].mxu1 %vm856_vm5, %v6370_v57  ;;  %v14460_v57 = vmax.f32 %v13627_v62, %v13711_v10  ;;  %v14464_v10 = vmax.f32 %v13647_v43, %v13727_v48 }
0x393f   : > { %6739 = vmatprep.mubr.bf16.mxu1 %v14451_v26 }
0x39c1   : > { %v6447_v6 = vpop.xlane.xlu1 %6446 }
0x39c2   : > { %vm6455_vm13 = vcmp.le.f32.partialorder %v13743_v25, %v6447_v6  ;;  %v6444_v47 = vpop.xlane.xlu0 %6443 }
0x39c3   : > { %v6459_v40 = vsel %vm6455_vm13, %v11621_v16, 32  ;;  %vm6454_vm14 = vcmp.le.f32.partialorder %v13749_v39, %v6444_v47 }
0x39c4   : > { %v6477_v12 = vsel %vm856_vm5, %v6459_v40, 2147483647  ;;  %v6458_v29 = vsel %vm6454_vm14, %v11621_v16, 32  ;;  %v14461_v40 = vmax.f32 %v13632_v7, %v13715_v44  ;;  %v14465_v44 = vmax.f32 %v13652_v22, %v13731_v36 }
0x39c5   : > { %v6479_v0 = vshra.s32 %v6477_v12, 16  ;;  %v6462_v31 = vsel %vm856_vm5, %v6458_v29, 2147483647  ;;  %v6453_v42 = vpop.xlane.xlu1 %6452  ;;  %v6478_v38 = vand.u32 65535, %v6477_v12 }
0x39c6   : > { %v6464_v11 = vshra.s32 %v6462_v31, 16  ;;  %vm6457_vm8 = vcmp.le.f32.partialorder %v13757_v28, %v6453_v42  ;;  %v6450_v55 = vpop.xlane.xlu0 %6449  ;;  %v14462_v42 = vmax.f32 %v13637_v45, %v13719_v49  ;;  %v14466_v49 = vmax.f32 %v13657_v30, %v13735_v13 }
0x39c7   : > { %v6461_v17 = vsel %vm6457_vm8, %v11621_v16, 32  ;;  %vm6456_vm15 = vcmp.le.f32.partialorder %v13763_v56, %v6450_v55  ;;  %v6481_v61 = vcvt.s32.f32 %v6479_v0  ;;  %v6463_v34 = vand.u32 65535, %v6462_v31 }
0x39c8   : > { %v6507_v14 = vsel %vm856_vm5, %v6461_v17, 2147483647  ;;  %v6460_v35 = vsel %vm6456_vm15, %v11621_v16, 32  ;;  %v6466_v37 = vcvt.s32.f32 %v6464_v11 }
0x39c9   : > { %v6509_v5 = vshra.s32 %v6507_v14, 16  ;;  %v6492_v1 = vsel %vm856_vm5, %v6460_v35, 2147483647  ;;  %6482 = vmin.xlane.f32.xlu1 %v6481_v61 }
0x39ca   : > { %v6494_v4 = vshra.s32 %v6492_v1, 16  ;;  %6467 = vmin.xlane.f32.xlu0 %v6466_v37  ;;  %v6493_v43 = vand.u32 65535, %v6492_v1 }
0x39cb   : > { %v6511_v3 = vcvt.s32.f32 %v6509_v5  ;;  %v6508_v5 = vand.u32 65535, %v6507_v14 }
0x39cc   : > { %v6496_v19 = vcvt.s32.f32 %v6494_v4  ;;  %v6495_v13 = vcvt.s32.f32 %v6493_v43 }
0x39cd   : > { %6512 = vmin.xlane.f32.xlu1 %v6511_v3 }
0x39ce   : > { %6497 = vmin.xlane.f32.xlu0 %v6496_v19 }
0x3a09   : > { %v6411_v51 = vpop.f32.mrb[84].mxu1 }
0x3a0a   : > { %v13789_v27 = vmax.f32 %v6269_v23, %v6411_v51  ;;  %v6413_v54 = vpop.f32.mrb[85].mxu1  ;;  %v6480_v51 = vcvt.s32.f32 %v6478_v38 }
0x3a0b   : > { %v13794_v6 = vmax.f32 %v14460_v57, %v6413_v54  ;;  %v6415_v47 = vpop.f32.mrb[86].mxu1  ;;  %v6465_v54 = vcvt.s32.f32 %v6463_v34 }
0x3a0c   : > { %v13799_v29 = vmax.f32 %v14461_v40, %v6415_v47  ;;  %v6417_v0 = vpop.f32.mrb[87].mxu1  ;;  %v6510_v47 = vcvt.s32.f32 %v6508_v5 }
0x3a0d   : > { %v13804_v11 = vmax.f32 %v14462_v42, %v6417_v0 }
0x3a11   : > { %v6421_v24 = vpop.f32.mrb[88].mxu1 }
0x3a12   : > { %v13809_v23 = vmax.f32 %v14463_v20, %v6421_v24  ;;  %v6423_v62 = vpop.f32.mrb[89].mxu1 }
0x3a13   : > { %v13814_v55 = vmax.f32 %v14464_v10, %v6423_v62  ;;  %v6425_v7 = vpop.f32.mrb[90].mxu1 }
0x3a14   : > { %v13819_v17 = vmax.f32 %v14465_v44, %v6425_v7  ;;  %v6427_v45 = vpop.f32.mrb[91].mxu1 }
0x3a15   : > { %v13824_v35 = vmax.f32 %v14466_v49, %v6427_v45 }
0x3a56   : > { %v6483_v4 = vpop.xlane.xlu1 %6482 }
0x3a57   : > { %vm6484_vm0 = vcmp.eq.f32.partialorder %v6481_v61, %v6483_v4  ;;  %v6468_v48 = vpop.xlane.xlu0 %6467  ;;  %v6489_v14 = vcvt.f32.s32 %v6483_v4 }
0x3a58   : > { %vm6469_vm1 = vcmp.eq.f32.partialorder %v6466_v37, %v6468_v48  ;;  %v6485_v57 = vsel %vm6484_vm0, %v6480_v51, inf  ;;  %v6474_v1 = vcvt.f32.s32 %v6468_v48 }
0x3a59   : > { %6486 = vmin.xlane.f32.xlu1 %v6485_v57  ;;  %v6470_v22 = vsel %vm6469_vm1, %v6465_v54, inf  ;;  %v6490_v40 = vshll.u32 %v6489_v14, 16 }
0x3a5a   : > { %v6513_v36 = vpop.xlane.xlu1 %6512  ;;  %6471 = vmin.xlane.f32.xlu0 %v6470_v22  ;;  %v6475_v20 = vshll.u32 %v6474_v1, 16 }
0x3a5b   : > { %vm6514_vm6 = vcmp.eq.f32.partialorder %v6511_v3, %v6513_v36  ;;  %v6498_v30 = vpop.xlane.xlu0 %6497  ;;  %v6519_v0 = vcvt.f32.s32 %v6513_v36 }
0x3a5c   : > { %vm6499_vm9 = vcmp.eq.f32.partialorder %v6496_v19, %v6498_v30  ;;  %v6515_v12 = vsel %vm6514_vm6, %v6510_v47, inf  ;;  %v6504_v37 = vcvt.f32.s32 %v6498_v30 }
0x3a5d   : > { %6516 = vmin.xlane.f32.xlu1 %v6515_v12  ;;  %v6500_v31 = vsel %vm6499_vm9, %v6495_v13, inf  ;;  %v6520_v44 = vshll.u32 %v6519_v0, 16 }
0x3a5e   : > { %6501 = vmin.xlane.f32.xlu0 %v6500_v31  ;;  %v6505_v45 = vshll.u32 %v6504_v37, 16 }
0x3ae6   : > { %v6487_v61 = vpop.xlane.xlu1 %6486 }
0x3ae7   : > { %v6488_v42 = vcvt.f32.s32 %v6487_v61  ;;  %v6472_v24 = vpop.xlane.xlu0 %6471 }
0x3ae8   : > { %v6473_v62 = vcvt.f32.s32 %v6472_v24 }
0x3ae9   : > { %v6491_v10 = vadd.s32 %v6490_v40, %v6488_v42 }
0x3aea   : > { %v6476_v7 = vadd.s32 %v6475_v20, %v6473_v62  ;;  %v6517_v3 = vpop.xlane.xlu1 %6516 }
0x3aeb   : > { %vm6523_vm10 = vcmp.eq.s32.totalorder %v11621_v16, %v6491_v10  ;;  %v6518_v19 = vcvt.f32.s32 %v6517_v3  ;;  %v6502_v49 = vpop.xlane.xlu0 %6501 }
0x3aec   : > { %v9693_v38 = vsel %vm6523_vm10, 1.0, %v14414_v8  ;;  %vm6522_vm11 = vcmp.eq.s32.totalorder %v11621_v16, %v6476_v7  ;;  %v6503_v34 = vcvt.f32.s32 %v6502_v49  ;;  %v13830_v5 = vsel %vm6523_vm10, inf, %v13743_v25 }
0x3aed   : > { %v9692_v4 = vsel %vm6522_vm11, 1.0, %v14414_v8  ;;  %v6521_v51 = vadd.s32 %v6520_v44, %v6518_v19  ;;  %v6610_v43 = vsel %vm856_vm5, %v13830_v5, inf  ;;  %v13836_v48 = vsel %vm6522_vm11, inf, %v13749_v39 }
0x3aee   : > { %v6534_v54 = vpack.c.bf16 %v9693_v38, %v9692_v4  ;;  %v6506_v57 = vadd.s32 %v6505_v45, %v6503_v34  ;;  %6611 = vmin.xlane.f32.xlu1 %v6610_v43  ;;  %v6607_v22 = vsel %vm856_vm5, %v13836_v48, inf }
0x3aef   : > { %vm6525_vm2 = vcmp.eq.s32.totalorder %v11621_v16, %v6521_v51  ;;  %6608 = vmin.xlane.f32.xlu0 %v6607_v22 }
0x3af0   : > { %vm6524_vm3 = vcmp.eq.s32.totalorder %v11621_v16, %v6506_v57  ;;  %9696 = vmatmul.mubr.msk.bf16.vlgmr.msra.gmra.mrb[92].mxu0 %vm856_vm5, %v6534_v54  ;;  %v13844_v25 = vsel %vm6525_vm2, inf, %v13757_v28  ;;  %v9695_v30 = vsel %vm6525_vm2, 1.0, %v14414_v8 }
0x3af1   : > { %6873 = vmatpush1.bf16.msra.mxu0 %v13338_v50  ;;  %v6616_v39 = vsel %vm856_vm5, %v13844_v25, inf  ;;  %v13850_v36 = vsel %vm6524_vm3, inf, %v13763_v56  ;;  %6584 = vmatprep.mubr.bf16.mxu0 %v14451_v26  ;;  %v9694_v28 = vsel %vm6524_vm3, 1.0, %v14414_v8 }
0x3af2   : > { %6874 = vmatprep.subr.bf16.mxu0 %v13387_v41  ;;  %6617 = vmin.xlane.f32.xlu1 %v6616_v39  ;;  %v6613_v47 = vsel %vm856_vm5, %v13850_v36, inf  ;;  %v6535_v50 = vpack.c.bf16 %v9695_v30, %v9694_v28 }
0x3af3   : > { %6614 = vmin.xlane.f32.xlu0 %v6613_v47 }
0x3af5   : > { %6875 = vmatpush1.bf16.msra.mxu0 %v13378_v21 }
0x3af8   : > { %9697 = vmatmul.mubr.msk.bf16.gmra.mrb[96].mxu0 %vm856_vm5, %v6535_v50 }
0x3af9   : > { %6904 = vmatprep.mubr.bf16.mxu0 %v14451_v26 }
0x3b7b   : > { %v6612_v56 = vpop.xlane.xlu1 %6611 }
0x3b7c   : > { %vm6620_vm4 = vcmp.le.f32.partialorder %v13830_v5, %v6612_v56  ;;  %v6609_v41 = vpop.xlane.xlu0 %6608 }
0x3b7d   : > { %v6624_v13 = vsel %vm6620_vm4, %v11621_v16, 32  ;;  %vm6619_vm12 = vcmp.le.f32.partialorder %v13836_v48, %v6609_v41 }
0x3b7e   : > { %v6642_v12 = vsel %vm856_vm5, %v6624_v13, 2147483647  ;;  %v6623_v31 = vsel %vm6619_vm12, %v11621_v16, 32 }
0x3b7f   : > { %v6644_v14 = vshra.s32 %v6642_v12, 16  ;;  %v6627_v21 = vsel %vm856_vm5, %v6623_v31, 2147483647  ;;  %v6618_v1 = vpop.xlane.xlu1 %6617  ;;  %v6643_v56 = vand.u32 65535, %v6642_v12 }
0x3b80   : > { %v6629_v61 = vshra.s32 %v6627_v21, 16  ;;  %vm6622_vm13 = vcmp.le.f32.partialorder %v13844_v25, %v6618_v1  ;;  %v6615_v40 = vpop.xlane.xlu0 %6614  ;;  %v6628_v41 = vand.u32 65535, %v6627_v21 }
0x3b81   : > { %v6626_v0 = vsel %vm6622_vm13, %v11621_v16, 32  ;;  %vm6621_vm14 = vcmp.le.f32.partialorder %v13850_v36, %v6615_v40  ;;  %v6646_v37 = vcvt.s32.f32 %v6644_v14  ;;  %v6645_v14 = vcvt.s32.f32 %v6643_v56 }
0x3b82   : > { %v6672_v42 = vsel %vm856_vm5, %v6626_v0, 2147483647  ;;  %v6625_v24 = vsel %vm6621_vm14, %v11621_v16, 32  ;;  %v6631_v20 = vcvt.s32.f32 %v6629_v61  ;;  %v6630_v40 = vcvt.s32.f32 %v6628_v41 }
0x3b83   : > { %v6674_v62 = vshra.s32 %v6672_v42, 16  ;;  %v6657_v10 = vsel %vm856_vm5, %v6625_v24, 2147483647  ;;  %6647 = vmin.xlane.f32.xlu1 %v6646_v37  ;;  %v6673_v13 = vand.u32 65535, %v6672_v42  ;;  %v7014_v42 = vld [vmem:[#allocation8 + $0x8] sm:$0xff] }
0x3b84   : > { %v6659_v7 = vshra.s32 %v6657_v10, 16  ;;  %6632 = vmin.xlane.f32.xlu0 %v6631_v20  ;;  %v6658_v1 = vand.u32 65535, %v6657_v10  ;;  %v7022_v10 = vld [vmem:[#allocation8 + $0x48] sm:$0xff] }
0x3b85   : > { %v6676_v3 = vcvt.s32.f32 %v6674_v62 }
0x3b86   : > { %v6661_v44 = vcvt.s32.f32 %v6659_v7  ;;  %v6675_v7 = vcvt.s32.f32 %v6673_v13  ;;  %v6660_v39 = vcvt.s32.f32 %v6658_v1  ;;  %v7013_v1 = vld [vmem:[#allocation8] sm:$0xff] }
0x3b87   : > { %6677 = vmin.xlane.f32.xlu1 %v6676_v3 }
0x3b88   : > { %6662 = vmin.xlane.f32.xlu0 %v6661_v44 }
0x3bc3   : > { %v13873_v45 = vpop.f32.mrb[92].mxu0 }
0x3bc4   : > { %v6599_v19 = vmax.f32 %v13789_v27, %v13873_v45  ;;  %v13877_v49 = vpop.f32.mrb[93].mxu0 }
0x3bc5   : > { %v6600_v38 = vmax.f32 %v13794_v6, %v13877_v49  ;;  %v13881_v34 = vpop.f32.mrb[94].mxu0 }
0x3bc6   : > { %v6601_v4 = vmax.f32 %v13799_v29, %v13881_v34  ;;  %v13885_v51 = vpop.f32.mrb[95].mxu0 }
0x3bcb   : > { %v13889_v54 = vpop.f32.mrb[96].mxu0 }
0x3bcc   : > { %v13893_v22 = vpop.f32.mrb[97].mxu0  ;;  %v14468_v45 = vmax.f32 %v13809_v23, %v13889_v54 }
0x3bcd   : > { %v13897_v47 = vpop.f32.mrb[98].mxu0  ;;  %v14469_v49 = vmax.f32 %v13814_v55, %v13893_v22 }
0x3bce   : > { %v13901_v28 = vpop.f32.mrb[99].mxu0  ;;  %v14470_v34 = vmax.f32 %v13819_v17, %v13897_v47 }
0x3c10   : > { %v6648_v31 = vpop.xlane.xlu1 %6647 }
0x3c11   : > { %vm6649_vm8 = vcmp.eq.f32.partialorder %v6646_v37, %v6648_v31  ;;  %v6633_v61 = vpop.xlane.xlu0 %6632  ;;  %v10312_v37 = vpack.c.bf16 %v7022_v10, %v7014_v42  ;;  %v6654_v56 = vcvt.f32.s32 %v6648_v31 }
0x3c12   : > { %vm6634_vm15 = vcmp.eq.f32.partialorder %v6631_v20, %v6633_v61  ;;  %v6650_v0 = vsel %vm6649_vm8, %v6645_v14, inf  ;;  %v6639_v20 = vcvt.f32.s32 %v6633_v61  ;;  %v7030_v61 = vld [vmem:[#allocation8 + $0x88] sm:$0xff] }
0x3c13   : > { %6651 = vmin.xlane.f32.xlu1 %v6650_v0  ;;  %v6635_v24 = vsel %vm6634_vm15, %v6630_v40, inf  ;;  %10313 = vmatprep.subr.bf16.mxu1 %v10312_v37  ;;  %v6655_v40 = vshll.u32 %v6654_v56, 16 }
0x3c14   : > { %v6678_v62 = vpop.xlane.xlu1 %6677  ;;  %6636 = vmin.xlane.f32.xlu0 %v6635_v24 }
0x3c15   : > { %vm6679_vm0 = vcmp.eq.f32.partialorder %v6676_v3, %v6678_v62  ;;  %v6663_v30 = vpop.xlane.xlu0 %6662  ;;  %v6684_v41 = vcvt.f32.s32 %v6678_v62  ;;  %v6640_v3 = vshll.u32 %v6639_v20, 16  ;;  %v7038_v62 = vld [vmem:[#allocation8 + $0xc8] sm:$0xff] }
0x3c16   : > { %vm6664_vm1 = vcmp.eq.f32.partialorder %v6661_v44, %v6663_v30  ;;  %v6680_v12 = vsel %vm6679_vm0, %v6675_v7, inf  ;;  %v6669_v0 = vcvt.f32.s32 %v6663_v30  ;;  %v7021_v44 = vld [vmem:[#allocation8 + $0x40] sm:$0xff] }
0x3c17   : > { %6681 = vmin.xlane.f32.xlu1 %v6680_v12  ;;  %v6665_v21 = vsel %vm6664_vm1, %v6660_v39, inf  ;;  %v6685_v12 = vshll.u32 %v6684_v41, 16  ;;  %v10314_v31 = vpack.c.bf16 %v7021_v44, %v7013_v1 }
0x3c18   : > { %6666 = vmin.xlane.f32.xlu0 %v6665_v21  ;;  %v6670_v57 = vshll.u32 %v6669_v0, 16  ;;  %v10316_v0 = vpack.c.bf16 %v7038_v62, %v7030_v61 }
0x3ca0   : > { %v6652_v14 = vpop.xlane.xlu1 %6651 }
0x3ca1   : > { %v6653_v24 = vcvt.f32.s32 %v6652_v14  ;;  %v6637_v13 = vpop.xlane.xlu0 %6636 }
0x3ca2   : > { %v6638_v50 = vcvt.f32.s32 %v6637_v13  ;;  %v7037_v13 = vld [vmem:[#allocation8 + $0xc0] sm:$0xff] }
0x3ca3   : > { %v6656_v7 = vadd.s32 %v6655_v40, %v6653_v24  ;;  %v7029_v24 = vld [vmem:[#allocation8 + $0x80] sm:$0xff] }
0x3ca4   : > { %v6641_v39 = vadd.s32 %v6640_v3, %v6638_v50  ;;  %v6682_v21 = vpop.xlane.xlu1 %6681  ;;  %v7054_v3 = vld [vmem:[#allocation8 + $0x148] sm:$0xff]  ;;  %v10318_v44 = vpack.c.bf16 %v7037_v13, %v7029_v24 }
0x3ca5   : > { %v6683_v43 = vcvt.f32.s32 %v6682_v21  ;;  %v6667_v42 = vpop.xlane.xlu0 %6666  ;;  %vm6688_vm6 = vcmp.eq.s32.totalorder %v11621_v16, %v6656_v7  ;;  %v7034_v24 = vld [vmem:[#allocation8 + $0xa8] sm:$0xff] }
0x3ca6   : > { %v6668_v10 = vcvt.f32.s32 %v6667_v42  ;;  %v13907_v30 = vsel %vm6688_vm6, inf, %v13830_v5  ;;  %v9699_v37 = vsel %vm6688_vm6, 1.0, %v14414_v8  ;;  %vm6687_vm9 = vcmp.eq.s32.totalorder %v11621_v16, %v6641_v39  ;;  %v7053_v39 = vld [vmem:[#allocation8 + $0x140] sm:$0xff]  ;;  %v7042_v13 = vld [vmem:[#allocation8 + $0xe8] sm:$0xff] }
0x3ca7   : > { %v6686_v56 = vadd.s32 %v6685_v12, %v6683_v43  ;;  %v6775_v50 = vsel %vm856_vm5, %v13907_v30, inf  ;;  %v13914_v20 = vsel %vm6687_vm9, inf, %v13836_v48  ;;  %v9698_v41 = vsel %vm6687_vm9, 1.0, %v14414_v8  ;;  %v7046_v43 = vld [vmem:[#allocation8 + $0x108] sm:$0xff] }
0x3ca8   : > { %v6671_v14 = vadd.s32 %v6670_v57, %v6668_v10  ;;  %6776 = vmin.xlane.f32.xlu1 %v6775_v50  ;;  %v6772_v40 = vsel %vm856_vm5, %v13914_v20, inf  ;;  %v6699_v5 = vpack.c.bf16 %v9699_v37, %v9698_v41  ;;  %v10320_v12 = vpack.c.bf16 %v7054_v3, %v7046_v43  ;;  %v7061_v37 = vld [vmem:[#allocation8 + $0x180] sm:$0xff]  ;;  %v7018_v41 = vld [vmem:[#allocation8 + $0x28] sm:$0xff] }
0x3ca9   : > { %6773 = vmin.xlane.f32.xlu0 %v6772_v40  ;;  %vm6690_vm10 = vcmp.eq.s32.totalorder %v11621_v16, %v6686_v56  ;;  %v7069_v50 = vld [vmem:[#allocation8 + $0x1c0] sm:$0xff]  ;;  %v10348_v3 = vpack.c.bf16 %v7042_v13, %v7034_v24  ;;  %v6974_v24 = vld [vmem:[#allocation7 + $0xc8] sm:$0xff] }
0x3caa   : > { %9702 = vmatmul.mubr.msk.bf16.vlgmr.msra.gmra.mrb[92].mxu1 %vm856_vm5, %v6699_v5  ;;  %v13924_v48 = vsel %vm6690_vm10, inf, %v13844_v25  ;;  %vm6689_vm11 = vcmp.eq.s32.totalorder %v11621_v16, %v6671_v14  ;;  %v7045_v25 = vld [vmem:[#allocation8 + $0x100] sm:$0xff]  ;;  %v9701_v21 = vsel %vm6690_vm10, 1.0, %v14414_v8  ;;  %v7026_v14 = vld [vmem:[#allocation8 + $0x68] sm:$0xff]  ;;  %v10326_v40 = vpack.c.bf16 %v7069_v50, %v7061_v37 }
0x3cab   : > { %10315 = vmatpush1.bf16.msra.mxu1 %v10314_v31  ;;  %v6781_v57 = vsel %vm856_vm5, %v13924_v48, inf  ;;  %v13930_v1 = vsel %vm6689_vm11, inf, %v13850_v36  ;;  %6749 = vmatprep.mubr.bf16.mxu1 %v14451_v26  ;;  %v9700_v42 = vsel %vm6689_vm11, 1.0, %v14414_v8  ;;  %v7062_v36 = vld [vmem:[#allocation8 + $0x188] sm:$0xff]  ;;  %v10322_v61 = vpack.c.bf16 %v7053_v39, %v7045_v25  ;;  %v7017_v5 = vld [vmem:[#allocation8 + $0x20] sm:$0xff] }
0x3cac   : > { %6782 = vmin.xlane.f32.xlu1 %v6781_v57  ;;  %10317 = vmatprep.subr.bf16.mxu1 %v10316_v0  ;;  %v6778_v7 = vsel %vm856_vm5, %v13930_v1, inf  ;;  %v7070_v31 = vld [vmem:[#allocation8 + $0x1c8] sm:$0xff]  ;;  %v6700_v62 = vpack.c.bf16 %v9701_v21, %v9700_v42  ;;  %v10344_v56 = vpack.c.bf16 %v7026_v14, %v7018_v41  ;;  %v7025_v0 = vld [vmem:[#allocation8 + $0x60] sm:$0xff] }
0x3cad   : > { %6779 = vmin.xlane.f32.xlu0 %v6778_v7  ;;  %v10324_v10 = vpack.c.bf16 %v7070_v31, %v7062_v36  ;;  %v10346_v43 = vpack.c.bf16 %v7025_v0, %v7017_v5  ;;  %v7033_v57 = vld [vmem:[#allocation8 + $0xa0] sm:$0xff]  ;;  %v7050_v7 = vld [vmem:[#allocation8 + $0x128] sm:$0xff] }
0x3cae   : > { %v7049_v21 = vld [vmem:[#allocation8 + $0x120] sm:$0xff]  ;;  %v7066_v36 = vld [vmem:[#allocation8 + $0x1a8] sm:$0xff] }
0x3caf   : > { %10319 = vmatpush1.bf16.msra.mxu1 %v10318_v44  ;;  %v7041_v44 = vld [vmem:[#allocation8 + $0xe0] sm:$0xff]  ;;  %v7074_v31 = vld [vmem:[#allocation8 + $0x1e8] sm:$0xff] }
0x3cb0   : > { %10321 = vmatprep.subr.bf16.mxu1 %v10320_v12  ;;  %v7058_v12 = vld [vmem:[#allocation8 + $0x168] sm:$0xff]  ;;  %v10350_v25 = vpack.c.bf16 %v7041_v44, %v7033_v57  ;;  %v7057_v42 = vld [vmem:[#allocation8 + $0x160] sm:$0xff] }
0x3cb1   : > { %v10352_v39 = vpack.c.bf16 %v7058_v12, %v7050_v7  ;;  %v7073_v37 = vld [vmem:[#allocation8 + $0x1e0] sm:$0xff]  ;;  %v6950_v50 = vld [vmem:[#allocation7 + $0x8] sm:$0xff] }
0x3cb2   : > { %9703 = vmatmul.mubr.msk.bf16.gmra.mrb[96].mxu1 %vm856_vm5, %v6700_v62  ;;  %v10356_v62 = vpack.c.bf16 %v7074_v31, %v7066_v36  ;;  %v6958_v41 = vld [vmem:[#allocation7 + $0x48] sm:$0xff]  ;;  %v6957_v5 = vld [vmem:[#allocation7 + $0x40] sm:$0xff] }
0x3cb3   : > { %10323 = vmatpush1.bf16.msra.mxu1 %v10322_v61  ;;  %7141 = vmatprep.mubr.f32.mxu1 %v14414_v8  ;;  %v10354_v61 = vpack.c.bf16 %v7057_v42, %v7049_v21  ;;  %v6966_v0 = vld [vmem:[#allocation7 + $0x88] sm:$0xff]  ;;  %v6973_v57 = vld [vmem:[#allocation7 + $0xc0] sm:$0xff] }
0x3cb4   : > { %10325 = vmatprep.subr.bf16.mxu1 %v10324_v10  ;;  %v7065_v10 = vld [vmem:[#allocation8 + $0x1a0] sm:$0xff]  ;;  %v6982_v44 = vld [vmem:[#allocation7 + $0x108] sm:$0xff] }
0x3cb5   : > { %v10358_v14 = vpack.c.bf16 %v7073_v37, %v7065_v10  ;;  %v6990_v7 = vld [vmem:[#allocation7 + $0x148] sm:$0xff]  ;;  %v6989_v21 = vld [vmem:[#allocation7 + $0x140] sm:$0xff] }
0x3cb6   : > { %v6998_v42 = vld [vmem:[#allocation7 + $0x188] sm:$0xff]  ;;  %v7005_v10 = vld [vmem:[#allocation7 + $0x1c0] sm:$0xff] }
0x3cb7   : > { %10327 = vmatpush1.bf16.msra.mxu1 %v10326_v40  ;;  %v10376_v40 = vpack.c.bf16 %v6958_v41, %v6950_v50  ;;  %v7006_v36 = vld [vmem:[#allocation7 + $0x1c8] sm:$0xff] }
0x3cb8   : > { %10345 = vmatprep.subr.bf16.mxu1 %v10344_v56  ;;  %v6949_v56 = vld [vmem:[#allocation7] sm:$0xff]  ;;  %v6954_v37 = vld [vmem:[#allocation7 + $0x28] sm:$0xff] }
0x3cb9   : > { %v10378_v13 = vpack.c.bf16 %v6957_v5, %v6949_v56  ;;  %v6962_v50 = vld [vmem:[#allocation7 + $0x68] sm:$0xff]  ;;  %v6961_v56 = vld [vmem:[#allocation7 + $0x60] sm:$0xff] }
0x3cba   : > { %9710 = vmatmul.mubr.msk.f32.vlgmr.msra.gmra.mrb[100].mxu1 %vm2130_vm7, %v12689_v2  ;;  %v6970_v5 = vld [vmem:[#allocation7 + $0xa8] sm:$0xff] }
0x3cbb   : > { %10347 = vmatpush1.bf16.msra.mxu1 %v10346_v43  ;;  %7147 = vmatprep.mubr.f32.mxu1 %v14414_v8  ;;  %v10380_v43 = vpack.c.bf16 %v6974_v24, %v6966_v0  ;;  %v6978_v0 = vld [vmem:[#allocation7 + $0xe8] sm:$0xff] }
0x3cbc   : > { %10349 = vmatprep.subr.bf16.mxu1 %v10348_v3  ;;  %v6965_v3 = vld [vmem:[#allocation7 + $0x80] sm:$0xff] }
0x3cbd   : > { %v10382_v12 = vpack.c.bf16 %v6973_v57, %v6965_v3  ;;  %v6977_v3 = vld [vmem:[#allocation7 + $0xe0] sm:$0xff]  ;;  %v6986_v57 = vld [vmem:[#allocation7 + $0x128] sm:$0xff] }
0x3cbe   : > { %9711 = vmatmul.mubr.msk.f32.gmra.mrb[102].mxu1 %vm2130_vm7, %v12693_v63 }
0x3cbf   : > { %10351 = vmatpush1.bf16.msra.mxu1 %v10350_v25  ;;  %7153 = vmatprep.mubr.f32.mxu1 %v14414_v8  ;;  %v10384_v25 = vpack.c.bf16 %v6990_v7, %v6982_v44  ;;  %v6994_v44 = vld [vmem:[#allocation7 + $0x168] sm:$0xff] }
0x3cc0   : > { %10353 = vmatprep.subr.bf16.mxu1 %v10352_v39  ;;  %v6981_v39 = vld [vmem:[#allocation7 + $0x100] sm:$0xff] }
0x3cc1   : > { %v10386_v31 = vpack.c.bf16 %v6989_v21, %v6981_v39  ;;  %v6993_v39 = vld [vmem:[#allocation7 + $0x160] sm:$0xff]  ;;  %v7002_v21 = vld [vmem:[#allocation7 + $0x1a8] sm:$0xff] }
0x3cc2   : > { %9712 = vmatmul.mubr.msk.f32.gmra.mrb[104].mxu1 %vm2130_vm7, %v12687_v15 }
0x3cc3   : > { %10355 = vmatpush1.bf16.msra.mxu1 %v10354_v61  ;;  %7159 = vmatprep.mubr.f32.mxu1 %v14414_v8  ;;  %v10388_v61 = vpack.c.bf16 %v7006_v36, %v6998_v42  ;;  %v7010_v42 = vld [vmem:[#allocation7 + $0x1e8] sm:$0xff] }
0x3cc4   : > { %10357 = vmatprep.subr.bf16.mxu1 %v10356_v62  ;;  %v6997_v62 = vld [vmem:[#allocation7 + $0x180] sm:$0xff] }
0x3cc5   : > { %v10390_v41 = vpack.c.bf16 %v7005_v10, %v6997_v62  ;;  %v7009_v62 = vld [vmem:[#allocation7 + $0x1e0] sm:$0xff]  ;;  %v7790_v10 = vld [vmem:[#allocation10 + $0x8] sm:$0xff] }
0x3cc6   : > { %9713 = vmatmul.mubr.msk.f32.gmra.mrb[106].mxu1 %vm2130_vm7, %v12691_v60 }
0x3cc7   : > { %10359 = vmatpush1.bf16.msra.mxu1 %v10358_v14  ;;  %7319 = vmatprep.mubr.f32.mxu1 %v14414_v8  ;;  %v10408_v14 = vpack.c.bf16 %v6962_v50, %v6954_v37  ;;  %v7798_v37 = vld [vmem:[#allocation10 + $0x48] sm:$0xff] }
0x3cc8   : > { %10377 = vmatprep.subr.bf16.mxu1 %v10376_v40  ;;  %v6953_v40 = vld [vmem:[#allocation7 + $0x20] sm:$0xff] }
0x3cc9   : > { %v10410_v24 = vpack.c.bf16 %v6961_v56, %v6953_v40  ;;  %v7797_v40 = vld [vmem:[#allocation10 + $0x40] sm:$0xff]  ;;  %v7806_v56 = vld [vmem:[#allocation10 + $0x88] sm:$0xff] }
0x3cca   : > { %9718 = vmatmul.mubr.msk.f32.vlgmr.msra.gmra.mrb[108].mxu1 %vm2130_vm7, %v12689_v2 }
0x3ccb   : > { %10379 = vmatpush1.bf16.msra.mxu1 %v10378_v13  ;;  %7325 = vmatprep.mubr.f32.mxu1 %v14414_v8  ;;  %v10412_v13 = vpack.c.bf16 %v6978_v0, %v6970_v5  ;;  %v7814_v5 = vld [vmem:[#allocation10 + $0xc8] sm:$0xff] }
0x3ccc   : > { %10381 = vmatprep.subr.bf16.mxu1 %v10380_v43  ;;  %v6969_v43 = vld [vmem:[#allocation7 + $0xa0] sm:$0xff] }
0x3ccd   : > { %v10414_v7 = vpack.c.bf16 %v6977_v3, %v6969_v43  ;;  %v7813_v43 = vld [vmem:[#allocation10 + $0xc0] sm:$0xff]  ;;  %v7822_v3 = vld [vmem:[#allocation10 + $0x108] sm:$0xff] }
0x3cce   : > { %9719 = vmatmul.mubr.msk.f32.gmra.mrb[110].mxu1 %vm2130_vm7, %v12693_v63 }
0x3ccf   : > { %10383 = vmatpush1.bf16.msra.mxu1 %v10382_v12  ;;  %7331 = vmatprep.mubr.f32.mxu1 %v14414_v8  ;;  %v10416_v12 = vpack.c.bf16 %v6994_v44, %v6986_v57  ;;  %v7830_v57 = vld [vmem:[#allocation10 + $0x148] sm:$0xff] }
0x3cd0   : > { %10385 = vmatprep.subr.bf16.mxu1 %v10384_v25  ;;  %v6985_v25 = vld [vmem:[#allocation7 + $0x120] sm:$0xff] }
0x3cd1   : > { %v10418_v36 = vpack.c.bf16 %v6993_v39, %v6985_v25  ;;  %v7829_v25 = vld [vmem:[#allocation10 + $0x140] sm:$0xff]  ;;  %v7838_v39 = vld [vmem:[#allocation10 + $0x188] sm:$0xff] }
0x3cd2   : > { %9720 = vmatmul.mubr.msk.f32.gmra.mrb[112].mxu1 %vm2130_vm7, %v12687_v15 }
0x3cd3   : > { %10387 = vmatpush1.bf16.msra.mxu1 %v10386_v31  ;;  %7337 = vmatprep.mubr.f32.mxu1 %v14414_v8  ;;  %v10420_v31 = vpack.c.bf16 %v7010_v42, %v7002_v21  ;;  %v7846_v21 = vld [vmem:[#allocation10 + $0x1c8] sm:$0xff] }
0x3cd4   : > { %10389 = vmatprep.subr.bf16.mxu1 %v10388_v61  ;;  %v7001_v61 = vld [vmem:[#allocation7 + $0x1a0] sm:$0xff] }
0x3cd5   : > { %v10422_v50 = vpack.c.bf16 %v7009_v62, %v7001_v61  ;;  %v7845_v61 = vld [vmem:[#allocation10 + $0x1c0] sm:$0xff]  ;;  %v7854_v62 = vld [vmem:[#allocation10 + $0x208] sm:$0xff] }
0x3cd6   : > { %9721 = vmatmul.mubr.msk.f32.gmra.mrb[114].mxu1 %vm2130_vm7, %v12691_v60 }
0x3cd7   : > { %10391 = vmatpush1.bf16.msra.mxu1 %v10390_v41  ;;  %7497 = vmatprep.mubr.f32.mxu1 %v14414_v8  ;;  %v10440_v41 = vpack.c.bf16 %v7798_v37, %v7790_v10  ;;  %v7862_v10 = vld [vmem:[#allocation10 + $0x248] sm:$0xff] }
0x3cd8   : > { %10409 = vmatprep.subr.bf16.mxu1 %v10408_v14  ;;  %v7789_v14 = vld [vmem:[#allocation10] sm:$0xff] }
0x3cd9   : > { %v10442_v0 = vpack.c.bf16 %v7797_v40, %v7789_v14  ;;  %v7861_v14 = vld [vmem:[#allocation10 + $0x240] sm:$0xff]  ;;  %v7870_v40 = vld [vmem:[#allocation10 + $0x288] sm:$0xff] }
0x3cda   : > { %9726 = vmatmul.mubr.msk.f32.vlgmr.msra.gmra.mrb[100].mxu1 %vm2130_vm7, %v12152_v52 }
0x3cdb   : > { %10411 = vmatpush1.bf16.msra.mxu1 %v10410_v24  ;;  %7503 = vmatprep.mubr.f32.mxu1 %v14414_v8  ;;  %v10444_v24 = vpack.c.bf16 %v7814_v5, %v7806_v56  ;;  %v7878_v56 = vld [vmem:[#allocation10 + $0x2c8] sm:$0xff] }
0x3cdc   : > { %10413 = vmatprep.subr.bf16.mxu1 %v10412_v13  ;;  %v7805_v13 = vld [vmem:[#allocation10 + $0x80] sm:$0xff] }
0x3cdd   : > { %v10446_v44 = vpack.c.bf16 %v7813_v43, %v7805_v13  ;;  %v7877_v13 = vld [vmem:[#allocation10 + $0x2c0] sm:$0xff]  ;;  %v7886_v43 = vld [vmem:[#allocation10 + $0x308] sm:$0xff] }
0x3cde   : > { %9727 = vmatmul.mubr.msk.f32.gmra.mrb[102].mxu1 %vm2130_vm7, %v12156_v59 }
0x3cdf   : > { %10415 = vmatpush1.bf16.msra.mxu1 %v10414_v7  ;;  %7509 = vmatprep.mubr.f32.mxu1 %v14414_v8  ;;  %v10448_v7 = vpack.c.bf16 %v7830_v57, %v7822_v3  ;;  %v7894_v3 = vld [vmem:[#allocation10 + $0x348] sm:$0xff] }
0x3ce0   : > { %10417 = vmatprep.subr.bf16.mxu1 %v10416_v12  ;;  %v7821_v12 = vld [vmem:[#allocation10 + $0x100] sm:$0xff] }
0x3ce1   : > { %v10450_v42 = vpack.c.bf16 %v7829_v25, %v7821_v12  ;;  %v7893_v12 = vld [vmem:[#allocation10 + $0x340] sm:$0xff]  ;;  %v7902_v25 = vld [vmem:[#allocation10 + $0x388] sm:$0xff] }
0x3ce2   : > { %9728 = vmatmul.mubr.msk.f32.gmra.mrb[104].mxu1 %vm2130_vm7, %v12150_v9 }
0x3ce3   : > { %10419 = vmatpush1.bf16.msra.mxu1 %v10418_v36  ;;  %7515 = vmatprep.mubr.f32.mxu1 %v14414_v8  ;;  %v10452_v36 = vpack.c.bf16 %v7846_v21, %v7838_v39  ;;  %v7910_v39 = vld [vmem:[#allocation10 + $0x3c8] sm:$0xff] }
0x3ce4   : > { %10421 = vmatprep.subr.bf16.mxu1 %v10420_v31  ;;  %v7837_v31 = vld [vmem:[#allocation10 + $0x180] sm:$0xff] }
0x3ce5   : > { %v10454_v37 = vpack.c.bf16 %v7845_v61, %v7837_v31  ;;  %v7909_v31 = vld [vmem:[#allocation10 + $0x3c0] sm:$0xff]  ;;  %v7794_v61 = vld [vmem:[#allocation10 + $0x28] sm:$0xff] }
0x3ce6   : > { %9729 = vmatmul.mubr.msk.f32.gmra.mrb[106].mxu1 %vm2130_vm7, %v12154_v58 }
0x3ce7   : > { %10423 = vmatpush1.bf16.msra.mxu1 %v10422_v50  ;;  %7675 = vmatprep.mubr.f32.mxu1 %v14414_v8  ;;  %v10456_v50 = vpack.c.bf16 %v7862_v10, %v7854_v62  ;;  %v7802_v62 = vld [vmem:[#allocation10 + $0x68] sm:$0xff] }
0x3ce8   : > { %10441 = vmatprep.subr.bf16.mxu1 %v10440_v41  ;;  %v7853_v41 = vld [vmem:[#allocation10 + $0x200] sm:$0xff] }
0x3ce9   : > { %v10458_v5 = vpack.c.bf16 %v7861_v14, %v7853_v41  ;;  %v7801_v41 = vld [vmem:[#allocation10 + $0x60] sm:$0xff]  ;;  %v7810_v14 = vld [vmem:[#allocation10 + $0xa8] sm:$0xff] }
0x3cea   : > { %9734 = vmatmul.mubr.msk.f32.vlgmr.msra.gmra.mrb[108].mxu1 %vm2130_vm7, %v12152_v52 }
0x3ceb   : > { %10443 = vmatpush1.bf16.msra.mxu1 %v10442_v0  ;;  %7681 = vmatprep.mubr.f32.mxu1 %v14414_v8  ;;  %v10460_v0 = vpack.c.bf16 %v7878_v56, %v7870_v40  ;;  %v7818_v40 = vld [vmem:[#allocation10 + $0xe8] sm:$0xff] }
0x3cec   : > { %10445 = vmatprep.subr.bf16.mxu1 %v10444_v24  ;;  %v7869_v24 = vld [vmem:[#allocation10 + $0x280] sm:$0xff] }
0x3ced   : > { %v10462_v57 = vpack.c.bf16 %v7877_v13, %v7869_v24  ;;  %v7817_v24 = vld [vmem:[#allocation10 + $0xe0] sm:$0xff]  ;;  %v7826_v13 = vld [vmem:[#allocation10 + $0x128] sm:$0xff] }
0x3cee   : > { %9735 = vmatmul.mubr.msk.f32.gmra.mrb[110].mxu1 %vm2130_vm7, %v12156_v59 }
0x3cef   : > { %10447 = vmatpush1.bf16.msra.mxu1 %v10446_v44  ;;  %7687 = vmatprep.mubr.f32.mxu1 %v14414_v8  ;;  %v10464_v44 = vpack.c.bf16 %v7894_v3, %v7886_v43  ;;  %v7834_v43 = vld [vmem:[#allocation10 + $0x168] sm:$0xff] }
0x3cf0   : > { %10449 = vmatprep.subr.bf16.mxu1 %v10448_v7  ;;  %v7885_v7 = vld [vmem:[#allocation10 + $0x300] sm:$0xff] }
0x3cf1   : > { %v10466_v21 = vpack.c.bf16 %v7893_v12, %v7885_v7  ;;  %v7833_v7 = vld [vmem:[#allocation10 + $0x160] sm:$0xff]  ;;  %v7842_v12 = vld [vmem:[#allocation10 + $0x1a8] sm:$0xff] }
0x3cf2   : > { %9736 = vmatmul.mubr.msk.f32.gmra.mrb[112].mxu1 %vm2130_vm7, %v12150_v9 }
0x3cf3   : > { %10451 = vmatpush1.bf16.msra.mxu1 %v10450_v42  ;;  %7693 = vmatprep.mubr.f32.mxu1 %v14414_v8  ;;  %v10468_v42 = vpack.c.bf16 %v7910_v39, %v7902_v25  ;;  %v7850_v25 = vld [vmem:[#allocation10 + $0x1e8] sm:$0xff] }
0x3cf4   : > { %10453 = vmatprep.subr.bf16.mxu1 %v10452_v36  ;;  %v7901_v36 = vld [vmem:[#allocation10 + $0x380] sm:$0xff] }
0x3cf5   : > { %v10470_v10 = vpack.c.bf16 %v7909_v31, %v7901_v36  ;;  %v7849_v36 = vld [vmem:[#allocation10 + $0x1e0] sm:$0xff]  ;;  %v7858_v31 = vld [vmem:[#allocation10 + $0x228] sm:$0xff] }
0x3cf6   : > { %9737 = vmatmul.mubr.msk.f32.gmra.mrb[114].mxu1 %vm2130_vm7, %v12154_v58 }
0x3cf7   : > { %10455 = vmatpush1.bf16.msra.mxu1 %v10454_v37  ;;  %7981 = vmatprep.mubr.f32.mxu1 %v14414_v8  ;;  %v10504_v37 = vpack.c.bf16 %v7802_v62, %v7794_v61  ;;  %v7866_v61 = vld [vmem:[#allocation10 + $0x268] sm:$0xff] }
0x3cf8   : > { %10457 = vmatprep.subr.bf16.mxu1 %v10456_v50  ;;  %v7793_v50 = vld [vmem:[#allocation10 + $0x20] sm:$0xff] }
0x3cf9   : > { %v10506_v56 = vpack.c.bf16 %v7801_v41, %v7793_v50  ;;  %v7865_v50 = vld [vmem:[#allocation10 + $0x260] sm:$0xff]  ;;  %v7874_v41 = vld [vmem:[#allocation10 + $0x2a8] sm:$0xff] }
0x3cfb   : > { %10459 = vmatpush1.bf16.msra.mxu1 %v10458_v5  ;;  %v10508_v5 = vpack.c.bf16 %v7818_v40, %v7810_v14  ;;  %v7882_v14 = vld [vmem:[#allocation10 + $0x2e8] sm:$0xff] }
0x3cfc   : > { %10461 = vmatprep.subr.bf16.mxu1 %v10460_v0  ;;  %v7809_v0 = vld [vmem:[#allocation10 + $0xa0] sm:$0xff] }
0x3cfd   : > { %v10510_v3 = vpack.c.bf16 %v7817_v24, %v7809_v0  ;;  %v7881_v0 = vld [vmem:[#allocation10 + $0x2e0] sm:$0xff]  ;;  %v7890_v24 = vld [vmem:[#allocation10 + $0x328] sm:$0xff] }
0x3cff   : > { %10463 = vmatpush1.bf16.msra.mxu1 %v10462_v57  ;;  %v10512_v57 = vpack.c.bf16 %v7834_v43, %v7826_v13  ;;  %v7898_v13 = vld [vmem:[#allocation10 + $0x368] sm:$0xff] }
0x3d00   : > { %10465 = vmatprep.subr.bf16.mxu1 %v10464_v44  ;;  %v7825_v44 = vld [vmem:[#allocation10 + $0x120] sm:$0xff] }
0x3d01   : > { %v10514_v39 = vpack.c.bf16 %v7833_v7, %v7825_v44  ;;  %v7897_v44 = vld [vmem:[#allocation10 + $0x360] sm:$0xff]  ;;  %v7906_v7 = vld [vmem:[#allocation10 + $0x3a8] sm:$0xff] }
0x3d03   : > { %10467 = vmatpush1.bf16.msra.mxu1 %v10466_v21  ;;  %v10516_v21 = vpack.c.bf16 %v7850_v25, %v7842_v12  ;;  %v7914_v12 = vld [vmem:[#allocation10 + $0x3e8] sm:$0xff] }
0x3d04   : > { %10469 = vmatprep.subr.bf16.mxu1 %v10468_v42  ;;  %v7841_v42 = vld [vmem:[#allocation10 + $0x1a0] sm:$0xff] }
0x3d05   : > { %v10518_v62 = vpack.c.bf16 %v7849_v36, %v7841_v42  ;;  %v7913_v42 = vld [vmem:[#allocation10 + $0x3e0] sm:$0xff] }
0x3d07   : > { %10471 = vmatpush1.bf16.msra.mxu1 %v10470_v10  ;;  %v10520_v10 = vpack.c.bf16 %v7866_v61, %v7858_v31 }
0x3d08   : > { %10505 = vmatprep.subr.bf16.mxu1 %v10504_v37  ;;  %v7857_v37 = vld [vmem:[#allocation10 + $0x220] sm:$0xff] }
0x3d09   : > { %v10522_v40 = vpack.c.bf16 %v7865_v50, %v7857_v37 }
0x3d0a   : > { %7982 = vmatmul.mubr.f32.vlgmr.msra.gmra.mrb[100].mxu1 %v13278_v53 }
0x3d0b   : > { %10507 = vmatpush1.bf16.msra.mxu1 %v10506_v56  ;;  %7987 = vmatprep.mubr.f32.mxu1 %v14414_v8  ;;  %v10524_v56 = vpack.c.bf16 %v7882_v14, %v7874_v41 }
0x3d0c   : > { %10509 = vmatprep.subr.bf16.mxu1 %v10508_v5  ;;  %v7873_v5 = vld [vmem:[#allocation10 + $0x2a0] sm:$0xff] }
0x3d0d   : > { %v10526_v43 = vpack.c.bf16 %v7881_v0, %v7873_v5 }
0x3d0e   : > { %7988 = vmatmul.mubr.f32.gmra.mrb[102].mxu1 %v13282_v33 }
0x3d0f   : > { %10511 = vmatpush1.bf16.msra.mxu1 %v10510_v3  ;;  %7993 = vmatprep.mubr.f32.mxu1 %v14414_v8  ;;  %v10528_v3 = vpack.c.bf16 %v7898_v13, %v7890_v24 }
0x3d10   : > { %10513 = vmatprep.subr.bf16.mxu1 %v10512_v57  ;;  %v7889_v57 = vld [vmem:[#allocation10 + $0x320] sm:$0xff] }
0x3d11   : > { %v10530_v25 = vpack.c.bf16 %v7897_v44, %v7889_v57 }
0x3d12   : > { %7994 = vmatmul.mubr.f32.gmra.mrb[104].mxu1 %v13280_v32 }
0x3d13   : > { %10515 = vmatpush1.bf16.msra.mxu1 %v10514_v39  ;;  %7999 = vmatprep.mubr.f32.mxu1 %v14414_v8  ;;  %v10532_v39 = vpack.c.bf16 %v7914_v12, %v7906_v7 }
0x3d14   : > { %10517 = vmatprep.subr.bf16.mxu1 %v10516_v21  ;;  %v7905_v21 = vld [vmem:[#allocation10 + $0x3a0] sm:$0xff] }
0x3d15   : > { %v10534_v36 = vpack.c.bf16 %v7913_v42, %v7905_v21  ;;  %v14467_v42 = vmax.f32 %v13804_v11, %v13885_v51  ;;  %v14471_v51 = vmax.f32 %v13824_v35, %v13901_v28 }
0x3d16   : > { %8000 = vmatmul.mubr.f32.gmra.mrb[106].mxu1 %v13288_v46 }
0x3d17   : > { %10519 = vmatpush1.bf16.msra.mxu1 %v10518_v62  ;;  %8159 = vmatprep.mubr.f32.mxu1 %v14414_v8 }
0x3d18   : > { %10521 = vmatprep.subr.bf16.mxu1 %v10520_v10 }
0x3d1b   : > { %10523 = vmatpush1.bf16.msra.mxu1 %v10522_v40 }
0x3d1c   : > { %10525 = vmatprep.subr.bf16.mxu1 %v10524_v56 }
0x3d1f   : > { %10527 = vmatpush1.bf16.msra.mxu1 %v10526_v43 }
0x3d20   : > { %10529 = vmatprep.subr.bf16.mxu1 %v10528_v3 }
0x3d23   : > { %10531 = vmatpush1.bf16.msra.mxu1 %v10530_v25 }
0x3d24   : > { %10533 = vmatprep.subr.bf16.mxu1 %v10532_v39 }
0x3d27   : > { %10535 = vmatpush1.bf16.msra.mxu1 %v10534_v36 }
0x3d2a   : > { %8160 = vmatmul.mubr.f32.vlgmr.msra.gmra.mrb[108].mxu1 %v13278_v53 }
0x3d2b   : > { %8165 = vmatprep.mubr.f32.mxu1 %v14414_v8 }
0x3d2e   : > { %8166 = vmatmul.mubr.f32.gmra.mrb[110].mxu1 %v13282_v33 }
0x3d2f   : > { %8171 = vmatprep.mubr.f32.mxu1 %v14414_v8 }
0x3d32   : > { %8172 = vmatmul.mubr.f32.gmra.mrb[112].mxu1 %v13280_v32 }
0x3d33   : > { %8177 = vmatprep.mubr.f32.mxu1 %v14414_v8 }
0x3d35   : > { %v6777_v31 = vpop.xlane.xlu1 %6776 }
0x3d36   : > { %vm6785_vm2 = vcmp.le.f32.partialorder %v13907_v30, %v6777_v31  ;;  %8178 = vmatmul.mubr.f32.gmra.mrb[114].mxu1 %v13288_v46  ;;  %v6774_v61 = vpop.xlane.xlu0 %6773 }
0x3d37   : > { %v6789_v62 = vsel %vm6785_vm2, %v11621_v16, 32  ;;  %vm6784_vm3 = vcmp.le.f32.partialorder %v13914_v20, %v6774_v61 }
0x3d38   : > { %v6807_v10 = vsel %vm856_vm5, %v6789_v62, 2147483647  ;;  %v6788_v37 = vsel %vm6784_vm3, %v11621_v16, 32 }
0x3d39   : > { %v6809_v50 = vshra.s32 %v6807_v10, 16  ;;  %v6792_v41 = vsel %vm856_vm5, %v6788_v37, 2147483647  ;;  %v6783_v14 = vpop.xlane.xlu1 %6782  ;;  %v6808_v23 = vand.u32 65535, %v6807_v10 }
0x3d3a   : > { %v6794_v40 = vshra.s32 %v6792_v41, 16  ;;  %vm6787_vm4 = vcmp.le.f32.partialorder %v13924_v48, %v6783_v14  ;;  %v6780_v56 = vpop.xlane.xlu0 %6779  ;;  %v6793_v54 = vand.u32 65535, %v6792_v41 }
0x3d3b   : > { %v6791_v30 = vsel %vm6787_vm4, %v11621_v16, 32  ;;  %vm6786_vm12 = vcmp.le.f32.partialorder %v13930_v1, %v6780_v56  ;;  %v6811_v5 = vcvt.s32.f32 %v6809_v50  ;;  %v6810_v37 = vcvt.s32.f32 %v6808_v23  ;;  %v7016_v56 = vld [vmem:[#allocation8 + $0x18] sm:$0xff] }
0x3d3c   : > { %v6837_v0 = vsel %vm856_vm5, %v6791_v30, 2147483647  ;;  %v6790_v20 = vsel %vm6786_vm12, %v11621_v16, 32  ;;  %v6796_v24 = vcvt.s32.f32 %v6794_v40  ;;  %v6795_v50 = vcvt.s32.f32 %v6793_v54  ;;  %v7024_v30 = vld [vmem:[#allocation8 + $0x58] sm:$0xff] }
0x3d3d   : > { %v6839_v13 = vshra.s32 %v6837_v0, 16  ;;  %v6822_v43 = vsel %vm856_vm5, %v6790_v20, 2147483647  ;;  %6812 = vmin.xlane.f32.xlu1 %v6811_v5  ;;  %v6838_v61 = vand.u32 65535, %v6837_v0 }
0x3d3e   : > { %v6824_v3 = vshra.s32 %v6822_v43, 16  ;;  %6797 = vmin.xlane.f32.xlu0 %v6796_v24  ;;  %v6823_v55 = vand.u32 65535, %v6822_v43 }
0x3d3f   : > { %v6841_v57 = vcvt.s32.f32 %v6839_v13  ;;  %v6840_v40 = vcvt.s32.f32 %v6838_v61 }
0x3d40   : > { %v6826_v44 = vcvt.s32.f32 %v6824_v3  ;;  %v6825_v28 = vcvt.s32.f32 %v6823_v55 }
0x3d41   : > { %6842 = vmin.xlane.f32.xlu1 %v6841_v57 }
0x3d42   : > { %6827 = vmin.xlane.f32.xlu0 %v6826_v44 }
0x3d7d   : > { %v6741_v48 = vpop.f32.mrb[92].mxu1 }
0x3d7e   : > { %v14019_v1 = vmax.f32 %v6599_v19, %v6741_v48  ;;  %v6743_v7 = vpop.f32.mrb[93].mxu1 }
0x3d7f   : > { %v14024_v12 = vmax.f32 %v6600_v38, %v6743_v7  ;;  %v6745_v25 = vpop.f32.mrb[94].mxu1 }
0x3d80   : > { %v14029_v39 = vmax.f32 %v6601_v4, %v6745_v25  ;;  %v6747_v21 = vpop.f32.mrb[95].mxu1 }
0x3d81   : > { %v14034_v36 = vmax.f32 %v14467_v42, %v6747_v21 }
0x3d85   : > { %v6751_v27 = vpop.f32.mrb[96].mxu1 }
0x3d86   : > { %v14039_v19 = vmax.f32 %v14468_v45, %v6751_v27  ;;  %v6753_v6 = vpop.f32.mrb[97].mxu1  ;;  %v7015_v27 = vld [vmem:[#allocation8 + $0x10] sm:$0xff] }
0x3d87   : > { %v14044_v38 = vmax.f32 %v14469_v49, %v6753_v6  ;;  %v6755_v29 = vpop.f32.mrb[98].mxu1  ;;  %v7023_v45 = vld [vmem:[#allocation8 + $0x50] sm:$0xff] }
0x3d88   : > { %v14049_v4 = vmax.f32 %v14470_v34, %v6755_v29  ;;  %v6757_v11 = vpop.f32.mrb[99].mxu1  ;;  %v7032_v34 = vld [vmem:[#allocation8 + $0x98] sm:$0xff] }
0x3d89   : > { %v14054_v31 = vmax.f32 %v14471_v51, %v6757_v11  ;;  %v7040_v11 = vld [vmem:[#allocation8 + $0xd8] sm:$0xff] }
0x3dca   : > { %v6813_v62 = vpop.xlane.xlu1 %6812 }
0x3dcb   : > { %vm6814_vm13 = vcmp.eq.f32.partialorder %v6811_v5, %v6813_v62  ;;  %v6798_v22 = vpop.xlane.xlu0 %6797  ;;  %v10328_v5 = vpack.c.bf16 %v7024_v30, %v7016_v56  ;;  %v6819_v0 = vcvt.f32.s32 %v6813_v62 }
0x3dcc   : > { %vm6799_vm14 = vcmp.eq.f32.partialorder %v6796_v24, %v6798_v22  ;;  %v6815_v14 = vsel %vm6814_vm13, %v6810_v37, inf  ;;  %v6804_v20 = vcvt.f32.s32 %v6798_v22  ;;  %v10330_v37 = vpack.c.bf16 %v7023_v45, %v7015_v27  ;;  %v8314_v27 = vld [vmem:[#allocation11 + $0x48] sm:$0xff] }
0x3dcd   : > { %6816 = vmin.xlane.f32.xlu1 %v6815_v14  ;;  %v6800_v17 = vsel %vm6799_vm14, %v6795_v50, inf  ;;  %10329 = vmatprep.subr.bf16.mxu0 %v10328_v5  ;;  %v6820_v13 = vshll.u32 %v6819_v0, 16  ;;  %v10332_v50 = vpack.c.bf16 %v7040_v11, %v7032_v34  ;;  %v7031_v14 = vld [vmem:[#allocation8 + $0x90] sm:$0xff]  ;;  %v7064_v5 = vld [vmem:[#allocation8 + $0x198] sm:$0xff] }
0x3dce   : > { %v6843_v47 = vpop.xlane.xlu1 %6842  ;;  %6801 = vmin.xlane.f32.xlu0 %v6800_v17  ;;  %v6805_v7 = vshll.u32 %v6804_v20, 16  ;;  %v7039_v17 = vld [vmem:[#allocation8 + $0xd0] sm:$0xff]  ;;  %v7072_v0 = vld [vmem:[#allocation8 + $0x1d8] sm:$0xff] }
0x3dcf   : > { %vm6844_vm8 = vcmp.eq.f32.partialorder %v6841_v57, %v6843_v47  ;;  %v6828_v35 = vpop.xlane.xlu0 %6827  ;;  %v6849_v43 = vcvt.f32.s32 %v6843_v47  ;;  %v7048_v47 = vld [vmem:[#allocation8 + $0x118] sm:$0xff]  ;;  %v7035_v11 = vld [vmem:[#allocation8 + $0xb0] sm:$0xff] }
0x3dd0   : > { %vm6829_vm15 = vcmp.eq.f32.partialorder %v6826_v44, %v6828_v35  ;;  %v6845_v10 = vsel %vm6844_vm8, %v6840_v40, inf  ;;  %v6834_v57 = vcvt.f32.s32 %v6828_v35  ;;  %v7056_v40 = vld [vmem:[#allocation8 + $0x158] sm:$0xff]  ;;  %v10334_v35 = vpack.c.bf16 %v7039_v17, %v7031_v14 }
0x3dd1   : > { %6846 = vmin.xlane.f32.xlu1 %v6845_v10  ;;  %v6830_v41 = vsel %vm6829_vm15, %v6825_v28, inf  ;;  %v6850_v6 = vshll.u32 %v6849_v43, 16  ;;  %v10336_v28 = vpack.c.bf16 %v7056_v40, %v7048_v47  ;;  %v7047_v10 = vld [vmem:[#allocation8 + $0x110] sm:$0xff]  ;;  %v8338_v47 = vld [vmem:[#allocation11 + $0x108] sm:$0xff] }
0x3dd2   : > { %6831 = vmin.xlane.f32.xlu0 %v6830_v41  ;;  %v6835_v51 = vshll.u32 %v6834_v57, 16  ;;  %v7055_v41 = vld [vmem:[#allocation8 + $0x150] sm:$0xff]  ;;  %v8346_v40 = vld [vmem:[#allocation11 + $0x148] sm:$0xff] }
0x3dd3   : > { %v10338_v20 = vpack.c.bf16 %v7055_v41, %v7047_v10  ;;  %v7071_v43 = vld [vmem:[#allocation8 + $0x1d0] sm:$0xff]  ;;  %v10576_v41 = vpack.c.bf16 %v8346_v40, %v8338_v47  ;;  %v6984_v40 = vld [vmem:[#allocation7 + $0x118] sm:$0xff] }
0x3dd4   : > { %v7019_v57 = vld [vmem:[#allocation8 + $0x30] sm:$0xff] }
0x3dd5   : > { %v7059_v10 = vld [vmem:[#allocation8 + $0x170] sm:$0xff] }
0x3dd6   : > { %v6975_v47 = vld [vmem:[#allocation7 + $0xd0] sm:$0xff] }
0x3e5a   : > { %v6817_v24 = vpop.xlane.xlu1 %6816 }
0x3e5b   : > { %v6818_v3 = vcvt.f32.s32 %v6817_v24  ;;  %v6802_v48 = vpop.xlane.xlu0 %6801 }
0x3e5c   : > { %v6803_v25 = vcvt.f32.s32 %v6802_v48  ;;  %v7028_v48 = vld [vmem:[#allocation8 + $0x78] sm:$0xff] }
0x3e5d   : > { %v6821_v21 = vadd.s32 %v6820_v13, %v6818_v3  ;;  %v7063_v13 = vld [vmem:[#allocation8 + $0x190] sm:$0xff]  ;;  %v7020_v3 = vld [vmem:[#allocation8 + $0x38] sm:$0xff] }
0x3e5e   : > { %v6806_v44 = vadd.s32 %v6805_v7, %v6803_v25  ;;  %v6847_v42 = vpop.xlane.xlu1 %6846  ;;  %v10360_v7 = vpack.c.bf16 %v7028_v48, %v7020_v3  ;;  %v7027_v25 = vld [vmem:[#allocation8 + $0x70] sm:$0xff]  ;;  %v8361_v3 = vld [vmem:[#allocation11 + $0x1c0] sm:$0xff] }
0x3e5f   : > { %vm6853_vm0 = vcmp.eq.s32.totalorder %v11621_v16, %v6821_v21  ;;  %v6848_v49 = vcvt.f32.s32 %v6847_v42  ;;  %v6832_v29 = vpop.xlane.xlu0 %6831  ;;  %v7036_v21 = vld [vmem:[#allocation8 + $0xb8] sm:$0xff]  ;;  %v8306_v42 = vld [vmem:[#allocation11 + $0x8] sm:$0xff]  ;;  %v10362_v45 = vpack.c.bf16 %v7027_v25, %v7019_v57 }
0x3e60   : > { %v9705_v23 = vsel %vm6853_vm0, 1.0, %v14414_v8  ;;  %vm6852_vm1 = vcmp.eq.s32.totalorder %v11621_v16, %v6806_v44  ;;  %v6833_v54 = vcvt.f32.s32 %v6832_v29  ;;  %v7044_v44 = vld [vmem:[#allocation8 + $0xf8] sm:$0xff]  ;;  %v8313_v29 = vld [vmem:[#allocation11 + $0x40] sm:$0xff] }
0x3e61   : > { %v9704_v61 = vsel %vm6852_vm1, 1.0, %v14414_v8  ;;  %v6851_v62 = vadd.s32 %v6850_v6, %v6848_v49  ;;  %v10568_v6 = vpack.c.bf16 %v8314_v27, %v8306_v42  ;;  %v8305_v49 = vld [vmem:[#allocation11] sm:$0xff]  ;;  %v10364_v34 = vpack.c.bf16 %v7044_v44, %v7036_v21  ;;  %v6952_v57 = vld [vmem:[#allocation7 + $0x18] sm:$0xff]  ;;  %v8370_v44 = vld [vmem:[#allocation11 + $0x208] sm:$0xff] }
0x3e62   : > { %v6864_v55 = vpack.c.bf16 %v9705_v23, %v9704_v61  ;;  %v6836_v22 = vadd.s32 %v6835_v51, %v6833_v54  ;;  %v7043_v51 = vld [vmem:[#allocation8 + $0xf0] sm:$0xff]  ;;  %v10570_v23 = vpack.c.bf16 %v8313_v29, %v8305_v49  ;;  %v8322_v54 = vld [vmem:[#allocation11 + $0x88] sm:$0xff]  ;;  %v7052_v61 = vld [vmem:[#allocation8 + $0x138] sm:$0xff] }
0x3e63   : > { %vm6855_vm6 = vcmp.eq.s32.totalorder %v11621_v16, %v6851_v62  ;;  %v7060_v62 = vld [vmem:[#allocation8 + $0x178] sm:$0xff]  ;;  %10569 = vmatprep.subr.bf16.mxu1 %v10568_v6  ;;  %v10366_v14 = vpack.c.bf16 %v7043_v51, %v7035_v11  ;;  %v8378_v42 = vld [vmem:[#allocation11 + $0x248] sm:$0xff]  ;;  %v8369_v6 = vld [vmem:[#allocation11 + $0x200] sm:$0xff] }
0x3e64   : > { %vm6854_vm9 = vcmp.eq.s32.totalorder %v11621_v16, %v6836_v22  ;;  %9708 = vmatmul.mubr.msk.bf16.vlgmr.msra.gmra.mrb[100].mxu0 %vm856_vm5, %v6864_v55  ;;  %v9707_v56 = vsel %vm6855_vm6, 1.0, %v14414_v8  ;;  %v10340_v16 = vpack.c.bf16 %v7072_v0, %v7064_v5  ;;  %10571 = vmatpush1.bf16.msra.mxu1 %v10570_v23  ;;  %v8321_v22 = vld [vmem:[#allocation11 + $0x80] sm:$0xff]  ;;  %v7076_v5 = vld [vmem:[#allocation8 + $0x1f8] sm:$0xff]  ;;  %v6959_v11 = vld [vmem:[#allocation7 + $0x50] sm:$0xff]  ;;  %v10584_v23 = vpack.c.bf16 %v8378_v42, %v8370_v44 }
0x3e65   : > { %10331 = vmatpush1.bf16.msra.mxu0 %v10330_v37  ;;  %6914 = vmatprep.mubr.bf16.mxu0 %v14451_v26  ;;  %v9706_v30 = vsel %vm6854_vm9, 1.0, %v14414_v8  ;;  %v10342_v26 = vpack.c.bf16 %v7071_v43, %v7063_v13  ;;  %v8330_v37 = vld [vmem:[#allocation11 + $0xc8] sm:$0xff]  ;;  %v8345_v0 = vld [vmem:[#allocation11 + $0x140] sm:$0xff]  ;;  %v6960_v21 = vld [vmem:[#allocation7 + $0x58] sm:$0xff] }
0x3e66   : > { %10333 = vmatprep.subr.bf16.mxu0 %v10332_v50  ;;  %v6865_v24 = vpack.c.bf16 %v9707_v56, %v9706_v30  ;;  %v10572_v55 = vpack.c.bf16 %v8330_v37, %v8322_v54  ;;  %v8329_v50 = vld [vmem:[#allocation11 + $0xc0] sm:$0xff]  ;;  %v7068_v30 = vld [vmem:[#allocation8 + $0x1b8] sm:$0xff]  ;;  %v10392_v29 = vpack.c.bf16 %v6960_v21, %v6952_v57  ;;  %v6999_v44 = vld [vmem:[#allocation7 + $0x190] sm:$0xff] }
0x3e67   : > { %v10574_v17 = vpack.c.bf16 %v8329_v50, %v8321_v22  ;;  %v8337_v56 = vld [vmem:[#allocation11 + $0x100] sm:$0xff]  ;;  %v10372_v48 = vpack.c.bf16 %v7076_v5, %v7068_v30  ;;  %v6968_v51 = vld [vmem:[#allocation7 + $0x98] sm:$0xff]  ;;  %v7007_v42 = vld [vmem:[#allocation7 + $0x1d0] sm:$0xff] }
0x3e68   : > { %10573 = vmatprep.subr.bf16.mxu1 %v10572_v55  ;;  %v8353_v43 = vld [vmem:[#allocation11 + $0x180] sm:$0xff]  ;;  %v6976_v54 = vld [vmem:[#allocation7 + $0xd8] sm:$0xff] }
0x3e69   : > { %10335 = vmatpush1.bf16.msra.mxu0 %v10334_v35  ;;  %v10368_v35 = vpack.c.bf16 %v7060_v62, %v7052_v61  ;;  %10575 = vmatpush1.bf16.msra.mxu1 %v10574_v17  ;;  %v10582_v27 = vpack.c.bf16 %v8361_v3, %v8353_v43  ;;  %v8377_v49 = vld [vmem:[#allocation11 + $0x240] sm:$0xff]  ;;  %v8386_v61 = vld [vmem:[#allocation11 + $0x288] sm:$0xff]  ;;  %v6967_v17 = vld [vmem:[#allocation7 + $0x90] sm:$0xff] }
0x3e6a   : > { %10337 = vmatprep.subr.bf16.mxu0 %v10336_v28  ;;  %v7051_v28 = vld [vmem:[#allocation8 + $0x130] sm:$0xff]  ;;  %10577 = vmatprep.subr.bf16.mxu1 %v10576_v41  ;;  %v8394_v62 = vld [vmem:[#allocation11 + $0x2c8] sm:$0xff]  ;;  %v10586_v37 = vpack.c.bf16 %v8377_v49, %v8369_v6  ;;  %v8385_v22 = vld [vmem:[#allocation11 + $0x280] sm:$0xff]  ;;  %v10398_v30 = vpack.c.bf16 %v6975_v47, %v6967_v17 }
0x3e6b   : > { %v10370_v13 = vpack.c.bf16 %v7059_v10, %v7051_v28  ;;  %v8393_v50 = vld [vmem:[#allocation11 + $0x2c0] sm:$0xff]  ;;  %v6992_v28 = vld [vmem:[#allocation7 + $0x158] sm:$0xff]  ;;  %v8402_v10 = vld [vmem:[#allocation11 + $0x308] sm:$0xff] }
0x3e6c   : > { %9709 = vmatmul.mubr.msk.bf16.gmra.mrb[104].mxu0 %vm856_vm5, %v6865_v24  ;;  %v8354_v24 = vld [vmem:[#allocation11 + $0x188] sm:$0xff]  ;;  %v8401_v5 = vld [vmem:[#allocation11 + $0x300] sm:$0xff]  ;;  %v7008_v3 = vld [vmem:[#allocation7 + $0x1d8] sm:$0xff] }
0x3e6d   : > { %10339 = vmatpush1.bf16.msra.mxu0 %v10338_v20  ;;  %7230 = vmatprep.mubr.f32.mxu0 %v14414_v8  ;;  %v10578_v20 = vpack.c.bf16 %v8345_v0, %v8337_v56  ;;  %v8410_v41 = vld [vmem:[#allocation11 + $0x348] sm:$0xff]  ;;  %v10590_v56 = vpack.c.bf16 %v8393_v50, %v8385_v22  ;;  %v8409_v0 = vld [vmem:[#allocation11 + $0x340] sm:$0xff]  ;;  %v6964_v6 = vld [vmem:[#allocation7 + $0x78] sm:$0xff] }
0x3e6e   : > { %10341 = vmatprep.subr.bf16.mxu0 %v10340_v16  ;;  %v8362_v16 = vld [vmem:[#allocation11 + $0x1c8] sm:$0xff]  ;;  %v10592_v43 = vpack.c.bf16 %v8410_v41, %v8402_v10  ;;  %v8417_v57 = vld [vmem:[#allocation11 + $0x380] sm:$0xff]  ;;  %v6988_v10 = vld [vmem:[#allocation7 + $0x138] sm:$0xff] }
0x3e6f   : > { %v10580_v25 = vpack.c.bf16 %v8362_v16, %v8354_v24  ;;  %10579 = vmatpush1.bf16.msra.mxu1 %v10578_v20  ;;  %v10400_v20 = vpack.c.bf16 %v6992_v28, %v6984_v40  ;;  %v6983_v24 = vld [vmem:[#allocation7 + $0x110] sm:$0xff]  ;;  %v8434_v49 = vld [vmem:[#allocation11 + $0x408] sm:$0xff]  ;;  %v8449_v17 = vld [vmem:[#allocation11 + $0x480] sm:$0xff] }
0x3e70   : > { %v6991_v16 = vld [vmem:[#allocation7 + $0x150] sm:$0xff]  ;;  %v8450_v22 = vld [vmem:[#allocation11 + $0x488] sm:$0xff]  ;;  %v8457_v47 = vld [vmem:[#allocation11 + $0x4c0] sm:$0xff] }
0x3e71   : > { %10343 = vmatpush1.bf16.msra.mxu0 %v10342_v26  ;;  %v7067_v26 = vld [vmem:[#allocation8 + $0x1b0] sm:$0xff]  ;;  %10581 = vmatprep.subr.bf16.mxu1 %v10580_v25  ;;  %v8425_v25 = vld [vmem:[#allocation11 + $0x3c0] sm:$0xff]  ;;  %v8458_v50 = vld [vmem:[#allocation11 + $0x4c8] sm:$0xff] }
0x3e72   : > { %10361 = vmatprep.subr.bf16.mxu0 %v10360_v7  ;;  %v7075_v7 = vld [vmem:[#allocation8 + $0x1f0] sm:$0xff]  ;;  %v10604_v41 = vpack.c.bf16 %v8458_v50, %v8450_v22  ;;  %v7816_v50 = vld [vmem:[#allocation10 + $0xd8] sm:$0xff] }
0x3e73   : > { %10583 = vmatpush1.bf16.msra.mxu1 %v10582_v27  ;;  %v6956_v27 = vld [vmem:[#allocation7 + $0x38] sm:$0xff]  ;;  %v6979_v28 = vld [vmem:[#allocation7 + $0xf0] sm:$0xff] }
0x3e74   : > { %9714 = vmatmul.mubr.msk.f32.vlgmr.msra.gmra.mrb[108].mxu0 %vm2130_vm7, %v12689_v2  ;;  %10585 = vmatprep.subr.bf16.mxu1 %v10584_v23  ;;  %v10424_v23 = vpack.c.bf16 %v6964_v6, %v6956_v27  ;;  %v7003_v27 = vld [vmem:[#allocation7 + $0x1b0] sm:$0xff]  ;;  %v7792_v6 = vld [vmem:[#allocation10 + $0x18] sm:$0xff] }
0x3e75   : > { %10363 = vmatpush1.bf16.msra.mxu0 %v10362_v45  ;;  %7236 = vmatprep.mubr.f32.mxu0 %v14414_v8  ;;  %v10374_v45 = vpack.c.bf16 %v7075_v7, %v7067_v26  ;;  %v8426_v26 = vld [vmem:[#allocation11 + $0x3c8] sm:$0xff]  ;;  %v10402_v7 = vpack.c.bf16 %v6991_v16, %v6983_v24  ;;  %v8473_v24 = vld [vmem:[#allocation11 + $0x540] sm:$0xff] }
0x3e76   : > { %10365 = vmatprep.subr.bf16.mxu0 %v10364_v34  ;;  %v6951_v34 = vld [vmem:[#allocation7 + $0x10] sm:$0xff] }
0x3e77   : > { %v10394_v55 = vpack.c.bf16 %v6959_v11, %v6951_v34  ;;  %10587 = vmatpush1.bf16.msra.mxu1 %v10586_v37  ;;  %v10406_v34 = vpack.c.bf16 %v7007_v42, %v6999_v44  ;;  %v8433_v11 = vld [vmem:[#allocation11 + $0x400] sm:$0xff] }
0x3e78   : > { %9715 = vmatmul.mubr.msk.f32.gmra.mrb[110].mxu0 %vm2130_vm7, %v12693_v63  ;;  %v8489_v44 = vld [vmem:[#allocation11 + $0x5c0] sm:$0xff] }
0x3e79   : > { %10367 = vmatpush1.bf16.msra.mxu0 %v10366_v14  ;;  %7242 = vmatprep.mubr.f32.mxu0 %v14414_v8  ;;  %v10396_v14 = vpack.c.bf16 %v6976_v54, %v6968_v51  ;;  %v8441_v51 = vld [vmem:[#allocation11 + $0x440] sm:$0xff]  ;;  %v6955_v54 = vld [vmem:[#allocation7 + $0x30] sm:$0xff] }
0x3e7a   : > { %10369 = vmatprep.subr.bf16.mxu0 %v10368_v35  ;;  %v10588_v35 = vpack.c.bf16 %v8394_v62, %v8386_v61  ;;  %v6963_v61 = vld [vmem:[#allocation7 + $0x70] sm:$0xff]  ;;  %v6972_v62 = vld [vmem:[#allocation7 + $0xb8] sm:$0xff] }
0x3e7c   : > { %9716 = vmatmul.mubr.msk.f32.gmra.mrb[112].mxu0 %vm2130_vm7, %v12687_v15  ;;  %10589 = vmatprep.subr.bf16.mxu1 %v10588_v35  ;;  %v6971_v35 = vld [vmem:[#allocation7 + $0xb0] sm:$0xff] }
0x3e7d   : > { %10371 = vmatpush1.bf16.msra.mxu0 %v10370_v13  ;;  %7248 = vmatprep.mubr.f32.mxu0 %v14414_v8  ;;  %v7000_v13 = vld [vmem:[#allocation7 + $0x198] sm:$0xff] }
0x3e7e   : > { %10373 = vmatprep.subr.bf16.mxu0 %v10372_v48  ;;  %v8418_v48 = vld [vmem:[#allocation11 + $0x388] sm:$0xff]  ;;  %10591 = vmatpush1.bf16.msra.mxu1 %v10590_v56  ;;  %v10404_v21 = vpack.c.bf16 %v7008_v3, %v7000_v13  ;;  %v6996_v56 = vld [vmem:[#allocation7 + $0x178] sm:$0xff]  ;;  %v6987_v13 = vld [vmem:[#allocation7 + $0x130] sm:$0xff] }
0x3e7f   : > { %10593 = vmatprep.subr.bf16.mxu1 %v10592_v43  ;;  %v10432_v16 = vpack.c.bf16 %v6996_v56, %v6988_v10  ;;  %v6995_v43 = vld [vmem:[#allocation7 + $0x170] sm:$0xff]  ;;  %v7004_v3 = vld [vmem:[#allocation7 + $0x1b8] sm:$0xff] }
0x3e80   : > { %9717 = vmatmul.mubr.msk.f32.gmra.mrb[114].mxu0 %vm2130_vm7, %v12691_v60  ;;  %v7807_v10 = vld [vmem:[#allocation10 + $0x90] sm:$0xff] }
0x3e81   : > { %10375 = vmatpush1.bf16.msra.mxu0 %v10374_v45  ;;  %7408 = vmatprep.mubr.f32.mxu0 %v14414_v8  ;;  %v10596_v45 = vpack.c.bf16 %v8426_v26, %v8418_v48  ;;  %v7012_v26 = vld [vmem:[#allocation7 + $0x1f8] sm:$0xff] }
0x3e82   : > { %10393 = vmatprep.subr.bf16.mxu0 %v10392_v29  ;;  %v8442_v29 = vld [vmem:[#allocation11 + $0x448] sm:$0xff]  ;;  %v10436_v42 = vpack.c.bf16 %v7012_v26, %v7004_v3  ;;  %v7847_v26 = vld [vmem:[#allocation10 + $0x1d0] sm:$0xff] }
0x3e83   : > { %v10600_v37 = vpack.c.bf16 %v8442_v29, %v8434_v49  ;;  %v7800_v29 = vld [vmem:[#allocation10 + $0x58] sm:$0xff] }
0x3e84   : > { %9722 = vmatmul.mubr.msk.f32.vlgmr.msra.gmra.mrb[116].mxu0 %vm2130_vm7, %v12689_v2  ;;  %v10594_v2 = vpack.c.bf16 %v8409_v0, %v8401_v5  ;;  %v8474_v5 = vld [vmem:[#allocation11 + $0x548] sm:$0xff]  ;;  %v10430_v0 = vpack.c.bf16 %v6979_v28, %v6971_v35  ;;  %v8521_v35 = vld [vmem:[#allocation11 + $0x6c0] sm:$0xff] }
0x3e85   : > { %10395 = vmatpush1.bf16.msra.mxu0 %v10394_v55  ;;  %7414 = vmatprep.mubr.f32.mxu0 %v14414_v8  ;;  %v6980_v55 = vld [vmem:[#allocation7 + $0xf8] sm:$0xff] }
0x3e86   : > { %10397 = vmatprep.subr.bf16.mxu0 %v10396_v14  ;;  %10595 = vmatpush1.bf16.msra.mxu1 %v10594_v2  ;;  %v10426_v14 = vpack.c.bf16 %v6963_v61, %v6955_v54  ;;  %v10428_v40 = vpack.c.bf16 %v6980_v55, %v6972_v62  ;;  %v8482_v2 = vld [vmem:[#allocation11 + $0x588] sm:$0xff]  ;;  %v8505_v54 = vld [vmem:[#allocation11 + $0x640] sm:$0xff]  ;;  %v10472_v61 = vpack.c.bf16 %v7800_v29, %v7792_v6  ;;  %v7791_v62 = vld [vmem:[#allocation10 + $0x10] sm:$0xff] }
0x3e87   : > { %10597 = vmatprep.subr.bf16.mxu1 %v10596_v45  ;;  %v7011_v45 = vld [vmem:[#allocation7 + $0x1f0] sm:$0xff]  ;;  %v7808_v55 = vld [vmem:[#allocation10 + $0x98] sm:$0xff] }
0x3e88   : > { %9723 = vmatmul.mubr.msk.f32.gmra.mrb[118].mxu0 %vm2130_vm7, %v12693_v63  ;;  %v10598_v63 = vpack.c.bf16 %v8425_v25, %v8417_v57  ;;  %v10434_v25 = vpack.c.bf16 %v6995_v43, %v6987_v13  ;;  %v10476_v28 = vpack.c.bf16 %v7816_v50, %v7808_v55  ;;  %v7840_v13 = vld [vmem:[#allocation10 + $0x198] sm:$0xff]  ;;  %v7879_v6 = vld [vmem:[#allocation10 + $0x2d0] sm:$0xff] }
0x3e89   : > { %10399 = vmatpush1.bf16.msra.mxu0 %v10398_v30  ;;  %7420 = vmatprep.mubr.f32.mxu0 %v14414_v8  ;;  %v8466_v30 = vld [vmem:[#allocation11 + $0x508] sm:$0xff]  ;;  %v7848_v43 = vld [vmem:[#allocation10 + $0x1d8] sm:$0xff] }
0x3e8a   : > { %10401 = vmatprep.subr.bf16.mxu0 %v10400_v20  ;;  %10599 = vmatpush1.bf16.msra.mxu1 %v10598_v63  ;;  %v8465_v20 = vld [vmem:[#allocation11 + $0x500] sm:$0xff]  ;;  %v10608_v48 = vpack.c.bf16 %v8474_v5, %v8466_v30  ;;  %v8498_v63 = vld [vmem:[#allocation11 + $0x608] sm:$0xff]  ;;  %v7824_v30 = vld [vmem:[#allocation10 + $0x118] sm:$0xff]  ;;  %v10484_v3 = vpack.c.bf16 %v7848_v43, %v7840_v13 }
0x3e8b   : > { %10601 = vmatprep.subr.bf16.mxu1 %v10600_v37  ;;  %v10610_v57 = vpack.c.bf16 %v8473_v24, %v8465_v20  ;;  %v7799_v37 = vld [vmem:[#allocation10 + $0x50] sm:$0xff]  ;;  %v7832_v5 = vld [vmem:[#allocation10 + $0x158] sm:$0xff] }
0x3e8c   : > { %9724 = vmatmul.mubr.msk.f32.gmra.mrb[120].mxu0 %vm2130_vm7, %v12687_v15  ;;  %v10602_v15 = vpack.c.bf16 %v8441_v51, %v8433_v11  ;;  %v10438_v51 = vpack.c.bf16 %v7011_v45, %v7003_v27  ;;  %v10480_v20 = vpack.c.bf16 %v7832_v5, %v7824_v30  ;;  %v7823_v24 = vld [vmem:[#allocation10 + $0x110] sm:$0xff]  ;;  %v7896_v29 = vld [vmem:[#allocation10 + $0x358] sm:$0xff] }
0x3e8d   : > { %10403 = vmatpush1.bf16.msra.mxu0 %v10402_v7  ;;  %7426 = vmatprep.mubr.f32.mxu0 %v14414_v8  ;;  %v8490_v7 = vld [vmem:[#allocation11 + $0x5c8] sm:$0xff]  ;;  %v7912_v55 = vld [vmem:[#allocation10 + $0x3d8] sm:$0xff] }
0x3e8e   : > { %10405 = vmatprep.subr.bf16.mxu0 %v10404_v21  ;;  %10603 = vmatpush1.bf16.msra.mxu1 %v10602_v15  ;;  %v8481_v21 = vld [vmem:[#allocation11 + $0x580] sm:$0xff]  ;;  %v10612_v49 = vpack.c.bf16 %v8490_v7, %v8482_v2  ;;  %v8514_v15 = vld [vmem:[#allocation11 + $0x688] sm:$0xff]  ;;  %v7856_v2 = vld [vmem:[#allocation10 + $0x218] sm:$0xff] }
0x3e8f   : > { %10605 = vmatprep.subr.bf16.mxu1 %v10604_v41  ;;  %v10614_v11 = vpack.c.bf16 %v8489_v44, %v8481_v21  ;;  %v7815_v41 = vld [vmem:[#allocation10 + $0xd0] sm:$0xff]  ;;  %v7864_v7 = vld [vmem:[#allocation10 + $0x258] sm:$0xff] }
0x3e90   : > { %9725 = vmatmul.mubr.msk.f32.gmra.mrb[122].mxu0 %vm2130_vm7, %v12691_v60  ;;  %v10606_v60 = vpack.c.bf16 %v8457_v47, %v8449_v17  ;;  %v10474_v47 = vpack.c.bf16 %v7799_v37, %v7791_v62  ;;  %v7863_v21 = vld [vmem:[#allocation10 + $0x250] sm:$0xff]  ;;  %v7872_v44 = vld [vmem:[#allocation10 + $0x298] sm:$0xff]  ;;  %v8537_v62 = vld [vmem:[#allocation11 + $0x740] sm:$0xff] }
0x3e91   : > { %10407 = vmatpush1.bf16.msra.mxu0 %v10406_v34  ;;  %7586 = vmatprep.mubr.f32.mxu0 %v14414_v8  ;;  %v8506_v34 = vld [vmem:[#allocation11 + $0x648] sm:$0xff]  ;;  %v7904_v37 = vld [vmem:[#allocation10 + $0x398] sm:$0xff] }
0x3e92   : > { %10425 = vmatprep.subr.bf16.mxu0 %v10424_v23  ;;  %10607 = vmatpush1.bf16.msra.mxu1 %v10606_v60  ;;  %v8497_v23 = vld [vmem:[#allocation11 + $0x600] sm:$0xff]  ;;  %v10616_v22 = vpack.c.bf16 %v8506_v34, %v8498_v63  ;;  %v7887_v34 = vld [vmem:[#allocation10 + $0x310] sm:$0xff]  ;;  %v7812_v43 = vld [vmem:[#allocation10 + $0xb8] sm:$0xff] }
0x3e93   : > { %10609 = vmatprep.subr.bf16.mxu1 %v10608_v48  ;;  %v10618_v17 = vpack.c.bf16 %v8505_v54, %v8497_v23  ;;  %v7839_v48 = vld [vmem:[#allocation10 + $0x190] sm:$0xff] }
0x3e94   : > { %9730 = vmatmul.mubr.msk.f32.vlgmr.msra.gmra.mrb[108].mxu0 %vm2130_vm7, %v12152_v52  ;;  %v7895_v54 = vld [vmem:[#allocation10 + $0x350] sm:$0xff] }
0x3e95   : > { %10427 = vmatpush1.bf16.msra.mxu0 %v10426_v14  ;;  %7592 = vmatprep.mubr.f32.mxu0 %v14414_v8  ;;  %v8522_v14 = vld [vmem:[#allocation11 + $0x6c8] sm:$0xff]  ;;  %v10498_v50 = vpack.c.bf16 %v7895_v54, %v7887_v34  ;;  %v7876_v54 = vld [vmem:[#allocation10 + $0x2b8] sm:$0xff] }
0x3e96   : > { %10429 = vmatprep.subr.bf16.mxu0 %v10428_v40  ;;  %10611 = vmatpush1.bf16.msra.mxu1 %v10610_v57  ;;  %v8513_v40 = vld [vmem:[#allocation11 + $0x680] sm:$0xff]  ;;  %v10620_v56 = vpack.c.bf16 %v8522_v14, %v8514_v15  ;;  %v10486_v57 = vpack.c.bf16 %v7847_v26, %v7839_v48  ;;  %v7903_v15 = vld [vmem:[#allocation10 + $0x390] sm:$0xff]  ;;  %v8546_v14 = vld [vmem:[#allocation11 + $0x788] sm:$0xff] }
0x3e97   : > { %10613 = vmatprep.subr.bf16.mxu1 %v10612_v49  ;;  %v10622_v60 = vpack.c.bf16 %v8521_v35, %v8513_v40  ;;  %v7888_v49 = vld [vmem:[#allocation10 + $0x318] sm:$0xff]  ;;  %v7911_v40 = vld [vmem:[#allocation10 + $0x3d0] sm:$0xff] }
0x3e98   : > { %9731 = vmatmul.mubr.msk.f32.gmra.mrb[110].mxu0 %vm2130_vm7, %v12156_v59  ;;  %v10496_v23 = vpack.c.bf16 %v7896_v29, %v7888_v49  ;;  %v10502_v5 = vpack.c.bf16 %v7911_v40, %v7903_v15  ;;  %v7811_v26 = vld [vmem:[#allocation10 + $0xb0] sm:$0xff]  ;;  %v7860_v29 = vld [vmem:[#allocation10 + $0x238] sm:$0xff] }
0x3e99   : > { %10431 = vmatpush1.bf16.msra.mxu0 %v10430_v0  ;;  %7598 = vmatprep.mubr.f32.mxu0 %v14414_v8  ;;  %v10478_v0 = vpack.c.bf16 %v7815_v41, %v7807_v10  ;;  %v8553_v10 = vld [vmem:[#allocation11 + $0x7c0] sm:$0xff]  ;;  %v7796_v41 = vld [vmem:[#allocation10 + $0x38] sm:$0xff]  ;;  %v7851_v49 = vld [vmem:[#allocation10 + $0x1f0] sm:$0xff] }
0x3e9a   : > { %10433 = vmatprep.subr.bf16.mxu0 %v10432_v16  ;;  %10615 = vmatpush1.bf16.msra.mxu1 %v10614_v11  ;;  %v7831_v16 = vld [vmem:[#allocation10 + $0x150] sm:$0xff]  ;;  %v8530_v11 = vld [vmem:[#allocation11 + $0x708] sm:$0xff]  ;;  %v7908_v40 = vld [vmem:[#allocation10 + $0x3b8] sm:$0xff] }
0x3e9b   : > { %10617 = vmatprep.subr.bf16.mxu1 %v10616_v22 }
0x3e9c   : > { %9732 = vmatmul.mubr.msk.f32.gmra.mrb[112].mxu0 %vm2130_vm7, %v12150_v9 }
0x3e9d   : > { %10435 = vmatpush1.bf16.msra.mxu0 %v10434_v25  ;;  %7604 = vmatprep.mubr.f32.mxu0 %v14414_v8  ;;  %v7855_v25 = vld [vmem:[#allocation10 + $0x210] sm:$0xff] }
0x3e9e   : > { %10437 = vmatprep.subr.bf16.mxu0 %v10436_v42  ;;  %10619 = vmatpush1.bf16.msra.mxu1 %v10618_v17  ;;  %v7880_v42 = vld [vmem:[#allocation10 + $0x2d8] sm:$0xff]  ;;  %v10490_v27 = vpack.c.bf16 %v7863_v21, %v7855_v25  ;;  %v8554_v17 = vld [vmem:[#allocation11 + $0x7c8] sm:$0xff]  ;;  %v7827_v21 = vld [vmem:[#allocation10 + $0x130] sm:$0xff] }
0x3e9f   : > { %10621 = vmatprep.subr.bf16.mxu1 %v10620_v56  ;;  %v10492_v45 = vpack.c.bf16 %v7880_v42, %v7872_v44  ;;  %v10628_v35 = vpack.c.bf16 %v8554_v17, %v8546_v14  ;;  %v7804_v56 = vld [vmem:[#allocation10 + $0x78] sm:$0xff]  ;;  %v7835_v44 = vld [vmem:[#allocation10 + $0x170] sm:$0xff] }
0x3ea0   : > { %9733 = vmatmul.mubr.msk.f32.gmra.mrb[114].mxu0 %vm2130_vm7, %v12154_v58  ;;  %v7844_v42 = vld [vmem:[#allocation10 + $0x1b8] sm:$0xff]  ;;  %v7891_v17 = vld [vmem:[#allocation10 + $0x330] sm:$0xff] }
0x3ea1   : > { %10439 = vmatpush1.bf16.msra.mxu0 %v10438_v51  ;;  %7764 = vmatprep.mubr.f32.mxu0 %v14414_v8  ;;  %v8538_v51 = vld [vmem:[#allocation11 + $0x748] sm:$0xff] }
0x3ea2   : > { %10473 = vmatprep.subr.bf16.mxu0 %v10472_v61  ;;  %10623 = vmatpush1.bf16.msra.mxu1 %v10622_v60  ;;  %v10624_v61 = vpack.c.bf16 %v8538_v51, %v8530_v11  ;;  %v8310_v60 = vld [vmem:[#allocation11 + $0x28] sm:$0xff]  ;;  %v7859_v51 = vld [vmem:[#allocation10 + $0x230] sm:$0xff] }
0x3ea4   : > { %9738 = vmatmul.mubr.msk.f32.vlgmr.msra.gmra.mrb[116].mxu0 %vm2130_vm7, %v12152_v52  ;;  %v10482_v52 = vpack.c.bf16 %v7831_v16, %v7823_v24  ;;  %10625 = vmatprep.subr.bf16.mxu1 %v10624_v61  ;;  %v7795_v24 = vld [vmem:[#allocation10 + $0x30] sm:$0xff]  ;;  %v7884_v61 = vld [vmem:[#allocation10 + $0x2f8] sm:$0xff] }
0x3ea5   : > { %10475 = vmatpush1.bf16.msra.mxu0 %v10474_v47  ;;  %7770 = vmatprep.mubr.f32.mxu0 %v14414_v8  ;;  %v10500_v47 = vpack.c.bf16 %v7912_v55, %v7904_v37  ;;  %v7803_v16 = vld [vmem:[#allocation10 + $0x70] sm:$0xff] }
0x3ea6   : > { %10477 = vmatprep.subr.bf16.mxu0 %v10476_v28  ;;  %v8545_v28 = vld [vmem:[#allocation11 + $0x780] sm:$0xff]  ;;  %v7875_v37 = vld [vmem:[#allocation10 + $0x2b0] sm:$0xff] }
0x3ea7   : > { %v10630_v30 = vpack.c.bf16 %v8553_v10, %v8545_v28  ;;  %v7883_v55 = vld [vmem:[#allocation10 + $0x2f0] sm:$0xff] }
0x3ea8   : > { %9739 = vmatmul.mubr.msk.f32.gmra.mrb[118].mxu0 %vm2130_vm7, %v12156_v59  ;;  %v10488_v59 = vpack.c.bf16 %v7864_v7, %v7856_v2  ;;  %v7819_v2 = vld [vmem:[#allocation10 + $0xf0] sm:$0xff]  ;;  %v7828_v7 = vld [vmem:[#allocation10 + $0x138] sm:$0xff]  ;;  %v10558_v15 = vpack.c.bf16 %v7883_v55, %v7875_v37 }
0x3ea9   : > { %10479 = vmatpush1.bf16.msra.mxu0 %v10478_v0  ;;  %7776 = vmatprep.mubr.f32.mxu0 %v14414_v8  ;;  %v8318_v0 = vld [vmem:[#allocation11 + $0x68] sm:$0xff]  ;;  %v8403_v37 = vld [vmem:[#allocation11 + $0x310] sm:$0xff] }
0x3eaa   : > { %10481 = vmatprep.subr.bf16.mxu0 %v10480_v20  ;;  %v10536_v20 = vpack.c.bf16 %v7804_v56, %v7796_v41  ;;  %v10696_v13 = vpack.c.bf16 %v8318_v0, %v8310_v60  ;;  %v7907_v41 = vld [vmem:[#allocation10 + $0x3b0] sm:$0xff] }
0x3eab   : > { %v7915_v56 = vld [vmem:[#allocation10 + $0x3f0] sm:$0xff] }
0x3eac   : > { %9740 = vmatmul.mubr.msk.f32.gmra.mrb[120].mxu0 %vm2130_vm7, %v12150_v9  ;;  %v7871_v9 = vld [vmem:[#allocation10 + $0x290] sm:$0xff]  ;;  %v10566_v60 = vpack.c.bf16 %v7915_v56, %v7907_v41  ;;  %v8452_v56 = vld [vmem:[#allocation11 + $0x498] sm:$0xff] }
0x3ead   : > { %10483 = vmatpush1.bf16.msra.mxu0 %v10482_v52  ;;  %7782 = vmatprep.mubr.f32.mxu0 %v14414_v8  ;;  %v10494_v63 = vpack.c.bf16 %v7879_v6, %v7871_v9  ;;  %v7820_v52 = vld [vmem:[#allocation10 + $0xf8] sm:$0xff]  ;;  %v7843_v6 = vld [vmem:[#allocation10 + $0x1b0] sm:$0xff] }
0x3eae   : > { %10485 = vmatprep.subr.bf16.mxu0 %v10484_v3  ;;  %v10538_v3 = vpack.c.bf16 %v7803_v16, %v7795_v24  ;;  %v10540_v48 = vpack.c.bf16 %v7820_v52, %v7812_v43  ;;  %v10550_v34 = vpack.c.bf16 %v7851_v49, %v7843_v6  ;;  %v8315_v24 = vld [vmem:[#allocation11 + $0x50] sm:$0xff]  ;;  %v8324_v16 = vld [vmem:[#allocation11 + $0x98] sm:$0xff] }
0x3eaf   : > { %v8380_v6 = vld [vmem:[#allocation11 + $0x258] sm:$0xff]  ;;  %v8411_v55 = vld [vmem:[#allocation11 + $0x350] sm:$0xff] }
0x3eb0   : > { %9741 = vmatmul.mubr.msk.f32.gmra.mrb[122].mxu0 %vm2130_vm7, %v12154_v58  ;;  %v8529_v58 = vld [vmem:[#allocation11 + $0x700] sm:$0xff]  ;;  %v8443_v41 = vld [vmem:[#allocation11 + $0x450] sm:$0xff] }
0x3eb1   : > { %10487 = vmatpush1.bf16.msra.mxu0 %v10486_v57  ;;  %8070 = vmatprep.mubr.f32.mxu0 %v14414_v8  ;;  %v10626_v22 = vpack.c.bf16 %v8537_v62, %v8529_v58  ;;  %v7836_v57 = vld [vmem:[#allocation10 + $0x178] sm:$0xff]  ;;  %v10556_v62 = vpack.c.bf16 %v7884_v61, %v7876_v54  ;;  %v8387_v54 = vld [vmem:[#allocation11 + $0x290] sm:$0xff] }
0x3eb2   : > { %10489 = vmatprep.subr.bf16.mxu0 %v10488_v59  ;;  %v10542_v59 = vpack.c.bf16 %v7819_v2, %v7811_v26  ;;  %v10544_v25 = vpack.c.bf16 %v7836_v57, %v7828_v7  ;;  %v8340_v26 = vld [vmem:[#allocation11 + $0x118] sm:$0xff]  ;;  %v8395_v61 = vld [vmem:[#allocation11 + $0x2d0] sm:$0xff] }
0x3eb3   : > { %10627 = vmatpush1.bf16.msra.mxu1 %v10626_v22  ;;  %v7892_v22 = vld [vmem:[#allocation10 + $0x338] sm:$0xff] }
0x3eb4   : > { %10629 = vmatprep.subr.bf16.mxu1 %v10628_v35  ;;  %v7916_v35 = vld [vmem:[#allocation10 + $0x3f8] sm:$0xff] }
0x3eb5   : > { %10491 = vmatpush1.bf16.msra.mxu0 %v10490_v27  ;;  %v7852_v27 = vld [vmem:[#allocation10 + $0x1f8] sm:$0xff]  ;;  %v10564_v10 = vpack.c.bf16 %v7916_v35, %v7908_v40 }
0x3eb6   : > { %10493 = vmatprep.subr.bf16.mxu0 %v10492_v45  ;;  %v10546_v45 = vpack.c.bf16 %v7835_v44, %v7827_v21  ;;  %v10548_v9 = vpack.c.bf16 %v7852_v27, %v7844_v42  ;;  %v8348_v2 = vld [vmem:[#allocation11 + $0x158] sm:$0xff] }
0x3eb7   : > { %10631 = vmatpush1.bf16.msra.mxu1 %v10630_v30  ;;  %v8308_v30 = vld [vmem:[#allocation11 + $0x18] sm:$0xff]  ;;  %v10640_v57 = vpack.c.bf16 %v8348_v2, %v8340_v26 }
0x3eb8   : > { %10697 = vmatprep.subr.bf16.mxu1 %v10696_v13  ;;  %v8332_v13 = vld [vmem:[#allocation11 + $0xd8] sm:$0xff] }
0x3eb9   : > { %10495 = vmatpush1.bf16.msra.mxu0 %v10494_v63  ;;  %v7868_v63 = vld [vmem:[#allocation10 + $0x278] sm:$0xff]  ;;  %v10636_v52 = vpack.c.bf16 %v8332_v13, %v8324_v16 }
0x3eba   : > { %10497 = vmatprep.subr.bf16.mxu0 %v10496_v23  ;;  %v10552_v11 = vpack.c.bf16 %v7868_v63, %v7860_v29  ;;  %v7867_v23 = vld [vmem:[#allocation10 + $0x270] sm:$0xff]  ;;  %v8356_v21 = vld [vmem:[#allocation11 + $0x198] sm:$0xff] }
0x3ebb   : > { %v10554_v58 = vpack.c.bf16 %v7867_v23, %v7859_v51  ;;  %v8364_v44 = vld [vmem:[#allocation11 + $0x1d8] sm:$0xff]  ;;  %v8371_v63 = vld [vmem:[#allocation11 + $0x210] sm:$0xff] }
0x3ebc   : > { %v10644_v27 = vpack.c.bf16 %v8364_v44, %v8356_v21  ;;  %v8444_v40 = vld [vmem:[#allocation11 + $0x458] sm:$0xff] }
0x3ebd   : > { %10499 = vmatpush1.bf16.msra.mxu0 %v10498_v50  ;;  %v7900_v50 = vld [vmem:[#allocation10 + $0x378] sm:$0xff] }
0x3ebe   : > { %10501 = vmatprep.subr.bf16.mxu0 %v10500_v47  ;;  %v10560_v14 = vpack.c.bf16 %v7900_v50, %v7892_v22  ;;  %v7899_v47 = vld [vmem:[#allocation10 + $0x370] sm:$0xff]  ;;  %v8420_v22 = vld [vmem:[#allocation11 + $0x398] sm:$0xff] }
0x3ebf   : > { %v10562_v28 = vpack.c.bf16 %v7899_v47, %v7891_v17  ;;  %v8428_v50 = vld [vmem:[#allocation11 + $0x3d8] sm:$0xff]  ;;  %v8427_v17 = vld [vmem:[#allocation11 + $0x3d0] sm:$0xff] }
0x3ec0   : > { %v8436_v47 = vld [vmem:[#allocation11 + $0x418] sm:$0xff] }
0x3ec1   : > { %10503 = vmatpush1.bf16.msra.mxu0 %v10502_v5  ;;  %v8316_v5 = vld [vmem:[#allocation11 + $0x58] sm:$0xff] }
0x3ec2   : > { %10537 = vmatprep.subr.bf16.mxu0 %v10536_v20  ;;  %v10632_v0 = vpack.c.bf16 %v8316_v5, %v8308_v30  ;;  %v8307_v20 = vld [vmem:[#allocation11 + $0x10] sm:$0xff]  ;;  %v8460_v30 = vld [vmem:[#allocation11 + $0x4d8] sm:$0xff] }
0x3ec3   : > { %v10634_v43 = vpack.c.bf16 %v8315_v24, %v8307_v20  ;;  %v8459_v20 = vld [vmem:[#allocation11 + $0x4d0] sm:$0xff]  ;;  %v8468_v24 = vld [vmem:[#allocation11 + $0x518] sm:$0xff] }
0x3ec4   : > { %8071 = vmatmul.mubr.f32.vlgmr.msra.gmra.mrb[108].mxu0 %v13278_v53  ;;  %v8476_v16 = vld [vmem:[#allocation11 + $0x558] sm:$0xff] }
0x3ec5   : > { %10539 = vmatpush1.bf16.msra.mxu0 %v10538_v3  ;;  %8076 = vmatprep.mubr.f32.mxu0 %v14414_v8  ;;  %v8323_v3 = vld [vmem:[#allocation11 + $0x90] sm:$0xff]  ;;  %v8492_v26 = vld [vmem:[#allocation11 + $0x5d8] sm:$0xff] }
0x3ec6   : > { %10541 = vmatprep.subr.bf16.mxu0 %v10540_v48  ;;  %v8331_v48 = vld [vmem:[#allocation11 + $0xd0] sm:$0xff]  ;;  %v8508_v21 = vld [vmem:[#allocation11 + $0x658] sm:$0xff] }
0x3ec7   : > { %v10638_v7 = vpack.c.bf16 %v8331_v48, %v8323_v3  ;;  %v8475_v3 = vld [vmem:[#allocation11 + $0x550] sm:$0xff]  ;;  %v8484_v48 = vld [vmem:[#allocation11 + $0x598] sm:$0xff] }
0x3ec8   : > { %8077 = vmatmul.mubr.f32.gmra.mrb[110].mxu0 %v13282_v33 }
0x3ec9   : > { %10543 = vmatpush1.bf16.msra.mxu0 %v10542_v59  ;;  %8082 = vmatprep.mubr.f32.mxu0 %v14414_v8  ;;  %v8339_v59 = vld [vmem:[#allocation11 + $0x110] sm:$0xff] }
0x3eca   : > { %10545 = vmatprep.subr.bf16.mxu0 %v10544_v25  ;;  %v8347_v25 = vld [vmem:[#allocation11 + $0x150] sm:$0xff] }
0x3ecb   : > { %v10642_v42 = vpack.c.bf16 %v8347_v25, %v8339_v59  ;;  %v8491_v59 = vld [vmem:[#allocation11 + $0x5d0] sm:$0xff]  ;;  %v8500_v25 = vld [vmem:[#allocation11 + $0x618] sm:$0xff] }
0x3ecc   : > { %8083 = vmatmul.mubr.f32.gmra.mrb[112].mxu0 %v13280_v32 }
0x3ecd   : > { %10547 = vmatpush1.bf16.msra.mxu0 %v10546_v45  ;;  %8088 = vmatprep.mubr.f32.mxu0 %v14414_v8  ;;  %v8355_v45 = vld [vmem:[#allocation11 + $0x190] sm:$0xff] }
0x3ece   : > { %10549 = vmatprep.subr.bf16.mxu0 %v10548_v9  ;;  %v8372_v9 = vld [vmem:[#allocation11 + $0x218] sm:$0xff] }
0x3ecf   : > { %v10648_v29 = vpack.c.bf16 %v8380_v6, %v8372_v9  ;;  %v8524_v9 = vld [vmem:[#allocation11 + $0x6d8] sm:$0xff] }
0x3ed0   : > { %8089 = vmatmul.mubr.f32.gmra.mrb[114].mxu0 %v13288_v46 }
0x3ed1   : > { %10551 = vmatpush1.bf16.msra.mxu0 %v10550_v34  ;;  %8248 = vmatprep.mubr.f32.mxu0 %v14414_v8  ;;  %v8388_v34 = vld [vmem:[#allocation11 + $0x298] sm:$0xff] }
0x3ed2   : > { %10553 = vmatprep.subr.bf16.mxu0 %v10552_v11  ;;  %v8396_v11 = vld [vmem:[#allocation11 + $0x2d8] sm:$0xff] }
0x3ed3   : > { %v10652_v23 = vpack.c.bf16 %v8396_v11, %v8388_v34  ;;  %v8540_v34 = vld [vmem:[#allocation11 + $0x758] sm:$0xff] }
0x3ed5   : > { %10555 = vmatpush1.bf16.msra.mxu0 %v10554_v58  ;;  %v8404_v58 = vld [vmem:[#allocation11 + $0x318] sm:$0xff] }
0x3ed6   : > { %10557 = vmatprep.subr.bf16.mxu0 %v10556_v62 }
0x3ed9   : > { %10559 = vmatpush1.bf16.msra.mxu0 %v10558_v15  ;;  %v10658_v15 = vpack.c.bf16 %v8411_v55, %v8403_v37  ;;  %v8555_v37 = vld [vmem:[#allocation11 + $0x7d0] sm:$0xff]  ;;  %v8312_v55 = vld [vmem:[#allocation11 + $0x38] sm:$0xff] }
0x3eda   : > { %10561 = vmatprep.subr.bf16.mxu0 %v10560_v14  ;;  %v8419_v14 = vld [vmem:[#allocation11 + $0x390] sm:$0xff] }
0x3edb   : > { %v10662_v35 = vpack.c.bf16 %v8427_v17, %v8419_v14  ;;  %v5272_v14 = vld [vmem:[%s14472_s23] sm:$0x3]  ;;  %v5466_v17 = vsub.s32 1, %v11623_v18 }
0x3edd   : > { %10563 = vmatpush1.bf16.msra.mxu0 %v10562_v28  ;;  %v10664_v28 = vpack.c.bf16 %v8444_v40, %v8436_v47  ;;  %v14140_v40 = vrot.slane %v5272_v14, %v5466_v17 }
0x3ede   : > { %10565 = vmatprep.subr.bf16.mxu0 %v10564_v10  ;;  %v8435_v10 = vld [vmem:[#allocation11 + $0x410] sm:$0xff] }
0x3edf   : > { %v10666_v5 = vpack.c.bf16 %v8443_v41, %v8435_v10  ;;  %v14474_v10 = vld [vmem:[#allocation28_spill] sm:$0xff] }
0x3ee1   : > { %10567 = vmatpush1.bf16.msra.mxu0 %v10566_v60  ;;  %v10668_v60 = vpack.c.bf16 %v8460_v30, %v8452_v56 }
0x3ee2   : > { %10633 = vmatprep.subr.bf16.mxu0 %v10632_v0  ;;  %v8451_v0 = vld [vmem:[#allocation11 + $0x490] sm:$0xff] }
0x3ee3   : > { %v10670_v13 = vpack.c.bf16 %v8459_v20, %v8451_v0  ;;  %v14477_v0 = vld [vmem:[#allocation30_spill] sm:$0xff] }
0x3ee4   : > { %8249 = vmatmul.mubr.f32.vlgmr.msra.gmra.mrb[116].mxu0 %v13278_v53  ;;  %v8363_v53 = vld [vmem:[#allocation11 + $0x1d0] sm:$0xff] }
0x3ee5   : > { %8254 = vmatprep.mubr.f32.mxu0 %v14414_v8  ;;  %10635 = vmatpush1.bf16.msra.mxu0 %v10634_v43  ;;  %v10646_v49 = vpack.c.bf16 %v8363_v53, %v8355_v45  ;;  %v10672_v43 = vpack.c.bf16 %v8476_v16, %v8468_v24  ;;  %v8507_v45 = vld [vmem:[#allocation11 + $0x650] sm:$0xff]  ;;  %v8516_v53 = vld [vmem:[#allocation11 + $0x698] sm:$0xff] }
0x3ee6   : > { %10637 = vmatprep.subr.bf16.mxu0 %v10636_v52  ;;  %v8467_v52 = vld [vmem:[#allocation11 + $0x510] sm:$0xff] }
0x3ee7   : > { %v10674_v2 = vpack.c.bf16 %v8475_v3, %v8467_v52  ;;  %v14479_v52 = vld [vmem:[#allocation31_spill] sm:$0xff]  ;;  %v14480_v3 = vld [vmem:[#allocation32_spill] sm:$0xff] }
0x3ee8   : > { %8255 = vmatmul.mubr.f32.gmra.mrb[118].mxu0 %v13282_v33  ;;  %v8379_v33 = vld [vmem:[#allocation11 + $0x250] sm:$0xff] }
0x3ee9   : > { %8260 = vmatprep.mubr.f32.mxu0 %v14414_v8  ;;  %10639 = vmatpush1.bf16.msra.mxu0 %v10638_v7  ;;  %v10650_v51 = vpack.c.bf16 %v8379_v33, %v8371_v63  ;;  %v10676_v7 = vpack.c.bf16 %v8492_v26, %v8484_v48  ;;  %v8523_v63 = vld [vmem:[#allocation11 + $0x6d0] sm:$0xff]  ;;  %v8532_v33 = vld [vmem:[#allocation11 + $0x718] sm:$0xff]  ;;  %v14481_v48 = vsub.f32 %v14479_v52, %v14480_v3 }
0x3eea   : > { %10641 = vmatprep.subr.bf16.mxu0 %v10640_v57  ;;  %v8483_v57 = vld [vmem:[#allocation11 + $0x590] sm:$0xff] }
0x3eeb   : > { %v10678_v44 = vpack.c.bf16 %v8491_v59, %v8483_v57  ;;  %v8317_v59 = vld [vmem:[#allocation11 + $0x60] sm:$0xff] }
0x3eec   : > { %8261 = vmatmul.mubr.f32.gmra.mrb[120].mxu0 %v13280_v32  ;;  %v8412_v32 = vld [vmem:[#allocation11 + $0x358] sm:$0xff] }
0x3eed   : > { %8266 = vmatprep.mubr.f32.mxu0 %v14414_v8  ;;  %10643 = vmatpush1.bf16.msra.mxu0 %v10642_v42  ;;  %v10654_v8 = vpack.c.bf16 %v8395_v61, %v8387_v54  ;;  %v10656_v62 = vpack.c.bf16 %v8412_v32, %v8404_v58  ;;  %v10680_v42 = vpack.c.bf16 %v8508_v21, %v8500_v25  ;;  %v8539_v54 = vld [vmem:[#allocation11 + $0x750] sm:$0xff]  ;;  %v8548_v61 = vld [vmem:[#allocation11 + $0x798] sm:$0xff] }
0x3eee   : > { %10645 = vmatprep.subr.bf16.mxu0 %v10644_v27  ;;  %v8499_v27 = vld [vmem:[#allocation11 + $0x610] sm:$0xff]  ;;  %v8556_v58 = vld [vmem:[#allocation11 + $0x7d8] sm:$0xff] }
0x3eef   : > { %v10682_v6 = vpack.c.bf16 %v8507_v45, %v8499_v27  ;;  %v8319_v25 = vld [vmem:[#allocation11 + $0x70] sm:$0xff] }
0x3ef0   : > { %8267 = vmatmul.mubr.f32.gmra.mrb[122].mxu0 %v13288_v46  ;;  %v10660_v46 = vpack.c.bf16 %v8428_v50, %v8420_v22  ;;  %v8320_v22 = vld [vmem:[#allocation11 + $0x78] sm:$0xff]  ;;  %v14482_v21 = vld [vmem:[#allocation33_spill] sm:$0xff] }
0x3ef1   : > { %10647 = vmatpush1.bf16.msra.mxu0 %v10646_v49  ;;  %v10684_v49 = vpack.c.bf16 %v8524_v9, %v8516_v53  ;;  %v8326_v53 = vld [vmem:[#allocation11 + $0xa8] sm:$0xff] }
0x3ef2   : > { %10649 = vmatprep.subr.bf16.mxu0 %v10648_v29  ;;  %v8515_v29 = vld [vmem:[#allocation11 + $0x690] sm:$0xff] }
0x3ef3   : > { %v10686_v11 = vpack.c.bf16 %v8523_v63, %v8515_v29  ;;  %v8336_v29 = vld [vmem:[#allocation11 + $0xf8] sm:$0xff] }
0x3ef5   : > { %10651 = vmatpush1.bf16.msra.mxu0 %v10650_v51  ;;  %v10688_v51 = vpack.c.bf16 %v8540_v34, %v8532_v33 }
0x3ef6   : > { %10653 = vmatprep.subr.bf16.mxu0 %v10652_v23  ;;  %v8531_v23 = vld [vmem:[#allocation11 + $0x710] sm:$0xff] }
0x3ef7   : > { %v10690_v32 = vpack.c.bf16 %v8539_v54, %v8531_v23  ;;  %v8327_v23 = vld [vmem:[#allocation11 + $0xb0] sm:$0xff]  ;;  %v14485_v54 = vld [vmem:[#allocation35_spill] sm:$0xff] }
0x3ef9   : > { %10655 = vmatpush1.bf16.msra.mxu0 %v10654_v8  ;;  %v10692_v8 = vpack.c.bf16 %v8556_v58, %v8548_v61  ;;  %v14486_v61 = vld [vmem:[#allocation36_spill] sm:$0xff] }
0x3efa   : > { %10657 = vmatprep.subr.bf16.mxu0 %v10656_v62  ;;  %v8547_v62 = vld [vmem:[#allocation11 + $0x790] sm:$0xff]  ;;  %v14487_v58 = vsub.f32 %v14485_v54, %v14486_v61  ;;  %v8374_v61 = vld [vmem:[#allocation11 + $0x228] sm:$0xff] }
0x3efb   : > { %v10694_v50 = vpack.c.bf16 %v8555_v37, %v8547_v62  ;;  %v8342_v62 = vld [vmem:[#allocation11 + $0x128] sm:$0xff] }
0x3efc   : > { %v8350_v37 = vld [vmem:[#allocation11 + $0x168] sm:$0xff] }
0x3efd   : > { %10659 = vmatpush1.bf16.msra.mxu0 %v10658_v15  ;;  %v10760_v15 = vpack.c.bf16 %v8320_v22, %v8312_v55  ;;  %v14488_v55 = vld [vmem:[#allocation37_spill] sm:$0xff]  ;;  %v14489_v22 = vld [vmem:[#allocation38_spill] sm:$0xff]  ;;  %v10704_v3 = vpack.c.bf16 %v8350_v37, %v8342_v62 }
0x3efe   : > { %10661 = vmatprep.subr.bf16.mxu0 %v10660_v46  ;;  %v5462_v46 = vsub.s32 0, %v11623_v18 }
0x3f00   : > { %v5463_v47 = vrot.slane %v5272_v14, %v5462_v46 }
0x3f01   : > { %10663 = vmatpush1.bf16.msra.mxu0 %v10662_v35 }
0x3f02   : > { %10665 = vmatprep.subr.bf16.mxu0 %v10664_v28  ;;  %v14473_v28 = vld [vmem:[#allocation27_spill] sm:$0xff]  ;;  %v5472_v26 = vadd.f32 %v5463_v47, %v14481_v48 }
0x3f03   : > { %v14475_v41 = vsub.f32 %v14473_v28, %v14474_v10  ;;  %v8341_v48 = vld [vmem:[#allocation11 + $0x120] sm:$0xff] }
0x3f05   : > { %10667 = vmatpush1.bf16.msra.mxu0 %v10666_v5  ;;  %v5470_v56 = vadd.f32 %v5463_v47, %v14475_v41  ;;  %v8344_v41 = vld [vmem:[#allocation11 + $0x138] sm:$0xff] }
0x3f06   : > { %10669 = vmatprep.subr.bf16.mxu0 %v10668_v60  ;;  %v14476_v60 = vld [vmem:[#allocation29_spill] sm:$0xff] }
0x3f07   : > { %v14478_v20 = vsub.f32 %v14476_v60, %v14477_v0 }
0x3f09   : > { %10671 = vmatpush1.bf16.msra.mxu0 %v10670_v13  ;;  %v5471_v24 = vadd.f32 %v14140_v40, %v14478_v20 }
0x3f0a   : > { %10673 = vmatprep.subr.bf16.mxu0 %v10672_v43  ;;  %v8309_v43 = vld [vmem:[#allocation11 + $0x20] sm:$0xff] }
0x3f0b   : > { %v10698_v33 = vpack.c.bf16 %v8317_v59, %v8309_v43  ;;  %v8343_v59 = vld [vmem:[#allocation11 + $0x130] sm:$0xff] }
0x3f0d   : > { %10675 = vmatpush1.bf16.msra.mxu0 %v10674_v2 }
0x3f0e   : > { %10677 = vmatprep.subr.bf16.mxu0 %v10676_v7 }
0x3f11   : > { %10679 = vmatpush1.bf16.msra.mxu0 %v10678_v44  ;;  %v14483_v44 = vld [vmem:[#allocation34_spill] sm:$0xff] }
0x3f12   : > { %10681 = vmatprep.subr.bf16.mxu0 %v10680_v42  ;;  %v14484_v42 = vsub.f32 %v14482_v21, %v14483_v44 }
0x3f14   : > { %v5473_v27 = vadd.f32 %v14140_v40, %v14484_v42 }
0x3f15   : > { %10683 = vmatpush1.bf16.msra.mxu0 %v10682_v6  ;;  %v8334_v6 = vld [vmem:[#allocation11 + $0xe8] sm:$0xff] }
0x3f16   : > { %10685 = vmatprep.subr.bf16.mxu0 %v10684_v49  ;;  %v8328_v49 = vld [vmem:[#allocation11 + $0xb8] sm:$0xff]  ;;  %v10700_v28 = vpack.c.bf16 %v8334_v6, %v8326_v53 }
0x3f17   : > { %v10764_v10 = vpack.c.bf16 %v8336_v29, %v8328_v49  ;;  %v8360_v53 = vld [vmem:[#allocation11 + $0x1b8] sm:$0xff] }
0x3f19   : > { %10687 = vmatpush1.bf16.msra.mxu0 %v10686_v11  ;;  %v8325_v11 = vld [vmem:[#allocation11 + $0xa0] sm:$0xff] }
0x3f1a   : > { %10689 = vmatprep.subr.bf16.mxu0 %v10688_v51  ;;  %v8333_v51 = vld [vmem:[#allocation11 + $0xe0] sm:$0xff] }
0x3f1d   : > { %10691 = vmatpush1.bf16.msra.mxu0 %v10690_v32  ;;  %v5474_v32 = vadd.f32 %v5463_v47, %v14487_v58  ;;  %v8382_v58 = vld [vmem:[#allocation11 + $0x268] sm:$0xff] }
0x3f1e   : > { %10693 = vmatprep.subr.bf16.mxu0 %v10692_v8 }
0x3f21   : > { %10695 = vmatpush1.bf16.msra.mxu0 %v10694_v50  ;;  %v14490_v50 = vsub.f32 %v14488_v55, %v14489_v22  ;;  %v8373_v55 = vld [vmem:[#allocation11 + $0x220] sm:$0xff] }
0x3f22   : > { %10761 = vmatprep.subr.bf16.mxu0 %v10760_v15  ;;  %v8381_v22 = vld [vmem:[#allocation11 + $0x260] sm:$0xff] }
0x3f23   : > { %v5475_v15 = vadd.f32 %v14140_v40, %v14490_v50 }
0x3f37   : > { %v6906_v35 = vpop.f32.mrb[100].mxu0 }
0x3f38   : > { %v6925_v30 = vmax.f32 %v14019_v1, %v6906_v35  ;;  %v6908_v5 = vpop.f32.mrb[101].mxu0  ;;  %v8311_v1 = vld [vmem:[#allocation11 + $0x30] sm:$0xff] }
0x3f39   : > { %v6926_v16 = vmax.f32 %v14024_v12, %v6908_v5  ;;  %v6910_v13 = vpop.f32.mrb[102].mxu0  ;;  %v10762_v34 = vpack.c.bf16 %v8319_v25, %v8311_v1  ;;  %v14492_v5 = vld [vmem:[#allocation40_spill] sm:$0xff]  ;;  %v14494_v1 = vld [vmem:[#allocation41_spill] sm:$0xff]  ;;  %v14495_v25 = vld [vmem:[#allocation42_spill] sm:$0xff] }
0x3f3a   : > { %v6933_v2 = vadd.f32 %v6925_v30, %v5470_v56  ;;  %v6927_v7 = vmax.f32 %v14029_v39, %v6910_v13  ;;  %v6912_v57 = vpop.f32.mrb[103].mxu0  ;;  %v8352_v56 = vld [vmem:[#allocation11 + $0x178] sm:$0xff]  ;;  %v14491_v30 = vld [vmem:[#allocation39_spill] sm:$0xff]  ;;  %v14496_v21 = vsub.f32 %v14494_v1, %v14495_v25  ;;  %v8407_v1 = vld [vmem:[#allocation11 + $0x330] sm:$0xff] }
0x3f3b   : > { %v6934_v45 = vadd.f32 %v6926_v16, %v5471_v24  ;;  %v6928_v12 = vmax.f32 %v14034_v36, %v6912_v57  ;;  %v8335_v36 = vld [vmem:[#allocation11 + $0xf0] sm:$0xff]  ;;  %v14493_v60 = vsub.f32 %v14491_v30, %v14492_v5  ;;  %v10702_v16 = vpack.c.bf16 %v8333_v51, %v8325_v11  ;;  %v8349_v57 = vld [vmem:[#allocation11 + $0x160] sm:$0xff]  ;;  %v8392_v30 = vld [vmem:[#allocation11 + $0x2b8] sm:$0xff] }
0x3f3c   : > { %v6935_v9 = vadd.f32 %v6927_v7, %v5472_v26  ;;  %v14165_v8 = vmax.f32 %v6933_v2, 0.0  ;;  %v10766_v52 = vpack.c.bf16 %v8335_v36, %v8327_v23  ;;  %v10768_v7 = vpack.c.bf16 %v8352_v56, %v8344_v41  ;;  %v8367_v11 = vld [vmem:[#allocation11 + $0x1f0] sm:$0xff]  ;;  %v8384_v36 = vld [vmem:[#allocation11 + $0x278] sm:$0xff]  ;;  %v8398_v56 = vld [vmem:[#allocation11 + $0x2e8] sm:$0xff] }
0x3f3d   : > { %v14160_v63 = vmax.f32 %v6934_v45, 0.0  ;;  %v6936_v39 = vadd.f32 %v6928_v12, %v5473_v27  ;;  %v5476_v0 = vadd.f32 %v5463_v47, %v14493_v60  ;;  %v5477_v44 = vadd.f32 %v14140_v40, %v14496_v21  ;;  %v8366_v12 = vld [vmem:[#allocation11 + $0x1e8] sm:$0xff]  ;;  %v8400_v5 = vld [vmem:[#allocation11 + $0x2f8] sm:$0xff]  ;;  %v8415_v25 = vld [vmem:[#allocation11 + $0x370] sm:$0xff] }
0x3f3e   : > { %v14182_v26 = vmax.f32 %v6935_v9, 0.0  ;;  %v8368_v9 = vld [vmem:[#allocation11 + $0x1f8] sm:$0xff]  ;;  %v10706_v40 = vpack.c.bf16 %v8349_v57, %v8341_v48  ;;  %v10714_v60 = vpack.c.bf16 %v8381_v22, %v8373_v55  ;;  %v8414_v48 = vld [vmem:[#allocation11 + $0x368] sm:$0xff]  ;;  %v8405_v57 = vld [vmem:[#allocation11 + $0x320] sm:$0xff] }
0x3f3f   : > { %v14171_v14 = vmax.f32 %v6936_v39, 0.0  ;;  %v6916_v35 = vpop.f32.mrb[104].mxu0  ;;  %8625 = vmatprep.mubr.f32.mxu1 %v14160_v63  ;;  %8714 = vmatprep.mubr.f32.mxu0 %v14160_v63  ;;  %v8357_v39 = vld [vmem:[#allocation11 + $0x1a0] sm:$0xff]  ;;  %v10772_v54 = vpack.c.bf16 %v8368_v9, %v8360_v53  ;;  %v8422_v21 = vld [vmem:[#allocation11 + $0x3a8] sm:$0xff] }
0x3f40   : > { %v6929_v20 = vmax.f32 %v14039_v19, %v6916_v35  ;;  %v6918_v24 = vpop.f32.mrb[105].mxu0  ;;  %8626 = vmatmul.mubr.f32.vlgmr.msra.gmra.mrb[100].mxu1 %v14165_v8  ;;  %8715 = vmatmul.mubr.f32.vlgmr.msra.gmra.mrb[108].mxu0 %v14165_v8  ;;  %v8383_v35 = vld [vmem:[#allocation11 + $0x270] sm:$0xff]  ;;  %v8429_v53 = vld [vmem:[#allocation11 + $0x3e0] sm:$0xff]  ;;  %v8454_v55 = vld [vmem:[#allocation11 + $0x4a8] sm:$0xff] }
0x3f41   : > { %v6930_v13 = vmax.f32 %v14044_v38, %v6918_v24  ;;  %10699 = vmatpush1.bf16.msra.mxu1 %v10698_v33  ;;  %10763 = vmatpush1.bf16.msra.mxu0 %v10762_v34  ;;  %v6920_v43 = vpop.f32.mrb[106].mxu0  ;;  %v8351_v38 = vld [vmem:[#allocation11 + $0x170] sm:$0xff]  ;;  %v8365_v33 = vld [vmem:[#allocation11 + $0x1e0] sm:$0xff]  ;;  %v8462_v22 = vld [vmem:[#allocation11 + $0x4e8] sm:$0xff] }
0x3f42   : > { %v6937_v2 = vadd.f32 %v6929_v20, %v5474_v32  ;;  %v6931_v47 = vmax.f32 %v14049_v4, %v6920_v43  ;;  %8631 = vmatprep.mubr.f32.mxu1 %v14171_v14  ;;  %8720 = vmatprep.mubr.f32.mxu0 %v14171_v14  ;;  %v6922_v19 = vpop.f32.mrb[107].mxu0  ;;  %v8358_v4 = vld [vmem:[#allocation11 + $0x1a8] sm:$0xff]  ;;  %v10770_v29 = vpack.c.bf16 %v8351_v38, %v8343_v59  ;;  %v8359_v34 = vld [vmem:[#allocation11 + $0x1b0] sm:$0xff]  ;;  %v8376_v32 = vld [vmem:[#allocation11 + $0x238] sm:$0xff] }
0x3f43   : > { %v6938_v42 = vadd.f32 %v6930_v13, %v5475_v15  ;;  %v6932_v27 = vmax.f32 %v14054_v31, %v6922_v19  ;;  %10701 = vmatprep.subr.bf16.mxu1 %v10700_v28  ;;  %10765 = vmatprep.subr.bf16.mxu0 %v10764_v10  ;;  %v10708_v23 = vpack.c.bf16 %v8366_v12, %v8358_v4  ;;  %v8375_v15 = vld [vmem:[#allocation11 + $0x230] sm:$0xff]  ;;  %v8390_v28 = vld [vmem:[#allocation11 + $0x2a8] sm:$0xff]  ;;  %v8389_v20 = vld [vmem:[#allocation11 + $0x2a0] sm:$0xff] }
0x3f44   : > { %v6939_v45 = vadd.f32 %v6931_v47, %v5476_v0  ;;  %8632 = vmatmul.mubr.f32.gmra.mrb[102].mxu1 %v14182_v26  ;;  %8721 = vmatmul.mubr.f32.gmra.mrb[110].mxu0 %v14182_v26  ;;  %v14196_v31 = vmax.f32 %v6937_v2, 0.0  ;;  %v10710_v62 = vpack.c.bf16 %v8365_v33, %v8357_v39  ;;  %v10774_v37 = vpack.c.bf16 %v8367_v11, %v8359_v34  ;;  %v8397_v24 = vld [vmem:[#allocation11 + $0x2e0] sm:$0xff]  ;;  %v8391_v43 = vld [vmem:[#allocation11 + $0x2b0] sm:$0xff]  ;;  %v8408_v2 = vld [vmem:[#allocation11 + $0x338] sm:$0xff] }
0x3f45   : > { %v14194_v6 = vmax.f32 %v6938_v42, 0.0  ;;  %v6940_v49 = vadd.f32 %v6932_v27, %v5477_v44  ;;  %10703 = vmatpush1.bf16.msra.mxu1 %v10702_v16  ;;  %10767 = vmatpush1.bf16.msra.mxu0 %v10766_v52  ;;  %v10712_v10 = vpack.c.bf16 %v8382_v58, %v8374_v61  ;;  %v10776_v41 = vpack.c.bf16 %v8384_v36, %v8376_v32  ;;  %v8399_v52 = vld [vmem:[#allocation11 + $0x2f0] sm:$0xff]  ;;  %v8416_v47 = vld [vmem:[#allocation11 + $0x378] sm:$0xff]  ;;  %v8413_v59 = vld [vmem:[#allocation11 + $0x360] sm:$0xff] }
0x3f46   : > { %10705 = vmatprep.subr.bf16.mxu1 %v10704_v3  ;;  %10769 = vmatprep.subr.bf16.mxu0 %v10768_v7  ;;  %v14204_v50 = vmax.f32 %v6939_v45, 0.0  ;;  %v10778_v0 = vpack.c.bf16 %v8383_v35, %v8375_v15  ;;  %v10716_v16 = vpack.c.bf16 %v8398_v56, %v8390_v28  ;;  %v10780_v13 = vpack.c.bf16 %v8400_v5, %v8392_v30  ;;  %v8406_v3 = vld [vmem:[#allocation11 + $0x328] sm:$0xff]  ;;  %v8424_v42 = vld [vmem:[#allocation11 + $0x3b8] sm:$0xff]  ;;  %v8421_v12 = vld [vmem:[#allocation11 + $0x3a0] sm:$0xff] }
0x3f47   : > { %v14198_v51 = vmax.f32 %v6940_v49, 0.0  ;;  %8637 = vmatprep.mubr.f32.mxu1 %v14194_v6  ;;  %8726 = vmatprep.mubr.f32.mxu0 %v14194_v6  ;;  %v10718_v19 = vpack.c.bf16 %v8397_v24, %v8389_v20  ;;  %v10782_v7 = vpack.c.bf16 %v8399_v52, %v8391_v43  ;;  %v10720_v38 = vpack.c.bf16 %v8414_v48, %v8406_v3  ;;  %v8430_v44 = vld [vmem:[#allocation11 + $0x3e8] sm:$0xff]  ;;  %v8432_v27 = vld [vmem:[#allocation11 + $0x3f8] sm:$0xff]  ;;  %v8437_v61 = vld [vmem:[#allocation11 + $0x420] sm:$0xff] }
0x3f48   : > { %8638 = vmatmul.mubr.f32.gmra.mrb[104].mxu1 %v14196_v31  ;;  %8727 = vmatmul.mubr.f32.gmra.mrb[112].mxu0 %v14196_v31  ;;  %v10722_v4 = vpack.c.bf16 %v8413_v59, %v8405_v57  ;;  %v10786_v45 = vpack.c.bf16 %v8415_v25, %v8407_v1  ;;  %v10724_v9 = vpack.c.bf16 %v8430_v44, %v8422_v21  ;;  %v8438_v39 = vld [vmem:[#allocation11 + $0x428] sm:$0xff]  ;;  %v8440_v34 = vld [vmem:[#allocation11 + $0x438] sm:$0xff]  ;;  %v8445_v58 = vld [vmem:[#allocation11 + $0x460] sm:$0xff] }
0x3f49   : > { %10707 = vmatpush1.bf16.msra.mxu1 %v10706_v40  ;;  %10771 = vmatpush1.bf16.msra.mxu0 %v10770_v29  ;;  %v10788_v49 = vpack.c.bf16 %v8432_v27, %v8424_v42  ;;  %v8423_v40 = vld [vmem:[#allocation11 + $0x3b0] sm:$0xff]  ;;  %v8446_v33 = vld [vmem:[#allocation11 + $0x468] sm:$0xff]  ;;  %v8448_v11 = vld [vmem:[#allocation11 + $0x478] sm:$0xff]  ;;  %v10730_v28 = vpack.c.bf16 %v8445_v58, %v8437_v61  ;;  %v10732_v30 = vpack.c.bf16 %v8462_v22, %v8454_v55 }
0x3f4a   : > { %8643 = vmatprep.mubr.f32.mxu1 %v14198_v51  ;;  %8732 = vmatprep.mubr.f32.mxu0 %v14198_v51  ;;  %v8431_v29 = vld [vmem:[#allocation11 + $0x3f0] sm:$0xff]  ;;  %v10728_v32 = vpack.c.bf16 %v8446_v33, %v8438_v39  ;;  %v10792_v36 = vpack.c.bf16 %v8448_v11, %v8440_v34  ;;  %v8456_v15 = vld [vmem:[#allocation11 + $0x4b8] sm:$0xff]  ;;  %v8461_v56 = vld [vmem:[#allocation11 + $0x4e0] sm:$0xff] }
0x3f4b   : > { %10709 = vmatprep.subr.bf16.mxu1 %v10708_v23  ;;  %10773 = vmatprep.subr.bf16.mxu0 %v10772_v54  ;;  %v10726_v23 = vpack.c.bf16 %v8429_v53, %v8421_v12  ;;  %v10790_v54 = vpack.c.bf16 %v8431_v29, %v8423_v40  ;;  %v8464_v35 = vld [vmem:[#allocation11 + $0x4f8] sm:$0xff]  ;;  %v8470_v20 = vld [vmem:[#allocation11 + $0x528] sm:$0xff]  ;;  %v8469_v3 = vld [vmem:[#allocation11 + $0x520] sm:$0xff] }
0x3f4c   : > { %8644 = vmatmul.mubr.f32.gmra.mrb[106].mxu1 %v14204_v50  ;;  %8733 = vmatmul.mubr.f32.gmra.mrb[114].mxu0 %v14204_v50  ;;  %v10796_v5 = vpack.c.bf16 %v8464_v35, %v8456_v15  ;;  %v8478_v24 = vld [vmem:[#allocation11 + $0x568] sm:$0xff]  ;;  %v8477_v48 = vld [vmem:[#allocation11 + $0x560] sm:$0xff] }
0x3f4d   : > { %10711 = vmatpush1.bf16.msra.mxu1 %v10710_v62  ;;  %10775 = vmatpush1.bf16.msra.mxu0 %v10774_v37  ;;  %v8439_v62 = vld [vmem:[#allocation11 + $0x430] sm:$0xff]  ;;  %v8486_v57 = vld [vmem:[#allocation11 + $0x5a8] sm:$0xff]  ;;  %v10738_v1 = vpack.c.bf16 %v8477_v48, %v8469_v3  ;;  %v8485_v21 = vld [vmem:[#allocation11 + $0x5a0] sm:$0xff] }
0x3f4e   : > { %8803 = vmatprep.mubr.f32.mxu1 %v14160_v63  ;;  %8892 = vmatprep.mubr.f32.mxu0 %v14160_v63  ;;  %v10784_v63 = vpack.c.bf16 %v8416_v47, %v8408_v2  ;;  %v8447_v37 = vld [vmem:[#allocation11 + $0x470] sm:$0xff]  ;;  %v10736_v2 = vpack.c.bf16 %v8478_v24, %v8470_v20  ;;  %v8494_v59 = vld [vmem:[#allocation11 + $0x5e8] sm:$0xff]  ;;  %v8493_v44 = vld [vmem:[#allocation11 + $0x5e0] sm:$0xff] }
0x3f4f   : > { %10713 = vmatprep.subr.bf16.mxu1 %v10712_v10  ;;  %10777 = vmatprep.subr.bf16.mxu0 %v10776_v41  ;;  %v10794_v10 = vpack.c.bf16 %v8447_v37, %v8439_v62  ;;  %v8453_v41 = vld [vmem:[#allocation11 + $0x4a0] sm:$0xff]  ;;  %v10740_v42 = vpack.c.bf16 %v8494_v59, %v8486_v57  ;;  %v8502_v12 = vld [vmem:[#allocation11 + $0x628] sm:$0xff]  ;;  %v10742_v40 = vpack.c.bf16 %v8493_v44, %v8485_v21 }
0x3f50   : > { %v10734_v43 = vpack.c.bf16 %v8461_v56, %v8453_v41  ;;  %v8510_v53 = vld [vmem:[#allocation11 + $0x668] sm:$0xff]  ;;  %v8501_v39 = vld [vmem:[#allocation11 + $0x620] sm:$0xff] }
0x3f51   : > { %10715 = vmatpush1.bf16.msra.mxu1 %v10714_v60  ;;  %10779 = vmatpush1.bf16.msra.mxu0 %v10778_v0  ;;  %v8455_v60 = vld [vmem:[#allocation11 + $0x4b0] sm:$0xff]  ;;  %v8509_v33 = vld [vmem:[#allocation11 + $0x660] sm:$0xff]  ;;  %v10744_v34 = vpack.c.bf16 %v8510_v53, %v8502_v12  ;;  %v8518_v61 = vld [vmem:[#allocation11 + $0x6a8] sm:$0xff] }
0x3f52   : > { %10717 = vmatprep.subr.bf16.mxu1 %v10716_v16  ;;  %10781 = vmatprep.subr.bf16.mxu0 %v10780_v13  ;;  %v8463_v0 = vld [vmem:[#allocation11 + $0x4f0] sm:$0xff]  ;;  %v8472_v16 = vld [vmem:[#allocation11 + $0x538] sm:$0xff]  ;;  %v8526_v58 = vld [vmem:[#allocation11 + $0x6e8] sm:$0xff]  ;;  %v10746_v62 = vpack.c.bf16 %v8509_v33, %v8501_v39 }
0x3f53   : > { %v8480_v13 = vld [vmem:[#allocation11 + $0x578] sm:$0xff]  ;;  %v10798_v52 = vpack.c.bf16 %v8463_v0, %v8455_v60  ;;  %v8517_v55 = vld [vmem:[#allocation11 + $0x6a0] sm:$0xff]  ;;  %v10748_v15 = vpack.c.bf16 %v8526_v58, %v8518_v61  ;;  %v8534_v41 = vld [vmem:[#allocation11 + $0x728] sm:$0xff] }
0x3f54   : > { %v10800_v47 = vpack.c.bf16 %v8480_v13, %v8472_v16  ;;  %v8525_v22 = vld [vmem:[#allocation11 + $0x6e0] sm:$0xff]  ;;  %v8542_v56 = vld [vmem:[#allocation11 + $0x768] sm:$0xff] }
0x3f55   : > { %10719 = vmatpush1.bf16.msra.mxu1 %v10718_v19  ;;  %10783 = vmatpush1.bf16.msra.mxu0 %v10782_v7  ;;  %v8471_v19 = vld [vmem:[#allocation11 + $0x530] sm:$0xff]  ;;  %v10750_v60 = vpack.c.bf16 %v8525_v22, %v8517_v55  ;;  %v8533_v20 = vld [vmem:[#allocation11 + $0x720] sm:$0xff]  ;;  %v10752_v16 = vpack.c.bf16 %v8542_v56, %v8534_v41  ;;  %v8550_v3 = vld [vmem:[#allocation11 + $0x7a8] sm:$0xff] }
0x3f56   : > { %10721 = vmatprep.subr.bf16.mxu1 %v10720_v38  ;;  %10785 = vmatprep.subr.bf16.mxu0 %v10784_v63  ;;  %v8479_v7 = vld [vmem:[#allocation11 + $0x570] sm:$0xff]  ;;  %v8488_v38 = vld [vmem:[#allocation11 + $0x5b8] sm:$0xff]  ;;  %v8541_v24 = vld [vmem:[#allocation11 + $0x760] sm:$0xff] }
0x3f57   : > { %v8496_v63 = vld [vmem:[#allocation11 + $0x5f8] sm:$0xff]  ;;  %v10802_v25 = vpack.c.bf16 %v8479_v7, %v8471_v19  ;;  %v8558_v48 = vld [vmem:[#allocation11 + $0x7e8] sm:$0xff]  ;;  %v10754_v19 = vpack.c.bf16 %v8541_v24, %v8533_v20  ;;  %v8549_v57 = vld [vmem:[#allocation11 + $0x7a0] sm:$0xff] }
0x3f58   : > { %v10804_v27 = vpack.c.bf16 %v8496_v63, %v8488_v38  ;;  %v10756_v59 = vpack.c.bf16 %v8558_v48, %v8550_v3  ;;  %v8557_v63 = vld [vmem:[#allocation11 + $0x7e0] sm:$0xff] }
0x3f59   : > { %10723 = vmatpush1.bf16.msra.mxu1 %v10722_v4  ;;  %10787 = vmatpush1.bf16.msra.mxu0 %v10786_v45  ;;  %v8487_v4 = vld [vmem:[#allocation11 + $0x5b0] sm:$0xff]  ;;  %v10758_v21 = vpack.c.bf16 %v8557_v63, %v8549_v57 }
0x3f5a   : > { %10725 = vmatprep.subr.bf16.mxu1 %v10724_v9  ;;  %10789 = vmatprep.subr.bf16.mxu0 %v10788_v49  ;;  %v8495_v45 = vld [vmem:[#allocation11 + $0x5f0] sm:$0xff]  ;;  %v8504_v9 = vld [vmem:[#allocation11 + $0x638] sm:$0xff] }
0x3f5b   : > { %v8512_v49 = vld [vmem:[#allocation11 + $0x678] sm:$0xff]  ;;  %v10806_v29 = vpack.c.bf16 %v8495_v45, %v8487_v4 }
0x3f5c   : > { %v10808_v11 = vpack.c.bf16 %v8512_v49, %v8504_v9 }
0x3f5d   : > { %10727 = vmatpush1.bf16.msra.mxu1 %v10726_v23  ;;  %10791 = vmatpush1.bf16.msra.mxu0 %v10790_v54  ;;  %v8503_v23 = vld [vmem:[#allocation11 + $0x630] sm:$0xff] }
0x3f5e   : > { %10729 = vmatprep.subr.bf16.mxu1 %v10728_v32  ;;  %10793 = vmatprep.subr.bf16.mxu0 %v10792_v36  ;;  %v8511_v54 = vld [vmem:[#allocation11 + $0x670] sm:$0xff]  ;;  %v8520_v32 = vld [vmem:[#allocation11 + $0x6b8] sm:$0xff] }
0x3f5f   : > { %v8528_v36 = vld [vmem:[#allocation11 + $0x6f8] sm:$0xff]  ;;  %v10810_v37 = vpack.c.bf16 %v8511_v54, %v8503_v23  ;;  %v11293_v54 = vmov 1966171168  }
0x3f60   : > { %v10812_v35 = vpack.c.bf16 %v8528_v36, %v8520_v32  ;;  %v9140_v61 = vunpack.c.l.s4 %v11293_v54 }
0x3f61   : > { %10731 = vmatpush1.bf16.msra.mxu1 %v10730_v28  ;;  %10795 = vmatpush1.bf16.msra.mxu0 %v10794_v10  ;;  %v8519_v28 = vld [vmem:[#allocation11 + $0x6b0] sm:$0xff] }
0x3f62   : > { %10733 = vmatprep.subr.bf16.mxu1 %v10732_v30  ;;  %10797 = vmatprep.subr.bf16.mxu0 %v10796_v5  ;;  %v8527_v10 = vld [vmem:[#allocation11 + $0x6f0] sm:$0xff]  ;;  %v8536_v30 = vld [vmem:[#allocation11 + $0x738] sm:$0xff] }
0x3f63   : > { %v8544_v5 = vld [vmem:[#allocation11 + $0x778] sm:$0xff]  ;;  %v10814_v0 = vpack.c.bf16 %v8527_v10, %v8519_v28 }
0x3f64   : > { %v10816_v13 = vpack.c.bf16 %v8544_v5, %v8536_v30 }
0x3f65   : > { %10735 = vmatpush1.bf16.msra.mxu1 %v10734_v43  ;;  %10799 = vmatpush1.bf16.msra.mxu0 %v10798_v52  ;;  %v8535_v43 = vld [vmem:[#allocation11 + $0x730] sm:$0xff] }
0x3f66   : > { %10737 = vmatprep.subr.bf16.mxu1 %v10736_v2  ;;  %10801 = vmatprep.subr.bf16.mxu0 %v10800_v47  ;;  %v8543_v52 = vld [vmem:[#allocation11 + $0x770] sm:$0xff]  ;;  %v8552_v2 = vld [vmem:[#allocation11 + $0x7b8] sm:$0xff] }
0x3f67   : > { %v8560_v47 = vld [vmem:[#allocation11 + $0x7f8] sm:$0xff]  ;;  %v10818_v7 = vpack.c.bf16 %v8543_v52, %v8535_v43 }
0x3f68   : > { %v10820_v38 = vpack.c.bf16 %v8560_v47, %v8552_v2  ;;  %v9141_v2 = vunpack.c.0.s8 %v9140_v61 }
0x3f69   : > { %10739 = vmatpush1.bf16.msra.mxu1 %v10738_v1  ;;  %10803 = vmatpush1.bf16.msra.mxu0 %v10802_v25  ;;  %v8551_v1 = vld [vmem:[#allocation11 + $0x7b0] sm:$0xff] }
0x3f6a   : > { %10741 = vmatprep.subr.bf16.mxu1 %v10740_v42  ;;  %10805 = vmatprep.subr.bf16.mxu0 %v10804_v27  ;;  %v8559_v25 = vld [vmem:[#allocation11 + $0x7f0] sm:$0xff] }
0x3f6b   : > { %v10822_v44 = vpack.c.bf16 %v8559_v25, %v8551_v1 }
0x3f6d   : > { %10743 = vmatpush1.bf16.msra.mxu1 %v10742_v40  ;;  %10807 = vmatpush1.bf16.msra.mxu0 %v10806_v29 }
0x3f6e   : > { %10745 = vmatprep.subr.bf16.mxu1 %v10744_v34  ;;  %10809 = vmatprep.subr.bf16.mxu0 %v10808_v11 }
0x3f71   : > { %10747 = vmatpush1.bf16.msra.mxu1 %v10746_v62  ;;  %10811 = vmatpush1.bf16.msra.mxu0 %v10810_v37 }
0x3f72   : > { %10749 = vmatprep.subr.bf16.mxu1 %v10748_v15  ;;  %10813 = vmatprep.subr.bf16.mxu0 %v10812_v35 }
0x3f75   : > { %10751 = vmatpush1.bf16.msra.mxu1 %v10750_v60  ;;  %10815 = vmatpush1.bf16.msra.mxu0 %v10814_v0 }
0x3f76   : > { %10753 = vmatprep.subr.bf16.mxu1 %v10752_v16  ;;  %10817 = vmatprep.subr.bf16.mxu0 %v10816_v13 }
0x3f79   : > { %10755 = vmatpush1.bf16.msra.mxu1 %v10754_v19  ;;  %10819 = vmatpush1.bf16.msra.mxu0 %v10818_v7 }
0x3f7a   : > { %10757 = vmatprep.subr.bf16.mxu1 %v10756_v59  ;;  %10821 = vmatprep.subr.bf16.mxu0 %v10820_v38 }
0x3f7d   : > { %10759 = vmatpush1.bf16.msra.mxu1 %v10758_v21  ;;  %10823 = vmatpush1.bf16.msra.mxu0 %v10822_v44 }
0x3f80   : > { %8804 = vmatmul.mubr.f32.vlgmr.msra.gmra.mrb[108].mxu1 %v14165_v8  ;;  %8893 = vmatmul.mubr.f32.vlgmr.msra.gmra.mrb[116].mxu0 %v14165_v8  ;;  %v8961_v8 = vsub.s32 2, %v11623_v18 }
0x3f81   : > { %8809 = vmatprep.mubr.f32.mxu1 %v14171_v14  ;;  %8898 = vmatprep.mubr.f32.mxu0 %v14171_v14  ;;  %v14230_v14 = vld [vmem:[%s14497_s29] sm:$0xff] }
0x3f84   : > { %8810 = vmatmul.mubr.f32.gmra.mrb[110].mxu1 %v14182_v26  ;;  %8899 = vmatmul.mubr.f32.gmra.mrb[118].mxu0 %v14182_v26  ;;  %v8965_v26 = vsub.s32 3, %v11623_v18 }
0x3f85   : > { %8815 = vmatprep.mubr.f32.mxu1 %v14194_v6  ;;  %8904 = vmatprep.mubr.f32.mxu0 %v14194_v6  ;;  %v8954_v6 = vrot.slane %v14230_v14, %v5462_v46 }
0x3f86   : > { %v8966_v27 = vrot.slane %v14230_v14, %v8965_v26 }
0x3f88   : > { %8816 = vmatmul.mubr.f32.gmra.mrb[112].mxu1 %v14196_v31  ;;  %8905 = vmatmul.mubr.f32.gmra.mrb[120].mxu0 %v14196_v31  ;;  %v8962_v31 = vrot.slane %v14230_v14, %v8961_v8 }
0x3f89   : > { %8821 = vmatprep.mubr.f32.mxu1 %v14198_v51  ;;  %8910 = vmatprep.mubr.f32.mxu0 %v14198_v51 }
0x3f8c   : > { %8822 = vmatmul.mubr.f32.gmra.mrb[114].mxu1 %v14204_v50  ;;  %8911 = vmatmul.mubr.f32.gmra.mrb[122].mxu0 %v14204_v50  ;;  %v8958_v50 = vrot.slane %v14230_v14, %v5466_v17 }
0x4013   : > { %v8627_v51 = vpop.f32.mrb[100].mxu1  ;;  %v8716_v42 = vpop.f32.mrb[108].mxu0 }
0x4014   : > { %v8629_v4 = vpop.f32.mrb[101].mxu1  ;;  %v8718_v45 = vpop.f32.mrb[109].mxu0  ;;  %v8991_v12 = vadd.f32 %v8954_v6, %v8627_v51  ;;  %v8993_v53 = vadd.f32 %v8962_v31, %v8716_v42 }
0x4015   : > { %v8992_v9 = vadd.f32 %v8958_v50, %v8629_v4  ;;  %v8994_v49 = vadd.f32 %v8966_v27, %v8718_v45 }
0x4016   : > { %v9023_v58 = vmax.f32 %v8991_v12, 0.0  ;;  %v9025_v17 = vmax.f32 %v8993_v53, 0.0 }
0x4017   : > { %v8633_v40 = vpop.f32.mrb[102].mxu1  ;;  %v8722_v29 = vpop.f32.mrb[110].mxu0  ;;  %v9024_v62 = vmax.f32 %v8992_v9, 0.0  ;;  %v9026_v37 = vmax.f32 %v8994_v49, 0.0 }
0x4018   : > { %v8999_v39 = vadd.f32 %v8954_v6, %v8633_v40  ;;  %v9001_v46 = vadd.f32 %v8962_v31, %v8722_v29  ;;  %v8635_v33 = vpop.f32.mrb[103].mxu1  ;;  %v8724_v34 = vpop.f32.mrb[111].mxu0  ;;  %v14242_v29 = vsub.s32 %v9141_v2, %v11623_v18 }
0x4019   : > { %v9000_v11 = vadd.f32 %v8958_v50, %v8635_v33  ;;  %v9002_v23 = vadd.f32 %v8966_v27, %v8724_v34 }
0x401a   : > { %v9031_v32 = vmax.f32 %v8999_v39, 0.0  ;;  %v9033_v36 = vmax.f32 %v9001_v46, 0.0 }
0x401b   : > { %v9032_v55 = vmax.f32 %v9000_v11, 0.0  ;;  %v9034_v22 = vmax.f32 %v9002_v23, 0.0  ;;  %v8639_v15 = vpop.f32.mrb[104].mxu1  ;;  %v8728_v35 = vpop.f32.mrb[112].mxu0 }
0x401c   : > { %v9055_v28 = vmax.f32 %v9023_v58, %v9031_v32  ;;  %v9186_v10 = vadd.f32 %v9031_v32, %v9023_v58  ;;  %v9073_v41 = vmax.f32 %v9025_v17, %v9033_v36  ;;  %v9204_v56 = vadd.f32 %v9033_v36, %v9025_v17  ;;  %v8641_v30 = vpop.f32.mrb[105].mxu1  ;;  %v8730_v5 = vpop.f32.mrb[113].mxu0 }
0x401d   : > { %v9064_v60 = vmax.f32 %v9024_v62, %v9032_v55  ;;  %v9195_v0 = vadd.f32 %v9032_v55, %v9024_v62  ;;  %v9082_v20 = vmax.f32 %v9026_v37, %v9034_v22  ;;  %v9213_v24 = vadd.f32 %v9034_v22, %v9026_v37 }
0x401e   : > { %v9007_v16 = vadd.f32 %v8954_v6, %v8639_v15  ;;  %v9009_v13 = vadd.f32 %v8962_v31, %v8728_v35  ;;  %v9008_v43 = vadd.f32 %v8958_v50, %v8641_v30  ;;  %v9010_v52 = vadd.f32 %v8966_v27, %v8730_v5 }
0x401f   : > { %v8645_v3 = vpop.f32.mrb[106].mxu1  ;;  %v8734_v48 = vpop.f32.mrb[114].mxu0 }
0x4020   : > { %v9039_v47 = vmax.f32 %v9007_v16, 0.0  ;;  %v9041_v19 = vmax.f32 %v9009_v13, 0.0  ;;  %v9040_v7 = vmax.f32 %v9008_v43, 0.0  ;;  %v9042_v57 = vmax.f32 %v9010_v52, 0.0  ;;  %v8647_v59 = vpop.f32.mrb[107].mxu1  ;;  %v8736_v38 = vpop.f32.mrb[115].mxu0 }
0x4021   : > { %v9015_v63 = vadd.f32 %v8954_v6, %v8645_v3  ;;  %v9017_v1 = vadd.f32 %v8962_v31, %v8734_v48  ;;  %v9016_v25 = vadd.f32 %v8958_v50, %v8647_v59  ;;  %v9018_v21 = vadd.f32 %v8966_v27, %v8736_v38 }
0x4022   : > { %v9056_v44 = vmax.f32 %v9055_v28, %v9039_v47  ;;  %v9187_v8 = vadd.f32 %v9186_v10, %v9039_v47  ;;  %v9074_v26 = vmax.f32 %v9073_v41, %v9041_v19  ;;  %v9205_v51 = vadd.f32 %v9204_v56, %v9041_v19 }
0x4023   : > { %v9065_v42 = vmax.f32 %v9064_v60, %v9040_v7  ;;  %v9196_v4 = vadd.f32 %v9195_v0, %v9040_v7  ;;  %v9083_v45 = vmax.f32 %v9082_v20, %v9042_v57  ;;  %v9214_v12 = vadd.f32 %v9213_v24, %v9042_v57 }
0x4024   : > { %v9047_v53 = vmax.f32 %v9015_v63, 0.0  ;;  %v9049_v9 = vmax.f32 %v9017_v1, 0.0  ;;  %v9048_v49 = vmax.f32 %v9016_v25, 0.0  ;;  %v9050_v40 = vmax.f32 %v9018_v21, 0.0 }
0x4026   : > { %v9057_v39 = vmax.f32 %v9056_v44, %v9047_v53  ;;  %v9188_v6 = vadd.f32 %v9187_v8, %v9047_v53  ;;  %v9075_v31 = vmax.f32 %v9074_v26, %v9049_v9  ;;  %v9206_v50 = vadd.f32 %v9205_v51, %v9049_v9 }
0x4027   : > { %v9066_v27 = vmax.f32 %v9065_v42, %v9048_v49  ;;  %v9197_v46 = vadd.f32 %v9196_v4, %v9048_v49  ;;  %v9084_v33 = vmax.f32 %v9083_v45, %v9050_v40  ;;  %v9215_v34 = vadd.f32 %v9214_v12, %v9050_v40 }
0x4028   : > { %v9058_v11 = vrot.slane %v9057_v39, 4  ;;  %v9189_v23 = vrot.slane %v9188_v6, 4  ;;  %v9076_v54 = vrot.slane %v9075_v31, 4  ;;  %v9207_v61 = vrot.slane %v9206_v50, 4 }
0x4029   : > { %v9067_v58 = vrot.slane %v9066_v27, 4  ;;  %v9198_v17 = vrot.slane %v9197_v46, 4  ;;  %v9085_v32 = vrot.slane %v9084_v33, 4  ;;  %v9216_v36 = vrot.slane %v9215_v34, 4 }
0x402a   : > { %v9059_v62 = vmax.f32 %v9057_v39, %v9058_v11  ;;  %v9190_v37 = vadd.f32 %v9189_v23, %v9188_v6  ;;  %v9077_v55 = vmax.f32 %v9075_v31, %v9076_v54  ;;  %v9208_v22 = vadd.f32 %v9207_v61, %v9206_v50 }
0x402b   : > { %v9068_v15 = vmax.f32 %v9066_v27, %v9067_v58  ;;  %v9199_v35 = vadd.f32 %v9198_v17, %v9197_v46  ;;  %v9086_v28 = vmax.f32 %v9084_v33, %v9085_v32  ;;  %v9217_v10 = vadd.f32 %v9216_v36, %v9215_v34 }
0x402c   : > { %v9060_v41 = vrot.slane %v9059_v62, 2  ;;  %v9191_v56 = vrot.slane %v9190_v37, 2  ;;  %v9078_v30 = vrot.slane %v9077_v55, 2  ;;  %v9209_v5 = vrot.slane %v9208_v22, 2 }
0x402d   : > { %v9069_v60 = vrot.slane %v9068_v15, 2  ;;  %v9200_v0 = vrot.slane %v9199_v35, 2  ;;  %v9087_v20 = vrot.slane %v9086_v28, 2  ;;  %v9218_v24 = vrot.slane %v9217_v10, 2 }
0x402e   : > { %v9061_v16 = vmax.f32 %v9059_v62, %v9060_v41  ;;  %v9192_v13 = vadd.f32 %v9191_v56, %v9190_v37  ;;  %v9079_v43 = vmax.f32 %v9077_v55, %v9078_v30  ;;  %v9210_v52 = vadd.f32 %v9209_v5, %v9208_v22 }
0x402f   : > { %v9070_v3 = vmax.f32 %v9068_v15, %v9069_v60  ;;  %v9201_v48 = vadd.f32 %v9200_v0, %v9199_v35  ;;  %v9088_v2 = vmax.f32 %v9086_v28, %v9087_v20  ;;  %v9219_v47 = vadd.f32 %v9218_v24, %v9217_v10 }
0x4030   : > { %v9062_v19 = vrot.slane %v9061_v16, 1  ;;  %v9193_v7 = vrot.slane %v9192_v13, 1  ;;  %v9080_v57 = vrot.slane %v9079_v43, 1  ;;  %v9211_v59 = vrot.slane %v9210_v52, 1 }
0x4031   : > { %v9071_v38 = vrot.slane %v9070_v3, 1  ;;  %v9202_v63 = vrot.slane %v9201_v48, 1  ;;  %v9089_v1 = vrot.slane %v9088_v2, 1  ;;  %v9220_v25 = vrot.slane %v9219_v47, 1 }
0x4032   : > { %v9063_v21 = vmax.f32 %v9061_v16, %v9062_v19  ;;  %v9194_v44 = vadd.f32 %v9193_v7, %v9192_v13  ;;  %v9081_v8 = vmax.f32 %v9079_v43, %v9080_v57  ;;  %v9212_v26 = vadd.f32 %v9211_v59, %v9210_v52 }
0x4033   : > { %v9072_v51 = vmax.f32 %v9070_v3, %v9071_v38  ;;  %v9203_v42 = vadd.f32 %v9202_v63, %v9201_v48  ;;  %v9090_v4 = vmax.f32 %v9088_v2, %v9089_v1  ;;  %v9221_v45 = vadd.f32 %v9220_v25, %v9219_v47 }
0x4034   : > { %v9258_v12 = vmul.f32 0.03125, %v9194_v44  ;;  %v9260_v53 = vmul.f32 0.03125, %v9212_v26  ;;  %v8969_v23 = vsub.s32 4, %v11623_v18  ;;  %v8977_v54 = vsub.s32 6, %v11623_v18 }
0x4035   : > { %v9135_v9 = vcombine.low %v9063_v21, %v9072_v51  ;;  %v9259_v49 = vmul.f32 0.03125, %v9203_v42  ;;  %v9136_v40 = vcombine.low %v9081_v8, %v9090_v4  ;;  %v9261_v39 = vmul.f32 0.03125, %v9221_v45 }
0x4036   : > { %v8973_v61 = vsub.s32 5, %v11623_v18  ;;  %v8981_v58 = vsub.s32 7, %v11623_v18  ;;  %v8970_v17 = vrot.slane %v14230_v14, %v8969_v23  ;;  %v8978_v32 = vrot.slane %v14230_v14, %v8977_v54 }
0x4037   : > { %v14245_v6 = vrot.slane %v9135_v9, %v14242_v29  ;;  %v9274_v31 = vcombine.low %v9258_v12, %v9259_v49  ;;  %v14248_v50 = vrot.slane %v9136_v40, %v14242_v29  ;;  %v9275_v27 = vcombine.low %v9260_v53, %v9261_v39 }
0x4038   : > { %v8974_v37 = vrot.slane %v14230_v14, %v8973_v61  ;;  %v8982_v55 = vrot.slane %v14230_v14, %v8981_v58 }
0x4039   : > { %v14251_v46 = vrot.slane %v9274_v31, %v14242_v29  ;;  %v9167_v33 = vcombine.low %v14245_v6, %v14248_v50  ;;  %v14256_v34 = vrot.slane %v9275_v27, %v14242_v29 }
0x403b   : > { %v9306_v11 = vcombine.low %v14251_v46, %v14256_v34 }
0x4053   : > { %v8805_v36 = vpop.f32.mrb[108].mxu1  ;;  %v8894_v62 = vpop.f32.mrb[116].mxu0 }
0x4054   : > { %v8807_v22 = vpop.f32.mrb[109].mxu1  ;;  %v8896_v15 = vpop.f32.mrb[117].mxu0  ;;  %v8995_v35 = vadd.f32 %v8970_v17, %v8805_v36  ;;  %v8997_v28 = vadd.f32 %v8978_v32, %v8894_v62 }
0x4055   : > { %v8996_v10 = vadd.f32 %v8974_v37, %v8807_v22  ;;  %v8998_v41 = vadd.f32 %v8982_v55, %v8896_v15 }
0x4056   : > { %v9027_v16 = vmax.f32 %v8995_v35, 0.0  ;;  %v9029_v13 = vmax.f32 %v8997_v28, 0.0 }
0x4057   : > { %v8811_v56 = vpop.f32.mrb[110].mxu1  ;;  %v8900_v30 = vpop.f32.mrb[118].mxu0  ;;  %v9028_v3 = vmax.f32 %v8996_v10, 0.0  ;;  %v9030_v14 = vmax.f32 %v8998_v41, 0.0 }
0x4058   : > { %v9003_v5 = vadd.f32 %v8970_v17, %v8811_v56  ;;  %v9005_v18 = vadd.f32 %v8978_v32, %v8900_v30  ;;  %v8813_v60 = vpop.f32.mrb[111].mxu1  ;;  %v8902_v0 = vpop.f32.mrb[119].mxu0 }
0x4059   : > { %v9004_v20 = vadd.f32 %v8974_v37, %v8813_v60  ;;  %v9006_v24 = vadd.f32 %v8982_v55, %v8902_v0 }
0x405a   : > { %v9035_v43 = vmax.f32 %v9003_v5, 0.0  ;;  %v9037_v52 = vmax.f32 %v9005_v18, 0.0 }
0x405b   : > { %v9036_v48 = vmax.f32 %v9004_v20, 0.0  ;;  %v9038_v2 = vmax.f32 %v9006_v24, 0.0  ;;  %v8817_v47 = vpop.f32.mrb[112].mxu1  ;;  %v8906_v19 = vpop.f32.mrb[120].mxu0 }
0x405c   : > { %v9091_v7 = vmax.f32 %v9027_v16, %v9035_v43  ;;  %v9222_v57 = vadd.f32 %v9035_v43, %v9027_v16  ;;  %v9109_v59 = vmax.f32 %v9029_v13, %v9037_v52  ;;  %v9240_v38 = vadd.f32 %v9037_v52, %v9029_v13  ;;  %v8819_v63 = vpop.f32.mrb[113].mxu1  ;;  %v8908_v1 = vpop.f32.mrb[121].mxu0 }
0x405d   : > { %v9100_v25 = vmax.f32 %v9028_v3, %v9036_v48  ;;  %v9231_v21 = vadd.f32 %v9036_v48, %v9028_v3  ;;  %v9118_v44 = vmax.f32 %v9030_v14, %v9038_v2  ;;  %v9249_v8 = vadd.f32 %v9038_v2, %v9030_v14 }
0x405e   : > { %v9011_v26 = vadd.f32 %v8970_v17, %v8817_v47  ;;  %v9013_v51 = vadd.f32 %v8978_v32, %v8906_v19  ;;  %v9012_v42 = vadd.f32 %v8974_v37, %v8819_v63  ;;  %v9014_v4 = vadd.f32 %v8982_v55, %v8908_v1 }
0x405f   : > { %v8823_v45 = vpop.f32.mrb[114].mxu1  ;;  %v8912_v12 = vpop.f32.mrb[122].mxu0 }
0x4060   : > { %v9043_v53 = vmax.f32 %v9011_v26, 0.0  ;;  %v9045_v9 = vmax.f32 %v9013_v51, 0.0  ;;  %v9044_v49 = vmax.f32 %v9012_v42, 0.0  ;;  %v9046_v40 = vmax.f32 %v9014_v4, 0.0  ;;  %v8825_v39 = vpop.f32.mrb[115].mxu1  ;;  %v8914_v31 = vpop.f32.mrb[123].mxu0 }
0x4061   : > { %v9019_v27 = vadd.f32 %v8970_v17, %v8823_v45  ;;  %v9021_v23 = vadd.f32 %v8978_v32, %v8912_v12  ;;  %v9020_v54 = vadd.f32 %v8974_v37, %v8825_v39  ;;  %v9022_v61 = vadd.f32 %v8982_v55, %v8914_v31 }
0x4062   : > { %v9092_v58 = vmax.f32 %v9091_v7, %v9043_v53  ;;  %v9223_v36 = vadd.f32 %v9222_v57, %v9043_v53  ;;  %v9110_v62 = vmax.f32 %v9109_v59, %v9045_v9  ;;  %v9241_v22 = vadd.f32 %v9240_v38, %v9045_v9 }
0x4063   : > { %v9101_v15 = vmax.f32 %v9100_v25, %v9044_v49  ;;  %v9232_v35 = vadd.f32 %v9231_v21, %v9044_v49  ;;  %v9119_v28 = vmax.f32 %v9118_v44, %v9046_v40  ;;  %v9250_v10 = vadd.f32 %v9249_v8, %v9046_v40 }
0x4064   : > { %v9051_v41 = vmax.f32 %v9019_v27, 0.0  ;;  %v9053_v56 = vmax.f32 %v9021_v23, 0.0  ;;  %v9052_v30 = vmax.f32 %v9020_v54, 0.0  ;;  %v9054_v5 = vmax.f32 %v9022_v61, 0.0 }
0x4066   : > { %v9093_v18 = vmax.f32 %v9092_v58, %v9051_v41  ;;  %v9224_v60 = vadd.f32 %v9223_v36, %v9051_v41  ;;  %v9111_v0 = vmax.f32 %v9110_v62, %v9053_v56  ;;  %v9242_v20 = vadd.f32 %v9241_v22, %v9053_v56 }
0x4067   : > { %v9102_v17 = vmax.f32 %v9101_v15, %v9052_v30  ;;  %v9233_v32 = vadd.f32 %v9232_v35, %v9052_v30  ;;  %v9120_v37 = vmax.f32 %v9119_v28, %v9054_v5  ;;  %v9251_v55 = vadd.f32 %v9250_v10, %v9054_v5 }
0x4068   : > { %v9094_v24 = vrot.slane %v9093_v18, 4  ;;  %v9225_v16 = vrot.slane %v9224_v60, 4  ;;  %v9112_v13 = vrot.slane %v9111_v0, 4  ;;  %v9243_v43 = vrot.slane %v9242_v20, 4 }
0x4069   : > { %v9103_v52 = vrot.slane %v9102_v17, 4  ;;  %v9234_v3 = vrot.slane %v9233_v32, 4  ;;  %v9121_v14 = vrot.slane %v9120_v37, 4  ;;  %v9252_v48 = vrot.slane %v9251_v55, 4 }
0x406a   : > { %v9095_v2 = vmax.f32 %v9093_v18, %v9094_v24  ;;  %v9226_v47 = vadd.f32 %v9225_v16, %v9224_v60  ;;  %v9113_v19 = vmax.f32 %v9111_v0, %v9112_v13  ;;  %v9244_v7 = vadd.f32 %v9243_v43, %v9242_v20 }
0x406b   : > { %v9104_v57 = vmax.f32 %v9102_v17, %v9103_v52  ;;  %v9235_v59 = vadd.f32 %v9234_v3, %v9233_v32  ;;  %v9122_v38 = vmax.f32 %v9120_v37, %v9121_v14  ;;  %v9253_v63 = vadd.f32 %v9252_v48, %v9251_v55 }
0x406c   : > { %v9096_v1 = vrot.slane %v9095_v2, 2  ;;  %v9227_v25 = vrot.slane %v9226_v47, 2  ;;  %v9114_v21 = vrot.slane %v9113_v19, 2  ;;  %v9245_v44 = vrot.slane %v9244_v7, 2 }
0x406d   : > { %v9105_v8 = vrot.slane %v9104_v57, 2  ;;  %v9236_v26 = vrot.slane %v9235_v59, 2  ;;  %v9123_v51 = vrot.slane %v9122_v38, 2  ;;  %v9254_v42 = vrot.slane %v9253_v63, 2 }
0x406e   : > { %v9097_v4 = vmax.f32 %v9095_v2, %v9096_v1  ;;  %v9228_v45 = vadd.f32 %v9227_v25, %v9226_v47  ;;  %v9115_v12 = vmax.f32 %v9113_v19, %v9114_v21  ;;  %v9246_v53 = vadd.f32 %v9245_v44, %v9244_v7 }
0x406f   : > { %v9106_v9 = vmax.f32 %v9104_v57, %v9105_v8  ;;  %v9237_v49 = vadd.f32 %v9236_v26, %v9235_v59  ;;  %v9124_v40 = vmax.f32 %v9122_v38, %v9123_v51  ;;  %v9255_v39 = vadd.f32 %v9254_v42, %v9253_v63 }
0x4070   : > { %v9098_v31 = vrot.slane %v9097_v4, 1  ;;  %v9229_v27 = vrot.slane %v9228_v45, 1  ;;  %v9116_v23 = vrot.slane %v9115_v12, 1  ;;  %v9247_v54 = vrot.slane %v9246_v53, 1 }
0x4071   : > { %v9107_v61 = vrot.slane %v9106_v9, 1  ;;  %v9238_v58 = vrot.slane %v9237_v49, 1  ;;  %v9125_v36 = vrot.slane %v9124_v40, 1  ;;  %v9256_v62 = vrot.slane %v9255_v39, 1 }
0x4072   : > { %v9099_v22 = vmax.f32 %v9097_v4, %v9098_v31  ;;  %v9230_v15 = vadd.f32 %v9229_v27, %v9228_v45  ;;  %v9117_v35 = vmax.f32 %v9115_v12, %v9116_v23  ;;  %v9248_v28 = vadd.f32 %v9247_v54, %v9246_v53 }
0x4073   : > { %v9108_v10 = vmax.f32 %v9106_v9, %v9107_v61  ;;  %v9239_v41 = vadd.f32 %v9238_v58, %v9237_v49  ;;  %v9126_v56 = vmax.f32 %v9124_v40, %v9125_v36  ;;  %v9257_v30 = vadd.f32 %v9256_v62, %v9255_v39 }
0x4074   : > { %v9262_v5 = vmul.f32 0.03125, %v9230_v15  ;;  %v9264_v18 = vmul.f32 0.03125, %v9248_v28  ;;  %v9175_v3 = vrot.slane %v9167_v33, %v14242_v29  ;;  %v9314_v2 = vrot.slane %v9306_v11, %v14242_v29 }
0x4075   : > { %v9137_v60 = vcombine.low %v9099_v22, %v9108_v10  ;;  %v9263_v0 = vmul.f32 0.03125, %v9239_v41  ;;  %v9138_v20 = vcombine.low %v9117_v35, %v9126_v56  ;;  %v9265_v17 = vmul.f32 0.03125, %v9257_v30 }
0x4077   : > { %v9159_v32 = vrot.slane %v9137_v60, %v14242_v29  ;;  %v9276_v37 = vcombine.low %v9262_v5, %v9263_v0  ;;  %v9166_v55 = vrot.slane %v9138_v20, %v14242_v29  ;;  %v9277_v24 = vcombine.low %v9264_v18, %v9265_v17 }
0x4079   : > { %v9298_v16 = vrot.slane %v9276_v37, %v14242_v29  ;;  %v9168_v13 = vcombine.low %v9159_v32, %v9166_v55  ;;  %v9305_v43 = vrot.slane %v9277_v24, %v14242_v29 }
0x407b   : > { %v9307_v52 = vcombine.low %v9298_v16, %v9305_v43  ;;  %v9182_v14 = vrot.slane %v9168_v13, %v14242_v29 }
0x407d   : > { %v9183_v48 = vcombine.low %v9175_v3, %v9182_v14  ;;  %v9321_v47 = vrot.slane %v9307_v52, %v14242_v29 }
0x407f   : > { %9185 = vst [vmem:[%s548_s14] sm:$0xff] %v9183_v48  ;;  %v9322_v19 = vcombine.low %v9314_v2, %v9321_v47 }
0x4081   : > { %9324 = vst [vmem:[%s548_s14 + $0x8] sm:$0xff] %v9322_v19 }
0x4082   : > { %11211 = shalt.err (!%p11208_p9)
}
0x4083   : > { %s11212_s23 = scalar_lea.hbm %s14287_s7, 256  ;;  %s11216_s29 = scalar_lea.hbm %s14500_s18, 512 }
0x4084   : > { %p11213_p10 = scmp.ne.s32.totalorder %s14287_s7, %s11212_s23  ;;  %p11217_p1 = scmp.lt.u32.totalorder %s14287_s7, %s14500_s18 }
0x4085   : > { %p11218_p2 = scmp.lt.u32.totalorder %s11216_s29, %s11212_s23  ;;  %p11220_p4 = scmp.lt.u32.totalorder %s11212_s23, %s14287_s7 }
0x4086   : > { %p11214_p13 = pnand %p11213_p10, %p14501_p7 }
0x4087   : > { %p11219_p3 = por %p11218_p2, %p11217_p1 }
0x4088   : > { %p11215_p12 = pneg %p11214_p13 }
0x4089   : > { %p11221_p8 = por %p11220_p4, %p11219_p3 }
0x408b   : > { %p11222_p11 = pnand %p11221_p8, %p11215_p12 }
0x408d   : > { %11225 = shalt.err (!%p11222_p11)
}
0x408e   : > { %10944 = dma.vmem_to_hbm [thread:$0]  (%p14501_p7), %s14289_s20, 256, %s14287_s7, %s9326_s17  }
0x408f PF: > { %s14502_s25 = sld [smem:[#allocation22_spill]]  ;;  %s14503_s26 = sld [smem:[#allocation19_spill]] }
0x4090   : > { %s14504_s14 = sld [smem:[#allocation26_spill]] }
0x4095   : > { %p10981_p5 = scmp.ge.s32.totalorder %s14502_s25, 2  ;;  %s9352_s19 = sand.u32 1, %s14503_s26  }
0x4096   : > { %p14505_p0 = scmp.ne.s32.totalorder %s14504_s14, 0  ;;  %s9353_s22 = scalar_lea.sflag [#allocation4], %s9352_s19 }
0x4098   : > { %p10966_p6 = pnand %p10981_p5, %p14505_p0 }
0x409a   : > { %11259 = dma.done.wait (!%p10966_p6), %s9353_s22, 256  }
0x409b   : > { %11261 = vsyncadd (!%p10966_p6), %s9353_s22, 4294967040  ;;  %s14506_s16 = sld [smem:[#allocation23_spill]]  ;;  %s14507_s29 = sld [smem:[#allocation20_spill]] }
0x409c   : > { %s14508_s30 = sld [smem:[#allocation21_spill]]  ;;  %s14509_s15 = sld [smem:[#allocation24_spill]] }
0x40a1   : > { %p28_p9 = scmp.ge.s32.totalorder %s14506_s16, 4  }
0x40a3   :  { %30 = sbr.rel (!%p28_p9) target bundleno = 12 (0xc), region = 136 }
0x40aa   :  { %9358 = vsyncpa [#allocation3], 1 }
0x40ab   :  { %9360 = vsyncpa [#allocation3 + $0x1], 1 }
0x40ac   :  { %9361 = vsyncpa [#allocation6], 1 }
0x40ad   :  { %9362 = vsyncpa [#allocation9], 1 }
0x40ae   :  { %9363 = vsyncpa [#allocation12], 1 }
0x40af   :  { %9364 = vsyncpa [#allocation4], 1 }
0x40b0   :  { %9366 = vsyncpa [#allocation4 + $0x1], 1 }

</bundles_post_ra>
